<compile_context>
chip_gen: v7x
topology: tpu7x:2x2x1
jax: 0.10.0
libtpu: 0.0.40
codegen_flags: <defaults>
</compile_context>

<pallas_src>
import math
from functools import partial

import jax
import jax.numpy as jnp
from jax import lax
from jax.experimental import pallas as pl
from jax.experimental.pallas import tpu as pltpu


def get_padding(kernel_size, dilation=1):
    return int((kernel_size * dilation - dilation) / 2)


def _unet_down_kernel(x_ref, w_ref, b_ref, gnw_ref, gnb_ref, a_ref, o_ref, *,
                      c_in, c_out, k, l, pad, gn, factor, same_channels,
                      gn_eps):
    """One batch tile: conv1d (pre-standardized weights) + GroupNorm + PReLU
    + residual + MaxPool1d."""
    bt = x_ref.shape[0]
    x = x_ref[...].astype(jnp.float32)                  # (bt, c_in, l)

    # ---- Conv1d, stride 1, 'same' padding (odd K) ------------------------
    # y[b, co, j] = sum_{kk, ci} W[co, ci, kk] * x[b, ci, j + kk - pad]
    # One batched MXU matmul per tap kk over the whole batch tile; the
    # per-tap lane shift is applied to the matmul *result* and out-of-range
    # positions are zeroed with a lane mask (implements the zero padding).
    lane = lax.broadcasted_iota(jnp.int32, (1, 1, l), 2)
    acc = jnp.zeros((bt, c_out, l), jnp.float32)
    for kk in range(k):
        wkk = jnp.broadcast_to(w_ref[kk][None], (bt, c_out, c_in))
        m = lax.dot_general(wkk, x, (((2,), (1,)), ((0,), (0,))),
                            preferred_element_type=jnp.float32)  # (bt,c_out,l)
        s = kk - pad                       # contrib[..., j] = m[..., j + s]
        if s == 0:
            contrib = m
        else:
            rolled = pltpu.roll(m, shift=(-s) % l, axis=2)
            if s > 0:
                contrib = jnp.where(lane < (l - s), rolled, 0.0)
            else:
                contrib = jnp.where(lane >= (-s), rolled, 0.0)
        acc = acc + contrib
    acc = acc + b_ref[...][None]                        # conv bias (1,c_out,1)

    # ---- GroupNorm(gn, c_out): per-(element, group) stats, two-pass ------
    gsize = c_out // gn
    inv_cnt = 1.0 / float(gsize * l)
    ch_idx = lax.broadcasted_iota(jnp.int32, (1, c_out, 1), 1)

    ch_sum = jnp.sum(acc, axis=2, keepdims=True)        # (bt, c_out, 1)
    mean = jnp.zeros((bt, c_out, 1), jnp.float32)
    for g in range(gn):
        msk = jnp.logical_and(ch_idx >= g * gsize, ch_idx < (g + 1) * gsize)
        g_mean = jnp.sum(jnp.where(msk, ch_sum, 0.0), axis=1,
                         keepdims=True) * inv_cnt       # (bt, 1, 1)
        mean = mean + jnp.where(msk, g_mean, 0.0)

    d = acc - mean
    ch_ss = jnp.sum(d * d, axis=2, keepdims=True)       # (bt, c_out, 1)
    rstd = jnp.zeros((bt, c_out, 1), jnp.float32)
    for g in range(gn):
        msk = jnp.logical_and(ch_idx >= g * gsize, ch_idx < (g + 1) * gsize)
        g_var = jnp.sum(jnp.where(msk, ch_ss, 0.0), axis=1,
                        keepdims=True) * inv_cnt        # (bt, 1, 1), biased
        rstd = rstd + jnp.where(msk, lax.rsqrt(g_var + gn_eps), 0.0)

    h = d * rstd * gnw_ref[...][None] + gnb_ref[...][None]

    # ---- PReLU (single shared slope, scalar read from SMEM) --------------
    a = a_ref[0, 0]
    h = jnp.where(h > 0, h, a * h)

    # ---- residual (only when in_channels == out_channels) ----------------
    if same_channels:
        h = (x + h) * 0.5

    # ---- MaxPool1d(kernel=stride=factor), floor behavior -----------------
    lt = (l // factor) * factor
    pooled = jnp.max(h[:, :, :lt].reshape(bt, c_out, lt // factor, factor),
                     axis=-1)
    o_ref[...] = pooled.astype(o_ref.dtype)


def unet_down(x, conv_w, conv_b, gn_w, gn_b, prelu_a, *, kernel_size, gn,
              factor=2, batch_tile=None):
    """x: (N, C_in, L) float32.  Returns (N, C_out, L // factor)."""
    n, c_in, l = x.shape
    c_out = conv_w.shape[0]
    k = kernel_size
    pad = get_padding(k)
    assert k % 2 == 1, "odd kernel_size keeps conv output length == L"
    assert c_out % gn == 0
    same_channels = (c_in == c_out)
    l_pool = l // factor

    # --- weight standardization hoisted out of the kernel (grid-invariant) ---
    ws_eps = 1e-5
    w32 = conv_w.astype(jnp.float32)
    w_mean = jnp.mean(w32, axis=(1, 2), keepdims=True)
    w_var = jnp.mean((w32 - w_mean) ** 2, axis=(1, 2), keepdims=True)  # biased
    nw = (w32 - w_mean) * lax.rsqrt(w_var + ws_eps)
    wt = jnp.transpose(nw, (2, 0, 1))          # (K, C_out, C_in); wt[kk]==W[:,:,kk]

    b2d = conv_b.reshape(c_out, 1).astype(jnp.float32)
    gnw2d = gn_w.reshape(c_out, 1).astype(jnp.float32)
    gnb2d = gn_b.reshape(c_out, 1).astype(jnp.float32)
    a2d = jnp.asarray(prelu_a, jnp.float32).reshape(1, 1)

    # --- batch tile: big enough to amortize per-step overhead, small enough
    #     for scoped VMEM; keep >=2 grid steps when there is enough work so
    #     both v7x TensorCores get a share (megacore via "parallel").
    if batch_tile is None:
        bt = min(n, 128)
        if n >= 8 and pl.cdiv(n, bt) < 2:
            bt = pl.cdiv(n, 2)
    else:
        bt = max(1, min(batch_tile, n))
    grid = (pl.cdiv(n, bt),)

    kernel = partial(_unet_down_kernel, c_in=c_in, c_out=c_out, k=k, l=l,
                     pad=pad, gn=gn, factor=factor,
                     same_channels=same_channels, gn_eps=1e-5)

    return pl.pallas_call(
        kernel,
        out_shape=jax.ShapeDtypeStruct((n, c_out, l_pool), x.dtype),
        grid=grid,
        in_specs=[
            pl.BlockSpec((bt, c_in, l), lambda i: (i, 0, 0)),         # x tile
            pl.BlockSpec((k, c_out, c_in), lambda i: (0, 0, 0)),      # weights
            pl.BlockSpec((c_out, 1), lambda i: (0, 0)),               # conv bias
            pl.BlockSpec((c_out, 1), lambda i: (0, 0)),               # gn weight
            pl.BlockSpec((c_out, 1), lambda i: (0, 0)),               # gn bias
            pl.BlockSpec(memory_space=pltpu.MemorySpace.SMEM),        # prelu a
        ],
        out_specs=pl.BlockSpec((bt, c_out, l_pool), lambda i: (i, 0, 0)),
        compiler_params=pltpu.CompilerParams(
            dimension_semantics=("parallel",)),
    )(x, wt, b2d, gnw2d, gnb2d, a2d)


def unet_down_ref(x, conv_w, conv_b, gn_w, gn_b, prelu_a, *, kernel_size, gn,
                  factor=2):
    """Pure-JAX reference mirroring the PyTorch forward pass."""
    pad = get_padding(kernel_size)
    eps = 1e-5
    mean = jnp.mean(conv_w, axis=(1, 2), keepdims=True)
    var = jnp.mean((conv_w - mean) ** 2, axis=(1, 2), keepdims=True)
    nw = (conv_w - mean) * lax.rsqrt(var + eps)
    y = lax.conv_general_dilated(x, nw, window_strides=(1,),
                                 padding=[(pad, pad)],
                                 dimension_numbers=("NCH", "OIH", "NCH"))
    y = y + conv_b[None, :, None]
    n, c, l = y.shape
    g = y.reshape(n, gn, c // gn, l)
    gm = jnp.mean(g, axis=(2, 3), keepdims=True)
    gv = jnp.mean((g - gm) ** 2, axis=(2, 3), keepdims=True)
    y = ((g - gm) * lax.rsqrt(gv + 1e-5)).reshape(n, c, l)
    y = y * gn_w[None, :, None] + gn_b[None, :, None]
    y = jnp.where(y > 0, y, prelu_a * y)
    if x.shape[1] == c:
        y = (x + y) / 2
    lt = (l // factor) * factor
    return jnp.max(y[:, :, :lt].reshape(n, c, lt // factor, factor), axis=-1)


if __name__ == "__main__":
    # UnetDown(in_channels=8, out_channels=8, kernel_size=3, gn=4, factor=2)
    N, C_IN, C_OUT, K, GN, FACTOR, L = 4, 8, 8, 3, 4, 2, 128

    key = jax.random.PRNGKey(0)
    kx, kw, kb = jax.random.split(key, 3)
    x = jax.random.normal(kx, (N, C_IN, L), dtype=jnp.float32)

    # deterministic parameter init (Conv1d-style uniform fan-in bound)
    bound = 1.0 / math.sqrt(C_IN * K)
    conv_w = jax.random.uniform(kw, (C_OUT, C_IN, K), jnp.float32, -bound, bound)
    conv_b = jax.random.uniform(kb, (C_OUT,), jnp.float32, -bound, bound)
    gn_w = jnp.ones((C_OUT,), jnp.float32)       # GroupNorm default affine
    gn_b = jnp.zeros((C_OUT,), jnp.float32)
    prelu_a = jnp.float32(0.25)                  # PReLU default slope

    out = unet_down(x, conv_w, conv_b, gn_w, gn_b, prelu_a,
                    kernel_size=K, gn=GN, factor=FACTOR)
    out = jax.block_until_ready(out)

    ref = unet_down_ref(x, conv_w, conv_b, gn_w, gn_b, prelu_a,
                        kernel_size=K, gn=GN, factor=FACTOR)
    assert out.shape == (N, C_OUT, L // FACTOR), out.shape
    assert jnp.allclose(out, ref, atol=1e-3, rtol=1e-3), \
        float(jnp.max(jnp.abs(out - ref)))

    print("KERNEL_OK")
</pallas_src>

<mosaic_0001>
module attributes {stable_mosaic.version = 11 : i64} {
  func.func @_unet_down_kernel(%arg0: i32, %arg1: memref<4x8x128xf32, #tpu.memory_space<vmem>>, %arg2: memref<3x8x8xf32, #tpu.memory_space<vmem>>, %arg3: memref<8x1xf32, #tpu.memory_space<vmem>>, %arg4: memref<8x1xf32, #tpu.memory_space<vmem>>, %arg5: memref<8x1xf32, #tpu.memory_space<vmem>>, %arg6: memref<1x1xf32, #tpu.memory_space<smem>>, %arg7: memref<4x8x64xf32, #tpu.memory_space<vmem>>) attributes {dimension_semantics = [#tpu.dimension_semantics<parallel>], iteration_bounds = array<i64: 1>, scalar_prefetch = 0 : i64, scratch_operands = 0 : i64, tpu.core_type = #tpu.core_type<tc>, window_params = [{transform_indices = @transform_0, window_bounds = array<i64: 4, 8, 128>}, {pipeline_mode = #tpu.pipeline_mode<synchronous>, transform_indices = @transform_1, window_bounds = array<i64: 3, 8, 8>}, {pipeline_mode = #tpu.pipeline_mode<synchronous>, transform_indices = @transform_2, window_bounds = array<i64: 8, 1>}, {pipeline_mode = #tpu.pipeline_mode<synchronous>, transform_indices = @transform_3, window_bounds = array<i64: 8, 1>}, {pipeline_mode = #tpu.pipeline_mode<synchronous>, transform_indices = @transform_4, window_bounds = array<i64: 8, 1>}, {transform_indices = @transform_5, window_bounds = array<i64: 1, 1>}, {transform_indices = @transform_6, window_bounds = array<i64: 4, 8, 64>}]} {
    %c0 = arith.constant 0 : index
    %c0_0 = arith.constant 0 : index
    %c0_1 = arith.constant 0 : index
    %0 = vector.load %arg1[%c0, %c0_0, %c0_1] : memref<4x8x128xf32, #tpu.memory_space<vmem>>, vector<4x8x128xf32>
    %1 = tpu.iota {dimensions = array<i32: 2>} : vector<1x1x128xi32>
    %cst = arith.constant 0.000000e+00 : f32
    %2 = vector.broadcast %cst : f32 to vector<4x8x128xf32>
    %c0_2 = arith.constant 0 : index
    %c0_3 = arith.constant 0 : index
    %c0_4 = arith.constant 0 : index
    %3 = vector.load %arg2[%c0_2, %c0_3, %c0_4] : memref<3x8x8xf32, #tpu.memory_space<vmem>>, vector<1x8x8xf32>
    %4 = vector.shape_cast %3 : vector<1x8x8xf32> to vector<8x8xf32>
    %5 = vector.shape_cast %4 : vector<8x8xf32> to vector<1x8x8xf32>
    %6 = vector.shape_cast %5 : vector<1x8x8xf32> to vector<1x8x8xf32>
    %7 = vector.broadcast %6 : vector<1x8x8xf32> to vector<4x8x8xf32>
    %cst_5 = arith.constant dense<0.000000e+00> : vector<4x8x128xf32>
    %8 = tpu.matmul %7, %0, %cst_5 {dimension_numbers = #tpu.dot_dimension_numbers<[2], [1], [1], [2], [0, 0, 0, 1, 1, 2], [0], [0]>} : vector<4x8x8xf32>, vector<4x8x128xf32>, vector<4x8x128xf32> -> vector<4x8x128xf32>
    %c1_i32 = arith.constant 1 : i32
    %9 = tpu.dynamic_rotate %8 by %c1_i32 dim 2 : vector<4x8x128xf32>, i32 -> vector<4x8x128xf32>
    %c1_i32_6 = arith.constant 1 : i32
    %10 = vector.broadcast %c1_i32_6 : i32 to vector<1x1x128xi32>
    %11 = arith.cmpi sge, %1, %10 : vector<1x1x128xi32>
    %cst_7 = arith.constant 0.000000e+00 : f32
    %12 = vector.shape_cast %11 : vector<1x1x128xi1> to vector<1x1x128xi1>
    %13 = vector.broadcast %12 : vector<1x1x128xi1> to vector<4x8x128xi1>
    %14 = vector.broadcast %cst_7 : f32 to vector<4x8x128xf32>
    %15 = arith.select %13, %9, %14 : vector<4x8x128xi1>, vector<4x8x128xf32>
    %16 = arith.addf %2, %15 : vector<4x8x128xf32>
    %c1 = arith.constant 1 : index
    %c0_8 = arith.constant 0 : index
    %c0_9 = arith.constant 0 : index
    %17 = vector.load %arg2[%c1, %c0_8, %c0_9] : memref<3x8x8xf32, #tpu.memory_space<vmem>>, vector<1x8x8xf32>
    %18 = vector.shape_cast %17 : vector<1x8x8xf32> to vector<8x8xf32>
    %19 = vector.shape_cast %18 : vector<8x8xf32> to vector<1x8x8xf32>
    %20 = vector.shape_cast %19 : vector<1x8x8xf32> to vector<1x8x8xf32>
    %21 = vector.broadcast %20 : vector<1x8x8xf32> to vector<4x8x8xf32>
    %cst_10 = arith.constant dense<0.000000e+00> : vector<4x8x128xf32>
    %22 = tpu.matmul %21, %0, %cst_10 {dimension_numbers = #tpu.dot_dimension_numbers<[2], [1], [1], [2], [0, 0, 0, 1, 1, 2], [0], [0]>} : vector<4x8x8xf32>, vector<4x8x128xf32>, vector<4x8x128xf32> -> vector<4x8x128xf32>
    %23 = arith.addf %16, %22 : vector<4x8x128xf32>
    %c2 = arith.constant 2 : index
    %c0_11 = arith.constant 0 : index
    %c0_12 = arith.constant 0 : index
    %24 = vector.load %arg2[%c2, %c0_11, %c0_12] : memref<3x8x8xf32, #tpu.memory_space<vmem>>, vector<1x8x8xf32>
    %25 = vector.shape_cast %24 : vector<1x8x8xf32> to vector<8x8xf32>
    %26 = vector.shape_cast %25 : vector<8x8xf32> to vector<1x8x8xf32>
    %27 = vector.shape_cast %26 : vector<1x8x8xf32> to vector<1x8x8xf32>
    %28 = vector.broadcast %27 : vector<1x8x8xf32> to vector<4x8x8xf32>
    %cst_13 = arith.constant dense<0.000000e+00> : vector<4x8x128xf32>
    %29 = tpu.matmul %28, %0, %cst_13 {dimension_numbers = #tpu.dot_dimension_numbers<[2], [1], [1], [2], [0, 0, 0, 1, 1, 2], [0], [0]>} : vector<4x8x8xf32>, vector<4x8x128xf32>, vector<4x8x128xf32> -> vector<4x8x128xf32>
    %c127_i32 = arith.constant 127 : i32
    %30 = tpu.dynamic_rotate %29 by %c127_i32 dim 2 : vector<4x8x128xf32>, i32 -> vector<4x8x128xf32>
    %c127_i32_14 = arith.constant 127 : i32
    %31 = vector.broadcast %c127_i32_14 : i32 to vector<1x1x128xi32>
    %32 = arith.cmpi slt, %1, %31 : vector<1x1x128xi32>
    %cst_15 = arith.constant 0.000000e+00 : f32
    %33 = vector.shape_cast %32 : vector<1x1x128xi1> to vector<1x1x128xi1>
    %34 = vector.broadcast %33 : vector<1x1x128xi1> to vector<4x8x128xi1>
    %35 = vector.broadcast %cst_15 : f32 to vector<4x8x128xf32>
    %36 = arith.select %34, %30, %35 : vector<4x8x128xi1>, vector<4x8x128xf32>
    %37 = arith.addf %23, %36 : vector<4x8x128xf32>
    %c0_16 = arith.constant 0 : index
    %c0_17 = arith.constant 0 : index
    %38 = vector.load %arg3[%c0_16, %c0_17] : memref<8x1xf32, #tpu.memory_space<vmem>>, vector<8x1xf32>
    %39 = vector.shape_cast %38 : vector<8x1xf32> to vector<1x8x1xf32>
    %40 = vector.broadcast %39 : vector<1x8x1xf32> to vector<4x8x128xf32>
    %41 = arith.addf %37, %40 : vector<4x8x128xf32>
    %42 = tpu.iota {dimensions = array<i32: 1>} : vector<1x8x1xi32>
    %cst_18 = arith.constant dense<0.000000e+00> : vector<4x8xf32>
    %43 = vector.multi_reduction <add>, %41, %cst_18 [2] : vector<4x8x128xf32> to vector<4x8xf32>
    %44 = vector.shape_cast %43 : vector<4x8xf32> to vector<4x8x1xf32>
    %cst_19 = arith.constant 0.000000e+00 : f32
    %45 = vector.broadcast %cst_19 : f32 to vector<4x8x1xf32>
    %c0_i32 = arith.constant 0 : i32
    %46 = vector.broadcast %c0_i32 : i32 to vector<1x8x1xi32>
    %47 = arith.cmpi sge, %42, %46 : vector<1x8x1xi32>
    %c2_i32 = arith.constant 2 : i32
    %48 = vector.broadcast %c2_i32 : i32 to vector<1x8x1xi32>
    %49 = arith.cmpi slt, %42, %48 : vector<1x8x1xi32>
    %50 = arith.andi %47, %49 : vector<1x8x1xi1>
    %cst_20 = arith.constant 0.000000e+00 : f32
    %51 = vector.shape_cast %50 : vector<1x8x1xi1> to vector<1x8x1xi1>
    %52 = vector.broadcast %51 : vector<1x8x1xi1> to vector<4x8x1xi1>
    %53 = vector.broadcast %cst_20 : f32 to vector<4x8x1xf32>
    %54 = arith.select %52, %44, %53 : vector<4x8x1xi1>, vector<4x8x1xf32>
    %cst_21 = arith.constant dense<0.000000e+00> : vector<4x1xf32>
    %55 = vector.multi_reduction <add>, %54, %cst_21 [1] : vector<4x8x1xf32> to vector<4x1xf32>
    %56 = vector.shape_cast %55 : vector<4x1xf32> to vector<4x1x1xf32>
    %cst_22 = arith.constant 3.906250e-03 : f32
    %57 = vector.broadcast %cst_22 : f32 to vector<4x1x1xf32>
    %58 = arith.mulf %56, %57 : vector<4x1x1xf32>
    %cst_23 = arith.constant 0.000000e+00 : f32
    %59 = vector.shape_cast %50 : vector<1x8x1xi1> to vector<1x8x1xi1>
    %60 = vector.broadcast %59 : vector<1x8x1xi1> to vector<4x8x1xi1>
    %61 = vector.shape_cast %58 : vector<4x1x1xf32> to vector<4x1x1xf32>
    %62 = vector.broadcast %61 : vector<4x1x1xf32> to vector<4x8x1xf32>
    %63 = vector.broadcast %cst_23 : f32 to vector<4x8x1xf32>
    %64 = arith.select %60, %62, %63 : vector<4x8x1xi1>, vector<4x8x1xf32>
    %65 = arith.addf %45, %64 : vector<4x8x1xf32>
    %c2_i32_24 = arith.constant 2 : i32
    %66 = vector.broadcast %c2_i32_24 : i32 to vector<1x8x1xi32>
    %67 = arith.cmpi sge, %42, %66 : vector<1x8x1xi32>
    %c4_i32 = arith.constant 4 : i32
    %68 = vector.broadcast %c4_i32 : i32 to vector<1x8x1xi32>
    %69 = arith.cmpi slt, %42, %68 : vector<1x8x1xi32>
    %70 = arith.andi %67, %69 : vector<1x8x1xi1>
    %cst_25 = arith.constant 0.000000e+00 : f32
    %71 = vector.shape_cast %70 : vector<1x8x1xi1> to vector<1x8x1xi1>
    %72 = vector.broadcast %71 : vector<1x8x1xi1> to vector<4x8x1xi1>
    %73 = vector.broadcast %cst_25 : f32 to vector<4x8x1xf32>
    %74 = arith.select %72, %44, %73 : vector<4x8x1xi1>, vector<4x8x1xf32>
    %cst_26 = arith.constant dense<0.000000e+00> : vector<4x1xf32>
    %75 = vector.multi_reduction <add>, %74, %cst_26 [1] : vector<4x8x1xf32> to vector<4x1xf32>
    %76 = vector.shape_cast %75 : vector<4x1xf32> to vector<4x1x1xf32>
    %cst_27 = arith.constant 3.906250e-03 : f32
    %77 = vector.broadcast %cst_27 : f32 to vector<4x1x1xf32>
    %78 = arith.mulf %76, %77 : vector<4x1x1xf32>
    %cst_28 = arith.constant 0.000000e+00 : f32
    %79 = vector.shape_cast %70 : vector<1x8x1xi1> to vector<1x8x1xi1>
    %80 = vector.broadcast %79 : vector<1x8x1xi1> to vector<4x8x1xi1>
    %81 = vector.shape_cast %78 : vector<4x1x1xf32> to vector<4x1x1xf32>
    %82 = vector.broadcast %81 : vector<4x1x1xf32> to vector<4x8x1xf32>
    %83 = vector.broadcast %cst_28 : f32 to vector<4x8x1xf32>
    %84 = arith.select %80, %82, %83 : vector<4x8x1xi1>, vector<4x8x1xf32>
    %85 = arith.addf %65, %84 : vector<4x8x1xf32>
    %c4_i32_29 = arith.constant 4 : i32
    %86 = vector.broadcast %c4_i32_29 : i32 to vector<1x8x1xi32>
    %87 = arith.cmpi sge, %42, %86 : vector<1x8x1xi32>
    %c6_i32 = arith.constant 6 : i32
    %88 = vector.broadcast %c6_i32 : i32 to vector<1x8x1xi32>
    %89 = arith.cmpi slt, %42, %88 : vector<1x8x1xi32>
    %90 = arith.andi %87, %89 : vector<1x8x1xi1>
    %cst_30 = arith.constant 0.000000e+00 : f32
    %91 = vector.shape_cast %90 : vector<1x8x1xi1> to vector<1x8x1xi1>
    %92 = vector.broadcast %91 : vector<1x8x1xi1> to vector<4x8x1xi1>
    %93 = vector.broadcast %cst_30 : f32 to vector<4x8x1xf32>
    %94 = arith.select %92, %44, %93 : vector<4x8x1xi1>, vector<4x8x1xf32>
    %cst_31 = arith.constant dense<0.000000e+00> : vector<4x1xf32>
    %95 = vector.multi_reduction <add>, %94, %cst_31 [1] : vector<4x8x1xf32> to vector<4x1xf32>
    %96 = vector.shape_cast %95 : vector<4x1xf32> to vector<4x1x1xf32>
    %cst_32 = arith.constant 3.906250e-03 : f32
    %97 = vector.broadcast %cst_32 : f32 to vector<4x1x1xf32>
    %98 = arith.mulf %96, %97 : vector<4x1x1xf32>
    %cst_33 = arith.constant 0.000000e+00 : f32
    %99 = vector.shape_cast %90 : vector<1x8x1xi1> to vector<1x8x1xi1>
    %100 = vector.broadcast %99 : vector<1x8x1xi1> to vector<4x8x1xi1>
    %101 = vector.shape_cast %98 : vector<4x1x1xf32> to vector<4x1x1xf32>
    %102 = vector.broadcast %101 : vector<4x1x1xf32> to vector<4x8x1xf32>
    %103 = vector.broadcast %cst_33 : f32 to vector<4x8x1xf32>
    %104 = arith.select %100, %102, %103 : vector<4x8x1xi1>, vector<4x8x1xf32>
    %105 = arith.addf %85, %104 : vector<4x8x1xf32>
    %c6_i32_34 = arith.constant 6 : i32
    %106 = vector.broadcast %c6_i32_34 : i32 to vector<1x8x1xi32>
    %107 = arith.cmpi sge, %42, %106 : vector<1x8x1xi32>
    %c8_i32 = arith.constant 8 : i32
    %108 = vector.broadcast %c8_i32 : i32 to vector<1x8x1xi32>
    %109 = arith.cmpi slt, %42, %108 : vector<1x8x1xi32>
    %110 = arith.andi %107, %109 : vector<1x8x1xi1>
    %cst_35 = arith.constant 0.000000e+00 : f32
    %111 = vector.shape_cast %110 : vector<1x8x1xi1> to vector<1x8x1xi1>
    %112 = vector.broadcast %111 : vector<1x8x1xi1> to vector<4x8x1xi1>
    %113 = vector.broadcast %cst_35 : f32 to vector<4x8x1xf32>
    %114 = arith.select %112, %44, %113 : vector<4x8x1xi1>, vector<4x8x1xf32>
    %cst_36 = arith.constant dense<0.000000e+00> : vector<4x1xf32>
    %115 = vector.multi_reduction <add>, %114, %cst_36 [1] : vector<4x8x1xf32> to vector<4x1xf32>
    %116 = vector.shape_cast %115 : vector<4x1xf32> to vector<4x1x1xf32>
    %cst_37 = arith.constant 3.906250e-03 : f32
    %117 = vector.broadcast %cst_37 : f32 to vector<4x1x1xf32>
    %118 = arith.mulf %116, %117 : vector<4x1x1xf32>
    %cst_38 = arith.constant 0.000000e+00 : f32
    %119 = vector.shape_cast %110 : vector<1x8x1xi1> to vector<1x8x1xi1>
    %120 = vector.broadcast %119 : vector<1x8x1xi1> to vector<4x8x1xi1>
    %121 = vector.shape_cast %118 : vector<4x1x1xf32> to vector<4x1x1xf32>
    %122 = vector.broadcast %121 : vector<4x1x1xf32> to vector<4x8x1xf32>
    %123 = vector.broadcast %cst_38 : f32 to vector<4x8x1xf32>
    %124 = arith.select %120, %122, %123 : vector<4x8x1xi1>, vector<4x8x1xf32>
    %125 = arith.addf %105, %124 : vector<4x8x1xf32>
    %126 = vector.broadcast %125 : vector<4x8x1xf32> to vector<4x8x128xf32>
    %127 = arith.subf %41, %126 : vector<4x8x128xf32>
    %128 = arith.mulf %127, %127 : vector<4x8x128xf32>
    %cst_39 = arith.constant dense<0.000000e+00> : vector<4x8xf32>
    %129 = vector.multi_reduction <add>, %128, %cst_39 [2] : vector<4x8x128xf32> to vector<4x8xf32>
    %130 = vector.shape_cast %129 : vector<4x8xf32> to vector<4x8x1xf32>
    %cst_40 = arith.constant 0.000000e+00 : f32
    %131 = vector.broadcast %cst_40 : f32 to vector<4x8x1xf32>
    %c0_i32_41 = arith.constant 0 : i32
    %132 = vector.broadcast %c0_i32_41 : i32 to vector<1x8x1xi32>
    %133 = arith.cmpi sge, %42, %132 : vector<1x8x1xi32>
    %c2_i32_42 = arith.constant 2 : i32
    %134 = vector.broadcast %c2_i32_42 : i32 to vector<1x8x1xi32>
    %135 = arith.cmpi slt, %42, %134 : vector<1x8x1xi32>
    %136 = arith.andi %133, %135 : vector<1x8x1xi1>
    %cst_43 = arith.constant 0.000000e+00 : f32
    %137 = vector.shape_cast %136 : vector<1x8x1xi1> to vector<1x8x1xi1>
    %138 = vector.broadcast %137 : vector<1x8x1xi1> to vector<4x8x1xi1>
    %139 = vector.broadcast %cst_43 : f32 to vector<4x8x1xf32>
    %140 = arith.select %138, %130, %139 : vector<4x8x1xi1>, vector<4x8x1xf32>
    %cst_44 = arith.constant dense<0.000000e+00> : vector<4x1xf32>
    %141 = vector.multi_reduction <add>, %140, %cst_44 [1] : vector<4x8x1xf32> to vector<4x1xf32>
    %142 = vector.shape_cast %141 : vector<4x1xf32> to vector<4x1x1xf32>
    %cst_45 = arith.constant 3.906250e-03 : f32
    %143 = vector.broadcast %cst_45 : f32 to vector<4x1x1xf32>
    %144 = arith.mulf %142, %143 : vector<4x1x1xf32>
    %cst_46 = arith.constant 9.99999974E-6 : f32
    %145 = vector.broadcast %cst_46 : f32 to vector<4x1x1xf32>
    %146 = arith.addf %144, %145 : vector<4x1x1xf32>
    %147 = math.rsqrt %146 : vector<4x1x1xf32>
    %cst_47 = arith.constant 0.000000e+00 : f32
    %148 = vector.shape_cast %136 : vector<1x8x1xi1> to vector<1x8x1xi1>
    %149 = vector.broadcast %148 : vector<1x8x1xi1> to vector<4x8x1xi1>
    %150 = vector.shape_cast %147 : vector<4x1x1xf32> to vector<4x1x1xf32>
    %151 = vector.broadcast %150 : vector<4x1x1xf32> to vector<4x8x1xf32>
    %152 = vector.broadcast %cst_47 : f32 to vector<4x8x1xf32>
    %153 = arith.select %149, %151, %152 : vector<4x8x1xi1>, vector<4x8x1xf32>
    %154 = arith.addf %131, %153 : vector<4x8x1xf32>
    %c2_i32_48 = arith.constant 2 : i32
    %155 = vector.broadcast %c2_i32_48 : i32 to vector<1x8x1xi32>
    %156 = arith.cmpi sge, %42, %155 : vector<1x8x1xi32>
    %c4_i32_49 = arith.constant 4 : i32
    %157 = vector.broadcast %c4_i32_49 : i32 to vector<1x8x1xi32>
    %158 = arith.cmpi slt, %42, %157 : vector<1x8x1xi32>
    %159 = arith.andi %156, %158 : vector<1x8x1xi1>
    %cst_50 = arith.constant 0.000000e+00 : f32
    %160 = vector.shape_cast %159 : vector<1x8x1xi1> to vector<1x8x1xi1>
    %161 = vector.broadcast %160 : vector<1x8x1xi1> to vector<4x8x1xi1>
    %162 = vector.broadcast %cst_50 : f32 to vector<4x8x1xf32>
    %163 = arith.select %161, %130, %162 : vector<4x8x1xi1>, vector<4x8x1xf32>
    %cst_51 = arith.constant dense<0.000000e+00> : vector<4x1xf32>
    %164 = vector.multi_reduction <add>, %163, %cst_51 [1] : vector<4x8x1xf32> to vector<4x1xf32>
    %165 = vector.shape_cast %164 : vector<4x1xf32> to vector<4x1x1xf32>
    %cst_52 = arith.constant 3.906250e-03 : f32
    %166 = vector.broadcast %cst_52 : f32 to vector<4x1x1xf32>
    %167 = arith.mulf %165, %166 : vector<4x1x1xf32>
    %cst_53 = arith.constant 9.99999974E-6 : f32
    %168 = vector.broadcast %cst_53 : f32 to vector<4x1x1xf32>
    %169 = arith.addf %167, %168 : vector<4x1x1xf32>
    %170 = math.rsqrt %169 : vector<4x1x1xf32>
    %cst_54 = arith.constant 0.000000e+00 : f32
    %171 = vector.shape_cast %159 : vector<1x8x1xi1> to vector<1x8x1xi1>
    %172 = vector.broadcast %171 : vector<1x8x1xi1> to vector<4x8x1xi1>
    %173 = vector.shape_cast %170 : vector<4x1x1xf32> to vector<4x1x1xf32>
    %174 = vector.broadcast %173 : vector<4x1x1xf32> to vector<4x8x1xf32>
    %175 = vector.broadcast %cst_54 : f32 to vector<4x8x1xf32>
    %176 = arith.select %172, %174, %175 : vector<4x8x1xi1>, vector<4x8x1xf32>
    %177 = arith.addf %154, %176 : vector<4x8x1xf32>
    %c4_i32_55 = arith.constant 4 : i32
    %178 = vector.broadcast %c4_i32_55 : i32 to vector<1x8x1xi32>
    %179 = arith.cmpi sge, %42, %178 : vector<1x8x1xi32>
    %c6_i32_56 = arith.constant 6 : i32
    %180 = vector.broadcast %c6_i32_56 : i32 to vector<1x8x1xi32>
    %181 = arith.cmpi slt, %42, %180 : vector<1x8x1xi32>
    %182 = arith.andi %179, %181 : vector<1x8x1xi1>
    %cst_57 = arith.constant 0.000000e+00 : f32
    %183 = vector.shape_cast %182 : vector<1x8x1xi1> to vector<1x8x1xi1>
    %184 = vector.broadcast %183 : vector<1x8x1xi1> to vector<4x8x1xi1>
    %185 = vector.broadcast %cst_57 : f32 to vector<4x8x1xf32>
    %186 = arith.select %184, %130, %185 : vector<4x8x1xi1>, vector<4x8x1xf32>
    %cst_58 = arith.constant dense<0.000000e+00> : vector<4x1xf32>
    %187 = vector.multi_reduction <add>, %186, %cst_58 [1] : vector<4x8x1xf32> to vector<4x1xf32>
    %188 = vector.shape_cast %187 : vector<4x1xf32> to vector<4x1x1xf32>
    %cst_59 = arith.constant 3.906250e-03 : f32
    %189 = vector.broadcast %cst_59 : f32 to vector<4x1x1xf32>
    %190 = arith.mulf %188, %189 : vector<4x1x1xf32>
    %cst_60 = arith.constant 9.99999974E-6 : f32
    %191 = vector.broadcast %cst_60 : f32 to vector<4x1x1xf32>
    %192 = arith.addf %190, %191 : vector<4x1x1xf32>
    %193 = math.rsqrt %192 : vector<4x1x1xf32>
    %cst_61 = arith.constant 0.000000e+00 : f32
    %194 = vector.shape_cast %182 : vector<1x8x1xi1> to vector<1x8x1xi1>
    %195 = vector.broadcast %194 : vector<1x8x1xi1> to vector<4x8x1xi1>
    %196 = vector.shape_cast %193 : vector<4x1x1xf32> to vector<4x1x1xf32>
    %197 = vector.broadcast %196 : vector<4x1x1xf32> to vector<4x8x1xf32>
    %198 = vector.broadcast %cst_61 : f32 to vector<4x8x1xf32>
    %199 = arith.select %195, %197, %198 : vector<4x8x1xi1>, vector<4x8x1xf32>
    %200 = arith.addf %177, %199 : vector<4x8x1xf32>
    %c6_i32_62 = arith.constant 6 : i32
    %201 = vector.broadcast %c6_i32_62 : i32 to vector<1x8x1xi32>
    %202 = arith.cmpi sge, %42, %201 : vector<1x8x1xi32>
    %c8_i32_63 = arith.constant 8 : i32
    %203 = vector.broadcast %c8_i32_63 : i32 to vector<1x8x1xi32>
    %204 = arith.cmpi slt, %42, %203 : vector<1x8x1xi32>
    %205 = arith.andi %202, %204 : vector<1x8x1xi1>
    %cst_64 = arith.constant 0.000000e+00 : f32
    %206 = vector.shape_cast %205 : vector<1x8x1xi1> to vector<1x8x1xi1>
    %207 = vector.broadcast %206 : vector<1x8x1xi1> to vector<4x8x1xi1>
    %208 = vector.broadcast %cst_64 : f32 to vector<4x8x1xf32>
    %209 = arith.select %207, %130, %208 : vector<4x8x1xi1>, vector<4x8x1xf32>
    %cst_65 = arith.constant dense<0.000000e+00> : vector<4x1xf32>
    %210 = vector.multi_reduction <add>, %209, %cst_65 [1] : vector<4x8x1xf32> to vector<4x1xf32>
    %211 = vector.shape_cast %210 : vector<4x1xf32> to vector<4x1x1xf32>
    %cst_66 = arith.constant 3.906250e-03 : f32
    %212 = vector.broadcast %cst_66 : f32 to vector<4x1x1xf32>
    %213 = arith.mulf %211, %212 : vector<4x1x1xf32>
    %cst_67 = arith.constant 9.99999974E-6 : f32
    %214 = vector.broadcast %cst_67 : f32 to vector<4x1x1xf32>
    %215 = arith.addf %213, %214 : vector<4x1x1xf32>
    %216 = math.rsqrt %215 : vector<4x1x1xf32>
    %cst_68 = arith.constant 0.000000e+00 : f32
    %217 = vector.shape_cast %205 : vector<1x8x1xi1> to vector<1x8x1xi1>
    %218 = vector.broadcast %217 : vector<1x8x1xi1> to vector<4x8x1xi1>
    %219 = vector.shape_cast %216 : vector<4x1x1xf32> to vector<4x1x1xf32>
    %220 = vector.broadcast %219 : vector<4x1x1xf32> to vector<4x8x1xf32>
    %221 = vector.broadcast %cst_68 : f32 to vector<4x8x1xf32>
    %222 = arith.select %218, %220, %221 : vector<4x8x1xi1>, vector<4x8x1xf32>
    %223 = arith.addf %200, %222 : vector<4x8x1xf32>
    %224 = vector.broadcast %223 : vector<4x8x1xf32> to vector<4x8x128xf32>
    %225 = arith.mulf %127, %224 : vector<4x8x128xf32>
    %c0_69 = arith.constant 0 : index
    %c0_70 = arith.constant 0 : index
    %226 = vector.load %arg4[%c0_69, %c0_70] : memref<8x1xf32, #tpu.memory_space<vmem>>, vector<8x1xf32>
    %227 = vector.shape_cast %226 : vector<8x1xf32> to vector<1x8x1xf32>
    %228 = vector.broadcast %227 : vector<1x8x1xf32> to vector<4x8x128xf32>
    %229 = arith.mulf %225, %228 : vector<4x8x128xf32>
    %c0_71 = arith.constant 0 : index
    %c0_72 = arith.constant 0 : index
    %230 = vector.load %arg5[%c0_71, %c0_72] : memref<8x1xf32, #tpu.memory_space<vmem>>, vector<8x1xf32>
    %231 = vector.shape_cast %230 : vector<8x1xf32> to vector<1x8x1xf32>
    %232 = vector.broadcast %231 : vector<1x8x1xf32> to vector<4x8x128xf32>
    %233 = arith.addf %229, %232 : vector<4x8x128xf32>
    %c0_73 = arith.constant 0 : index
    %c0_74 = arith.constant 0 : index
    %234 = memref.load %arg6[%c0_73, %c0_74] : memref<1x1xf32, #tpu.memory_space<smem>>
    %cst_75 = arith.constant 0.000000e+00 : f32
    %235 = vector.broadcast %cst_75 : f32 to vector<4x8x128xf32>
    %236 = arith.cmpf ogt, %233, %235 : vector<4x8x128xf32>
    %237 = vector.broadcast %234 : f32 to vector<4x8x128xf32>
    %238 = arith.mulf %237, %233 : vector<4x8x128xf32>
    %239 = arith.select %236, %233, %238 : vector<4x8x128xi1>, vector<4x8x128xf32>
    %240 = arith.addf %0, %239 : vector<4x8x128xf32>
    %cst_76 = arith.constant 5.000000e-01 : f32
    %241 = vector.broadcast %cst_76 : f32 to vector<4x8x128xf32>
    %242 = arith.mulf %240, %241 : vector<4x8x128xf32>
    %243 = vector.shape_cast %242 : vector<4x8x128xf32> to vector<4x8x64x2xf32>
    %cst_77 = arith.constant dense<0xFF800000> : vector<4x8x64xf32>
    %244 = vector.multi_reduction <maximumf>, %243, %cst_77 [3] : vector<4x8x64x2xf32> to vector<4x8x64xf32>
    %c0_78 = arith.constant 0 : index
    %c0_79 = arith.constant 0 : index
    %c0_80 = arith.constant 0 : index
    %245 = vector.load %arg7[%c0_78, %c0_79, %c0_80] : memref<4x8x64xf32, #tpu.memory_space<vmem>>, vector<4x8x64xf32>
    tpu.vector_store %arg7[%c0_78, %c0_79, %c0_80], %244 {strides = array<i32>} : memref<4x8x64xf32, #tpu.memory_space<vmem>>, vector<4x8x64xf32>,
    return
  }
  func.func @transform_0(%arg0: i32) -> (i32, i32, i32) {
    %c0_i32 = arith.constant 0 : i32
    %c0_i32_0 = arith.constant 0 : i32
    %c0_i32_1 = arith.constant 0 : i32
    return %arg0, %c0_i32, %c0_i32_0 : i32, i32, i32
  }
  func.func @transform_1(%arg0: i32) -> (i32, i32, i32) {
    %c0_i32 = arith.constant 0 : i32
    %c0_i32_0 = arith.constant 0 : i32
    %c0_i32_1 = arith.constant 0 : i32
    %c0_i32_2 = arith.constant 0 : i32
    return %c0_i32, %c0_i32_0, %c0_i32_1 : i32, i32, i32
  }
  func.func @transform_2(%arg0: i32) -> (i32, i32) {
    %c0_i32 = arith.constant 0 : i32
    %c0_i32_0 = arith.constant 0 : i32
    %c0_i32_1 = arith.constant 0 : i32
    return %c0_i32, %c0_i32_0 : i32, i32
  }
  func.func @transform_3(%arg0: i32) -> (i32, i32) {
    %c0_i32 = arith.constant 0 : i32
    %c0_i32_0 = arith.constant 0 : i32
    %c0_i32_1 = arith.constant 0 : i32
    return %c0_i32, %c0_i32_0 : i32, i32
  }
  func.func @transform_4(%arg0: i32) -> (i32, i32) {
    %c0_i32 = arith.constant 0 : i32
    %c0_i32_0 = arith.constant 0 : i32
    %c0_i32_1 = arith.constant 0 : i32
    return %c0_i32, %c0_i32_0 : i32, i32
  }
  func.func @transform_5(%arg0: i32) -> (i32, i32) {
    %c0_i32 = arith.constant 0 : i32
    %c0_i32_0 = arith.constant 0 : i32
    %c0_i32_1 = arith.constant 0 : i32
    return %c0_i32, %c0_i32_0 : i32, i32
  }
  func.func @transform_6(%arg0: i32) -> (i32, i32, i32) {
    %c0_i32 = arith.constant 0 : i32
    %c0_i32_0 = arith.constant 0 : i32
    %c0_i32_1 = arith.constant 0 : i32
    return %arg0, %c0_i32, %c0_i32_0 : i32, i32, i32
  }
}

</mosaic_0001>

<bundles_post_ra>
// kernel: tpu_custom_call.1
= control target key start
LH: loop header
LB: loop body
LE: loop exit
PB: predicated region body
PF: predicated region fallthrough
CT: control target
= control target key end

     0   :  { %12 = vsyncpa [#allocation4], 0  ;;  %s14707_s0 = inlined_call_operand.hbm [shape: f32[4,8,128], index: 0, kind: input, shape index: {}]   ;;  %s14708_s1 = inlined_call_operand.vmem [shape: f32[3,8,8], index: 1, kind: input, shape index: {}]   ;;  %s14709_s2 = inlined_call_operand.vmem [shape: f32[8,1], index: 2, kind: input, shape index: {}]   ;;  %s14710_s3 = inlined_call_operand.vmem [shape: f32[8,1], index: 3, kind: input, shape index: {}]   ;;  %s14711_s4 = inlined_call_operand.vmem [shape: f32[8,1], index: 4, kind: input, shape index: {}]   ;;  %s14712_s5 = inlined_call_operand.<no memory space> [shape: f32[1,1], index: 5, kind: input, shape index: {}]   ;;  %s14713_s6 = inlined_call_operand.hbm [shape: f32[4,8,64], index: 6, kind: output, shape index: {}]  }
   0x1   :  { %13 = vsyncpa [#allocation5], 0  ;;  %s9111_s21 = smov [#allocation3]   ;;  %s9063_s25 = scalar_lea.hbm %s14707_s0, 512 }
   0x2   :  { %s19_s22 = sshll.u32 %s9111_s21, 4  ;;  %p9064_p0 = scmp.ne.s32.totalorder %s14707_s0, %s9063_s25  ;;  %s20_s22 = int_to_ptr.vmem [resolvable:$true] %s19_s22 }
   0x3   :  { %p9067_p1 = scmp.lt.u32.totalorder %s9063_s25, %s14707_s0 }
   0x5   :  { %p9069_p2 = pnand %p9067_p1, %p9064_p0 }
   0x7   :  { %9072 = shalt.err (!%p9069_p2)
}
   0x8   :  { %s9073_s30 = scalar_lea.vmem %s20_s22, 512  ;;  %p9078_p4 = scmp.lt.s32.totalorder %s20_s22, %s20_s22 }
   0x9   :  { %p9074_p3 = scmp.ne.s32.totalorder %s20_s22, %s9073_s30  ;;  %p9079_p5 = scmp.lt.s32.totalorder %s9073_s30, %s9073_s30 }
   0xb   :  { %p9080_p6 = por %p9079_p5, %p9078_p4 }
   0xd   :  { %p9081_p7 = pnand %p9080_p6, %p9074_p3 }
   0xf   :  { %9084 = shalt.err (!%p9081_p7)
}
  0x10   :  { %s14714_s7 = smov 128   ;;  %s9113_s8 = smov 8  }
  0x11   :  { %25 = dma.hbm_to_vmem [thread:$0]  %s14707_s0, 512, %s20_s22, [#allocation4], %s14714_s7, %s14714_s7, %s9113_s8  }
  0x12   :  { %9107 = dma.done.wait [#allocation4], 512  }
  0x13   :  { %9108 = vsyncadd [#allocation4], 4294966784  ;;  %v9114_v0 = vmov 0.0   ;;  %vm9115_vm0 = vmmov 0   ;;  %v9116_v1 = vmov 0   ;;  %vm46_vm1 = vcmask 64512  }
  0x14   :  { %8894 = vmatprep.subr.mxu0 %v9114_v0  ;;  %8899 = vmatprep.subr.mxu1 %v9114_v0  ;;  %v9236_v2 = vld [vmem:[#allocation3] sm:$0xff]  ;;  %v9238_v3 = vld [vmem:[#allocation3 + $0x8] sm:$0xff]  ;;  %v41_v5 = vld [vmem:[#allocation3 + $0x10] sm:$0xff]  ;;  %v43_v39 = vlaneseq  ;;  %s9120_s22 = smov 124   ;;  %s9121_s23 = smov 122  }
  0x15   :  { %8896 = vmatprep.mubr.msk.f32.mxu0 %vm9115_vm0, %v9114_v0  ;;  %8901 = vmatprep.mubr.msk.f32.mxu1 %vm9115_vm0, %v9114_v0  ;;  %v45_v4 = vld [vmem:[%s14708_s1] sm:$0xff]  ;;  %v42_v6 = vld [vmem:[#allocation3 + $0x18] sm:$0xff]  ;;  %v8860_v7 = vld [vmem:[%s14708_s1 + $0x8] sm:$0xff]  ;;  %s9122_s24 = smov 120   ;;  %s9123_s25 = smov 118  }
  0x16   :  { %9027 = vset.pattern.permute.xlu0 %v9116_v1  ;;  %9028 = vset.pattern.permute.xlu1 %v9116_v1  ;;  %v8865_v8 = vld [vmem:[%s14708_s1 + $0x10] sm:$0xff]  ;;  %v942_v9 = vld [vmem:[%s14709_s2] sm:$0xff]  ;;  %s9117_s2 = smov 1   ;;  %v9290_v41 = vand.u32 127, %v43_v39  ;;  %s9124_s26 = smov 116  }
  0x17   :  { %8895 = vmatpush3.msra.mxu0 %v9236_v2  ;;  %8900 = vmatpush3.msra.mxu1 %v9238_v3  ;;  %v1354_v10 = vld [vmem:[%s14710_s3] sm:$0xff]  ;;  %s9118_s3 = smov 127   ;;  %s9125_s27 = smov 114  }
  0x18   :  { %8897 = vmatmul.mubr.msk.f32.vlgmr.msra.gmra.mrb[0].mxu0 %vm46_vm1, %v45_v4  ;;  %8902 = vmatmul.mubr.msk.f32.vlgmr.msra.gmra.mrb[0].mxu1 %vm46_vm1, %v45_v4  ;;  %v1364_v11 = vld [vmem:[%s14711_s4] sm:$0xff]  ;;  %15154 = vst [vmem:[#allocation9_spill] sm:$0xff] %v9290_v41  ;;  %vm338_vm2 = vcmp.ge.s32.totalorder %v9290_v41, 1  ;;  %vm931_vm3 = vcmp.lt.s32.totalorder %v9290_v41, 127  ;;  %s9126_s28 = smov 112   ;;  %s9127_s29 = smov 110  }
  0x19   :  { %8904 = vmatprep.subr.mxu0 %v9114_v0  ;;  %8909 = vmatprep.subr.mxu1 %v9114_v0  ;;  %s9128_s30 = smov 108   ;;  %s9129_s9 = smov 106  }
  0x1a   :  { %8905 = vmatpush3.msra.mxu0 %v41_v5  ;;  %8906 = vmatprep.mubr.msk.f32.mxu0 %vm9115_vm0, %v9114_v0  ;;  %s9130_s10 = smov 104   ;;  %s9131_s11 = smov 102  }
  0x1b   :  { %8910 = vmatpush3.msra.mxu1 %v42_v6  ;;  %8911 = vmatprep.mubr.msk.f32.mxu1 %vm9115_vm0, %v9114_v0  ;;  %s9132_s0 = smov 100   ;;  %s9133_s12 = smov 98  }
  0x1c   :  { %8907 = vmatmul.mubr.msk.f32.vlgmr.msra.gmra.mrb[2].mxu0 %vm46_vm1, %v45_v4  ;;  %8912 = vmatmul.mubr.msk.f32.vlgmr.msra.gmra.mrb[2].mxu1 %vm46_vm1, %v45_v4  ;;  %s9134_s13 = smov 96   ;;  %s9135_s14 = smov 94  }
  0x1d   :  { %8914 = vmatprep.subr.mxu0 %v9114_v0  ;;  %8919 = vmatprep.subr.mxu1 %v9114_v0  ;;  %s9136_s15 = smov 92   ;;  %s9137_s16 = smov 90  }
  0x1e   :  { %8915 = vmatpush3.msra.mxu0 %v9236_v2  ;;  %8916 = vmatprep.mubr.msk.f32.mxu0 %vm9115_vm0, %v9114_v0  ;;  %s9138_s17 = smov 88   ;;  %s9139_s1 = smov 86  }
  0x1f   :  { %8920 = vmatpush3.msra.mxu1 %v9238_v3  ;;  %8921 = vmatprep.mubr.msk.f32.mxu1 %vm9115_vm0, %v9114_v0  ;;  %s9140_s18 = smov 84   ;;  %s9141_s19 = smov 82  }
  0x20   :  { %8917 = vmatmul.mubr.msk.f32.vlgmr.msra.gmra.mrb[4].mxu0 %vm46_vm1, %v8860_v7  ;;  %8922 = vmatmul.mubr.msk.f32.vlgmr.msra.gmra.mrb[4].mxu1 %vm46_vm1, %v8860_v7  ;;  %s14715_s20 = smov 80   ;;  %s14719_s4 = smov 74  }
  0x21   :  { %8924 = vmatprep.subr.mxu0 %v9114_v0  ;;  %8929 = vmatprep.subr.mxu1 %v9114_v0  ;;  %s14721_s21 = smov 72   ;;  %s14723_s7 = smov 70  }
  0x22   :  { %8925 = vmatpush3.msra.mxu0 %v41_v5  ;;  %8926 = vmatprep.mubr.msk.f32.mxu0 %vm9115_vm0, %v9114_v0 }
  0x23   :  { %8930 = vmatpush3.msra.mxu1 %v42_v6  ;;  %8931 = vmatprep.mubr.msk.f32.mxu1 %vm9115_vm0, %v9114_v0 }
  0x24   :  { %8927 = vmatmul.mubr.msk.f32.vlgmr.msra.gmra.mrb[6].mxu0 %vm46_vm1, %v8860_v7  ;;  %8932 = vmatmul.mubr.msk.f32.vlgmr.msra.gmra.mrb[6].mxu1 %vm46_vm1, %v8860_v7  ;;  %v9314_v7 = vshrl.u32 %v43_v39, 7 }
  0x25   :  { %8934 = vmatprep.subr.mxu0 %v9114_v0  ;;  %8939 = vmatprep.subr.mxu1 %v9114_v0 }
  0x26   :  { %8935 = vmatpush3.msra.mxu0 %v9236_v2  ;;  %8936 = vmatprep.mubr.msk.f32.mxu0 %vm9115_vm0, %v9114_v0  ;;  %15155 = vst [vmem:[#allocation10_spill] sm:$0xff] %v9314_v7  ;;  %vm1007_vm4 = vcmp.ge.s32.totalorder %v9314_v7, 2  ;;  %vm1008_vm5 = vcmp.lt.s32.totalorder %v9314_v7, 4  ;;  %vm1052_vm6 = vcmp.ge.s32.totalorder %v9314_v7, 4  ;;  %vm1053_vm7 = vcmp.lt.s32.totalorder %v9314_v7, 6 }
  0x27   :  { %8940 = vmatpush3.msra.mxu1 %v9238_v3  ;;  %8941 = vmatprep.mubr.msk.f32.mxu1 %vm9115_vm0, %v9114_v0  ;;  %vm9320_vm8 = vmand %vm1007_vm4, %vm1008_vm5  ;;  %vm963_vm9 = vcmp.lt.s32.totalorder %v9314_v7, 2  ;;  %vm1097_vm11 = vcmp.ge.s32.totalorder %v9314_v7, 6  ;;  %vm7563_vm4 = vcmask 326912   ;;  %vm7570_vm5 = vcmask 392512  }
  0x28   :  { %8937 = vmatmul.mubr.msk.f32.vlgmr.msra.gmra.mrb[8].mxu0 %vm46_vm1, %v8865_v8  ;;  %8942 = vmatmul.mubr.msk.f32.vlgmr.msra.gmra.mrb[8].mxu1 %vm46_vm1, %v8865_v8  ;;  %vm9325_vm10 = vmand %vm1052_vm6, %vm1053_vm7  ;;  %vm7577_vm6 = vcmask 458112   ;;  %vm7584_vm7 = vcmask 523712  }
  0x29   :  { %8944 = vmatprep.subr.mxu0 %v9114_v0  ;;  %8949 = vmatprep.subr.mxu1 %v9114_v0 }
  0x2a   :  { %8945 = vmatpush3.msra.mxu0 %v41_v5  ;;  %8946 = vmatprep.mubr.msk.f32.mxu0 %vm9115_vm0, %v9114_v0 }
  0x2b   :  { %8950 = vmatpush3.msra.mxu1 %v42_v6  ;;  %8951 = vmatprep.mubr.msk.f32.mxu1 %vm9115_vm0, %v9114_v0  ;;  %vm6508_vm0 = vcmask 15360  }
  0x2c   :  { %8947 = vmatmul.mubr.msk.f32.vlgmr.msra.gmra.mrb[10].mxu0 %vm46_vm1, %v8865_v8  ;;  %8952 = vmatmul.mubr.msk.f32.vlgmr.msra.gmra.mrb[10].mxu1 %vm46_vm1, %v8865_v8  ;;  %vm7542_vm1 = vcmask 130112  }
  0x2d   :  { %945 = vperm.xlu0 %9027, %v942_v9   ;;  %1357 = vperm.xlu1 %9028, %v1354_v10  }
  0x31   :  { %1367 = vperm.xlu0 %9027, %v1364_v11  }
  0xac   :  { %v946_v36 = vpop.permute.xlu0 %945  ;;  %v9288_v38 = vpop.permute.xlu1 %1357 }
  0xb0   :  { %v9286_v37 = vpop.permute.xlu0 %1367 }
  0xeb   :  { %v116_v12 = vpop.f32.mrb[0].mxu0  ;;  %v186_v13 = vpop.f32.mrb[0].mxu1 }
  0xec   :  { %330 = vrot.lane.b32.xlu0 %v116_v12, %s9117_s2  ;;  %v8898_v14 = vpop.f32.mrb[1].mxu0  ;;  %v8903_v15 = vpop.f32.mrb[1].mxu1 }
  0xef   :  { %v256_v16 = vpop.f32.mrb[2].mxu0  ;;  %v326_v17 = vpop.f32.mrb[2].mxu1 }
  0xf0   :  { %332 = vrot.lane.b32.xlu0 %v186_v13, %s9117_s2  ;;  %334 = vrot.lane.b32.xlu1 %v256_v16, %s9117_s2  ;;  %v8908_v18 = vpop.f32.mrb[3].mxu0  ;;  %v8913_v19 = vpop.f32.mrb[3].mxu1 }
  0xf3   :  { %v420_v20 = vpop.f32.mrb[4].mxu0  ;;  %v490_v21 = vpop.f32.mrb[4].mxu1 }
  0xf4   :  { %336 = vrot.lane.b32.xlu1 %v326_v17, %s9117_s2  ;;  %v8918_v22 = vpop.f32.mrb[5].mxu0  ;;  %v8923_v23 = vpop.f32.mrb[5].mxu1  ;;  %s9143_s2 = smov 78  }
  0xf7   :  { %v560_v24 = vpop.f32.mrb[6].mxu0  ;;  %v630_v25 = vpop.f32.mrb[6].mxu1 }
  0xf8   :  { %v8928_v26 = vpop.f32.mrb[7].mxu0  ;;  %v8933_v27 = vpop.f32.mrb[7].mxu1 }
  0xfb   :  { %v709_v28 = vpop.f32.mrb[8].mxu0  ;;  %v779_v29 = vpop.f32.mrb[8].mxu1 }
  0xfc   :  { %925 = vrot.lane.b32.xlu1 %v779_v29, %s9118_s3  ;;  %923 = vrot.lane.b32.xlu0 %v709_v28, %s9118_s3  ;;  %v8938_v30 = vpop.f32.mrb[9].mxu0  ;;  %v8943_v31 = vpop.f32.mrb[9].mxu1 }
  0xff   :  { %v849_v32 = vpop.f32.mrb[10].mxu0  ;;  %v919_v33 = vpop.f32.mrb[10].mxu1 }
 0x100   :  { %929 = vrot.lane.b32.xlu1 %v919_v33, %s9118_s3  ;;  %927 = vrot.lane.b32.xlu0 %v849_v32, %s9118_s3  ;;  %v8953_v34 = vpop.f32.mrb[11].mxu1  ;;  %v8948_v35 = vpop.f32.mrb[11].mxu0  ;;  %s14717_s3 = smov 76  }
 0x15e   :  { %v331_v40 = vpop.permute.xlu0 %330 }
 0x15f   :  { %v341_v45 = vsel %vm338_vm2, %v331_v40, 0.0 }
 0x160   :  { %v634_v47 = vadd.f32 %v420_v20, %v341_v45 }
 0x162   :  { %v335_v42 = vpop.permute.xlu1 %334  ;;  %v333_v43 = vpop.permute.xlu0 %332 }
 0x163   :  { %v342_v46 = vsel %vm338_vm2, %v333_v43, 0.0  ;;  %v343_v51 = vsel %vm338_vm2, %v335_v42, 0.0 }
 0x164   :  { %v635_v48 = vadd.f32 %v490_v21, %v342_v46  ;;  %v636_v57 = vadd.f32 %v560_v24, %v343_v51 }
 0x166   :  { %v337_v44 = vpop.permute.xlu1 %336 }
 0x167   :  { %v344_v52 = vsel %vm338_vm2, %v337_v44, 0.0  ;;  %vm7549_vm2 = vcmask 195712  }
 0x168   :  { %v637_v58 = vadd.f32 %v630_v25, %v344_v52 }
 0x16e   :  { %v926_v49 = vpop.permute.xlu1 %925  ;;  %v924_v50 = vpop.permute.xlu0 %923 }
 0x16f   :  { %v935_v53 = vsel %vm931_vm3, %v926_v49, 0.0  ;;  %v934_v54 = vsel %vm931_vm3, %v924_v50, 0.0 }
 0x170   :  { %v939_v55 = vadd.f32 %v935_v53, %v635_v48  ;;  %v938_v56 = vadd.f32 %v934_v54, %v634_v47 }
 0x172   :  { %v930_v59 = vpop.permute.xlu1 %929  ;;  %v928_v60 = vpop.permute.xlu0 %927  ;;  %v9298_v61 = vadd.f32 %v946_v36, %v938_v56  ;;  %v9300_v62 = vadd.f32 %v946_v36, %v939_v55 }
 0x173   :  { %v937_v63 = vsel %vm931_vm3, %v930_v59, 0.0  ;;  %v936_v0 = vsel %vm931_vm3, %v928_v60, 0.0  ;;  %vm7556_vm3 = vcmask 261312  }
 0x174   :  { %v941_v1 = vadd.f32 %v937_v63, %v637_v58  ;;  %v940_v4 = vadd.f32 %v936_v0, %v636_v57  ;;  %954 = vadd.xlane.f32.xlu1 %v9298_v61  ;;  %956 = vadd.xlane.f32.xlu0 %v9300_v62 }
 0x176   :  { %v9308_v5 = vadd.f32 %v946_v36, %v941_v1  ;;  %v9310_v6 = vadd.f32 %v946_v36, %v940_v4 }
 0x178   :  { %960 = vadd.xlane.f32.xlu0 %v9308_v5  ;;  %958 = vadd.xlane.f32.xlu1 %v9310_v6 }
 0x201   :  { %v955_v10 = vpop.xlane.xlu1 %954  ;;  %v957_v11 = vpop.xlane.xlu0 %956 }
 0x202   :  { %v967_v12 = vsel %vm963_vm9, %v955_v10, 0.0  ;;  %v1012_v13 = vsel %vm9320_vm8, %v955_v10, 0.0  ;;  %v1057_v14 = vsel %vm9325_vm10, %v955_v10, 0.0  ;;  %v1102_v15 = vsel %vm1097_vm11, %v955_v10, 0.0 }
 0x203   :  { %v971_v16 = vrot.slane %v967_v12, 4  ;;  %v1016_v17 = vrot.slane %v1012_v13, 4  ;;  %v1061_v18 = vrot.slane %v1057_v14, 4  ;;  %v1106_v19 = vrot.slane %v1102_v15, 4 }
 0x204   :  { %v968_v20 = vsel %vm963_vm9, %v957_v11, 0.0  ;;  %v1013_v21 = vsel %vm9320_vm8, %v957_v11, 0.0  ;;  %v1058_v22 = vsel %vm9325_vm10, %v957_v11, 0.0  ;;  %v1103_v23 = vsel %vm1097_vm11, %v957_v11, 0.0 }
 0x205   :  { %v972_v24 = vadd.f32 %v971_v16, %v967_v12  ;;  %v1017_v25 = vadd.f32 %v1016_v17, %v1012_v13  ;;  %v1062_v26 = vadd.f32 %v1061_v18, %v1057_v14  ;;  %v9346_v27 = vadd.f32 %v1106_v19, %v1102_v15  ;;  %v959_v32 = vpop.xlane.xlu1 %958  ;;  %v961_v52 = vpop.xlane.xlu0 %960 }
 0x206   :  { %v977_v28 = vrot.slane %v968_v20, 4  ;;  %v1022_v29 = vrot.slane %v1013_v21, 4  ;;  %v1067_v30 = vrot.slane %v1058_v22, 4  ;;  %v1112_v31 = vrot.slane %v1103_v23, 4 }
 0x207   :  { %v973_v33 = vrot.slane %v972_v24, 2  ;;  %v1018_v34 = vrot.slane %v1017_v25, 2  ;;  %v1063_v35 = vrot.slane %v1062_v26, 2  ;;  %v1108_v36 = vrot.slane %v9346_v27, 2 }
 0x208   :  { %v978_v39 = vadd.f32 %v977_v28, %v968_v20  ;;  %v1023_v40 = vadd.f32 %v1022_v29, %v1013_v21  ;;  %v1068_v42 = vadd.f32 %v1067_v30, %v1058_v22  ;;  %v9349_v43 = vadd.f32 %v1112_v31, %v1103_v23 }
 0x209   :  { %v974_v44 = vadd.f32 %v973_v33, %v972_v24  ;;  %v1019_v45 = vadd.f32 %v1018_v34, %v1017_v25  ;;  %v1064_v46 = vadd.f32 %v1063_v35, %v1062_v26  ;;  %v969_v47 = vsel %vm963_vm9, %v959_v32, 0.0 }
 0x20a   :  { %v979_v48 = vrot.slane %v978_v39, 2  ;;  %v1024_v49 = vrot.slane %v1023_v40, 2  ;;  %v1069_v50 = vrot.slane %v1068_v42, 2  ;;  %v1114_v51 = vrot.slane %v9349_v43, 2 }
 0x20b   :  { %v975_v53 = vrot.slane %v974_v44, 1  ;;  %v1020_v54 = vrot.slane %v1019_v45, 1  ;;  %v983_v55 = vrot.slane %v969_v47, 4  ;;  %v1014_v56 = vsel %vm9320_vm8, %v959_v32, 0.0 }
 0x20c   :  { %v980_v57 = vadd.f32 %v979_v48, %v978_v39  ;;  %v1025_v58 = vadd.f32 %v1024_v49, %v1023_v40  ;;  %v9356_v59 = vadd.f32 %v1069_v50, %v1068_v42  ;;  %v1028_v60 = vrot.slane %v1014_v56, 4 }
 0x20d   :  { %v984_v63 = vadd.f32 %v983_v55, %v969_v47  ;;  %v1059_v0 = vsel %vm9325_vm10, %v959_v32, 0.0  ;;  %v1104_v1 = vsel %vm1097_vm11, %v959_v32, 0.0  ;;  %v970_v4 = vsel %vm963_vm9, %v961_v52, 0.0 }
 0x20e   :  { %v981_v10 = vrot.slane %v980_v57, 1  ;;  %v1026_v11 = vrot.slane %v1025_v58, 1  ;;  %v1029_v12 = vadd.f32 %v1028_v60, %v1014_v56  ;;  %v1073_v13 = vrot.slane %v1059_v0, 4 }
 0x20f   :  { %v985_v14 = vrot.slane %v984_v63, 2  ;;  %v1118_v15 = vrot.slane %v1104_v1, 4  ;;  %v989_v16 = vrot.slane %v970_v4, 4  ;;  %v1015_v17 = vsel %vm9320_vm8, %v961_v52, 0.0 }
 0x210   :  { %v1030_v18 = vrot.slane %v1029_v12, 2  ;;  %v1074_v19 = vadd.f32 %v1073_v13, %v1059_v0  ;;  %v1034_v20 = vrot.slane %v1015_v17, 4  ;;  %v1060_v21 = vsel %vm9325_vm10, %v961_v52, 0.0 }
 0x211   :  { %v986_v22 = vadd.f32 %v985_v14, %v984_v63  ;;  %v1119_v23 = vadd.f32 %v1118_v15, %v1104_v1  ;;  %v990_v24 = vadd.f32 %v989_v16, %v970_v4  ;;  %v1079_v25 = vrot.slane %v1060_v21, 4 }
 0x212   :  { %v1031_v26 = vadd.f32 %v1030_v18, %v1029_v12  ;;  %v1075_v28 = vrot.slane %v1074_v19, 2  ;;  %v1035_v29 = vadd.f32 %v1034_v20, %v1015_v17  ;;  %v1105_v30 = vsel %vm1097_vm11, %v961_v52, 0.0 }
 0x213   :  { %v987_v31 = vrot.slane %v986_v22, 1  ;;  %v1120_v32 = vrot.slane %v1119_v23, 2  ;;  %v991_v33 = vrot.slane %v990_v24, 2  ;;  %v1080_v34 = vadd.f32 %v1079_v25, %v1060_v21 }
 0x214   :  { %v1032_v35 = vrot.slane %v1031_v26, 1  ;;  %v1076_v39 = vadd.f32 %v1075_v28, %v1074_v19  ;;  %v1036_v40 = vrot.slane %v1035_v29, 2  ;;  %v1124_v42 = vrot.slane %v1105_v30, 4 }
 0x215   :  { %v992_v47 = vadd.f32 %v991_v33, %v990_v24  ;;  %v1081_v48 = vrot.slane %v1080_v34, 2  ;;  %v976_v49 = vadd.f32 %v975_v53, %v974_v44  ;;  %v1021_v50 = vadd.f32 %v1020_v54, %v1019_v45 }
 0x216   :  { %v1037_v55 = vadd.f32 %v1036_v40, %v1035_v29  ;;  %v1125_v56 = vadd.f32 %v1124_v42, %v1105_v30  ;;  %v1065_v60 = vrot.slane %v1064_v46, 1  ;;  %v1109_v63 = vadd.f32 %v1108_v36, %v9346_v27 }
 0x217   :  { %v993_v0 = vrot.slane %v992_v47, 1  ;;  %v1082_v1 = vadd.f32 %v1081_v48, %v1080_v34  ;;  %v995_v52 = vmul.f32 0.00390625, %v976_v49  ;;  %v1040_v4 = vmul.f32 0.00390625, %v1021_v50 }
 0x218   :  { %v1038_v12 = vrot.slane %v1037_v55, 1  ;;  %v1126_v13 = vrot.slane %v1125_v56, 2  ;;  %v1066_v14 = vadd.f32 %v1065_v60, %v1064_v46  ;;  %v1110_v15 = vrot.slane %v1109_v63, 1 }
 0x219   :  { %v999_v16 = vsel %vm963_vm9, %v995_v52, 0.0  ;;  %v1044_v44 = vsel %vm9320_vm8, %v1040_v4, 0.0  ;;  %v982_v45 = vadd.f32 %v981_v10, %v980_v57  ;;  %v1027_v53 = vadd.f32 %v1026_v11, %v1025_v58 }
 0x21a   :  { %v1048_v54 = vadd.f32 %v1044_v44, %v999_v16  ;;  %v1085_v17 = vmul.f32 0.00390625, %v1066_v14  ;;  %v1111_v18 = vadd.f32 %v1110_v15, %v1109_v63  ;;  %v1071_v27 = vrot.slane %v9356_v59, 1 }
 0x21b   :  { %v996_v36 = vmul.f32 0.00390625, %v982_v45  ;;  %v1041_v19 = vmul.f32 0.00390625, %v1027_v53  ;;  %v1115_v46 = vadd.f32 %v1114_v51, %v9349_v43  ;;  %v988_v20 = vadd.f32 %v987_v31, %v986_v22 }
 0x21c   :  { %v1089_v21 = vsel %vm9325_vm10, %v1085_v17, 0.0  ;;  %v1130_v24 = vmul.f32 0.00390625, %v1111_v18  ;;  %v1072_v25 = vadd.f32 %v1071_v27, %v9356_v59  ;;  %v1033_v57 = vadd.f32 %v1032_v35, %v1031_v26 }
 0x21d   :  { %v1093_v58 = vadd.f32 %v1089_v21, %v1048_v54  ;;  %v1000_v10 = vsel %vm963_vm9, %v996_v36, 0.0  ;;  %v1045_v11 = vsel %vm9320_vm8, %v1041_v19, 0.0  ;;  %v1116_v28 = vrot.slane %v1115_v46, 1 }
 0x21e   :  { %v1134_v29 = vsel %vm1097_vm11, %v1130_v24, 0.0  ;;  %v1049_v43 = vadd.f32 %v1045_v11, %v1000_v10  ;;  %v1086_v51 = vmul.f32 0.00390625, %v1072_v25  ;;  %v997_v22 = vmul.f32 0.00390625, %v988_v20 }
 0x21f   :  { %v1138_v30 = vadd.f32 %v1134_v29, %v1093_v58  ;;  %v1117_v31 = vadd.f32 %v1116_v28, %v1115_v46  ;;  %v1042_v33 = vmul.f32 0.00390625, %v1033_v57  ;;  %v1077_v34 = vrot.slane %v1076_v39, 1 }
 0x220   :  { %v1090_v59 = vsel %vm9325_vm10, %v1086_v51, 0.0  ;;  %v1001_v26 = vsel %vm963_vm9, %v997_v22, 0.0  ;;  %v1121_v35 = vadd.f32 %v1120_v32, %v1119_v23  ;;  %v994_v40 = vadd.f32 %v993_v0, %v992_v47 }
 0x221   :  { %v9393_v42 = vsub.f32 %v9298_v61, %v1138_v30  ;;  %v1094_v48 = vadd.f32 %v1090_v59, %v1049_v43  ;;  %v1131_v49 = vmul.f32 0.00390625, %v1117_v31  ;;  %v1046_v50 = vsel %vm9320_vm8, %v1042_v33, 0.0 }
 0x222   :  { %v1050_v60 = vadd.f32 %v1046_v50, %v1001_v26  ;;  %v1078_v63 = vadd.f32 %v1077_v34, %v1076_v39  ;;  %v1122_v52 = vrot.slane %v1121_v35, 1  ;;  %v998_v4 = vmul.f32 0.00390625, %v994_v40 }
 0x223   :  { %v1146_v14 = vmul.f32 %v9393_v42, %v9393_v42  ;;  %v1135_v15 = vsel %vm1097_vm11, %v1131_v49, 0.0  ;;  %v1039_v23 = vadd.f32 %v1038_v12, %v1037_v55  ;;  %v1083_v32 = vrot.slane %v1082_v1, 1 }
 0x224   :  { %v1139_v47 = vadd.f32 %v1135_v15, %v1094_v48  ;;  %v1087_v61 = vmul.f32 0.00390625, %v1078_v63  ;;  %v1123_v0 = vadd.f32 %v1122_v52, %v1121_v35  ;;  %v1002_v16 = vsel %vm963_vm9, %v998_v4, 0.0 }
 0x225   :  { %1150 = vadd.xlane.f32.xlu1 %v1146_v14  ;;  %v1043_v44 = vmul.f32 0.00390625, %v1039_v23  ;;  %v1084_v45 = vadd.f32 %v1083_v32, %v1082_v1  ;;  %v1127_v39 = vadd.f32 %v1126_v13, %v1125_v56 }
 0x226   :  { %v9404_v53 = vsub.f32 %v9300_v62, %v1139_v47  ;;  %v1091_v54 = vsel %vm9325_vm10, %v1087_v61, 0.0  ;;  %v1132_v17 = vmul.f32 0.00390625, %v1123_v0 }
 0x227   :  { %v1095_v18 = vadd.f32 %v1091_v54, %v1050_v60  ;;  %v1047_v55 = vsel %vm9320_vm8, %v1043_v44, 0.0  ;;  %v1088_v12 = vmul.f32 0.00390625, %v1084_v45  ;;  %v1128_v27 = vrot.slane %v1127_v39, 1 }
 0x228   :  { %v1147_v36 = vmul.f32 %v9404_v53, %v9404_v53  ;;  %v1136_v1 = vsel %vm1097_vm11, %v1132_v17, 0.0  ;;  %v1051_v56 = vadd.f32 %v1047_v55, %v1002_v16 }
 0x229   :  { %v1140_v13 = vadd.f32 %v1136_v1, %v1095_v18  ;;  %v1092_v62 = vsel %vm9325_vm10, %v1088_v12, 0.0  ;;  %v1129_v19 = vadd.f32 %v1128_v27, %v1127_v39 }
 0x22a   :  { %1152 = vadd.xlane.f32.xlu0 %v1147_v36  ;;  %v1096_v46 = vadd.f32 %v1092_v62, %v1051_v56 }
 0x22b   :  { %v9417_v20 = vsub.f32 %v9310_v6, %v1140_v13  ;;  %v1133_v21 = vmul.f32 0.00390625, %v1129_v19 }
 0x22d   :  { %v1148_v24 = vmul.f32 %v9417_v20, %v9417_v20  ;;  %v1137_v25 = vsel %vm1097_vm11, %v1133_v21, 0.0 }
 0x22e   :  { %v1141_v57 = vadd.f32 %v1137_v25, %v1096_v46 }
 0x22f   :  { %1154 = vadd.xlane.f32.xlu1 %v1148_v24 }
 0x230   :  { %v9424_v58 = vsub.f32 %v9308_v5, %v1141_v57 }
 0x232   :  { %v1149_v10 = vmul.f32 %v9424_v58, %v9424_v58 }
 0x234   :  { %1156 = vadd.xlane.f32.xlu0 %v1149_v10 }
 0x2b2   :  { %v1151_v11 = vpop.xlane.xlu1 %1150 }
 0x2b3   :  { %v1158_v6 = vsel %vm963_vm9, %v1151_v11, 0.0  ;;  %v1206_v28 = vsel %vm9320_vm8, %v1151_v11, 0.0  ;;  %v1254_v29 = vsel %vm9325_vm10, %v1151_v11, 0.0  ;;  %v1302_v43 = vsel %vm1097_vm11, %v1151_v11, 0.0 }
 0x2b4   :  { %v1162_v51 = vrot.slane %v1158_v6, 4  ;;  %v1210_v5 = vrot.slane %v1206_v28, 4  ;;  %v1258_v22 = vrot.slane %v1254_v29, 4  ;;  %v1306_v30 = vrot.slane %v1302_v43, 4 }
 0x2b6   :  { %v1163_v31 = vadd.f32 %v1162_v51, %v1158_v6  ;;  %v1211_v33 = vadd.f32 %v1210_v5, %v1206_v28  ;;  %v1259_v34 = vadd.f32 %v1258_v22, %v1254_v29  ;;  %v1307_v59 = vadd.f32 %v1306_v30, %v1302_v43 }
 0x2b7   :  { %v1153_v26 = vpop.xlane.xlu0 %1152 }
 0x2b8   :  { %v1164_v35 = vrot.slane %v1163_v31, 2  ;;  %v1212_v40 = vrot.slane %v1211_v33, 2  ;;  %v1260_v48 = vrot.slane %v1259_v34, 2  ;;  %v1308_v49 = vrot.slane %v1307_v59, 2 }
 0x2b9   :  { %v1159_v50 = vsel %vm963_vm9, %v1153_v26, 0.0  ;;  %v1207_v60 = vsel %vm9320_vm8, %v1153_v26, 0.0  ;;  %v1255_v63 = vsel %vm9325_vm10, %v1153_v26, 0.0  ;;  %v1303_v52 = vsel %vm1097_vm11, %v1153_v26, 0.0 }
 0x2ba   :  { %v1165_v4 = vadd.f32 %v1164_v35, %v1163_v31  ;;  %v1213_v14 = vadd.f32 %v1212_v40, %v1211_v33  ;;  %v1261_v15 = vadd.f32 %v1260_v48, %v1259_v34  ;;  %v1309_v23 = vadd.f32 %v1308_v49, %v1307_v59 }
 0x2bb   :  { %v1168_v32 = vrot.slane %v1159_v50, 4  ;;  %v1216_v47 = vrot.slane %v1207_v60, 4  ;;  %v1264_v61 = vrot.slane %v1255_v63, 4  ;;  %v1312_v0 = vrot.slane %v1303_v52, 4 }
 0x2bc   :  { %v1166_v16 = vrot.slane %v1165_v4, 1  ;;  %v1214_v44 = vrot.slane %v1213_v14, 1  ;;  %v1262_v45 = vrot.slane %v1261_v15, 1  ;;  %v1310_v39 = vrot.slane %v1309_v23, 1 }
 0x2bd   :  { %v1169_v54 = vadd.f32 %v1168_v32, %v1159_v50  ;;  %v1217_v17 = vadd.f32 %v1216_v47, %v1207_v60  ;;  %v1265_v18 = vadd.f32 %v1264_v61, %v1255_v63  ;;  %v1313_v55 = vadd.f32 %v1312_v0, %v1303_v52 }
 0x2be   :  { %v1167_v12 = vadd.f32 %v1166_v16, %v1165_v4  ;;  %v1215_v27 = vadd.f32 %v1214_v44, %v1213_v14  ;;  %v1263_v36 = vadd.f32 %v1262_v45, %v1261_v15  ;;  %v1311_v1 = vadd.f32 %v1310_v39, %v1309_v23 }
 0x2bf   :  { %v1170_v56 = vrot.slane %v1169_v54, 2  ;;  %v1218_v13 = vrot.slane %v1217_v17, 2  ;;  %v1266_v62 = vrot.slane %v1265_v18, 2  ;;  %v1314_v19 = vrot.slane %v1313_v55, 2 }
 0x2c0   :  { %v1186_v46 = vmul.f32 0.00390625, %v1167_v12  ;;  %v1234_v21 = vmul.f32 0.00390625, %v1215_v27  ;;  %v1282_v24 = vmul.f32 0.00390625, %v1263_v36  ;;  %v1330_v25 = vmul.f32 0.00390625, %v1311_v1 }
 0x2c1   :  { %v1171_v57 = vadd.f32 %v1170_v56, %v1169_v54  ;;  %v1219_v10 = vadd.f32 %v1218_v13, %v1217_v17  ;;  %v1267_v11 = vadd.f32 %v1266_v62, %v1265_v18  ;;  %v1315_v6 = vadd.f32 %v1314_v19, %v1313_v55 }
 0x2c2   :  { %v1190_v28 = vadd.f32 1e-05, %v1186_v46  ;;  %v1238_v29 = vadd.f32 1e-05, %v1234_v21  ;;  %v1286_v43 = vadd.f32 1e-05, %v1282_v24  ;;  %v9463_v13 = vstv %s14712_s5 }
 0x2c3   :  { %v1334_v51 = vadd.f32 1e-05, %v1330_v25  ;;  %v1172_v5 = vrot.slane %v1171_v57, 1  ;;  %v1220_v22 = vrot.slane %v1219_v10, 1  ;;  %v1268_v30 = vrot.slane %v1267_v11, 1  ;;  %s9119_s5 = smov 126  }
 0x2c4   :  { %9029 = vrsqrt.f32 %v1190_v28  ;;  %v1316_v31 = vrot.slane %v1315_v6, 1 }
 0x2c5   :  { %9031 = vrsqrt.f32 %v1238_v29  ;;  %v1173_v33 = vadd.f32 %v1172_v5, %v1171_v57  ;;  %v1221_v34 = vadd.f32 %v1220_v22, %v1219_v10  ;;  %v1269_v59 = vadd.f32 %v1268_v30, %v1267_v11 }
 0x2c6   :  { %9033 = vrsqrt.f32 %v1286_v43  ;;  %v1317_v26 = vadd.f32 %v1316_v31, %v1315_v6  ;;  %v9591_v43 = vpop.xlane.xlu1 %1154 }
 0x2c7   :  { %9035 = vrsqrt.f32 %v1334_v51  ;;  %v1187_v35 = vmul.f32 0.00390625, %v1173_v33  ;;  %v1235_v40 = vmul.f32 0.00390625, %v1221_v34  ;;  %v1283_v48 = vmul.f32 0.00390625, %v1269_v59 }
 0x2c8   :  { %v1331_v49 = vmul.f32 0.00390625, %v1317_v26 }
 0x2c9   :  { %v1191_v50 = vadd.f32 1e-05, %v1187_v35  ;;  %v1239_v60 = vadd.f32 1e-05, %v1235_v40  ;;  %v1287_v63 = vadd.f32 1e-05, %v1283_v48 }
 0x2ca   :  { %v1335_v52 = vadd.f32 1e-05, %v1331_v49 }
 0x2cb   :  { %9037 = vrsqrt.f32 %v1191_v50 }
 0x2cc   :  { %9039 = vrsqrt.f32 %v1239_v60 }
 0x2cd   :  { %9041 = vrsqrt.f32 %v1287_v63 }
 0x2ce   :  { %v9030_v4 = vpop.eup %9029  ;;  %9043 = vrsqrt.f32 %v1335_v52 }
 0x2cf   :  { %v9032_v14 = vpop.eup %9031  ;;  %v1198_v15 = vsel %vm963_vm9, %v9030_v4, 0.0 }
 0x2d0   :  { %v9034_v23 = vpop.eup %9033  ;;  %v1246_v32 = vsel %vm9320_vm8, %v9032_v14, 0.0 }
 0x2d1   :  { %v9036_v47 = vpop.eup %9035  ;;  %v1250_v61 = vadd.f32 %v1246_v32, %v1198_v15  ;;  %v1294_v0 = vsel %vm9325_vm10, %v9034_v23, 0.0 }
 0x2d2   :  { %v1342_v44 = vsel %vm1097_vm11, %v9036_v47, 0.0 }
 0x2d3   :  { %v1298_v16 = vadd.f32 %v1294_v0, %v1250_v61  ;;  %v1160_v61 = vsel %vm963_vm9, %v9591_v43, 0.0  ;;  %v1208_v0 = vsel %vm9320_vm8, %v9591_v43, 0.0 }
 0x2d5   :  { %v9038_v45 = vpop.eup %9037  ;;  %v1346_v39 = vadd.f32 %v1342_v44, %v1298_v16  ;;  %v1174_v44 = vrot.slane %v1160_v61, 4 }
 0x2d6   :  { %v9040_v54 = vpop.eup %9039  ;;  %v1199_v17 = vsel %vm963_vm9, %v9038_v45, 0.0 }
 0x2d7   :  { %v9042_v18 = vpop.eup %9041  ;;  %v1350_v55 = vmul.f32 %v1346_v39, %v9393_v42  ;;  %v1247_v12 = vsel %vm9320_vm8, %v9040_v54, 0.0  ;;  %v1222_v39 = vrot.slane %v1208_v0, 4 }
 0x2d8   :  { %v9044_v27 = vpop.eup %9043  ;;  %v1251_v36 = vadd.f32 %v1247_v12, %v1199_v17  ;;  %v1295_v56 = vsel %vm9325_vm10, %v9042_v18, 0.0  ;;  %v1175_v17 = vadd.f32 %v1174_v44, %v1160_v61  ;;  %v1256_v18 = vsel %vm9325_vm10, %v9591_v43, 0.0 }
 0x2d9   :  { %v1360_v1 = vmul.f32 %v9288_v38, %v1350_v55  ;;  %v1343_v42 = vsel %vm1097_vm11, %v9044_v27, 0.0  ;;  %v1223_v12 = vadd.f32 %v1222_v39, %v1208_v0  ;;  %v1270_v27 = vrot.slane %v1256_v18, 4 }
 0x2da   :  { %v1299_v62 = vadd.f32 %v1295_v56, %v1251_v36  ;;  %v1304_v36 = vsel %vm1097_vm11, %v9591_v43, 0.0  ;;  %v1176_v56 = vrot.slane %v1175_v17, 2 }
 0x2db   :  { %v1370_v19 = vadd.f32 %v9286_v37, %v1360_v1 }
 0x2dc   :  { %v1347_v46 = vadd.f32 %v1343_v42, %v1299_v62  ;;  %v1224_v42 = vrot.slane %v1223_v12, 2 }
 0x2dd   :  { %vm1375_vm12 = vcmp.gt.f32.partialorder %v1370_v19, 0.0  ;;  %v1380_v21 = vmul.f32 %v9463_v13, %v1370_v19 }
 0x2de   :  { %v1351_v24 = vmul.f32 %v1347_v46, %v9404_v53 }
 0x2df   :  { %v1384_v25 = vsel %vm1375_vm12, %v1370_v19, %v1380_v21  ;;  %v1318_v21 = vrot.slane %v1304_v36, 4  ;;  %vm8803_vm12 = vcmask 1045509  }
 0x2e0   :  { %v1388_v57 = vadd.f32 %v1384_v25, %v9236_v2  ;;  %v1361_v10 = vmul.f32 %v9288_v38, %v1351_v24  ;;  %v1271_v24 = vadd.f32 %v1270_v27, %v1256_v18 }
 0x2e2   :  { %v9472_v11 = vmul.f32 0.5, %v1388_v57  ;;  %v1371_v6 = vadd.f32 %v9286_v37, %v1361_v10  ;;  %v1177_v10 = vadd.f32 %v1176_v56, %v1175_v17  ;;  %v1272_v43 = vrot.slane %v1271_v24, 2 }
 0x2e4   :  { %vm1376_vm13 = vcmp.gt.f32.partialorder %v1371_v6, 0.0  ;;  %v1381_v28 = vmul.f32 %v9463_v13, %v1371_v6  ;;  %1400 = vrot.lane.b32.xlu1 %v9472_v11, %s9119_s5  ;;  %1412 = vrot.lane.b32.xlu0 %v9472_v11, %s9120_s22  ;;  %v1178_v39 = vrot.slane %v1177_v10, 1  ;;  %v1273_v56 = vadd.f32 %v1272_v43, %v1271_v24 }
 0x2e6   :  { %v1385_v53 = vsel %vm1376_vm13, %v1371_v6, %v1381_v28  ;;  %v1274_v24 = vrot.slane %v1273_v56, 1  ;;  %vm8805_vm13 = vcmask 1046534  }
 0x2e7   :  { %v1389_v2 = vadd.f32 %v1385_v53, %v9238_v3  ;;  %v9589_v3 = vpop.xlane.xlu0 %1156  ;;  %v1225_v53 = vadd.f32 %v1224_v42, %v1223_v12 }
 0x2e8   :  { %1424 = vrot.lane.b32.xlu0 %v9472_v11, %s9121_s23  ;;  %v1161_v62 = vsel %vm963_vm9, %v9589_v3, 0.0  ;;  %v1209_v46 = vsel %vm9320_vm8, %v9589_v3, 0.0  ;;  %v1257_v0 = vsel %vm9325_vm10, %v9589_v3, 0.0  ;;  %v1305_v42 = vsel %vm1097_vm11, %v9589_v3, 0.0 }
 0x2e9   :  { %v9483_v29 = vmul.f32 0.5, %v1389_v2  ;;  %v1180_v25 = vrot.slane %v1161_v62, 4  ;;  %v1228_v6 = vrot.slane %v1209_v46, 4  ;;  %v1319_v2 = vadd.f32 %v1318_v21, %v1304_v36 }
 0x2ea   :  { %v1226_v12 = vrot.slane %v1225_v53, 1  ;;  %v1276_v36 = vrot.slane %v1257_v0, 4 }
 0x2eb   :  { %15160 = vst [vmem:[#allocation11_spill] sm:$0xff] %v9483_v29  ;;  %1402 = vrot.lane.b32.xlu1 %v9483_v29, %s9119_s5  ;;  %v1181_v61 = vadd.f32 %v1180_v25, %v1161_v62  ;;  %v1229_v17 = vadd.f32 %v1228_v6, %v1209_v46  ;;  %v1320_v27 = vrot.slane %v1319_v2, 2  ;;  %v1179_v46 = vadd.f32 %v1178_v39, %v1177_v10 }
 0x2ec   :  { %1436 = vrot.lane.b32.xlu0 %v9472_v11, %s9122_s24 }
 0x2ed   :  { %v1182_v62 = vrot.slane %v1181_v61, 2  ;;  %v1230_v25 = vrot.slane %v1229_v17, 2 }
 0x2ef   :  { %1414 = vrot.lane.b32.xlu1 %v9483_v29, %s9120_s22  ;;  %v1183_v43 = vadd.f32 %v1182_v62, %v1181_v61  ;;  %v1231_v10 = vadd.f32 %v1230_v25, %v1229_v17 }
 0x2f0   :  { %1448 = vrot.lane.b32.xlu0 %v9472_v11, %s9123_s25 }
 0x2f1   :  { %v1232_v62 = vrot.slane %v1231_v10, 1 }
 0x2f3   :  { %1426 = vrot.lane.b32.xlu1 %v9483_v29, %s9121_s23 }
 0x2f4   :  { %1460 = vrot.lane.b32.xlu0 %v9472_v11, %s9124_s26 }
 0x2f7   :  { %1438 = vrot.lane.b32.xlu1 %v9483_v29, %s9122_s24 }
 0x2f8   :  { %1472 = vrot.lane.b32.xlu0 %v9472_v11, %s9125_s27 }
 0x2fb   :  { %1450 = vrot.lane.b32.xlu1 %v9483_v29, %s9123_s25 }
 0x2fc   :  { %1484 = vrot.lane.b32.xlu0 %v9472_v11, %s9126_s28 }
 0x2ff   :  { %1462 = vrot.lane.b32.xlu1 %v9483_v29, %s9124_s26 }
 0x300   :  { %1496 = vrot.lane.b32.xlu0 %v9472_v11, %s9127_s29 }
 0x303   :  { %1474 = vrot.lane.b32.xlu1 %v9483_v29, %s9125_s27 }
 0x304   :  { %1508 = vrot.lane.b32.xlu0 %v9472_v11, %s9128_s30 }
 0x307   :  { %1486 = vrot.lane.b32.xlu1 %v9483_v29, %s9126_s28 }
 0x308   :  { %1520 = vrot.lane.b32.xlu0 %v9472_v11, %s9129_s9 }
 0x30b   :  { %1498 = vrot.lane.b32.xlu1 %v9483_v29, %s9127_s29 }
 0x30c   :  { %1532 = vrot.lane.b32.xlu0 %v9472_v11, %s9130_s10 }
 0x30f   :  { %1510 = vrot.lane.b32.xlu1 %v9483_v29, %s9128_s30 }
 0x310   :  { %1544 = vrot.lane.b32.xlu0 %v9472_v11, %s9131_s11 }
 0x313   :  { %1522 = vrot.lane.b32.xlu1 %v9483_v29, %s9129_s9 }
 0x314   :  { %1556 = vrot.lane.b32.xlu0 %v9472_v11, %s9132_s0 }
 0x317   :  { %1534 = vrot.lane.b32.xlu1 %v9483_v29, %s9130_s10 }
 0x318   :  { %1568 = vrot.lane.b32.xlu0 %v9472_v11, %s9133_s12 }
 0x31b   :  { %1546 = vrot.lane.b32.xlu1 %v9483_v29, %s9131_s11 }
 0x31c   :  { %1580 = vrot.lane.b32.xlu0 %v9472_v11, %s9134_s13 }
 0x31f   :  { %1558 = vrot.lane.b32.xlu1 %v9483_v29, %s9132_s0 }
 0x320   :  { %1592 = vrot.lane.b32.xlu0 %v9472_v11, %s9135_s14 }
 0x323   :  { %1570 = vrot.lane.b32.xlu1 %v9483_v29, %s9133_s12 }
 0x324   :  { %1604 = vrot.lane.b32.xlu0 %v9472_v11, %s9136_s15 }
 0x327   :  { %1582 = vrot.lane.b32.xlu1 %v9483_v29, %s9134_s13 }
 0x328   :  { %1616 = vrot.lane.b32.xlu0 %v9472_v11, %s9137_s16 }
 0x32b   :  { %1594 = vrot.lane.b32.xlu1 %v9483_v29, %s9135_s14 }
 0x32c   :  { %1628 = vrot.lane.b32.xlu0 %v9472_v11, %s9138_s17 }
 0x32f   :  { %1606 = vrot.lane.b32.xlu1 %v9483_v29, %s9136_s15 }
 0x330   :  { %1640 = vrot.lane.b32.xlu0 %v9472_v11, %s9139_s1 }
 0x333   :  { %1618 = vrot.lane.b32.xlu1 %v9483_v29, %s9137_s16 }
 0x334   :  { %1652 = vrot.lane.b32.xlu0 %v9472_v11, %s9140_s18 }
 0x337   :  { %1630 = vrot.lane.b32.xlu1 %v9483_v29, %s9138_s17 }
 0x338   :  { %1664 = vrot.lane.b32.xlu0 %v9472_v11, %s9141_s19 }
 0x33b   :  { %1642 = vrot.lane.b32.xlu1 %v9483_v29, %s9139_s1 }
 0x33c   :  { %1676 = vrot.lane.b32.xlu0 %v9472_v11, %s14715_s20 }
 0x33f   :  { %1654 = vrot.lane.b32.xlu1 %v9483_v29, %s9140_s18 }
 0x340   :  { %1688 = vrot.lane.b32.xlu0 %v9472_v11, %s9143_s2 }
 0x343   :  { %1666 = vrot.lane.b32.xlu1 %v9483_v29, %s9141_s19 }
 0x344   :  { %1700 = vrot.lane.b32.xlu0 %v9472_v11, %s14717_s3 }
 0x347   :  { %1678 = vrot.lane.b32.xlu1 %v9483_v29, %s14715_s20  ;;  %s14725_s20 = smov 68  }
 0x348   :  { %1712 = vrot.lane.b32.xlu0 %v9472_v11, %s14719_s4 }
 0x34b   :  { %1690 = vrot.lane.b32.xlu1 %v9483_v29, %s9143_s2 }
 0x34c   :  { %1724 = vrot.lane.b32.xlu0 %v9472_v11, %s14721_s21 }
 0x34f   :  { %1702 = vrot.lane.b32.xlu1 %v9483_v29, %s14717_s3  ;;  %s14727_s3 = smov 66  }
 0x350   :  { %1736 = vrot.lane.b32.xlu0 %v9472_v11, %s14723_s7 }
 0x353   :  { %1714 = vrot.lane.b32.xlu1 %v9483_v29, %s14719_s4  ;;  %s14729_s4 = smov 64  }
 0x354   :  { %1748 = vrot.lane.b32.xlu0 %v9472_v11, %s14725_s20 }
 0x356   :  { %v9597_v51 = vpop.permute.xlu0 %1412  ;;  %v9601_v5 = vpop.permute.xlu1 %1400 }
 0x357   :  { %1726 = vrot.lane.b32.xlu1 %v9483_v29, %s14721_s21  ;;  %15161 = vst [vmem:[#allocation12_spill] sm:$0xff] %v9601_v5  ;;  %s14731_s21 = smov 62  }
 0x358   :  { %1760 = vrot.lane.b32.xlu0 %v9472_v11, %s14727_s3 }
 0x35a   :  { %v9605_v22 = vpop.permute.xlu0 %1424 }
 0x35b   :  { %1738 = vrot.lane.b32.xlu1 %v9483_v29, %s14723_s7  ;;  %s14733_s7 = smov 60  }
 0x35c   :  { %1772 = vrot.lane.b32.xlu0 %v9472_v11, %s14729_s4 }
 0x35d   :  { %v9611_v30 = vpop.permute.xlu1 %1402 }
 0x35e   :  { %15162 = vst [vmem:[#allocation13_spill] sm:$0xff] %v9611_v30  ;;  %v9613_v31 = vpop.permute.xlu0 %1436 }
 0x35f   :  { %15163 = vst [vmem:[#allocation14_spill] sm:$0xff] %v9613_v31  ;;  %1750 = vrot.lane.b32.xlu1 %v9483_v29, %s14725_s20  ;;  %s14735_s20 = smov 58  }
 0x360   :  { %1784 = vrot.lane.b32.xlu0 %v9472_v11, %s14731_s21 }
 0x361   :  { %v9619_v33 = vpop.permute.xlu1 %1414 }
 0x362   :  { %15164 = vst [vmem:[#allocation15_spill] sm:$0xff] %v9619_v33  ;;  %v9621_v34 = vpop.permute.xlu0 %1448 }
 0x363   :  { %15165 = vst [vmem:[#allocation16_spill] sm:$0xff] %v9621_v34  ;;  %1762 = vrot.lane.b32.xlu1 %v9483_v29, %s14727_s3  ;;  %s14737_s3 = smov 56  }
 0x364   :  { %1796 = vrot.lane.b32.xlu0 %v9472_v11, %s14733_s7 }
 0x365   :  { %v9627_v59 = vpop.permute.xlu1 %1426 }
 0x366   :  { %15166 = vst [vmem:[#allocation17_spill] sm:$0xff] %v9627_v59  ;;  %v9629_v26 = vpop.permute.xlu0 %1460 }
 0x367   :  { %15167 = vst [vmem:[#allocation18_spill] sm:$0xff] %v9629_v26  ;;  %1774 = vrot.lane.b32.xlu1 %v9483_v29, %s14729_s4  ;;  %s14741_s4 = smov 54  }
 0x368   :  { %1808 = vrot.lane.b32.xlu0 %v9472_v11, %s14735_s20 }
 0x369   :  { %v9635_v35 = vpop.permute.xlu1 %1438 }
 0x36a   :  { %15168 = vst [vmem:[#allocation19_spill] sm:$0xff] %v9635_v35  ;;  %v9637_v40 = vpop.permute.xlu0 %1472 }
 0x36b   :  { %15169 = vst [vmem:[#allocation20_spill] sm:$0xff] %v9637_v40  ;;  %1786 = vrot.lane.b32.xlu1 %v9483_v29, %s14731_s21  ;;  %s14739_s21 = smov 52  }
 0x36c   :  { %1820 = vrot.lane.b32.xlu0 %v9472_v11, %s14737_s3 }
 0x36d   :  { %v9643_v48 = vpop.permute.xlu1 %1450 }
 0x36e   :  { %15170 = vst [vmem:[#allocation21_spill] sm:$0xff] %v9643_v48  ;;  %v9645_v49 = vpop.permute.xlu0 %1484  ;;  %v1277_v48 = vadd.f32 %v1276_v36, %v1257_v0 }
 0x36f   :  { %15171 = vst [vmem:[#allocation22_spill] sm:$0xff] %v9645_v49  ;;  %1798 = vrot.lane.b32.xlu1 %v9483_v29, %s14733_s7  ;;  %s14743_s7 = smov 50  }
 0x370   :  { %1832 = vrot.lane.b32.xlu0 %v9472_v11, %s14741_s4 }
 0x371   :  { %v9651_v50 = vpop.permute.xlu1 %1462 }
 0x372   :  { %15172 = vst [vmem:[#allocation23_spill] sm:$0xff] %v9651_v50  ;;  %v9653_v60 = vpop.permute.xlu0 %1496 }
 0x373   :  { %1810 = vrot.lane.b32.xlu1 %v9483_v29, %s14735_s20  ;;  %s14747_s20 = smov 48  }
 0x374   :  { %1844 = vrot.lane.b32.xlu0 %v9472_v11, %s14739_s21 }
 0x375   :  { %v9659_v63 = vpop.permute.xlu1 %1474 }
 0x376   :  { %15173 = vst [vmem:[#allocation24_spill] sm:$0xff] %v9659_v63  ;;  %v9661_v52 = vpop.permute.xlu0 %1508  ;;  %v1324_v63 = vrot.slane %v1305_v42, 4 }
 0x377   :  { %15174 = vst [vmem:[#allocation25_spill] sm:$0xff] %v9661_v52  ;;  %1822 = vrot.lane.b32.xlu1 %v9483_v29, %s14737_s3  ;;  %s14745_s3 = smov 46  }
 0x378   :  { %1856 = vrot.lane.b32.xlu0 %v9472_v11, %s14743_s7  ;;  %v1325_v0 = vadd.f32 %v1324_v63, %v1305_v42 }
 0x379   :  { %v9667_v4 = vpop.permute.xlu1 %1486 }
 0x37a   :  { %15175 = vst [vmem:[#allocation26_spill] sm:$0xff] %v9667_v4  ;;  %v9669_v14 = vpop.permute.xlu0 %1520  ;;  %v1227_v4 = vadd.f32 %v1226_v12, %v1225_v53  ;;  %v1275_v12 = vadd.f32 %v1274_v24, %v1273_v56 }
 0x37b   :  { %1834 = vrot.lane.b32.xlu1 %v9483_v29, %s14741_s4  ;;  %s14749_s4 = smov 42  }
 0x37c   :  { %1868 = vrot.lane.b32.xlu0 %v9472_v11, %s14747_s20  ;;  %v1236_v35 = vmul.f32 0.00390625, %v1227_v4  ;;  %v1284_v63 = vmul.f32 0.00390625, %v1275_v12 }
 0x37d   :  { %v9675_v15 = vpop.permute.xlu1 %1498 }
 0x37e   :  { %15176 = vst [vmem:[#allocation27_spill] sm:$0xff] %v9675_v15  ;;  %v9677_v23 = vpop.permute.xlu0 %1532 }
 0x37f   :  { %15177 = vst [vmem:[#allocation28_spill] sm:$0xff] %v9677_v23  ;;  %1846 = vrot.lane.b32.xlu1 %v9483_v29, %s14739_s21  ;;  %s14782_s21 = smov 44  }
 0x380   :  { %1880 = vrot.lane.b32.xlu0 %v9472_v11, %s14745_s3 }
 0x381   :  { %v9683_v32 = vpop.permute.xlu1 %1510 }
 0x382   :  { %15178 = vst [vmem:[#allocation29_spill] sm:$0xff] %v9683_v32  ;;  %v9685_v47 = vpop.permute.xlu0 %1544  ;;  %v1321_v32 = vadd.f32 %v1320_v27, %v1319_v2  ;;  %v1278_v2 = vrot.slane %v1277_v48, 2  ;;  %v1184_v27 = vrot.slane %v1183_v43, 1 }
 0x383   :  { %1858 = vrot.lane.b32.xlu1 %v9483_v29, %s14743_s7  ;;  %s14755_s7 = smov 40  }
 0x384   :  { %1892 = vrot.lane.b32.xlu0 %v9472_v11, %s14782_s21  ;;  %v1322_v53 = vrot.slane %v1321_v32, 1  ;;  %v1279_v25 = vadd.f32 %v1278_v2, %v1277_v48  ;;  %v1185_v56 = vadd.f32 %v1184_v27, %v1183_v43 }
 0x385   :  { %v9697_v16 = vpop.permute.xlu1 %1522 }
 0x386   :  { %15179 = vst [vmem:[#allocation30_spill] sm:$0xff] %v9697_v16  ;;  %v9699_v45 = vpop.permute.xlu0 %1556  ;;  %v1323_v4 = vadd.f32 %v1322_v53, %v1321_v32  ;;  %v1280_v32 = vrot.slane %v1279_v25, 1  ;;  %v1288_v53 = vadd.f32 1e-05, %v1284_v63  ;;  %v1189_v2 = vmul.f32 0.00390625, %v1185_v56 }
 0x387   :  { %15180 = vst [vmem:[#allocation31_spill] sm:$0xff] %v9699_v45  ;;  %1870 = vrot.lane.b32.xlu1 %v9483_v29, %s14747_s20  ;;  %s14762_s20 = smov 36  }
 0x388   :  { %1904 = vrot.lane.b32.xlu0 %v9472_v11, %s14749_s4 }
 0x389   :  { %v9705_v54 = vpop.permute.xlu1 %1534 }
 0x38a   :  { %15181 = vst [vmem:[#allocation32_spill] sm:$0xff] %v9705_v54  ;;  %v9710_v55 = vpop.permute.xlu0 %1568 }
 0x38b   :  { %1882 = vrot.lane.b32.xlu1 %v9483_v29, %s14745_s3  ;;  %s14759_s3 = smov 38  }
 0x38c   :  { %1916 = vrot.lane.b32.xlu0 %v9472_v11, %s14755_s7 }
 0x38d   :  { %v9719_v1 = vpop.permute.xlu1 %1546 }
 0x38e   :  { %15182 = vst [vmem:[#allocation33_spill] sm:$0xff] %v9719_v1  ;;  %v9724_v19 = vpop.permute.xlu0 %1580 }
 0x38f   :  { %15183 = vst [vmem:[#allocation34_spill] sm:$0xff] %v9724_v19  ;;  %1894 = vrot.lane.b32.xlu1 %v9483_v29, %s14782_s21  ;;  %s14795_s21 = smov 12  }
 0x390   :  { %1928 = vrot.lane.b32.xlu0 %v9472_v11, %s14759_s3 }
 0x391   :  { %v9733_v57 = vpop.permute.xlu1 %1558 }
 0x392   :  { %15184 = vst [vmem:[#allocation35_spill] sm:$0xff] %v9733_v57  ;;  %v9735_v28 = vpop.permute.xlu0 %1592 }
 0x393   :  { %15185 = vst [vmem:[#allocation36_spill] sm:$0xff] %v9735_v28  ;;  %1906 = vrot.lane.b32.xlu1 %v9483_v29, %s14749_s4  ;;  %s14764_s4 = smov 34  }
 0x394   :  { %1940 = vrot.lane.b32.xlu0 %v9472_v11, %s14762_s20 }
 0x395   :  { %v9744_v44 = vpop.permute.xlu1 %1570 }
 0x396   :  { %15186 = vst [vmem:[#allocation37_spill] sm:$0xff] %v9744_v44  ;;  %v9746_v18 = vpop.permute.xlu0 %1604 }
 0x397   :  { %15187 = vst [vmem:[#allocation38_spill] sm:$0xff] %v9746_v18  ;;  %1918 = vrot.lane.b32.xlu1 %v9483_v29, %s14755_s7  ;;  %s14766_s7 = smov 32  }
 0x398   :  { %1952 = vrot.lane.b32.xlu0 %v9472_v11, %s14764_s4 }
 0x399   :  { %v9755_v21 = vpop.permute.xlu1 %1582 }
 0x39a   :  { %15188 = vst [vmem:[#allocation39_spill] sm:$0xff] %v9755_v21  ;;  %v9757_v6 = vpop.permute.xlu0 %1616  ;;  %v1188_v21 = vmul.f32 0.00390625, %v1179_v46  ;;  %v1240_v46 = vadd.f32 1e-05, %v1236_v35  ;;  %v1332_v35 = vmul.f32 0.00390625, %v1323_v4 }
 0x39b   :  { %15189 = vst [vmem:[#allocation40_spill] sm:$0xff] %v9757_v6  ;;  %1930 = vrot.lane.b32.xlu1 %v9483_v29, %s14759_s3  ;;  %s14768_s3 = smov 30  }
 0x39c   :  { %1964 = vrot.lane.b32.xlu0 %v9472_v11, %s14766_s7  ;;  %v1192_v36 = vadd.f32 1e-05, %v1188_v21  ;;  %v1233_v21 = vadd.f32 %v1232_v62, %v1231_v10  ;;  %v1336_v10 = vadd.f32 1e-05, %v1332_v35 }
 0x39d   :  { %v9763_v3 = vpop.permute.xlu1 %1594 }
 0x39e   :  { %15190 = vst [vmem:[#allocation41_spill] sm:$0xff] %v9763_v3  ;;  %v9765_v39 = vpop.permute.xlu0 %1628  ;;  %v1326_v3 = vrot.slane %v1325_v0, 2  ;;  %9045 = vrsqrt.f32 %v1192_v36  ;;  %v1237_v12 = vmul.f32 0.00390625, %v1233_v21  ;;  %v1281_v36 = vadd.f32 %v1280_v32, %v1279_v25 }
 0x39f   :  { %15191 = vst [vmem:[#allocation42_spill] sm:$0xff] %v9765_v39  ;;  %1942 = vrot.lane.b32.xlu1 %v9483_v29, %s14762_s20  ;;  %s14770_s20 = smov 28   ;;  %9047 = vrsqrt.f32 %v1240_v46 }
 0x3a0   :  { %1976 = vrot.lane.b32.xlu0 %v9472_v11, %s14768_s3  ;;  %v1327_v48 = vadd.f32 %v1326_v3, %v1325_v0  ;;  %9049 = vrsqrt.f32 %v1288_v53  ;;  %v1193_v3 = vadd.f32 1e-05, %v1189_v2  ;;  %v1241_v46 = vadd.f32 1e-05, %v1237_v12 }
 0x3a1   :  { %v9771_v61 = vpop.permute.xlu1 %1606  ;;  %9051 = vrsqrt.f32 %v1336_v10  ;;  %v1285_v56 = vmul.f32 0.00390625, %v1281_v36 }
 0x3a2   :  { %15192 = vst [vmem:[#allocation43_spill] sm:$0xff] %v9771_v61  ;;  %v9773_v17 = vpop.permute.xlu0 %1640  ;;  %v1328_v62 = vrot.slane %v1327_v48, 1  ;;  %9053 = vrsqrt.f32 %v1193_v3 }
 0x3a3   :  { %15193 = vst [vmem:[#allocation44_spill] sm:$0xff] %v9773_v17  ;;  %1954 = vrot.lane.b32.xlu1 %v9483_v29, %s14764_s4  ;;  %s14772_s4 = smov 26   ;;  %9055 = vrsqrt.f32 %v1241_v46  ;;  %v1289_v2 = vadd.f32 1e-05, %v1285_v56 }
 0x3a4   :  { %1988 = vrot.lane.b32.xlu0 %v9472_v11, %s14770_s20  ;;  %v1329_v21 = vadd.f32 %v1328_v62, %v1327_v48 }
 0x3a5   :  { %v9779_v42 = vpop.permute.xlu1 %1618  ;;  %9057 = vrsqrt.f32 %v1289_v2 }
 0x3a6   :  { %15194 = vst [vmem:[#allocation45_spill] sm:$0xff] %v9779_v42  ;;  %v9781_v24 = vpop.permute.xlu0 %1652  ;;  %v1333_v12 = vmul.f32 0.00390625, %v1329_v21 }
 0x3a7   :  { %15195 = vst [vmem:[#allocation46_spill] sm:$0xff] %v9781_v24  ;;  %1966 = vrot.lane.b32.xlu1 %v9483_v29, %s14766_s7  ;;  %s14776_s7 = smov 24  }
 0x3a8   :  { %2000 = vrot.lane.b32.xlu0 %v9472_v11, %s14772_s4  ;;  %v9046_v63 = vpop.eup %9045  ;;  %v1337_v46 = vadd.f32 1e-05, %v1333_v12 }
 0x3a9   :  { %v9787_v43 = vpop.permute.xlu1 %1630  ;;  %v9048_v25 = vpop.eup %9047  ;;  %v1200_v53 = vsel %vm963_vm9, %v9046_v63, 0.0 }
 0x3aa   :  { %15196 = vst [vmem:[#allocation47_spill] sm:$0xff] %v9787_v43  ;;  %v9789_v27 = vpop.permute.xlu0 %1664  ;;  %v1248_v48 = vsel %vm9320_vm8, %v9048_v25, 0.0  ;;  %v9050_v62 = vpop.eup %9049  ;;  %9059 = vrsqrt.f32 %v1337_v46 }
 0x3ab   :  { %15197 = vst [vmem:[#allocation48_spill] sm:$0xff] %v9789_v27  ;;  %1978 = vrot.lane.b32.xlu1 %v9483_v29, %s14768_s3  ;;  %s14778_s3 = smov 22   ;;  %v1252_v3 = vadd.f32 %v1248_v48, %v1200_v53  ;;  %v9052_v56 = vpop.eup %9051  ;;  %v1296_v21 = vsel %vm9325_vm10, %v9050_v62, 0.0 }
 0x3ac   :  { %2012 = vrot.lane.b32.xlu0 %v9472_v11, %s14776_s7  ;;  %v1344_v2 = vsel %vm1097_vm11, %v9052_v56, 0.0 }
 0x3ad   :  { %v9795_v0 = vpop.permute.xlu1 %1642 }
 0x3ae   :  { %15198 = vst [vmem:[#allocation49_spill] sm:$0xff] %v9795_v0  ;;  %v9797_v4 = vpop.permute.xlu0 %1676  ;;  %v9054_v0 = vpop.eup %9053 }
 0x3af   :  { %15199 = vst [vmem:[#allocation50_spill] sm:$0xff] %v9797_v4  ;;  %1990 = vrot.lane.b32.xlu1 %v9483_v29, %s14770_s20  ;;  %s14785_s20 = smov 20   ;;  %v9056_v53 = vpop.eup %9055 }
 0x3b0   :  { %2024 = vrot.lane.b32.xlu0 %v9472_v11, %s14778_s3  ;;  %v9058_v43 = vpop.eup %9057 }
 0x3b1   :  { %v9803_v35 = vpop.permute.xlu1 %1654  ;;  %v1297_v8 = vsel %vm9325_vm10, %v9058_v43, 0.0  ;;  %vm8799_vm10 = vcmask 1043459  }
 0x3b2   :  { %15200 = vst [vmem:[#allocation51_spill] sm:$0xff] %v9803_v35  ;;  %v9805_v32 = vpop.permute.xlu0 %1688 }
 0x3b3   :  { %15201 = vst [vmem:[#allocation52_spill] sm:$0xff] %v9805_v32  ;;  %2002 = vrot.lane.b32.xlu1 %v9483_v29, %s14772_s4  ;;  %s9173_s4 = smov 18  }
 0x3b4   :  { %2036 = vrot.lane.b32.xlu0 %v9472_v11, %s14785_s20 }
 0x3b5   :  { %v9815_v10 = vpop.permute.xlu1 %1666 }
 0x3b6   :  { %15202 = vst [vmem:[#allocation53_spill] sm:$0xff] %v9815_v10  ;;  %v9817_v36 = vpop.permute.xlu0 %1700  ;;  %v1300_v10 = vadd.f32 %v1296_v21, %v1252_v3  ;;  %v1201_v3 = vsel %vm963_vm9, %v9054_v0, 0.0  ;;  %v1249_v21 = vsel %vm9320_vm8, %v9056_v53, 0.0  ;;  %v9060_v53 = vpop.eup %9059  ;;  %vm8795_vm8 = vcmask 1041409  }
 0x3b7   :  { %15203 = vst [vmem:[#allocation54_spill] sm:$0xff] %v9817_v36  ;;  %2014 = vrot.lane.b32.xlu1 %v9483_v29, %s14776_s7  ;;  %s14787_s7 = smov 16   ;;  %v1253_v56 = vadd.f32 %v1249_v21, %v1201_v3  ;;  %vm8797_vm9 = vcmask 1042434  }
 0x3b8   :  { %2048 = vrot.lane.b32.xlu0 %v9472_v11, %s9173_s4  ;;  %v1348_v62 = vadd.f32 %v1344_v2, %v1300_v10 }
 0x3b9   :  { %v9823_v63 = vpop.permute.xlu1 %1678  ;;  %v1301_v2 = vadd.f32 %v1297_v8, %v1253_v56 }
 0x3ba   :  { %15204 = vst [vmem:[#allocation55_spill] sm:$0xff] %v9823_v63  ;;  %v9827_v25 = vpop.permute.xlu0 %1712  ;;  %v1352_v10 = vmul.f32 %v1348_v62, %v9417_v20  ;;  %v1345_v20 = vsel %vm1097_vm11, %v9060_v53, 0.0  ;;  %vm8801_vm11 = vcmask 1044484  }
 0x3bb   :  { %15205 = vst [vmem:[#allocation56_spill] sm:$0xff] %v9827_v25  ;;  %2026 = vrot.lane.b32.xlu1 %v9483_v29, %s14778_s3  ;;  %s14790_s3 = smov 14   ;;  %v1349_v43 = vadd.f32 %v1345_v20, %v1301_v2 }
 0x3bc   :  { %2060 = vrot.lane.b32.xlu0 %v9472_v11, %s14787_s7  ;;  %v1362_v3 = vmul.f32 %v9288_v38, %v1352_v10 }
 0x3bd   :  { %v9833_v48 = vpop.permute.xlu1 %1690  ;;  %v1353_v10 = vmul.f32 %v1349_v43, %v9424_v58  ;;  %v9061_v43 = vld [vmem:[#allocation3 + $0x10] sm:$0xff] }
 0x3be   :  { %15206 = vst [vmem:[#allocation57_spill] sm:$0xff] %v9833_v48  ;;  %v9837_v12 = vpop.permute.xlu0 %1724  ;;  %v1372_v21 = vadd.f32 %v9286_v37, %v1362_v3 }
 0x3bf   :  { %15207 = vst [vmem:[#allocation58_spill] sm:$0xff] %v9837_v12  ;;  %2038 = vrot.lane.b32.xlu1 %v9483_v29, %s14785_s20  ;;  %s9177_s20 = smov 10   ;;  %v1363_v3 = vmul.f32 %v9288_v38, %v1353_v10 }
 0x3c0   :  { %2072 = vrot.lane.b32.xlu0 %v9472_v11, %s14790_s3  ;;  %v1382_v53 = vmul.f32 %v9463_v13, %v1372_v21  ;;  %vm1377_vm14 = vcmp.gt.f32.partialorder %v1372_v21, 0.0 }
 0x3c1   :  { %v9847_v46 = vpop.permute.xlu1 %1702  ;;  %v1373_v48 = vadd.f32 %v9286_v37, %v1363_v3 }
 0x3c2   :  { %15208 = vst [vmem:[#allocation59_spill] sm:$0xff] %v9847_v46  ;;  %v9849_v35 = vpop.permute.xlu0 %1736  ;;  %v1386_v46 = vsel %vm1377_vm14, %v1372_v21, %v1382_v53  ;;  %vm8807_vm14 = vcmask 1047559  }
 0x3c3   :  { %15209 = vst [vmem:[#allocation60_spill] sm:$0xff] %v9849_v35  ;;  %2050 = vrot.lane.b32.xlu1 %v9483_v29, %s9173_s4  ;;  %v1383_v10 = vmul.f32 %v9463_v13, %v1373_v48  ;;  %vm1378_vm15 = vcmp.gt.f32.partialorder %v1373_v48, 0.0  ;;  %v9062_v13 = vld [vmem:[#allocation3 + $0x18] sm:$0xff] }
 0x3c4   :  { %2084 = vrot.lane.b32.xlu0 %v9472_v11, %s14795_s21 }
 0x3c5   :  { %v9858_v0 = vpop.permute.xlu1 %1714 }
 0x3c6   :  { %15210 = vst [vmem:[#allocation61_spill] sm:$0xff] %v9858_v0  ;;  %v9860_v63 = vpop.permute.xlu0 %1748 }
 0x3c7   :  { %15211 = vst [vmem:[#allocation62_spill] sm:$0xff] %v9860_v63  ;;  %2062 = vrot.lane.b32.xlu1 %v9483_v29, %s14787_s7  ;;  %s9178_s7 = smov 6  }
 0x3c8   :  { %2096 = vrot.lane.b32.xlu0 %v9472_v11, %s9177_s20 }
 0x3c9   :  { %v9869_v9 = vpop.permute.xlu1 %1726 }
 0x3ca   :  { %15212 = vst [vmem:[#allocation63_spill] sm:$0xff] %v9869_v9  ;;  %v9871_v62 = vpop.permute.xlu0 %1760  ;;  %v1390_v9 = vadd.f32 %v9061_v43, %v1386_v46  ;;  %v1387_v46 = vsel %vm1378_vm15, %v1373_v48, %v1383_v10  ;;  %vm8834_vm15 = vcmask 523264  }
 0x3cb   :  { %15213 = vst [vmem:[#allocation64_spill] sm:$0xff] %v9871_v62  ;;  %2074 = vrot.lane.b32.xlu1 %v9483_v29, %s14790_s3  ;;  %s9179_s3 = smov 4  }
 0x3cc   :  { %2108 = vrot.lane.b32.xlu0 %v9472_v11, %s9113_s8  ;;  %v9908_v21 = vmul.f32 0.5, %v1390_v9  ;;  %v1391_v9 = vadd.f32 %v9062_v13, %v1387_v46 }
 0x3cd   :  { %v9878_v56 = vpop.permute.xlu1 %1738 }
 0x3ce   :  { %15214 = vst [vmem:[#allocation65_spill] sm:$0xff] %v9878_v56  ;;  %v9881_v8 = vpop.permute.xlu0 %1772  ;;  %15221 = vst [vmem:[#allocation72_spill] sm:$0xff] %v9908_v21  ;;  %v9933_v48 = vmul.f32 0.5, %v1391_v9 }
 0x3cf   :  { %15215 = vst [vmem:[#allocation66_spill] sm:$0xff] %v9881_v8  ;;  %2086 = vrot.lane.b32.xlu1 %v9483_v29, %s14795_s21  ;;  %s9180_s21 = smov 2  }
 0x3d0   :  { %2120 = vrot.lane.b32.xlu0 %v9472_v11, %s9178_s7  ;;  %15227 = vst [vmem:[#allocation78_spill] sm:$0xff] %v9933_v48 }
 0x3d1   :  { %v9888_v2 = vpop.permute.xlu1 %1750 }
 0x3d2   :  { %15216 = vst [vmem:[#allocation67_spill] sm:$0xff] %v9888_v2  ;;  %v9891_v20 = vpop.permute.xlu0 %1784 }
 0x3d3   :  { %15217 = vst [vmem:[#allocation68_spill] sm:$0xff] %v9891_v20  ;;  %2098 = vrot.lane.b32.xlu1 %v9483_v29, %s9177_s20 }
 0x3d4   :  { %2132 = vrot.lane.b32.xlu0 %v9472_v11, %s9179_s3 }
 0x3d5   :  { %v9897_v58 = vpop.permute.xlu1 %1762 }
 0x3d6   :  { %15218 = vst [vmem:[#allocation69_spill] sm:$0xff] %v9897_v58  ;;  %v9900_v0 = vpop.permute.xlu0 %1796 }
 0x3d7   :  { %15219 = vst [vmem:[#allocation70_spill] sm:$0xff] %v9900_v0  ;;  %2110 = vrot.lane.b32.xlu1 %v9483_v29, %s9113_s8 }
 0x3d8   :  { %2144 = vrot.lane.b32.xlu0 %v9472_v11, %s9180_s21 }
 0x3d9   :  { %v9906_v38 = vpop.permute.xlu1 %1774 }
 0x3da   :  { %15220 = vst [vmem:[#allocation71_spill] sm:$0xff] %v9906_v38  ;;  %v9911_v53 = vpop.permute.xlu0 %1808 }
 0x3db   :  { %15222 = vst [vmem:[#allocation73_spill] sm:$0xff] %v9911_v53  ;;  %2122 = vrot.lane.b32.xlu1 %v9483_v29, %s9178_s7 }
 0x3dc   :  { %1404 = vrot.lane.b32.xlu0 %v9908_v21, %s9119_s5 }
 0x3dd   :  { %v9917_v37 = vpop.permute.xlu1 %1786 }
 0x3de   :  { %15223 = vst [vmem:[#allocation74_spill] sm:$0xff] %v9917_v37  ;;  %v9919_v3 = vpop.permute.xlu0 %1820 }
 0x3df   :  { %15224 = vst [vmem:[#allocation75_spill] sm:$0xff] %v9919_v3  ;;  %2134 = vrot.lane.b32.xlu1 %v9483_v29, %s9179_s3  ;;  %v2172_v3 = vcombine.low %v9601_v5, %v9605_v22 }
 0x3e0   :  { %1416 = vrot.lane.b32.xlu0 %v9908_v21, %s9120_s22 }
 0x3e1   :  { %v9925_v43 = vpop.permute.xlu1 %1798 }
 0x3e2   :  { %15225 = vst [vmem:[#allocation76_spill] sm:$0xff] %v9925_v43  ;;  %v9927_v38 = vpop.permute.xlu0 %1832 }
 0x3e3   :  { %15226 = vst [vmem:[#allocation77_spill] sm:$0xff] %v9927_v38  ;;  %2146 = vrot.lane.b32.xlu1 %v9483_v29, %s9180_s21 }
 0x3e4   :  { %1428 = vrot.lane.b32.xlu0 %v9908_v21, %s9121_s23 }
 0x3e5   :  { %v9935_v10 = vpop.permute.xlu1 %1810 }
 0x3e6   :  { %15228 = vst [vmem:[#allocation79_spill] sm:$0xff] %v9935_v10  ;;  %v9937_v37 = vpop.permute.xlu0 %1844 }
 0x3e7   :  { %15229 = vst [vmem:[#allocation80_spill] sm:$0xff] %v9937_v37  ;;  %1406 = vrot.lane.b32.xlu1 %v9933_v48, %s9119_s5  ;;  %s15270_s5 = smov 80  }
 0x3e8   :  { %1440 = vrot.lane.b32.xlu0 %v9908_v21, %s9122_s24 }
 0x3e9   :  { %v9943_v46 = vpop.permute.xlu1 %1822 }
 0x3ea   :  { %15230 = vst [vmem:[#allocation81_spill] sm:$0xff] %v9943_v46  ;;  %v9945_v13 = vpop.permute.xlu0 %1856 }
 0x3eb   :  { %15231 = vst [vmem:[#allocation82_spill] sm:$0xff] %v9945_v13  ;;  %1418 = vrot.lane.b32.xlu1 %v9933_v48, %s9120_s22  ;;  %s15275_s22 = smov 76  }
 0x3ec   :  { %1452 = vrot.lane.b32.xlu0 %v9908_v21, %s9123_s25 }
 0x3ed   :  { %v9951_v9 = vpop.permute.xlu1 %1834 }
 0x3ee   :  { %15232 = vst [vmem:[#allocation83_spill] sm:$0xff] %v9951_v9  ;;  %v9953_v43 = vpop.permute.xlu0 %1868 }
 0x3ef   :  { %15233 = vst [vmem:[#allocation84_spill] sm:$0xff] %v9953_v43  ;;  %1430 = vrot.lane.b32.xlu1 %v9933_v48, %s9121_s23  ;;  %s15278_s23 = smov 74  }
 0x3f0   :  { %1464 = vrot.lane.b32.xlu0 %v9908_v21, %s9124_s26 }
 0x3f1   :  { %v9959_v10 = vpop.permute.xlu1 %1846 }
 0x3f2   :  { %15234 = vst [vmem:[#allocation85_spill] sm:$0xff] %v9959_v10  ;;  %v9961_v46 = vpop.permute.xlu0 %1880 }
 0x3f3   :  { %15235 = vst [vmem:[#allocation86_spill] sm:$0xff] %v9961_v46  ;;  %1442 = vrot.lane.b32.xlu1 %v9933_v48, %s9122_s24  ;;  %s15281_s24 = smov 72  }
 0x3f4   :  { %1476 = vrot.lane.b32.xlu0 %v9908_v21, %s9125_s27 }
 0x3f5   :  { %v9967_v2 = vpop.permute.xlu1 %1858 }
 0x3f6   :  { %15236 = vst [vmem:[#allocation87_spill] sm:$0xff] %v9967_v2  ;;  %v9969_v9 = vpop.permute.xlu0 %1892 }
 0x3f7   :  { %15237 = vst [vmem:[#allocation88_spill] sm:$0xff] %v9969_v9  ;;  %1454 = vrot.lane.b32.xlu1 %v9933_v48, %s9123_s25  ;;  %s15284_s25 = smov 70  }
 0x3f8   :  { %1488 = vrot.lane.b32.xlu0 %v9908_v21, %s9126_s28 }
 0x3f9   :  { %v9975_v56 = vpop.permute.xlu1 %1870 }
 0x3fa   :  { %15238 = vst [vmem:[#allocation89_spill] sm:$0xff] %v9975_v56  ;;  %v9977_v10 = vpop.permute.xlu0 %1904 }
 0x3fb   :  { %15239 = vst [vmem:[#allocation90_spill] sm:$0xff] %v9977_v10  ;;  %1466 = vrot.lane.b32.xlu1 %v9933_v48, %s9124_s26  ;;  %s15287_s26 = smov 68  }
 0x3fc   :  { %1500 = vrot.lane.b32.xlu0 %v9908_v21, %s9127_s29 }
 0x3fd   :  { %v9983_v58 = vpop.permute.xlu1 %1882 }
 0x3fe   :  { %15240 = vst [vmem:[#allocation91_spill] sm:$0xff] %v9983_v58  ;;  %v9985_v2 = vpop.permute.xlu0 %1916 }
 0x3ff   :  { %15241 = vst [vmem:[#allocation92_spill] sm:$0xff] %v9985_v2  ;;  %1478 = vrot.lane.b32.xlu1 %v9933_v48, %s9125_s27  ;;  %s15290_s27 = smov 66  }
 0x400   :  { %1512 = vrot.lane.b32.xlu0 %v9908_v21, %s9128_s30 }
 0x401   :  { %v9991_v42 = vpop.permute.xlu1 %1894 }
 0x402   :  { %15242 = vst [vmem:[#allocation93_spill] sm:$0xff] %v9991_v42  ;;  %v9993_v56 = vpop.permute.xlu0 %1928 }
 0x403   :  { %15243 = vst [vmem:[#allocation94_spill] sm:$0xff] %v9993_v56  ;;  %1490 = vrot.lane.b32.xlu1 %v9933_v48, %s9126_s28  ;;  %s15293_s28 = smov 64  }
 0x404   :  { %1524 = vrot.lane.b32.xlu0 %v9908_v21, %s9129_s9 }
 0x405   :  { %v9999_v61 = vpop.permute.xlu1 %1906 }
 0x406   :  { %15244 = vst [vmem:[#allocation95_spill] sm:$0xff] %v9999_v61  ;;  %v10001_v58 = vpop.permute.xlu0 %1940 }
 0x407   :  { %15245 = vst [vmem:[#allocation96_spill] sm:$0xff] %v10001_v58  ;;  %1502 = vrot.lane.b32.xlu1 %v9933_v48, %s9127_s29  ;;  %s15296_s29 = smov 62  }
 0x408   :  { %1536 = vrot.lane.b32.xlu0 %v9908_v21, %s9130_s10 }
 0x409   :  { %v10007_v50 = vpop.permute.xlu1 %1918 }
 0x40a   :  { %15246 = vst [vmem:[#allocation97_spill] sm:$0xff] %v10007_v50  ;;  %v10009_v42 = vpop.permute.xlu0 %1952 }
 0x40b   :  { %15247 = vst [vmem:[#allocation98_spill] sm:$0xff] %v10009_v42  ;;  %1514 = vrot.lane.b32.xlu1 %v9933_v48, %s9128_s30  ;;  %s15299_s30 = smov 60  }
 0x40c   :  { %1548 = vrot.lane.b32.xlu0 %v9908_v21, %s9131_s11 }
 0x40d   :  { %v10015_v30 = vpop.permute.xlu1 %1930 }
 0x40e   :  { %15248 = vst [vmem:[#allocation99_spill] sm:$0xff] %v10015_v30  ;;  %v10017_v61 = vpop.permute.xlu0 %1964 }
 0x40f   :  { %15249 = vst [vmem:[#allocation100_spill] sm:$0xff] %v10017_v61  ;;  %1526 = vrot.lane.b32.xlu1 %v9933_v48, %s9129_s9  ;;  %s15302_s9 = smov 58  }
 0x410   :  { %1560 = vrot.lane.b32.xlu0 %v9908_v21, %s9132_s0 }
 0x411   :  { %v10023_v59 = vpop.permute.xlu1 %1942 }
 0x412   :  { %15250 = vst [vmem:[#allocation101_spill] sm:$0xff] %v10023_v59  ;;  %v10025_v50 = vpop.permute.xlu0 %1976 }
 0x413   :  { %15251 = vst [vmem:[#allocation102_spill] sm:$0xff] %v10025_v50  ;;  %1538 = vrot.lane.b32.xlu1 %v9933_v48, %s9130_s10  ;;  %s15305_s10 = smov 56  }
 0x414   :  { %1572 = vrot.lane.b32.xlu0 %v9908_v21, %s9133_s12 }
 0x415   :  { %v10031_v54 = vpop.permute.xlu1 %1954 }
 0x416   :  { %15252 = vst [vmem:[#allocation103_spill] sm:$0xff] %v10031_v54  ;;  %v10033_v30 = vpop.permute.xlu0 %1988 }
 0x417   :  { %15253 = vst [vmem:[#allocation104_spill] sm:$0xff] %v10033_v30  ;;  %1550 = vrot.lane.b32.xlu1 %v9933_v48, %s9131_s11  ;;  %s15308_s11 = smov 54  }
 0x418   :  { %1584 = vrot.lane.b32.xlu0 %v9908_v21, %s9134_s13 }
 0x419   :  { %v10039_v57 = vpop.permute.xlu1 %1966 }
 0x41a   :  { %15254 = vst [vmem:[#allocation105_spill] sm:$0xff] %v10039_v57  ;;  %v10041_v59 = vpop.permute.xlu0 %2000 }
 0x41b   :  { %15255 = vst [vmem:[#allocation106_spill] sm:$0xff] %v10041_v59  ;;  %1562 = vrot.lane.b32.xlu1 %v9933_v48, %s9132_s0  ;;  %s15311_s0 = smov 52  }
 0x41c   :  { %1596 = vrot.lane.b32.xlu0 %v9908_v21, %s9135_s14 }
 0x41d   :  { %v10047_v1 = vpop.permute.xlu1 %1978 }
 0x41e   :  { %15256 = vst [vmem:[#allocation107_spill] sm:$0xff] %v10047_v1  ;;  %v10049_v54 = vpop.permute.xlu0 %2012 }
 0x41f   :  { %15257 = vst [vmem:[#allocation108_spill] sm:$0xff] %v10049_v54  ;;  %1574 = vrot.lane.b32.xlu1 %v9933_v48, %s9133_s12  ;;  %s15314_s12 = smov 50  }
 0x420   :  { %1608 = vrot.lane.b32.xlu0 %v9908_v21, %s9136_s15 }
 0x421   :  { %v10055_v44 = vpop.permute.xlu1 %1990 }
 0x422   :  { %15258 = vst [vmem:[#allocation109_spill] sm:$0xff] %v10055_v44  ;;  %v10057_v57 = vpop.permute.xlu0 %2024 }
 0x423   :  { %15259 = vst [vmem:[#allocation110_spill] sm:$0xff] %v10057_v57  ;;  %1586 = vrot.lane.b32.xlu1 %v9933_v48, %s9134_s13  ;;  %s15317_s13 = smov 48  }
 0x424   :  { %1620 = vrot.lane.b32.xlu0 %v9908_v21, %s9137_s16 }
 0x425   :  { %v10063_v15 = vpop.permute.xlu1 %2002 }
 0x426   :  { %15260 = vst [vmem:[#allocation111_spill] sm:$0xff] %v10063_v15  ;;  %v10065_v1 = vpop.permute.xlu0 %2036 }
 0x427   :  { %15261 = vst [vmem:[#allocation112_spill] sm:$0xff] %v10065_v1  ;;  %1598 = vrot.lane.b32.xlu1 %v9933_v48, %s9135_s14  ;;  %s15320_s14 = smov 46  }
 0x428   :  { %1632 = vrot.lane.b32.xlu0 %v9908_v21, %s9138_s17 }
 0x429   :  { %v10071_v16 = vpop.permute.xlu1 %2014 }
 0x42a   :  { %15262 = vst [vmem:[#allocation113_spill] sm:$0xff] %v10071_v16  ;;  %v10073_v44 = vpop.permute.xlu0 %2048 }
 0x42b   :  { %15263 = vst [vmem:[#allocation114_spill] sm:$0xff] %v10073_v44  ;;  %1610 = vrot.lane.b32.xlu1 %v9933_v48, %s9136_s15  ;;  %s15323_s15 = smov 44  }
 0x42c   :  { %1644 = vrot.lane.b32.xlu0 %v9908_v21, %s9139_s1 }
 0x42d   :  { %v10079_v29 = vpop.permute.xlu1 %2026 }
 0x42e   :  { %15264 = vst [vmem:[#allocation115_spill] sm:$0xff] %v10079_v29  ;;  %v10081_v15 = vpop.permute.xlu0 %2060 }
 0x42f   :  { %15265 = vst [vmem:[#allocation116_spill] sm:$0xff] %v10081_v15  ;;  %1622 = vrot.lane.b32.xlu1 %v9933_v48, %s9137_s16  ;;  %s15326_s16 = smov 42  }
 0x430   :  { %1656 = vrot.lane.b32.xlu0 %v9908_v21, %s9140_s18 }
 0x431   :  { %v10087_v33 = vpop.permute.xlu1 %2038 }
 0x432   :  { %15266 = vst [vmem:[#allocation117_spill] sm:$0xff] %v10087_v33  ;;  %v10089_v16 = vpop.permute.xlu0 %2072 }
 0x433   :  { %15267 = vst [vmem:[#allocation118_spill] sm:$0xff] %v10089_v16  ;;  %1634 = vrot.lane.b32.xlu1 %v9933_v48, %s9138_s17  ;;  %s15329_s17 = smov 40  }
 0x434   :  { %1668 = vrot.lane.b32.xlu0 %v9908_v21, %s9141_s19 }
 0x435   :  { %v10095_v41 = vpop.permute.xlu1 %2050 }
 0x436   :  { %15268 = vst [vmem:[#allocation119_spill] sm:$0xff] %v10095_v41  ;;  %v10097_v29 = vpop.permute.xlu0 %2084 }
 0x437   :  { %15269 = vst [vmem:[#allocation120_spill] sm:$0xff] %v10097_v29  ;;  %1646 = vrot.lane.b32.xlu1 %v9933_v48, %s9139_s1  ;;  %s15332_s1 = smov 38  }
 0x438   :  { %1680 = vrot.lane.b32.xlu0 %v9908_v21, %s15270_s5 }
 0x439   :  { %v10103_v61 = vpop.permute.xlu1 %2062 }
 0x43a   :  { %15271 = vst [vmem:[#allocation121_spill] sm:$0xff] %v10103_v61  ;;  %v10105_v33 = vpop.permute.xlu0 %2096 }
 0x43b   :  { %15272 = vst [vmem:[#allocation122_spill] sm:$0xff] %v10105_v33  ;;  %1658 = vrot.lane.b32.xlu1 %v9933_v48, %s9140_s18  ;;  %s15335_s18 = smov 36  }
 0x43c   :  { %1692 = vrot.lane.b32.xlu0 %v9908_v21, %s9143_s2 }
 0x43d   :  { %v10111_v30 = vpop.permute.xlu1 %2074 }
 0x43e   :  { %15273 = vst [vmem:[#allocation123_spill] sm:$0xff] %v10111_v30  ;;  %v10113_v41 = vpop.permute.xlu0 %2108 }
 0x43f   :  { %15274 = vst [vmem:[#allocation124_spill] sm:$0xff] %v10113_v41  ;;  %1670 = vrot.lane.b32.xlu1 %v9933_v48, %s9141_s19  ;;  %s15338_s19 = smov 34  }
 0x440   :  { %1704 = vrot.lane.b32.xlu0 %v9908_v21, %s15275_s22 }
 0x441   :  { %v10119_v54 = vpop.permute.xlu1 %2086 }
 0x442   :  { %15276 = vst [vmem:[#allocation125_spill] sm:$0xff] %v10119_v54  ;;  %v10121_v61 = vpop.permute.xlu0 %2120 }
 0x443   :  { %15277 = vst [vmem:[#allocation126_spill] sm:$0xff] %v10121_v61  ;;  %1682 = vrot.lane.b32.xlu1 %v9933_v48, %s15270_s5  ;;  %s15344_s5 = smov 30  }
 0x444   :  { %1716 = vrot.lane.b32.xlu0 %v9908_v21, %s15278_s23 }
 0x445   :  { %v10127_v1 = vpop.permute.xlu1 %2098 }
 0x446   :  { %15279 = vst [vmem:[#allocation127_spill] sm:$0xff] %v10127_v1  ;;  %v10129_v30 = vpop.permute.xlu0 %2132 }
 0x447   :  { %15280 = vst [vmem:[#allocation128_spill] sm:$0xff] %v10129_v30  ;;  %1694 = vrot.lane.b32.xlu1 %v9933_v48, %s9143_s2  ;;  %s15341_s2 = smov 32  }
 0x448   :  { %1728 = vrot.lane.b32.xlu0 %v9908_v21, %s15281_s24 }
 0x449   :  { %v10135_v50 = vpop.permute.xlu1 %2110 }
 0x44a   :  { %15282 = vst [vmem:[#allocation129_spill] sm:$0xff] %v10135_v50  ;;  %v10137_v54 = vpop.permute.xlu0 %2144 }
 0x44b   :  { %15283 = vst [vmem:[#allocation130_spill] sm:$0xff] %v10137_v54  ;;  %1706 = vrot.lane.b32.xlu1 %v9933_v48, %s15275_s22  ;;  %s15347_s22 = smov 28  }
 0x44c   :  { %1740 = vrot.lane.b32.xlu0 %v9908_v21, %s15284_s25 }
 0x44d   :  { %v10143_v59 = vpop.permute.xlu1 %2122 }
 0x44e   :  { %15285 = vst [vmem:[#allocation131_spill] sm:$0xff] %v10143_v59  ;;  %v10145_v1 = vpop.permute.xlu0 %1404 }
 0x44f   :  { %15286 = vst [vmem:[#allocation132_spill] sm:$0xff] %v10145_v1  ;;  %1718 = vrot.lane.b32.xlu1 %v9933_v48, %s15278_s23  ;;  %s15350_s23 = smov 26  }
 0x450   :  { %1752 = vrot.lane.b32.xlu0 %v9908_v21, %s15287_s26 }
 0x451   :  { %v10151_v57 = vpop.permute.xlu1 %2134 }
 0x452   :  { %15288 = vst [vmem:[#allocation133_spill] sm:$0xff] %v10151_v57  ;;  %v10153_v50 = vpop.permute.xlu0 %1416 }
 0x453   :  { %15289 = vst [vmem:[#allocation134_spill] sm:$0xff] %v10153_v50  ;;  %1730 = vrot.lane.b32.xlu1 %v9933_v48, %s15281_s24  ;;  %s15353_s24 = smov 24  }
 0x454   :  { %1764 = vrot.lane.b32.xlu0 %v9908_v21, %s15290_s27 }
 0x455   :  { %v10159_v44 = vpop.permute.xlu1 %2146 }
 0x456   :  { %15291 = vst [vmem:[#allocation135_spill] sm:$0xff] %v10159_v44  ;;  %v10161_v59 = vpop.permute.xlu0 %1428 }
 0x457   :  { %15292 = vst [vmem:[#allocation136_spill] sm:$0xff] %v10161_v59  ;;  %1742 = vrot.lane.b32.xlu1 %v9933_v48, %s15284_s25  ;;  %s15356_s25 = smov 22  }
 0x458   :  { %1776 = vrot.lane.b32.xlu0 %v9908_v21, %s15293_s28 }
 0x459   :  { %v10167_v1 = vpop.permute.xlu1 %1406 }
 0x45a   :  { %15294 = vst [vmem:[#allocation137_spill] sm:$0xff] %v10167_v1  ;;  %v10169_v57 = vpop.permute.xlu0 %1440 }
 0x45b   :  { %15295 = vst [vmem:[#allocation138_spill] sm:$0xff] %v10169_v57  ;;  %1754 = vrot.lane.b32.xlu1 %v9933_v48, %s15287_s26  ;;  %s15359_s26 = smov 20  }
 0x45c   :  { %1788 = vrot.lane.b32.xlu0 %v9908_v21, %s15296_s29 }
 0x45d   :  { %v10175_v50 = vpop.permute.xlu1 %1418 }
 0x45e   :  { %15297 = vst [vmem:[#allocation139_spill] sm:$0xff] %v10175_v50  ;;  %v10177_v44 = vpop.permute.xlu0 %1452 }
 0x45f   :  { %15298 = vst [vmem:[#allocation140_spill] sm:$0xff] %v10177_v44  ;;  %1766 = vrot.lane.b32.xlu1 %v9933_v48, %s15290_s27  ;;  %s15364_s27 = smov 16  }
 0x460   :  { %1800 = vrot.lane.b32.xlu0 %v9908_v21, %s15299_s30 }
 0x461   :  { %v10183_v59 = vpop.permute.xlu1 %1430 }
 0x462   :  { %15300 = vst [vmem:[#allocation141_spill] sm:$0xff] %v10183_v59  ;;  %v10185_v1 = vpop.permute.xlu0 %1464 }
 0x463   :  { %15301 = vst [vmem:[#allocation142_spill] sm:$0xff] %v10185_v1  ;;  %1778 = vrot.lane.b32.xlu1 %v9933_v48, %s15293_s28  ;;  %s15367_s28 = smov 14  }
 0x464   :  { %1812 = vrot.lane.b32.xlu0 %v9908_v21, %s15302_s9 }
 0x465   :  { %v10191_v57 = vpop.permute.xlu1 %1442 }
 0x466   :  { %15303 = vst [vmem:[#allocation143_spill] sm:$0xff] %v10191_v57  ;;  %v10193_v50 = vpop.permute.xlu0 %1476 }
 0x467   :  { %15304 = vst [vmem:[#allocation144_spill] sm:$0xff] %v10193_v50  ;;  %1790 = vrot.lane.b32.xlu1 %v9933_v48, %s15296_s29  ;;  %s15370_s29 = smov 12  }
 0x468   :  { %1824 = vrot.lane.b32.xlu0 %v9908_v21, %s15305_s10 }
 0x469   :  { %v10199_v44 = vpop.permute.xlu1 %1454 }
 0x46a   :  { %15306 = vst [vmem:[#allocation145_spill] sm:$0xff] %v10199_v44  ;;  %v10201_v59 = vpop.permute.xlu0 %1488 }
 0x46b   :  { %15307 = vst [vmem:[#allocation146_spill] sm:$0xff] %v10201_v59  ;;  %1802 = vrot.lane.b32.xlu1 %v9933_v48, %s15299_s30 }
 0x46c   :  { %1836 = vrot.lane.b32.xlu0 %v9908_v21, %s15308_s11 }
 0x46d   :  { %v10207_v1 = vpop.permute.xlu1 %1466 }
 0x46e   :  { %15309 = vst [vmem:[#allocation147_spill] sm:$0xff] %v10207_v1  ;;  %v10209_v57 = vpop.permute.xlu0 %1500 }
 0x46f   :  { %15310 = vst [vmem:[#allocation148_spill] sm:$0xff] %v10209_v57  ;;  %1814 = vrot.lane.b32.xlu1 %v9933_v48, %s15302_s9 }
 0x470   :  { %1848 = vrot.lane.b32.xlu0 %v9908_v21, %s15311_s0 }
 0x471   :  { %v10215_v50 = vpop.permute.xlu1 %1478 }
 0x472   :  { %15312 = vst [vmem:[#allocation149_spill] sm:$0xff] %v10215_v50  ;;  %v10217_v44 = vpop.permute.xlu0 %1512 }
 0x473   :  { %15313 = vst [vmem:[#allocation150_spill] sm:$0xff] %v10217_v44  ;;  %1826 = vrot.lane.b32.xlu1 %v9933_v48, %s15305_s10 }
 0x474   :  { %1860 = vrot.lane.b32.xlu0 %v9908_v21, %s15314_s12 }
 0x475   :  { %v10223_v59 = vpop.permute.xlu1 %1490 }
 0x476   :  { %15315 = vst [vmem:[#allocation151_spill] sm:$0xff] %v10223_v59  ;;  %v10225_v1 = vpop.permute.xlu0 %1524 }
 0x477   :  { %15316 = vst [vmem:[#allocation152_spill] sm:$0xff] %v10225_v1  ;;  %1838 = vrot.lane.b32.xlu1 %v9933_v48, %s15308_s11 }
 0x478   :  { %1872 = vrot.lane.b32.xlu0 %v9908_v21, %s15317_s13 }
 0x479   :  { %v10231_v57 = vpop.permute.xlu1 %1502 }
 0x47a   :  { %15318 = vst [vmem:[#allocation153_spill] sm:$0xff] %v10231_v57  ;;  %v10233_v50 = vpop.permute.xlu0 %1536 }
 0x47b   :  { %15319 = vst [vmem:[#allocation154_spill] sm:$0xff] %v10233_v50  ;;  %1850 = vrot.lane.b32.xlu1 %v9933_v48, %s15311_s0 }
 0x47c   :  { %1884 = vrot.lane.b32.xlu0 %v9908_v21, %s15320_s14 }
 0x47d   :  { %v10239_v44 = vpop.permute.xlu1 %1514 }
 0x47e   :  { %15321 = vst [vmem:[#allocation155_spill] sm:$0xff] %v10239_v44  ;;  %v10241_v59 = vpop.permute.xlu0 %1548 }
 0x47f   :  { %15322 = vst [vmem:[#allocation156_spill] sm:$0xff] %v10241_v59  ;;  %1862 = vrot.lane.b32.xlu1 %v9933_v48, %s15314_s12 }
 0x480   :  { %1896 = vrot.lane.b32.xlu0 %v9908_v21, %s15323_s15 }
 0x481   :  { %v10247_v1 = vpop.permute.xlu1 %1526 }
 0x482   :  { %15324 = vst [vmem:[#allocation157_spill] sm:$0xff] %v10247_v1  ;;  %v10249_v57 = vpop.permute.xlu0 %1560 }
 0x483   :  { %15325 = vst [vmem:[#allocation158_spill] sm:$0xff] %v10249_v57  ;;  %1874 = vrot.lane.b32.xlu1 %v9933_v48, %s15317_s13 }
 0x484   :  { %1908 = vrot.lane.b32.xlu0 %v9908_v21, %s15326_s16 }
 0x485   :  { %v10255_v50 = vpop.permute.xlu1 %1538 }
 0x486   :  { %15327 = vst [vmem:[#allocation159_spill] sm:$0xff] %v10255_v50  ;;  %v10257_v44 = vpop.permute.xlu0 %1572 }
 0x487   :  { %15328 = vst [vmem:[#allocation160_spill] sm:$0xff] %v10257_v44  ;;  %1886 = vrot.lane.b32.xlu1 %v9933_v48, %s15320_s14 }
 0x488   :  { %1920 = vrot.lane.b32.xlu0 %v9908_v21, %s15329_s17 }
 0x489   :  { %v10263_v59 = vpop.permute.xlu1 %1550 }
 0x48a   :  { %15330 = vst [vmem:[#allocation161_spill] sm:$0xff] %v10263_v59  ;;  %v10265_v1 = vpop.permute.xlu0 %1584 }
 0x48b   :  { %15331 = vst [vmem:[#allocation162_spill] sm:$0xff] %v10265_v1  ;;  %1898 = vrot.lane.b32.xlu1 %v9933_v48, %s15323_s15 }
 0x48c   :  { %1932 = vrot.lane.b32.xlu0 %v9908_v21, %s15332_s1 }
 0x48d   :  { %v10271_v57 = vpop.permute.xlu1 %1562 }
 0x48e   :  { %15333 = vst [vmem:[#allocation163_spill] sm:$0xff] %v10271_v57  ;;  %v10273_v50 = vpop.permute.xlu0 %1596 }
 0x48f   :  { %15334 = vst [vmem:[#allocation164_spill] sm:$0xff] %v10273_v50  ;;  %1910 = vrot.lane.b32.xlu1 %v9933_v48, %s15326_s16 }
 0x490   :  { %1944 = vrot.lane.b32.xlu0 %v9908_v21, %s15335_s18 }
 0x491   :  { %v10279_v44 = vpop.permute.xlu1 %1574 }
 0x492   :  { %15336 = vst [vmem:[#allocation165_spill] sm:$0xff] %v10279_v44  ;;  %v10281_v59 = vpop.permute.xlu0 %1608 }
 0x493   :  { %15337 = vst [vmem:[#allocation166_spill] sm:$0xff] %v10281_v59  ;;  %1922 = vrot.lane.b32.xlu1 %v9933_v48, %s15329_s17 }
 0x494   :  { %1956 = vrot.lane.b32.xlu0 %v9908_v21, %s15338_s19 }
 0x495   :  { %v10287_v1 = vpop.permute.xlu1 %1586 }
 0x496   :  { %15339 = vst [vmem:[#allocation167_spill] sm:$0xff] %v10287_v1  ;;  %v10289_v57 = vpop.permute.xlu0 %1620 }
 0x497   :  { %15340 = vst [vmem:[#allocation168_spill] sm:$0xff] %v10289_v57  ;;  %1934 = vrot.lane.b32.xlu1 %v9933_v48, %s15332_s1 }
 0x498   :  { %1968 = vrot.lane.b32.xlu0 %v9908_v21, %s15341_s2 }
 0x499   :  { %v10295_v50 = vpop.permute.xlu1 %1598 }
 0x49a   :  { %15342 = vst [vmem:[#allocation169_spill] sm:$0xff] %v10295_v50  ;;  %v10297_v44 = vpop.permute.xlu0 %1632 }
 0x49b   :  { %15343 = vst [vmem:[#allocation170_spill] sm:$0xff] %v10297_v44  ;;  %1946 = vrot.lane.b32.xlu1 %v9933_v48, %s15335_s18 }
 0x49c   :  { %1980 = vrot.lane.b32.xlu0 %v9908_v21, %s15344_s5 }
 0x49d   :  { %v10303_v59 = vpop.permute.xlu1 %1610 }
 0x49e   :  { %15345 = vst [vmem:[#allocation171_spill] sm:$0xff] %v10303_v59  ;;  %v10305_v1 = vpop.permute.xlu0 %1644 }
 0x49f   :  { %15346 = vst [vmem:[#allocation172_spill] sm:$0xff] %v10305_v1  ;;  %1958 = vrot.lane.b32.xlu1 %v9933_v48, %s15338_s19 }
 0x4a0   :  { %1992 = vrot.lane.b32.xlu0 %v9908_v21, %s15347_s22 }
 0x4a1   :  { %v10311_v57 = vpop.permute.xlu1 %1622 }
 0x4a2   :  { %15348 = vst [vmem:[#allocation173_spill] sm:$0xff] %v10311_v57  ;;  %v10313_v50 = vpop.permute.xlu0 %1656 }
 0x4a3   :  { %15349 = vst [vmem:[#allocation174_spill] sm:$0xff] %v10313_v50  ;;  %1970 = vrot.lane.b32.xlu1 %v9933_v48, %s15341_s2 }
 0x4a4   :  { %2004 = vrot.lane.b32.xlu0 %v9908_v21, %s15350_s23 }
 0x4a5   :  { %v10319_v44 = vpop.permute.xlu1 %1634 }
 0x4a6   :  { %15351 = vst [vmem:[#allocation175_spill] sm:$0xff] %v10319_v44  ;;  %v10321_v59 = vpop.permute.xlu0 %1668 }
 0x4a7   :  { %15352 = vst [vmem:[#allocation176_spill] sm:$0xff] %v10321_v59  ;;  %1982 = vrot.lane.b32.xlu1 %v9933_v48, %s15344_s5 }
 0x4a8   :  { %2016 = vrot.lane.b32.xlu0 %v9908_v21, %s15353_s24 }
 0x4a9   :  { %v10327_v1 = vpop.permute.xlu1 %1646 }
 0x4aa   :  { %15354 = vst [vmem:[#allocation177_spill] sm:$0xff] %v10327_v1  ;;  %v10329_v57 = vpop.permute.xlu0 %1680 }
 0x4ab   :  { %15355 = vst [vmem:[#allocation178_spill] sm:$0xff] %v10329_v57  ;;  %1994 = vrot.lane.b32.xlu1 %v9933_v48, %s15347_s22 }
 0x4ac   :  { %2028 = vrot.lane.b32.xlu0 %v9908_v21, %s15356_s25 }
 0x4ad   :  { %v10335_v50 = vpop.permute.xlu1 %1658 }
 0x4ae   :  { %15357 = vst [vmem:[#allocation179_spill] sm:$0xff] %v10335_v50  ;;  %v10337_v44 = vpop.permute.xlu0 %1692 }
 0x4af   :  { %15358 = vst [vmem:[#allocation180_spill] sm:$0xff] %v10337_v44  ;;  %2006 = vrot.lane.b32.xlu1 %v9933_v48, %s15350_s23 }
 0x4b0   :  { %2040 = vrot.lane.b32.xlu0 %v9908_v21, %s15359_s26 }
 0x4b1   :  { %v10343_v59 = vpop.permute.xlu1 %1670 }
 0x4b2   :  { %15360 = vst [vmem:[#allocation181_spill] sm:$0xff] %v10343_v59  ;;  %v10345_v1 = vpop.permute.xlu0 %1704 }
 0x4b3   :  { %15361 = vst [vmem:[#allocation182_spill] sm:$0xff] %v10345_v1  ;;  %2018 = vrot.lane.b32.xlu1 %v9933_v48, %s15353_s24 }
 0x4b4   :  { %2052 = vrot.lane.b32.xlu0 %v9908_v21, %s9173_s4 }
 0x4b5   :  { %v10351_v57 = vpop.permute.xlu1 %1682 }
 0x4b6   :  { %15362 = vst [vmem:[#allocation183_spill] sm:$0xff] %v10351_v57  ;;  %v10353_v50 = vpop.permute.xlu0 %1716 }
 0x4b7   :  { %15363 = vst [vmem:[#allocation184_spill] sm:$0xff] %v10353_v50  ;;  %2030 = vrot.lane.b32.xlu1 %v9933_v48, %s15356_s25 }
 0x4b8   :  { %2064 = vrot.lane.b32.xlu0 %v9908_v21, %s15364_s27 }
 0x4b9   :  { %v10359_v44 = vpop.permute.xlu1 %1694 }
 0x4ba   :  { %15365 = vst [vmem:[#allocation185_spill] sm:$0xff] %v10359_v44  ;;  %v10361_v59 = vpop.permute.xlu0 %1728 }
 0x4bb   :  { %15366 = vst [vmem:[#allocation186_spill] sm:$0xff] %v10361_v59  ;;  %2042 = vrot.lane.b32.xlu1 %v9933_v48, %s15359_s26 }
 0x4bc   :  { %2076 = vrot.lane.b32.xlu0 %v9908_v21, %s15367_s28 }
 0x4bd   :  { %v10367_v1 = vpop.permute.xlu1 %1706 }
 0x4be   :  { %15368 = vst [vmem:[#allocation187_spill] sm:$0xff] %v10367_v1  ;;  %v10369_v57 = vpop.permute.xlu0 %1740 }
 0x4bf   :  { %15369 = vst [vmem:[#allocation188_spill] sm:$0xff] %v10369_v57  ;;  %2054 = vrot.lane.b32.xlu1 %v9933_v48, %s9173_s4 }
 0x4c0   :  { %2088 = vrot.lane.b32.xlu0 %v9908_v21, %s15370_s29 }
 0x4c1   :  { %v10375_v50 = vpop.permute.xlu1 %1718 }
 0x4c2   :  { %15371 = vst [vmem:[#allocation189_spill] sm:$0xff] %v10375_v50  ;;  %v10377_v44 = vpop.permute.xlu0 %1752 }
 0x4c3   :  { %15372 = vst [vmem:[#allocation190_spill] sm:$0xff] %v10377_v44  ;;  %2066 = vrot.lane.b32.xlu1 %v9933_v48, %s15364_s27 }
 0x4c4   :  { %2100 = vrot.lane.b32.xlu0 %v9908_v21, %s9177_s20 }
 0x4c5   :  { %v10383_v59 = vpop.permute.xlu1 %1730 }
 0x4c6   :  { %15373 = vst [vmem:[#allocation191_spill] sm:$0xff] %v10383_v59  ;;  %v10385_v1 = vpop.permute.xlu0 %1764 }
 0x4c7   :  { %15374 = vst [vmem:[#allocation192_spill] sm:$0xff] %v10385_v1  ;;  %2078 = vrot.lane.b32.xlu1 %v9933_v48, %s15367_s28 }
 0x4c8   :  { %2112 = vrot.lane.b32.xlu0 %v9908_v21, %s9113_s8 }
 0x4c9   :  { %v10391_v57 = vpop.permute.xlu1 %1742 }
 0x4ca   :  { %15375 = vst [vmem:[#allocation193_spill] sm:$0xff] %v10391_v57  ;;  %v10393_v50 = vpop.permute.xlu0 %1776  ;;  %v9181_v57 = vmov 1983009808  }
 0x4cb   :  { %15376 = vst [vmem:[#allocation194_spill] sm:$0xff] %v10393_v50  ;;  %2090 = vrot.lane.b32.xlu1 %v9933_v48, %s15370_s29  ;;  %v2159_v50 = vunpack.c.l.s4 %v9181_v57 }
 0x4cc   :  { %2124 = vrot.lane.b32.xlu0 %v9908_v21, %s9178_s7 }
 0x4cd   :  { %v10399_v44 = vpop.permute.xlu1 %1754 }
 0x4ce   :  { %15377 = vst [vmem:[#allocation195_spill] sm:$0xff] %v10399_v44  ;;  %v10401_v59 = vpop.permute.xlu0 %1788 }
 0x4cf   :  { %15378 = vst [vmem:[#allocation196_spill] sm:$0xff] %v10401_v59  ;;  %2102 = vrot.lane.b32.xlu1 %v9933_v48, %s9177_s20  ;;  %v2160_v59 = vunpack.c.0.s8 %v2159_v50 }
 0x4d0   :  { %2136 = vrot.lane.b32.xlu0 %v9908_v21, %s9179_s3 }
 0x4d1   :  { %v10407_v1 = vpop.permute.xlu1 %1766 }
 0x4d2   :  { %15379 = vst [vmem:[#allocation197_spill] sm:$0xff] %v10407_v1  ;;  %v10409_v8 = vpop.permute.xlu0 %1800  ;;  %v2204_v1 = vcombine.low %v9621_v34, %v9637_v40  ;;  %v2156_v34 = vcombine.low %v9472_v11, %v9597_v51 }
 0x4d3   :  { %15380 = vst [vmem:[#allocation198_spill] sm:$0xff] %v10409_v8  ;;  %2114 = vrot.lane.b32.xlu1 %v9933_v48, %s9113_s8  ;;  %v10426_v8 = vsub.s32 %v2160_v59, %v9314_v7 }
 0x4d4   :  { %2148 = vrot.lane.b32.xlu0 %v9908_v21, %s9180_s21 }
 0x4d5   :  { %v10415_v44 = vpop.permute.xlu1 %1778  ;;  %15384 = vst [vmem:[#allocation202_spill] sm:$0xff] %v10426_v8  ;;  %v10444_v40 = vrot.slane %v2172_v3, %v10426_v8 }
 0x4d6   :  { %15381 = vst [vmem:[#allocation199_spill] sm:$0xff] %v10415_v44  ;;  %v10417_v0 = vpop.permute.xlu0 %1812  ;;  %v2188_v44 = vcombine.low %v9613_v31, %v9629_v26 }
 0x4d7   :  { %15382 = vst [vmem:[#allocation200_spill] sm:$0xff] %v10417_v0  ;;  %2126 = vrot.lane.b32.xlu1 %v9933_v48, %s9178_s7  ;;  %v9182_v0 = vmov 1934713408   ;;  %s9183_s7 = smov [#allocation6]  }
 0x4d8   :  { %v2223_v21 = vunpack.c.l.s4 %v9182_v0  ;;  %v10447_v31 = vrot.slane %v2188_v44, %v10426_v8  ;;  %v10452_v0 = vrot.slane %v2156_v34, %v10426_v8  ;;  %v2444_v34 = vcombine.low %v9735_v28, %v9757_v6  ;;  %v15401_v28 = vld [vmem:[#allocation110_spill] sm:$0xff]  ;;  %s8844_s20 = sshll.u32 %s9183_s7, 4  ;;  %s8845_s20 = int_to_ptr.vmem [resolvable:$true] %s8844_s20 }
 0x4d9   :  { %v10423_v57 = vpop.permute.xlu1 %1790  ;;  %p9090_p9 = scmp.lt.s32.totalorder %s8845_s20, %s8845_s20 }
 0x4da   :  { %15383 = vst [vmem:[#allocation201_spill] sm:$0xff] %v10423_v57  ;;  %v10432_v50 = vpop.permute.xlu0 %1824  ;;  %v10439_v57 = vrot.slane %v2204_v1, %v10426_v8  ;;  %v2220_v44 = vcombine.low %v10452_v0, %v10444_v40 }
 0x4db   :  { %15385 = vst [vmem:[#allocation203_spill] sm:$0xff] %v10432_v50  ;;  %2138 = vrot.lane.b32.xlu1 %v9933_v48, %s9179_s3  ;;  %v2224_v50 = vunpack.c.0.s8 %v2223_v21  ;;  %s9085_s3 = scalar_lea.vmem %s8845_s20, 512 }
 0x4dc   :  { %v2252_v26 = vcombine.low %v10447_v31, %v10439_v57  ;;  %p9086_p8 = scmp.ne.s32.totalorder %s8845_s20, %s9085_s3  ;;  %p9091_p10 = scmp.lt.s32.totalorder %s9085_s3, %s9085_s3 }
 0x4dd   :  { %v10441_v59 = vpop.permute.xlu1 %1802  ;;  %v10465_v21 = vsub.s32 %v2224_v50, %v9314_v7 }
 0x4de   :  { %15386 = vst [vmem:[#allocation204_spill] sm:$0xff] %v10441_v59  ;;  %v10456_v1 = vpop.permute.xlu0 %1836  ;;  %v2476_v59 = vcombine.low %v9773_v17, %v9789_v27  ;;  %v2612_v17 = vcombine.low %v9849_v35, %v9871_v62  ;;  %p9092_p11 = por %p9091_p10, %p9090_p9 }
 0x4df   :  { %2150 = vrot.lane.b32.xlu1 %v9933_v48, %s9180_s21  ;;  %15387 = vst [vmem:[#allocation205_spill] sm:$0xff] %v10456_v1  ;;  %v2460_v48 = vcombine.low %v9765_v39, %v9781_v24  ;;  %v10472_v5 = vrot.slane %v2252_v26, %v10465_v21  ;;  %v2428_v1 = vcombine.low %v9724_v19, %v9746_v18  ;;  %v15406_v19 = vld [vmem:[#allocation108_spill] sm:$0xff] }
 0x4e0   :  { %v10486_v27 = vrot.slane %v2220_v44, %v10465_v21  ;;  %v10489_v39 = vrot.slane %v2444_v34, %v10426_v8  ;;  %v2596_v24 = vcombine.low %v9837_v12, %v9860_v63  ;;  %v10508_v34 = vrot.slane %v2612_v17, %v10426_v8  ;;  %p9093_p12 = pnand %p9092_p11, %p9086_p8 }
 0x4e1   :  { %v10460_v3 = vpop.permute.xlu1 %1814  ;;  %v10492_v26 = vrot.slane %v2460_v48, %v10426_v8  ;;  %v2564_v48 = vcombine.low %v9797_v4, %v9817_v36  ;;  %v2292_v12 = vcombine.low %v9645_v49, %v9661_v52  ;;  %v2884_v63 = vcombine.low %v9993_v56, %v10009_v42 }
 0x4e2   :  { %15388 = vst [vmem:[#allocation206_spill] sm:$0xff] %v10460_v3  ;;  %v10477_v3 = vrot.slane %v2476_v59, %v10426_v8  ;;  %v10483_v7 = vpop.permute.xlu0 %1848  ;;  %v2580_v59 = vcombine.low %v9805_v32, %v9827_v25  ;;  %v10524_v17 = vrot.slane %v2596_v24, %v10426_v8  ;;  %v2868_v4 = vcombine.low %v9985_v2, %v10001_v58 }
 0x4e3   :  { %15390 = vst [vmem:[#allocation208_spill] sm:$0xff] %v10483_v7  ;;  %v10501_v7 = vrot.slane %v2428_v1, %v10426_v8  ;;  %v2340_v1 = vcombine.low %v9685_v47, %v9710_v55  ;;  %v2324_v42 = vcombine.low %v9677_v23, %v9699_v45  ;;  %v10536_v62 = vrot.slane %v2564_v48, %v10426_v8 }
 0x4e4   :  { %v2524_v44 = vcombine.low %v10492_v26, %v10477_v3  ;;  %v10521_v35 = vrot.slane %v2580_v59, %v10426_v8  ;;  %v2660_v24 = vcombine.low %v10524_v17, %v10508_v34  ;;  %v10546_v2 = vrot.slane %v2292_v12, %v10426_v8 }
 0x4e5   :  { %v10481_v50 = vpop.permute.xlu1 %1826  ;;  %v2492_v25 = vcombine.low %v10501_v7, %v10489_v39  ;;  %v3156_v48 = vcombine.low %v10121_v61, %v10137_v54  ;;  %v2308_v58 = vcombine.low %v9653_v60, %v9669_v14  ;;  %v3124_v61 = vcombine.low %v10089_v16, %v10105_v33  ;;  %v15400_v33 = vld [vmem:[#allocation114_spill] sm:$0xff] }
 0x4e6   :  { %15389 = vst [vmem:[#allocation207_spill] sm:$0xff] %v10481_v50  ;;  %v2284_v50 = vcombine.low %v10486_v27, %v10472_v5  ;;  %v10530_v36 = vpop.permute.xlu0 %1860  ;;  %v3140_v54 = vcombine.low %v10113_v41, %v10129_v30 }
 0x4e7   :  { %15392 = vst [vmem:[#allocation210_spill] sm:$0xff] %v10530_v36  ;;  %v10551_v36 = vrot.slane %v2884_v63, %v10426_v8  ;;  %v10563_v12 = vrot.slane %v2492_v25, %v10465_v21  ;;  %v10569_v63 = vrot.slane %v2868_v4, %v10426_v8  ;;  %v10585_v4 = vrot.slane %v2660_v24, %v10465_v21 }
 0x4e8   :  { %v6509_v56 = vsel %vm6508_vm0, %v2284_v50, -inf  ;;  %v2836_v50 = vcombine.low %v9953_v43, %v9969_v9  ;;  %v2748_v9 = vcombine.low %v9927_v38, %v9945_v13  ;;  %v10595_v30 = vrot.slane %v3156_v48, %v10426_v8 }
 0x4e9   :  { %v10510_v32 = vpop.permute.xlu1 %1838  ;;  %v2932_v41 = vcombine.low %v10569_v63, %v10551_v36  ;;  %v2716_v24 = vcombine.low %v9891_v20, %v9911_v53  ;;  %v15397_v20 = vld [vmem:[#allocation70_spill] sm:$0xff] }
 0x4ea   :  { %15391 = vst [vmem:[#allocation209_spill] sm:$0xff] %v10510_v32  ;;  %v2852_v32 = vcombine.low %v9961_v46, %v9977_v10  ;;  %v10543_v46 = vrot.slane %v2524_v44, %v10465_v21  ;;  %v2628_v44 = vcombine.low %v10536_v62, %v10521_v35  ;;  %v10588_v10 = vrot.slane %v2836_v50, %v10426_v8  ;;  %v10597_v38 = vpop.permute.xlu0 %1872  ;;  %v15396_v50 = vld [vmem:[#allocation75_spill] sm:$0xff]  ;;  %v15398_v53 = vld [vmem:[#allocation66_spill] sm:$0xff] }
 0x4eb   :  { %15395 = vst [vmem:[#allocation213_spill] sm:$0xff] %v10597_v38  ;;  %v2732_v13 = vcombine.low %v15396_v50, %v9937_v37  ;;  %v10614_v38 = vrot.slane %v3124_v61, %v10426_v8  ;;  %v3020_v61 = vcombine.low %v15401_v28, %v15400_v33  ;;  %v15403_v28 = vld [vmem:[#allocation106_spill] sm:$0xff] }
 0x4ec   :  { %v10566_v43 = vrot.slane %v2852_v32, %v10426_v8  ;;  %v2556_v32 = vcombine.low %v10563_v12, %v10543_v46  ;;  %v10607_v16 = vrot.slane %v2628_v44, %v10465_v21  ;;  %v15404_v33 = vld [vmem:[#allocation102_spill] sm:$0xff] }
 0x4ed   :  { %v10540_v59 = vpop.permute.xlu1 %1850  ;;  %v10668_v45 = vrot.slane %v3020_v61, %v10426_v8 }
 0x4ee   :  { %15393 = vst [vmem:[#allocation211_spill] sm:$0xff] %v10540_v59  ;;  %v10558_v59 = vrot.slane %v2340_v1, %v10426_v8  ;;  %v10576_v1 = vrot.slane %v2324_v42, %v10426_v8  ;;  %v3108_v42 = vcombine.low %v10081_v15, %v10097_v29  ;;  %v2900_v48 = vcombine.low %v10588_v10, %v10566_v43  ;;  %v10653_v49 = vpop.permute.xlu0 %1884 }
 0x4ef   :  { %v2700_v29 = vcombine.low %v15398_v53, %v15397_v20  ;;  %v6515_v50 = vsel %vm6508_vm0, %v2556_v32, -inf  ;;  %v2692_v37 = vcombine.low %v10607_v16, %v10585_v4  ;;  %v10637_v53 = vrot.slane %v2932_v41, %v10465_v21  ;;  %v15405_v20 = vld [vmem:[#allocation112_spill] sm:$0xff]  ;;  %15407 = vst [vmem:[#allocation216_spill] sm:$0xff] %v10653_v49 }
 0x4f0   :  { %v2388_v15 = vcombine.low %v10576_v1, %v10558_v59  ;;  %v10632_v6 = vrot.slane %v3108_v42, %v10426_v8  ;;  %v10642_v32 = vrot.slane %v2716_v24, %v10426_v8  ;;  %v2988_v42 = vcombine.low %v15404_v33, %v15403_v28 }
 0x4f1   :  { %v10580_v25 = vpop.permute.xlu1 %1862  ;;  %v3004_v18 = vcombine.low %v15406_v19, %v15405_v20  ;;  %v2908_v52 = vrot.slane %v2900_v48, %v10465_v21  ;;  %v10657_v24 = vrot.slane %v2700_v29, %v10426_v8  ;;  %v6518_v33 = vsel %vm6508_vm0, %v2692_v37, -inf  ;;  %v15410_v19 = vld [vmem:[#allocation104_spill] sm:$0xff] }
 0x4f2   :  { %15394 = vst [vmem:[#allocation212_spill] sm:$0xff] %v10580_v25  ;;  %v10600_v25 = vrot.slane %v2308_v58, %v10426_v8  ;;  %v10617_v58 = vrot.slane %v3140_v54, %v10426_v8  ;;  %15402 = vst [vmem:[#allocation215_spill] sm:$0xff] %v10642_v32  ;;  %v3172_v41 = vcombine.low %v10632_v6, %v10614_v38  ;;  %v15411_v20 = vld [vmem:[#allocation100_spill] sm:$0xff] }
 0x4f3   :  { %6510 = vmax.xlane.f32.xlu0 %v6509_v56  ;;  %v10622_v56 = vrot.slane %v2748_v9, %v10426_v8  ;;  %15408 = vst [vmem:[#allocation217_spill] sm:$0xff] %v10657_v24  ;;  %v2396_v28 = vrot.slane %v2388_v15, %v10465_v21  ;;  %v2972_v23 = vcombine.low %v15411_v20, %v15410_v19 }
 0x4f4   :  { %v3204_v54 = vcombine.low %v10617_v58, %v10595_v30  ;;  %v2356_v9 = vcombine.low %v10546_v2, %v10600_v25  ;;  %v2964_v48 = vcombine.low %v2908_v52, %v10637_v53  ;;  %v10678_v37 = vrot.slane %v2988_v42, %v10426_v8 }
 0x4f5   :  { %v10624_v44 = vpop.permute.xlu1 %1874  ;;  %v10681_v15 = vrot.slane %v3004_v18, %v10426_v8  ;;  %v3180_v61 = vrot.slane %v3172_v41, %v10465_v21 }
 0x4f6   :  { %15399 = vst [vmem:[#allocation214_spill] sm:$0xff] %v10624_v44  ;;  %v10645_v44 = vrot.slane %v2732_v13, %v10426_v8  ;;  %v10672_v29 = vrot.slane %v3204_v54, %v10465_v21  ;;  %v2364_v49 = vrot.slane %v2356_v9, %v10465_v21  ;;  %v6524_v42 = vsel %vm6508_vm0, %v2964_v48, -inf }
 0x4f7   :  { %6516 = vmax.xlane.f32.xlu0 %v6515_v50  ;;  %15412 = vst [vmem:[#allocation219_spill] sm:$0xff] %v10681_v15  ;;  %v3068_v9 = vcombine.low %v10681_v15, %v10668_v45 }
 0x4f8   :  { %v2796_v13 = vcombine.low %v10645_v44, %v10622_v56  ;;  %v2420_v19 = vcombine.low %v2364_v49, %v2396_v28  ;;  %v3236_v18 = vcombine.low %v3180_v61, %v10672_v29 }
 0x4f9   :  { %v10661_v50 = vpop.permute.xlu1 %1886 }
 0x4fa   :  { %15409 = vst [vmem:[#allocation218_spill] sm:$0xff] %v10661_v50  ;;  %v2764_v50 = vcombine.low %v10657_v24, %v10642_v32  ;;  %v10687_v54 = vrot.slane %v2796_v13, %v10465_v21  ;;  %v10694_v24 = vpop.permute.xlu0 %1896  ;;  %v2421_v32 = vcombine.high %v2364_v49, %v2396_v28 }
 0x4fb   :  { %6519 = vmax.xlane.f32.xlu0 %v6518_v33  ;;  %v10690_v33 = vrot.slane %v2972_v23, %v10426_v8  ;;  %15414 = vst [vmem:[#allocation221_spill] sm:$0xff] %v10694_v24  ;;  %v6512_v23 = vsel %vm6508_vm0, %v2420_v19, -inf  ;;  %v6530_v8 = vsel %vm6508_vm0, %v3236_v18, -inf  ;;  %v10707_v24 = vrot.slane %v3068_v9, %v10465_v21 }
 0x4fc   :  { %v6536_v19 = vsel %vm6508_vm0, %v2421_v32, -inf  ;;  %v2693_v9 = vcombine.high %v10607_v16, %v10585_v4  ;;  %v2389_v32 = vcombine.high %v10576_v1, %v10558_v59  ;;  %v2357_v16 = vcombine.high %v10546_v2, %v10600_v25 }
 0x4fd   :  { %v10684_v20 = vpop.permute.xlu1 %1898  ;;  %v3036_v41 = vcombine.low %v10690_v33, %v10678_v37  ;;  %v3237_v59 = vcombine.high %v3180_v61, %v10672_v29  ;;  %v2253_v2 = vcombine.high %v10447_v31, %v10439_v57  ;;  %v2933_v29 = vcombine.high %v10569_v63, %v10551_v36 }
 0x4fe   :  { %15413 = vst [vmem:[#allocation220_spill] sm:$0xff] %v10684_v20  ;;  %v2772_v20 = vrot.slane %v2764_v50, %v10465_v21  ;;  %v10709_v48 = vpop.permute.xlu0 %1908  ;;  %v2901_v57 = vcombine.high %v10588_v10, %v10566_v43  ;;  %v2525_v63 = vcombine.high %v10492_v26, %v10477_v3  ;;  %v3205_v43 = vcombine.high %v10617_v58, %v10595_v30  ;;  %v15425_v26 = vld [vmem:[#allocation12_spill] sm:$0xff] }
 0x4ff   :  { %6525 = vmax.xlane.f32.xlu0 %v6524_v42  ;;  %15416 = vst [vmem:[#allocation223_spill] sm:$0xff] %v10709_v48  ;;  %v10712_v42 = vrot.slane %v3036_v41, %v10465_v21  ;;  %v6554_v31 = vsel %vm6508_vm0, %v3237_v59, -inf  ;;  %v10798_v3 = vrot.slane %v2933_v29, %v10465_v21  ;;  %v2493_v30 = vcombine.high %v10501_v7, %v10489_v39 }
 0x500   :  { %v2828_v15 = vcombine.low %v2772_v20, %v10687_v54  ;;  %v2829_v25 = vcombine.high %v2772_v20, %v10687_v54  ;;  %v2341_v58 = vcombine.high %v9685_v47, %v9710_v55  ;;  %v2797_v7 = vcombine.high %v10645_v44, %v10622_v56  ;;  %v15431_v55 = vld [vmem:[#allocation31_spill] sm:$0xff] }
 0x501   :  { %v10701_v13 = vpop.permute.xlu1 %1910  ;;  %v3100_v28 = vcombine.low %v10712_v42, %v10707_v24  ;;  %v10825_v47 = vrot.slane %v2525_v63, %v10465_v21  ;;  %v15434_v44 = vld [vmem:[#allocation215_spill] sm:$0xff] }
 0x502   :  { %15415 = vst [vmem:[#allocation222_spill] sm:$0xff] %v10701_v13  ;;  %v6521_v49 = vsel %vm6508_vm0, %v2828_v15, -inf  ;;  %v10724_v18 = vpop.permute.xlu0 %1920  ;;  %v6542_v15 = vsel %vm6508_vm0, %v2693_v9, -inf  ;;  %v6545_v54 = vsel %vm6508_vm0, %v2829_v25, -inf  ;;  %v10846_v25 = vrot.slane %v2493_v30, %v10465_v21 }
 0x503   :  { %6513 = vmax.xlane.f32.xlu1 %v6512_v23  ;;  %6531 = vmax.xlane.f32.xlu0 %v6530_v8  ;;  %15419 = vst [vmem:[#allocation226_spill] sm:$0xff] %v10724_v18  ;;  %v6527_v41 = vsel %vm6508_vm0, %v3100_v28, -inf  ;;  %v2285_v23 = vcombine.high %v10486_v27, %v10472_v5  ;;  %v2557_v28 = vcombine.high %v10563_v12, %v10543_v46 }
 0x504   :  { %v2661_v5 = vcombine.high %v10524_v17, %v10508_v34  ;;  %v2629_v46 = vcombine.high %v10536_v62, %v10521_v35  ;;  %v10756_v34 = vrot.slane %v2357_v16, %v10465_v21  ;;  %v2221_v17 = vcombine.high %v10452_v0, %v10444_v40 }
 0x505   :  { %v10714_v50 = vpop.permute.xlu1 %1922  ;;  %v6539_v1 = vsel %vm6508_vm0, %v2557_v28, -inf  ;;  %v2157_v40 = vcombine.high %v9472_v11, %v9597_v51  ;;  %v10780_v0 = vrot.slane %v2253_v2, %v10465_v21  ;;  %v3101_v11 = vcombine.high %v10712_v42, %v10707_v24  ;;  %v15427_v24 = vld [vmem:[#allocation14_spill] sm:$0xff] }
 0x506   :  { %15417 = vst [vmem:[#allocation224_spill] sm:$0xff] %v10714_v50  ;;  %v10768_v62 = vrot.slane %v2661_v5, %v10465_v21  ;;  %v10777_v36 = vrot.slane %v2629_v46, %v10465_v21  ;;  %v10790_v51 = vrot.slane %v2221_v17, %v10465_v21  ;;  %v3173_v16 = vcombine.high %v10632_v6, %v10614_v38  ;;  %v15432_v6 = vld [vmem:[#allocation28_spill] sm:$0xff]  ;;  %v15435_v46 = vld [vmem:[#allocation217_spill] sm:$0xff] }
 0x507   :  { %6522 = vmax.xlane.f32.xlu1 %v6521_v49  ;;  %6537 = vmax.xlane.f32.xlu0 %v6536_v19  ;;  %v2965_v49 = vcombine.high %v2908_v52, %v10637_v53  ;;  %v6533_v19 = vsel %vm6508_vm0, %v2285_v23, -inf  ;;  %v10745_v52 = vrot.slane %v2389_v32, %v10465_v21  ;;  %v10747_v53 = vpop.permute.xlu0 %1932  ;;  %v15426_v23 = vld [vmem:[#allocation18_spill] sm:$0xff]  ;;  %v15428_v32 = vld [vmem:[#allocation20_spill] sm:$0xff]  ;;  %v10817_v28 = vrot.slane %v2901_v57, %v10465_v21 }
 0x508   :  { %15421 = vst [vmem:[#allocation228_spill] sm:$0xff] %v10747_v53  ;;  %v2694_v9 = vcombine.low %v10777_v36, %v10768_v62  ;;  %v2189_v42 = vcombine.high %v15427_v24, %v15426_v23  ;;  %v2309_v5 = vcombine.high %v9653_v60, %v9669_v14  ;;  %v6551_v39 = vsel %vm6508_vm0, %v3101_v11, -inf  ;;  %v15433_v60 = vld [vmem:[#allocation202_spill] sm:$0xff] }
 0x509   :  { %v10722_v8 = vpop.permute.xlu1 %1934  ;;  %v6548_v27 = vsel %vm6508_vm0, %v2965_v49, -inf  ;;  %v2422_v35 = vcombine.low %v10756_v34, %v10745_v52  ;;  %v2325_v38 = vcombine.high %v15432_v6, %v15431_v55  ;;  %v2966_v59 = vcombine.low %v10817_v28, %v10798_v3 }
 0x50a   :  { %15418 = vst [vmem:[#allocation225_spill] sm:$0xff] %v10722_v8  ;;  %v10833_v2 = vrot.slane %v3205_v43, %v10465_v21  ;;  %v10839_v56 = vrot.slane %v2189_v42, %v15433_v60  ;;  %v2765_v17 = vcombine.high %v15435_v46, %v15434_v44  ;;  %v10854_v63 = vrot.slane %v2341_v58, %v15433_v60  ;;  %v15440_v43 = vld [vmem:[#allocation219_spill] sm:$0xff]  ;;  %v15496_v8 = vld [vmem:[#allocation108_spill] sm:$0xff] }
 0x50b   :  { %6528 = vmax.xlane.f32.xlu1 %v6527_v41  ;;  %6543 = vmax.xlane.f32.xlu0 %v6542_v15  ;;  %v10784_v61 = vpop.permute.xlu0 %1944  ;;  %v6560_v10 = vsel %vm6508_vm0, %v2422_v35, -inf  ;;  %v2173_v41 = vcombine.high %v15425_v26, %v9605_v22  ;;  %v15429_v15 = vld [vmem:[#allocation16_spill] sm:$0xff]  ;;  %v2286_v22 = vcombine.low %v10790_v51, %v10780_v0  ;;  %v15438_v35 = vld [vmem:[#allocation22_spill] sm:$0xff]  ;;  %v10859_v11 = vrot.slane %v3173_v16, %v10465_v21 }
 0x50c   :  { %15424 = vst [vmem:[#allocation231_spill] sm:$0xff] %v10784_v61  ;;  %v2205_v49 = vcombine.high %v15429_v15, %v15428_v32  ;;  %v2558_v26 = vcombine.low %v10846_v25, %v10825_v47  ;;  %v10870_v23 = vrot.slane %v2309_v5, %v15433_v60  ;;  %v10873_v24 = vrot.slane %v2325_v38, %v15433_v60 }
 0x50d   :  { %v10735_v4 = vpop.permute.xlu1 %1946  ;;  %v10836_v14 = vrot.slane %v2173_v41, %v15433_v60  ;;  %v10867_v41 = vrot.slane %v2797_v7, %v10465_v21  ;;  %v6572_v42 = vsel %vm6508_vm0, %v2966_v59, -inf  ;;  %v3037_v32 = vcombine.high %v10690_v33, %v10678_v37  ;;  %v15444_v59 = vld [vmem:[#allocation34_spill] sm:$0xff] }
 0x50e   :  { %15420 = vst [vmem:[#allocation227_spill] sm:$0xff] %v10735_v4  ;;  %v10849_v29 = vrot.slane %v2205_v49, %v15433_v60  ;;  %v10881_v15 = vrot.slane %v2765_v17, %v10465_v21  ;;  %v10884_v49 = vrot.slane %v2157_v40, %v15433_v60  ;;  %v2404_v16 = vcombine.low %v10873_v24, %v10854_v63 }
 0x50f   :  { %6534 = vmax.xlane.f32.xlu1 %v6533_v19  ;;  %6549 = vmax.xlane.f32.xlu0 %v6548_v27  ;;  %v6566_v27 = vsel %vm6508_vm0, %v2694_v9, -inf  ;;  %v6557_v9 = vsel %vm6508_vm0, %v2286_v22, -inf  ;;  %v6563_v37 = vsel %vm6508_vm0, %v2558_v26, -inf  ;;  %v2423_v6 = vcombine.high %v10756_v34, %v10745_v52  ;;  %v15449_v52 = vld [vmem:[#allocation60_spill] sm:$0xff] }
 0x510   :  { %v2268_v30 = vcombine.low %v10839_v56, %v10849_v29  ;;  %v2830_v33 = vcombine.low %v10881_v15, %v10867_v41  ;;  %v2236_v7 = vcombine.low %v10884_v49, %v10836_v14  ;;  %v10911_v38 = vrot.slane %v3037_v32, %v10465_v21 }
 0x511   :  { %v10753_v12 = vpop.permute.xlu1 %1958  ;;  %v10918_v17 = vrot.slane %v2404_v16, %v10465_v21  ;;  %v15450_v16 = vld [vmem:[#allocation56_spill] sm:$0xff] }
 0x512   :  { %15422 = vst [vmem:[#allocation229_spill] sm:$0xff] %v10753_v12 }
 0x513   :  { %6540 = vmax.xlane.f32.xlu1 %v6539_v1  ;;  %6555 = vmax.xlane.f32.xlu0 %v6554_v31  ;;  %v10843_v1 = vpop.permute.xlu0 %1956  ;;  %v15437_v31 = vld [vmem:[#allocation25_spill] sm:$0xff] }
 0x514   :  { %15436 = vst [vmem:[#allocation18_spill] sm:$0xff] %v10843_v1  ;;  %v2293_v57 = vcombine.high %v15438_v35, %v15437_v31  ;;  %v10921_v31 = vrot.slane %v2268_v30, %v10465_v21  ;;  %v15446_v35 = vld [vmem:[#allocation40_spill] sm:$0xff]  ;;  %v10937_v30 = vrot.slane %v2236_v7, %v10465_v21 }
 0x515   :  { %v10774_v20 = vpop.permute.xlu1 %1970 }
 0x516   :  { %15423 = vst [vmem:[#allocation230_spill] sm:$0xff] %v10774_v20  ;;  %v10889_v58 = vrot.slane %v2293_v57, %v15433_v60  ;;  %v15447_v57 = vld [vmem:[#allocation36_spill] sm:$0xff] }
 0x517   :  { %6546 = vmax.xlane.f32.xlu1 %v6545_v54  ;;  %6561 = vmax.xlane.f32.xlu0 %v6560_v10  ;;  %v3069_v10 = vcombine.high %v15440_v43, %v10668_v45  ;;  %v3238_v45 = vcombine.low %v10859_v11, %v10833_v2  ;;  %v10895_v5 = vpop.permute.xlu0 %1968  ;;  %v2445_v43 = vcombine.high %v15447_v57, %v15446_v35  ;;  %v15462_v20 = vld [vmem:[#allocation48_spill] sm:$0xff] }
 0x518   :  { %15442 = vst [vmem:[#allocation16_spill] sm:$0xff] %v10895_v5 }
 0x519   :  { %v10812_v19 = vpop.permute.xlu1 %1982  ;;  %v10901_v40 = vrot.slane %v3069_v10, %v10465_v21  ;;  %v6578_v55 = vsel %vm6508_vm0, %v3238_v45, -inf  ;;  %v15448_v10 = vld [vmem:[#allocation64_spill] sm:$0xff]  ;;  %v2695_v45 = vcombine.high %v10777_v36, %v10768_v62  ;;  %v2287_v62 = vcombine.high %v10790_v51, %v10780_v0  ;;  %v15460_v51 = vld [vmem:[#allocation98_spill] sm:$0xff] }
 0x51a   :  { %15430 = vst [vmem:[#allocation12_spill] sm:$0xff] %v10812_v19  ;;  %v2613_v34 = vcombine.high %v15449_v52, %v15448_v10  ;;  %v15456_v10 = vld [vmem:[#allocation54_spill] sm:$0xff] }
 0x51b   :  { %6552 = vmax.xlane.f32.xlu1 %v6551_v39  ;;  %6567 = vmax.xlane.f32.xlu0 %v6566_v27  ;;  %v2372_v39 = vcombine.low %v10889_v58, %v10870_v23  ;;  %v15443_v27 = vld [vmem:[#allocation38_spill] sm:$0xff]  ;;  %v3102_v26 = vcombine.low %v10911_v38, %v10901_v40  ;;  %v10943_v35 = vpop.permute.xlu0 %1980  ;;  %v6590_v7 = vsel %vm6508_vm0, %v2695_v45, -inf  ;;  %v15466_v45 = vld [vmem:[#allocation96_spill] sm:$0xff] }
 0x51c   :  { %v2429_v44 = vcombine.high %v15444_v59, %v15443_v27  ;;  %v15452_v27 = vld [vmem:[#allocation62_spill] sm:$0xff]  ;;  %15454 = vst [vmem:[#allocation28_spill] sm:$0xff] %v10943_v35 }
 0x51d   :  { %v10856_v54 = vpop.permute.xlu1 %1994  ;;  %v10934_v32 = vrot.slane %v2372_v39, %v10465_v21  ;;  %v10957_v39 = vrot.slane %v2445_v43, %v15433_v60  ;;  %v15457_v52 = vld [vmem:[#allocation50_spill] sm:$0xff]  ;;  %v2967_v43 = vcombine.high %v10817_v28, %v10798_v3 }
 0x51e   :  { %15439 = vst [vmem:[#allocation14_spill] sm:$0xff] %v10856_v54  ;;  %v15463_v54 = vld [vmem:[#allocation44_spill] sm:$0xff] }
 0x51f   :  { %6558 = vmax.xlane.f32.xlu1 %v6557_v9  ;;  %6573 = vmax.xlane.f32.xlu0 %v6572_v42  ;;  %v6569_v9 = vsel %vm6508_vm0, %v2830_v33, -inf  ;;  %v6584_v42 = vsel %vm6508_vm0, %v2423_v6, -inf  ;;  %v15453_v33 = vld [vmem:[#allocation58_spill] sm:$0xff]  ;;  %v10946_v6 = vrot.slane %v2429_v44, %v15433_v60  ;;  %v2424_v36 = vcombine.low %v10934_v32, %v10918_v17 }
 0x520   :  { %v2597_v59 = vcombine.high %v15453_v33, %v15452_v27  ;;  %v10962_v44 = vrot.slane %v2613_v34, %v15433_v60  ;;  %v15461_v27 = vld [vmem:[#allocation94_spill] sm:$0xff] }
 0x521   :  { %v10893_v22 = vpop.permute.xlu1 %2006  ;;  %v2885_v33 = vcombine.high %v15461_v27, %v15460_v51  ;;  %v15467_v51 = vld [vmem:[#allocation92_spill] sm:$0xff]  ;;  %v6608_v28 = vsel %vm6508_vm0, %v2424_v36, -inf }
 0x522   :  { %15441 = vst [vmem:[#allocation20_spill] sm:$0xff] %v10893_v22  ;;  %v2869_v27 = vcombine.high %v15467_v51, %v15466_v45  ;;  %v15473_v45 = vld [vmem:[#allocation126_spill] sm:$0xff]  ;;  %v6596_v51 = vsel %vm6508_vm0, %v2967_v43, -inf }
 0x523   :  { %6564 = vmax.xlane.f32.xlu1 %v6563_v37  ;;  %6579 = vmax.xlane.f32.xlu0 %v6578_v55  ;;  %v15451_v37 = vld [vmem:[#allocation52_spill] sm:$0xff]  ;;  %v15479_v22 = vld [vmem:[#allocation82_spill] sm:$0xff] }
 0x524   :  { %v2581_v55 = vcombine.high %v15451_v37, %v15450_v16  ;;  %v15458_v16 = vld [vmem:[#allocation46_spill] sm:$0xff]  ;;  %v11022_v43 = vrot.slane %v2869_v27, %v15433_v60 }
 0x525   :  { %v10915_v46 = vpop.permute.xlu1 %2018  ;;  %v15459_v37 = vld [vmem:[#allocation42_spill] sm:$0xff] }
 0x526   :  { %15445 = vst [vmem:[#allocation31_spill] sm:$0xff] %v10915_v46  ;;  %v2461_v0 = vcombine.high %v15459_v37, %v15458_v16  ;;  %v10975_v34 = vrot.slane %v2581_v55, %v15433_v60  ;;  %v15464_v16 = vld [vmem:[#allocation90_spill] sm:$0xff]  ;;  %v15480_v46 = vld [vmem:[#allocation77_spill] sm:$0xff] }
 0x527   :  { %6570 = vmax.xlane.f32.xlu1 %v6569_v9  ;;  %6585 = vmax.xlane.f32.xlu0 %v6584_v42  ;;  %v2565_v9 = vcombine.high %v15457_v52, %v15456_v10  ;;  %v6575_v42 = vsel %vm6508_vm0, %v3102_v26, -inf  ;;  %v2477_v10 = vcombine.high %v15463_v54, %v15462_v20  ;;  %v10978_v26 = vrot.slane %v2597_v59, %v15433_v60  ;;  %v15470_v59 = vld [vmem:[#allocation84_spill] sm:$0xff] }
 0x528   :  { %v2559_v52 = vcombine.high %v10846_v25, %v10825_v47  ;;  %v6581_v20 = vsel %vm6508_vm0, %v2287_v62, -inf  ;;  %v15469_v25 = vld [vmem:[#allocation88_spill] sm:$0xff]  ;;  %v15472_v62 = vld [vmem:[#allocation130_spill] sm:$0xff]  ;;  %v11010_v54 = vrot.slane %v2461_v0, %v15433_v60 }
 0x529   :  { %v10948_v57 = vpop.permute.xlu1 %2030  ;;  %v10993_v55 = vrot.slane %v2565_v9, %v15433_v60  ;;  %v2676_v47 = vcombine.low %v10978_v26, %v10962_v44  ;;  %v3157_v36 = vcombine.high %v15473_v45, %v15472_v62  ;;  %v3239_v9 = vcombine.high %v10859_v11, %v10833_v2  ;;  %v15475_v2 = vld [vmem:[#allocation118_spill] sm:$0xff]  ;;  %v15476_v0 = vld [vmem:[#allocation128_spill] sm:$0xff] }
 0x52a   :  { %15455 = vst [vmem:[#allocation202_spill] sm:$0xff] %v10948_v57  ;;  %v11013_v19 = vrot.slane %v2477_v10, %v15433_v60  ;;  %v15477_v62 = vld [vmem:[#allocation124_spill] sm:$0xff]  ;;  %v15486_v57 = vld [vmem:[#allocation75_spill] sm:$0xff] }
 0x52b   :  { %6576 = vmax.xlane.f32.xlu1 %v6575_v42  ;;  %6591 = vmax.xlane.f32.xlu0 %v6590_v7  ;;  %v15465_v42 = vld [vmem:[#allocation86_spill] sm:$0xff]  ;;  %v2837_v7 = vcombine.high %v15470_v59, %v15469_v25  ;;  %v2644_v25 = vcombine.low %v10993_v55, %v10975_v34  ;;  %v3141_v45 = vcombine.high %v15477_v62, %v15476_v0 }
 0x52c   :  { %v2853_v37 = vcombine.high %v15465_v42, %v15464_v16  ;;  %v10999_v16 = vpop.permute.xlu0 %1992  ;;  %v11002_v42 = vrot.slane %v2885_v33, %v15433_v60  ;;  %v6587_v33 = vsel %vm6508_vm0, %v2559_v52, -inf  ;;  %v2831_v52 = vcombine.high %v10881_v15, %v10867_v41  ;;  %v15484_v41 = vld [vmem:[#allocation68_spill] sm:$0xff] }
 0x52d   :  { %v10986_v3 = vpop.permute.xlu1 %2042  ;;  %15471 = vst [vmem:[#allocation217_spill] sm:$0xff] %v10999_v16  ;;  %v11045_v62 = vrot.slane %v3157_v36, %v15433_v60  ;;  %v15488_v36 = vld [vmem:[#allocation70_spill] sm:$0xff] }
 0x52e   :  { %15468 = vst [vmem:[#allocation215_spill] sm:$0xff] %v10986_v3  ;;  %v11019_v59 = vrot.slane %v2853_v37, %v15433_v60  ;;  %v2749_v3 = vcombine.high %v15480_v46, %v15479_v22  ;;  %v11038_v37 = vrot.slane %v2676_v47, %v10465_v21  ;;  %v2948_v27 = vcombine.low %v11022_v43, %v11002_v42  ;;  %v15485_v47 = vld [vmem:[#allocation80_spill] sm:$0xff] }
 0x52f   :  { %6582 = vmax.xlane.f32.xlu1 %v6581_v20  ;;  %6597 = vmax.xlane.f32.xlu0 %v6596_v51  ;;  %v15474_v20 = vld [vmem:[#allocation122_spill] sm:$0xff]  ;;  %v11033_v51 = vrot.slane %v2837_v7, %v15433_v60  ;;  %v6602_v22 = vsel %vm6508_vm0, %v3239_v9, -inf  ;;  %v2540_v46 = vcombine.low %v11010_v54, %v11013_v19  ;;  %v15483_v7 = vld [vmem:[#allocation73_spill] sm:$0xff]  ;;  %v6593_v13 = vsel %vm6508_vm0, %v2831_v52, -inf }
 0x530   :  { %v3125_v11 = vcombine.high %v15475_v2, %v15474_v20  ;;  %v15481_v20 = vld [vmem:[#allocation120_spill] sm:$0xff]  ;;  %v2717_v15 = vcombine.high %v15484_v41, %v15483_v7  ;;  %v11054_v50 = vpop.permute.xlu0 %2004  ;;  %v11067_v7 = vrot.slane %v3141_v45, %v15433_v60 }
 0x531   :  { %v11028_v10 = vpop.permute.xlu1 %2054  ;;  %v15482_v2 = vld [vmem:[#allocation116_spill] sm:$0xff]  ;;  %15487 = vst [vmem:[#allocation22_spill] sm:$0xff] %v11054_v50  ;;  %v2916_v9 = vcombine.low %v11033_v51, %v11019_v59 }
 0x532   :  { %15478 = vst [vmem:[#allocation25_spill] sm:$0xff] %v11028_v10  ;;  %v3109_v0 = vcombine.high %v15482_v2, %v15481_v20  ;;  %v2733_v10 = vcombine.high %v15486_v57, %v15485_v47  ;;  %v11057_v20 = vrot.slane %v2644_v25, %v10465_v21  ;;  %v15489_v2 = vld [vmem:[#allocation66_spill] sm:$0xff]  ;;  %v11064_v4 = vrot.slane %v3125_v11, %v15433_v60 }
 0x533   :  { %6588 = vmax.xlane.f32.xlu1 %v6587_v33  ;;  %6603 = vmax.xlane.f32.xlu0 %v6602_v22  ;;  %v2701_v33 = vcombine.high %v15489_v2, %v15488_v36  ;;  %v11072_v57 = vrot.slane %v2749_v3, %v15433_v60  ;;  %v15491_v22 = vld [vmem:[#allocation114_spill] sm:$0xff]  ;;  %v3103_v36 = vcombine.high %v10911_v38, %v10901_v40 }
 0x534   :  { %v15492_v25 = vld [vmem:[#allocation110_spill] sm:$0xff]  ;;  %v11080_v2 = vrot.slane %v3109_v0, %v15433_v60  ;;  %v3220_v11 = vcombine.low %v11067_v7, %v11045_v62  ;;  %v2696_v45 = vcombine.low %v11057_v20, %v11038_v37  ;;  %v11087_v3 = vrot.slane %v2948_v27, %v10465_v21 }
 0x535   :  { %v11069_v41 = vpop.permute.xlu1 %2066  ;;  %v3021_v47 = vcombine.high %v15492_v25, %v15491_v22  ;;  %v11090_v22 = vrot.slane %v2717_v15, %v15433_v60  ;;  %v11093_v52 = vrot.slane %v2733_v10, %v15433_v60  ;;  %v15493_v40 = vld [vmem:[#allocation106_spill] sm:$0xff]  ;;  %v15495_v25 = vld [vmem:[#allocation112_spill] sm:$0xff]  ;;  %v11107_v15 = vrot.slane %v2916_v9, %v10465_v21 }
 0x536   :  { %15490 = vst [vmem:[#allocation219_spill] sm:$0xff] %v11069_v41  ;;  %v15494_v38 = vld [vmem:[#allocation102_spill] sm:$0xff]  ;;  %v3005_v12 = vcombine.high %v15496_v8, %v15495_v25  ;;  %v3188_v27 = vcombine.low %v11080_v2, %v11064_v4  ;;  %v11110_v10 = vrot.slane %v2540_v46, %v10465_v21  ;;  %v15499_v8 = vld [vmem:[#allocation100_spill] sm:$0xff]  ;;  %v11119_v25 = vpop.permute.xlu0 %2016  ;;  %v6599_v16 = vsel %vm6508_vm0, %v3103_v36, -inf }
 0x537   :  { %6594 = vmax.xlane.f32.xlu1 %v6593_v13  ;;  %v2989_v0 = vcombine.high %v15494_v38, %v15493_v40  ;;  %6609 = vmax.xlane.f32.xlu0 %v6608_v28  ;;  %v11100_v13 = vrot.slane %v2701_v33, %v15433_v60  ;;  %v2812_v40 = vcombine.low %v11093_v52, %v11072_v57  ;;  %v15498_v38 = vld [vmem:[#allocation104_spill] sm:$0xff]  ;;  %v6614_v9 = vsel %vm6508_vm0, %v2696_v45, -inf }
 0x538   :  { %v2973_v28 = vcombine.high %v15499_v8, %v15498_v38  ;;  %v11117_v33 = vrot.slane %v3021_v47, %v15433_v60  ;;  %15500 = vst [vmem:[#allocation34_spill] sm:$0xff] %v11119_v25  ;;  %v2968_v46 = vcombine.low %v11107_v15, %v11087_v3  ;;  %v11126_v35 = vrot.slane %v3220_v11, %v10465_v21 }
 0x539   :  { %v11104_v5 = vpop.permute.xlu1 %2078  ;;  %v2780_v50 = vcombine.low %v11100_v13, %v11090_v22  ;;  %v11131_v38 = vrot.slane %v2989_v0, %v15433_v60  ;;  %v11134_v47 = vrot.slane %v3005_v12, %v15433_v60  ;;  %v15503_v11 = vcombine.low %v10937_v30, %v10921_v31 }
 0x53a   :  { %15497 = vst [vmem:[#allocation38_spill] sm:$0xff] %v11104_v5  ;;  %v11149_v0 = vrot.slane %v3188_v27, %v10465_v21  ;;  %v11152_v12 = vrot.slane %v2973_v28, %v15433_v60  ;;  %v11159_v25 = vrot.slane %v2812_v40, %v10465_v21  ;;  %v6620_v18 = vsel %vm6508_vm0, %v2968_v46, -inf  ;;  %v11166_v28 = vpop.permute.xlu0 %2028 }
 0x53b   :  { %6600 = vmax.xlane.f32.xlu1 %v6599_v16  ;;  %6615 = vmax.xlane.f32.xlu0 %v6614_v9  ;;  %v15501_v16 = vcombine.low %v10946_v6, %v10957_v39  ;;  %v6605_v8 = vsel %vm6508_vm0, %v15503_v11, -inf  ;;  %v3084_v9 = vcombine.low %v11134_v47, %v11117_v33  ;;  %15504 = vst [vmem:[#allocation36_spill] sm:$0xff] %v11166_v28 }
 0x53c   :  { %v3240_v11 = vcombine.low %v11149_v0, %v11126_v35  ;;  %v3052_v27 = vcombine.low %v11152_v12, %v11131_v38  ;;  %v11171_v48 = vrot.slane %v2780_v50, %v10465_v21  ;;  %v2425_v50 = vcombine.high %v10934_v32, %v10918_v17 }
 0x53d   :  { %v11140_v36 = vrot.slane %v15501_v16, %v10465_v21  ;;  %v11142_v45 = vpop.permute.xlu1 %2090  ;;  %v11181_v1 = vrot.slane %v3084_v9, %v10465_v21  ;;  %v2697_v32 = vcombine.high %v11057_v20, %v11038_v37  ;;  %v2373_v37 = vcombine.high %v10889_v58, %v10870_v23 }
 0x53e   :  { %15502 = vst [vmem:[#allocation40_spill] sm:$0xff] %v11142_v45  ;;  %v6372_v61 = vcombine.low %v11069_v41, %v11142_v45  ;;  %v2832_v53 = vcombine.low %v11171_v48, %v11159_v25  ;;  %v6626_v41 = vsel %vm6508_vm0, %v3240_v11, -inf  ;;  %v11197_v9 = vpop.permute.xlu0 %2040  ;;  %v6632_v17 = vsel %vm6508_vm0, %v2425_v50, -inf }
 0x53f   :  { %v2560_v16 = vcombine.low %v11140_v36, %v11110_v10  ;;  %6606 = vmax.xlane.f32.xlu1 %v6605_v8  ;;  %6621 = vmax.xlane.f32.xlu0 %v6620_v18  ;;  %15509 = vst [vmem:[#allocation62_spill] sm:$0xff] %v11197_v9  ;;  %v6638_v11 = vsel %vm6508_vm0, %v2697_v32, -inf  ;;  %v2969_v50 = vcombine.high %v11107_v15, %v11087_v3 }
 0x540   :  { %v11187_v18 = vrot.slane %v6372_v61, %v15433_v60  ;;  %v2677_v3 = vcombine.high %v10978_v26, %v10962_v44  ;;  %v3241_v58 = vcombine.high %v11149_v0, %v11126_v35  ;;  %v11261_v0 = vrot.slane %v2373_v37, %v10465_v21 }
 0x541   :  { %v11173_v40 = vpop.permute.xlu1 %2102  ;;  %v6611_v8 = vsel %vm6508_vm0, %v2560_v16, -inf  ;;  %v11193_v16 = vrot.slane %v3052_v27, %v10465_v21  ;;  %v6644_v23 = vsel %vm6508_vm0, %v2969_v50, -inf  ;;  %v3085_v9 = vcombine.high %v11134_v47, %v11117_v33 }
 0x542   :  { %15505 = vst [vmem:[#allocation64_spill] sm:$0xff] %v11173_v40  ;;  %v6388_v46 = vcombine.low %v11104_v5, %v11173_v40  ;;  %15506 = vst [vmem:[#allocation60_spill] sm:$0xff] %v11187_v18  ;;  %v11279_v50 = vrot.slane %v2677_v3, %v10465_v21  ;;  %v2917_v3 = vcombine.high %v11033_v51, %v11019_v59  ;;  %v15530_v40 = vld [vmem:[#allocation35_spill] sm:$0xff] }
 0x543   :  { %6612 = vmax.xlane.f32.xlu1 %v6611_v8  ;;  %6627 = vmax.xlane.f32.xlu0 %v6626_v41  ;;  %v6617_v8 = vsel %vm6508_vm0, %v2832_v53, -inf  ;;  %v3104_v61 = vcombine.low %v11193_v16, %v11181_v1  ;;  %v2405_v53 = vcombine.high %v10873_v24, %v10854_v63  ;;  %v2269_v63 = vcombine.high %v10839_v56, %v10849_v29 }
 0x544   :  { %v11190_v45 = vrot.slane %v6388_v46, %v15433_v60  ;;  %v2289_v46 = vcombine.high %v10937_v30, %v10921_v31  ;;  %v2561_v30 = vcombine.high %v11140_v36, %v11110_v10  ;;  %v2237_v29 = vcombine.high %v10884_v49, %v10836_v14 }
 0x545   :  { %v11195_v5 = vpop.permute.xlu1 %2114  ;;  %v6623_v27 = vsel %vm6508_vm0, %v3104_v61, -inf  ;;  %v15513_v61 = vld [vmem:[#allocation10_spill] sm:$0xff]  ;;  %v11238_v15 = vrot.slane %v2405_v53, %v10465_v21  ;;  %v2645_v10 = vcombine.high %v10993_v55, %v10975_v34  ;;  %v2949_v34 = vcombine.high %v11022_v43, %v11002_v42  ;;  %v15520_v43 = vld [vmem:[#allocation15_spill] sm:$0xff] }
 0x546   :  { %15507 = vst [vmem:[#allocation56_spill] sm:$0xff] %v11190_v45  ;;  %15508 = vst [vmem:[#allocation52_spill] sm:$0xff] %v11195_v5  ;;  %v6629_v24 = vsel %vm6508_vm0, %v2289_v46, -inf  ;;  %v6635_v49 = vsel %vm6508_vm0, %v2561_v30, -inf  ;;  %v11271_v46 = vrot.slane %v2269_v63, %v10465_v21  ;;  %v6650_v55 = vsel %vm6508_vm0, %v3241_v58, -inf  ;;  %v15521_v63 = vld [vmem:[#allocation11_spill] sm:$0xff] }
 0x547   :  { %6618 = vmax.xlane.f32.xlu1 %v6617_v8  ;;  %6633 = vmax.xlane.f32.xlu0 %v6632_v17  ;;  %v11217_v8 = vpop.permute.xlu0 %2052  ;;  %v15514_v17 = vld [vmem:[#allocation9_spill] sm:$0xff]  ;;  %v2426_v53 = vcombine.low %v11261_v0, %v11238_v15  ;;  %v11291_v42 = vrot.slane %v2237_v29, %v10465_v21  ;;  %v2541_v30 = vcombine.high %v11010_v54, %v11013_v19 }
 0x548   :  { %15511 = vst [vmem:[#allocation54_spill] sm:$0xff] %v11217_v8  ;;  %v11225_v31 = vsub.s32 %v15514_v17, %v15513_v61  ;;  %v11244_v56 = vadd.s32 4294967280, %v15514_v17  ;;  %v11251_v26 = vadd.s32 4294967272, %v15514_v17  ;;  %v11254_v35 = vadd.s32 4294967264, %v15514_v17  ;;  %v15550_v8 = vld [vmem:[#allocation45_spill] sm:$0xff] }
 0x549   :  { %v11207_v41 = vpop.permute.xlu1 %2126  ;;  %v11282_v37 = vadd.s32 4294967256, %v15514_v17  ;;  %v3105_v29 = vcombine.high %v11193_v16, %v11181_v1  ;;  %v3221_v19 = vcombine.high %v11067_v7, %v11045_v62  ;;  %v6656_v54 = vsel %vm6508_vm0, %v2426_v53, -inf  ;;  %v15529_v53 = vld [vmem:[#allocation33_spill] sm:$0xff] }
 0x54a   :  { %15510 = vst [vmem:[#allocation58_spill] sm:$0xff] %v11207_v41  ;;  %15515 = vst [vmem:[#allocation46_spill] sm:$0xff] %v11225_v31  ;;  %v11315_v51 = vrot.slane %v2949_v34, %v10465_v21  ;;  %v2509_v1 = vcombine.high %v10946_v6, %v10957_v39  ;;  %v15525_v62 = vcombine.high %v11187_v18, %v11190_v45  ;;  %v15528_v34 = vld [vmem:[#allocation37_spill] sm:$0xff]  ;;  %v11396_v47 = vadd.s32 4294967248, %v15514_v17 }
 0x54b   :  { %6624 = vmax.xlane.f32.xlu1 %v6623_v27  ;;  %6639 = vmax.xlane.f32.xlu0 %v6638_v11  ;;  %v11241_v11 = vadd.s32 4294967288, %v15514_v17  ;;  %v11263_v32 = vpop.permute.xlu0 %2064  ;;  %v2833_v27 = vcombine.high %v11171_v48, %v11159_v25  ;;  %v11337_v6 = vrot.slane %v2917_v3, %v10465_v21  ;;  %v11340_v39 = vrot.slane %v2541_v30, %v10465_v21  ;;  %v15538_v45 = vld [vmem:[#allocation29_spill] sm:$0xff] }
 0x54c   :  { %15517 = vst [vmem:[#allocation98_spill] sm:$0xff] %v11263_v32  ;;  %v11327_v7 = vrot.slane %v15525_v62, %v10465_v21  ;;  %v6647_v62 = vsel %vm6508_vm0, %v3105_v29, -inf  ;;  %v11355_v3 = vrot.slane %v3221_v19, %v10465_v21  ;;  %15542 = vst [vmem:[#allocation88_spill] sm:$0xff] %v11396_v47 }
 0x54d   :  { %v11221_v20 = vpop.permute.xlu1 %2138  ;;  %v2970_v30 = vcombine.low %v11337_v6, %v11315_v51 }
 0x54e   :  { %15512 = vst [vmem:[#allocation50_spill] sm:$0xff] %v11221_v20  ;;  %v6404_v44 = vcombine.low %v11195_v5, %v11221_v20  ;;  %15526 = vst [vmem:[#allocation90_spill] sm:$0xff] %v11327_v7  ;;  %v3189_v5 = vcombine.high %v11080_v2, %v11064_v4  ;;  %v2781_v20 = vcombine.high %v11100_v13, %v11090_v22 }
 0x54f   :  { %6630 = vmax.xlane.f32.xlu1 %v6629_v24  ;;  %6645 = vmax.xlane.f32.xlu0 %v6644_v23  ;;  %v3244_v24 = vcombine.low %v15521_v63, %v15520_v43  ;;  %v11300_v23 = vrot.slane %v2645_v10, %v10465_v21  ;;  %v15522_v10 = vld [vmem:[#allocation30_spill] sm:$0xff]  ;;  %v11321_v16 = vpop.permute.xlu0 %2076 }
 0x550   :  { %v11285_v48 = vrot.slane %v6404_v44, %v15433_v60  ;;  %v6641_v44 = vsel %vm6508_vm0, %v2833_v27, -inf  ;;  %15524 = vst [vmem:[#allocation44_spill] sm:$0xff] %v11321_v16  ;;  %v11374_v32 = vrot.slane %v3189_v5, %v10465_v21  ;;  %v6668_v5 = vsel %vm6508_vm0, %v2970_v30, -inf }
 0x551   :  { %v11258_v36 = vpop.permute.xlu1 %2150  ;;  %v2698_v59 = vcombine.low %v11300_v23, %v11279_v50 }
 0x552   :  { %15516 = vst [vmem:[#allocation42_spill] sm:$0xff] %v11258_v36  ;;  %v6420_v14 = vcombine.low %v11207_v41, %v11258_v36  ;;  %15518 = vst [vmem:[#allocation94_spill] sm:$0xff] %v11285_v48  ;;  %v15531_v41 = vld [vmem:[#allocation32_spill] sm:$0xff]  ;;  %v15534_v36 = vld [vmem:[#allocation23_spill] sm:$0xff]  ;;  %v3242_v33 = vcombine.low %v11374_v32, %v11355_v3 }
 0x553   :  { %6636 = vmax.xlane.f32.xlu1 %v6635_v49  ;;  %6651 = vmax.xlane.f32.xlu0 %v6650_v55  ;;  %v15523_v49 = vld [vmem:[#allocation27_spill] sm:$0xff]  ;;  %v3412_v4 = vcombine.low %v15531_v41, %v15530_v40  ;;  %v6662_v2 = vsel %vm6508_vm0, %v2698_v59, -inf  ;;  %v15536_v59 = vld [vmem:[#allocation24_spill] sm:$0xff]  ;;  %v11378_v22 = vpop.permute.xlu0 %2088  ;;  %v2971_v41 = vcombine.high %v11337_v6, %v11315_v51 }
 0x554   :  { %v11288_v25 = vrot.slane %v6420_v14, %v15433_v60  ;;  %v2290_v14 = vcombine.low %v11291_v42, %v11271_v46  ;;  %v3396_v27 = vcombine.low %v15523_v49, %v15522_v10  ;;  %15540 = vst [vmem:[#allocation96_spill] sm:$0xff] %v11378_v22  ;;  %v11419_v22 = vrot.slane %v3244_v24, %v15433_v60 }
 0x555   :  { %v2427_v24 = vcombine.high %v11261_v0, %v11238_v15  ;;  %v15548_v15 = vld [vmem:[#allocation43_spill] sm:$0xff]  ;;  %v6692_v6 = vsel %vm6508_vm0, %v2971_v41, -inf }
 0x556   :  { %15519 = vst [vmem:[#allocation48_spill] sm:$0xff] %v11288_v25  ;;  %v6469_v58 = vcombine.high %v11285_v48, %v11288_v25  ;;  %v15539_v48 = vld [vmem:[#allocation26_spill] sm:$0xff]  ;;  %v6653_v13 = vsel %vm6508_vm0, %v2290_v14, -inf  ;;  %v11387_v16 = vrot.slane %v3396_v27, %v15433_v60  ;;  %v11404_v27 = vrot.slane %v2781_v20, %v10465_v21  ;;  %v15549_v0 = vld [vmem:[#allocation39_spill] sm:$0xff] }
 0x557   :  { %6642 = vmax.xlane.f32.xlu1 %v6641_v44  ;;  %6657 = vmax.xlane.f32.xlu0 %v6656_v54  ;;  %v3428_v44 = vcombine.low %v15529_v53, %v15528_v34  ;;  %v2813_v54 = vcombine.high %v11093_v52, %v11072_v57  ;;  %v15532_v57 = vld [vmem:[#allocation17_spill] sm:$0xff]  ;;  %v3380_v19 = vcombine.low %v15539_v48, %v15538_v45 }
 0x558   :  { %v11330_v55 = vrot.slane %v6469_v58, %v10465_v21  ;;  %v15533_v52 = vld [vmem:[#allocation13_spill] sm:$0xff]  ;;  %v15535_v58 = vld [vmem:[#allocation19_spill] sm:$0xff]  ;;  %15541 = vst [vmem:[#allocation92_spill] sm:$0xff] %v11387_v16  ;;  %v11425_v20 = vrot.slane %v3085_v9, %v10465_v21  ;;  %v11444_v9 = vpop.permute.xlu0 %2100  ;;  %v3516_v28 = vcombine.low %v15549_v0, %v15548_v15 }
 0x559   :  { %v3260_v29 = vcombine.low %v15533_v52, %v15532_v57  ;;  %v3276_v18 = vcombine.low %v15535_v58, %v15534_v36  ;;  %v11371_v25 = vrot.slane %v3428_v44, %v15433_v60  ;;  %v11390_v44 = vrot.slane %v3412_v4, %v15433_v60  ;;  %15547 = vst [vmem:[#allocation118_spill] sm:$0xff] %v11444_v9  ;;  %v15552_v9 = vld [vmem:[#allocation69_spill] sm:$0xff]  ;;  %v15557_v15 = vld [vmem:[#allocation63_spill] sm:$0xff] }
 0x55a   :  { %15527 = vst [vmem:[#allocation86_spill] sm:$0xff] %v11330_v55  ;;  %v15537_v55 = vld [vmem:[#allocation21_spill] sm:$0xff]  ;;  %v11408_v4 = vsub.s32 %v11241_v11, %v15513_v61 }
 0x55b   :  { %6648 = vmax.xlane.f32.xlu1 %v6647_v62  ;;  %6663 = vmax.xlane.f32.xlu0 %v6662_v2  ;;  %v11364_v62 = vrot.slane %v2509_v1, %v10465_v21  ;;  %v3292_v7 = vcombine.low %v15537_v55, %v15536_v59  ;;  %v11384_v2 = vrot.slane %v2813_v54, %v10465_v21 }
 0x55c   :  { %v11399_v14 = vrot.slane %v3260_v29, %v15433_v60  ;;  %v3053_v54 = vcombine.high %v11152_v12, %v11131_v38  ;;  %15543 = vst [vmem:[#allocation84_spill] sm:$0xff] %v11408_v4  ;;  %v3476_v29 = vcombine.low %v11390_v44, %v11371_v25  ;;  %v11428_v11 = vrot.slane %v3276_v18, %v15433_v60 }
 0x55d   :  { %v2562_v1 = vcombine.low %v11364_v62, %v11340_v39  ;;  %v11411_v30 = vrot.slane %v3292_v7, %v15433_v60  ;;  %v2834_v12 = vcombine.low %v11404_v27, %v11384_v2 }
 0x55e   :  { %v3308_v18 = vcombine.low %v11419_v22, %v11399_v14 }
 0x55f   :  { %6654 = vmax.xlane.f32.xlu1 %v6653_v13  ;;  %6669 = vmax.xlane.f32.xlu0 %v6668_v5  ;;  %v11414_v13 = vrot.slane %v3380_v19, %v15433_v60  ;;  %v6659_v38 = vsel %vm6508_vm0, %v2562_v1, -inf  ;;  %v6674_v19 = vsel %vm6508_vm0, %v3242_v33, -inf  ;;  %v11437_v1 = vsub.s32 %v11244_v56, %v15513_v61 }
 0x560   :  { %v11440_v5 = vadd.s32 4294967240, %v15514_v17  ;;  %v3340_v33 = vcombine.low %v11428_v11, %v11411_v30  ;;  %v2291_v56 = vcombine.high %v11291_v42, %v11271_v46  ;;  %v11456_v17 = vrot.slane %v3476_v29, %v10465_v21 }
 0x561   :  { %15544 = vst [vmem:[#allocation130_spill] sm:$0xff] %v11414_v13  ;;  %v3444_v7 = vcombine.low %v11414_v13, %v11387_v16  ;;  %15545 = vst [vmem:[#allocation126_spill] sm:$0xff] %v11437_v1  ;;  %v15551_v1 = vld [vmem:[#allocation41_spill] sm:$0xff]  ;;  %v6680_v46 = vsel %vm6508_vm0, %v2427_v24, -inf  ;;  %v2699_v42 = vcombine.high %v11300_v23, %v11279_v50  ;;  %v11483_v24 = vrot.slane %v3516_v28, %v15433_v60  ;;  %v15563_v13 = vld [vmem:[#allocation103_spill] sm:$0xff] }
 0x562   :  { %15546 = vst [vmem:[#allocation122_spill] sm:$0xff] %v11440_v5  ;;  %v3532_v4 = vcombine.low %v15551_v1, %v15550_v8  ;;  %v15556_v8 = vld [vmem:[#allocation67_spill] sm:$0xff]  ;;  %v6677_v50 = vsel %vm6508_vm0, %v2291_v56, -inf }
 0x563   :  { %6660 = vmax.xlane.f32.xlu1 %v6659_v38  ;;  %6675 = vmax.xlane.f32.xlu0 %v6674_v19  ;;  %v11447_v38 = vrot.slane %v3053_v54, %v10465_v21  ;;  %v15553_v19 = vld [vmem:[#allocation65_spill] sm:$0xff]  ;;  %v6665_v54 = vsel %vm6508_vm0, %v2834_v12, -inf  ;;  %v11471_v29 = vrot.slane %v3444_v7, %v10465_v21  ;;  %v3684_v47 = vcombine.low %v15557_v15, %v15556_v8  ;;  %v15561_v56 = vld [vmem:[#allocation51_spill] sm:$0xff] }
 0x564   :  { %v3700_v31 = vcombine.low %v15553_v19, %v15552_v9  ;;  %v15554_v9 = vld [vmem:[#allocation61_spill] sm:$0xff]  ;;  %v11489_v7 = vrot.slane %v3340_v33, %v10465_v21  ;;  %v11492_v0 = vrot.slane %v3532_v4, %v15433_v60  ;;  %v15558_v19 = vld [vmem:[#allocation59_spill] sm:$0xff]  ;;  %v6686_v4 = vsel %vm6508_vm0, %v2699_v42, -inf }
 0x565   :  { %v3106_v5 = vcombine.low %v11447_v38, %v11425_v20  ;;  %v15555_v12 = vld [vmem:[#allocation57_spill] sm:$0xff]  ;;  %v3508_v23 = vcombine.low %v11471_v29, %v11456_v17  ;;  %v15562_v15 = vld [vmem:[#allocation47_spill] sm:$0xff] }
 0x566   :  { %v3668_v1 = vcombine.low %v15555_v12, %v15554_v9  ;;  %v15559_v12 = vld [vmem:[#allocation55_spill] sm:$0xff]  ;;  %v11499_v9 = vpop.permute.xlu0 %2112  ;;  %v3548_v8 = vcombine.low %v15562_v15, %v15561_v56  ;;  %v15571_v42 = vld [vmem:[#allocation101_spill] sm:$0xff] }
 0x567   :  { %6666 = vmax.xlane.f32.xlu1 %v6665_v54  ;;  %6681 = vmax.xlane.f32.xlu0 %v6680_v46  ;;  %v11480_v54 = vrot.slane %v3308_v18, %v10465_v21  ;;  %v3652_v46 = vcombine.low %v15559_v12, %v15558_v19  ;;  %v11497_v18 = vrot.slane %v3700_v31, %v15433_v60  ;;  %v6671_v28 = vsel %vm6508_vm0, %v3106_v5, -inf  ;;  %v15564_v16 = vld [vmem:[#allocation99_spill] sm:$0xff]  ;;  %v15565_v12 = vld [vmem:[#allocation53_spill] sm:$0xff] }
 0x568   :  { %15560 = vst [vmem:[#allocation128_spill] sm:$0xff] %v11499_v9  ;;  %v3972_v33 = vcombine.low %v15564_v16, %v15563_v13  ;;  %v15566_v19 = vld [vmem:[#allocation49_spill] sm:$0xff]  ;;  %v11512_v40 = vrot.slane %v3668_v1, %v15433_v60  ;;  %v11515_v5 = vrot.slane %v3684_v47, %v15433_v60  ;;  %v2563_v9 = vcombine.high %v11364_v62, %v11340_v39  ;;  %v15569_v16 = vld [vmem:[#allocation95_spill] sm:$0xff] }
 0x569   :  { %v3564_v31 = vcombine.low %v15566_v19, %v15565_v12  ;;  %v15572_v15 = vld [vmem:[#allocation97_spill] sm:$0xff]  ;;  %v6704_v51 = vsel %vm6508_vm0, %v3508_v23, -inf  ;;  %v11529_v47 = vrot.slane %v3652_v46, %v15433_v60  ;;  %v15577_v23 = vld [vmem:[#allocation131_spill] sm:$0xff]  ;;  %v3243_v1 = vcombine.high %v11374_v32, %v11355_v3 }
 0x56a   :  { %15567 = vst [vmem:[#allocation124_spill] sm:$0xff] %v11512_v40  ;;  %15568 = vst [vmem:[#allocation82_spill] sm:$0xff] %v11515_v5  ;;  %v3956_v56 = vcombine.low %v15572_v15, %v15571_v42  ;;  %v3748_v39 = vcombine.low %v11515_v5, %v11497_v18  ;;  %v15574_v62 = vld [vmem:[#allocation93_spill] sm:$0xff]  ;;  %v15576_v15 = vld [vmem:[#allocation135_spill] sm:$0xff]  ;;  %v11544_v46 = vrot.slane %v3548_v8, %v15433_v60 }
 0x56b   :  { %6672 = vmax.xlane.f32.xlu1 %v6671_v28  ;;  %6687 = vmax.xlane.f32.xlu0 %v6686_v4  ;;  %v15570_v28 = vld [vmem:[#allocation91_spill] sm:$0xff]  ;;  %15573 = vst [vmem:[#allocation77_spill] sm:$0xff] %v11529_v47  ;;  %v15575_v4 = vld [vmem:[#allocation89_spill] sm:$0xff]  ;;  %v4244_v42 = vcombine.low %v15577_v23, %v15576_v15  ;;  %v11547_v19 = vrot.slane %v3564_v31, %v15433_v60  ;;  %v6683_v23 = vsel %vm6508_vm0, %v2563_v9, -inf }
 0x56c   :  { %v3940_v13 = vcombine.low %v15570_v28, %v15569_v16  ;;  %v3924_v28 = vcombine.low %v15575_v4, %v15574_v62  ;;  %v11536_v16 = vrot.slane %v3972_v33, %v15433_v60  ;;  %15578 = vst [vmem:[#allocation120_spill] sm:$0xff] %v11544_v46  ;;  %v3716_v4 = vcombine.low %v11529_v47, %v11512_v40  ;;  %v11551_v33 = vpop.permute.xlu0 %2124  ;;  %v15581_v32 = vld [vmem:[#allocation127_spill] sm:$0xff]  ;;  %v15583_v15 = vld [vmem:[#allocation133_spill] sm:$0xff] }
 0x56d   :  { %15579 = vst [vmem:[#allocation116_spill] sm:$0xff] %v11551_v33  ;;  %v11558_v41 = vrot.slane %v3956_v56, %v15433_v60  ;;  %v15582_v8 = vld [vmem:[#allocation123_spill] sm:$0xff]  ;;  %v15584_v31 = vld [vmem:[#allocation129_spill] sm:$0xff]  ;;  %v2835_v9 = vcombine.high %v11404_v27, %v11384_v2  ;;  %v15592_v2 = vld [vmem:[#allocation74_spill] sm:$0xff] }
 0x56e   :  { %v4212_v3 = vcombine.low %v15582_v8, %v15581_v32  ;;  %v4228_v62 = vcombine.low %v15584_v31, %v15583_v15  ;;  %v15585_v12 = vld [vmem:[#allocation87_spill] sm:$0xff]  ;;  %v11567_v33 = vrot.slane %v3924_v28, %v15433_v60  ;;  %v15589_v8 = vld [vmem:[#allocation121_spill] sm:$0xff]  ;;  %v11579_v31 = vrot.slane %v4244_v42, %v15433_v60 }
 0x56f   :  { %6678 = vmax.xlane.f32.xlu1 %v6677_v50  ;;  %6693 = vmax.xlane.f32.xlu0 %v6692_v6  ;;  %v11555_v50 = vrot.slane %v3940_v13, %v15433_v60  ;;  %15580 = vst [vmem:[#allocation73_spill] sm:$0xff] %v11558_v41  ;;  %v15586_v5 = vld [vmem:[#allocation83_spill] sm:$0xff]  ;;  %v11572_v13 = vrot.slane %v3748_v39, %v10465_v21  ;;  %v15588_v6 = vld [vmem:[#allocation125_spill] sm:$0xff]  ;;  %v6698_v15 = vsel %vm6508_vm0, %v3243_v1, -inf }
 0x570   :  { %v3836_v47 = vcombine.low %v15586_v5, %v15585_v12  ;;  %15587 = vst [vmem:[#allocation68_spill] sm:$0xff] %v11567_v33  ;;  %v4020_v56 = vcombine.low %v11558_v41, %v11536_v16  ;;  %v4196_v32 = vcombine.low %v15589_v8, %v15588_v6  ;;  %15590 = vst [vmem:[#allocation80_spill] sm:$0xff] %v11579_v31  ;;  %v15591_v5 = vld [vmem:[#allocation79_spill] sm:$0xff]  ;;  %v15593_v39 = vld [vmem:[#allocation85_spill] sm:$0xff] }
 0x571   :  { %v3612_v28 = vcombine.low %v11544_v46, %v11547_v19  ;;  %v3804_v27 = vcombine.low %v15592_v2, %v15591_v5  ;;  %v15594_v12 = vld [vmem:[#allocation81_spill] sm:$0xff]  ;;  %v11589_v41 = vrot.slane %v3716_v4, %v10465_v21  ;;  %v15595_v8 = vld [vmem:[#allocation76_spill] sm:$0xff]  ;;  %v15596_v6 = vld [vmem:[#allocation71_spill] sm:$0xff]  ;;  %v11596_v1 = vrot.slane %v4212_v3, %v15433_v60  ;;  %v11606_v4 = vpop.permute.xlu0 %2136 }
 0x572   :  { %v3820_v40 = vcombine.low %v15594_v12, %v15593_v39  ;;  %v3788_v42 = vcombine.low %v15596_v6, %v15595_v8  ;;  %v11599_v46 = vrot.slane %v4228_v62, %v15433_v60  ;;  %v11602_v2 = vrot.slane %v3836_v47, %v15433_v60  ;;  %v15598_v12 = vld [vmem:[#allocation119_spill] sm:$0xff]  ;;  %15600 = vst [vmem:[#allocation70_spill] sm:$0xff] %v11606_v4 }
 0x573   :  { %6684 = vmax.xlane.f32.xlu1 %v6683_v23  ;;  %6699 = vmax.xlane.f32.xlu0 %v6698_v15  ;;  %v3988_v23 = vcombine.low %v11567_v33, %v11555_v50  ;;  %v15599_v15 = vld [vmem:[#allocation115_spill] sm:$0xff]  ;;  %v6689_v5 = vsel %vm6508_vm0, %v2835_v9, -inf  ;;  %v3107_v6 = vcombine.high %v11447_v38, %v11425_v20  ;;  %v11612_v8 = vrot.slane %v4196_v32, %v15433_v60 }
 0x574   :  { %15597 = vst [vmem:[#allocation75_spill] sm:$0xff] %v11599_v46  ;;  %v4108_v39 = vcombine.low %v15599_v15, %v15598_v12  ;;  %v4292_v62 = vcombine.low %v11599_v46, %v11579_v31  ;;  %v3780_v47 = vcombine.low %v11589_v41, %v11572_v13  ;;  %v11619_v3 = vrot.slane %v4020_v56, %v10465_v21  ;;  %v15601_v20 = vld [vmem:[#allocation111_spill] sm:$0xff]  ;;  %v15603_v15 = vld [vmem:[#allocation117_spill] sm:$0xff] }
 0x575   :  { %v11622_v4 = vrot.slane %v3804_v27, %v15433_v60  ;;  %v11625_v9 = vrot.slane %v3820_v40, %v15433_v60  ;;  %v15602_v38 = vld [vmem:[#allocation107_spill] sm:$0xff]  ;;  %v15604_v12 = vld [vmem:[#allocation113_spill] sm:$0xff]  ;;  %v4260_v56 = vcombine.low %v11612_v8, %v11596_v1  ;;  %v11637_v46 = vrot.slane %v3988_v23, %v10465_v21 }
 0x576   :  { %v4076_v32 = vcombine.low %v15602_v38, %v15601_v20  ;;  %v4092_v33 = vcombine.low %v15604_v12, %v15603_v15  ;;  %v11640_v27 = vrot.slane %v3612_v28, %v10465_v21  ;;  %v15605_v38 = vld [vmem:[#allocation109_spill] sm:$0xff]  ;;  %v3277_v12 = vcombine.high %v15535_v58, %v15534_v36 }
 0x577   :  { %6690 = vmax.xlane.f32.xlu1 %v6689_v5  ;;  %6705 = vmax.xlane.f32.xlu0 %v6704_v51  ;;  %v11632_v5 = vrot.slane %v3788_v42, %v15433_v60  ;;  %v3884_v40 = vcombine.low %v11625_v9, %v11602_v2  ;;  %v15606_v20 = vld [vmem:[#allocation105_spill] sm:$0xff]  ;;  %v11647_v51 = vrot.slane %v4108_v39, %v15433_v60  ;;  %v6695_v42 = vsel %vm6508_vm0, %v3107_v6, -inf }
 0x578   :  { %v4060_v31 = vcombine.low %v15606_v20, %v15605_v38  ;;  %v6710_v23 = vsel %vm6508_vm0, %v3780_v47, -inf  ;;  %v4052_v28 = vcombine.low %v11637_v46, %v11619_v3  ;;  %v11656_v15 = vrot.slane %v4292_v62, %v10465_v21  ;;  %v11666_v38 = vpop.permute.xlu0 %2148 }
 0x579   :  { %v3852_v20 = vcombine.low %v11632_v5, %v11622_v4  ;;  %v11661_v39 = vrot.slane %v4076_v32, %v15433_v60  ;;  %v11664_v6 = vrot.slane %v4092_v33, %v15433_v60  ;;  %15608 = vst [vmem:[#allocation114_spill] sm:$0xff] %v11666_v38  ;;  %v15609_v36 = vcombine.low %v11483_v24, %v11492_v0 }
 0x57a   :  { %v3245_v62 = vcombine.high %v15521_v63, %v15520_v43  ;;  %v15610_v47 = vcombine.high %v15537_v55, %v15536_v59  ;;  %v15611_v33 = vcombine.low %v11480_v54, %v11489_v7  ;;  %v11697_v55 = vrot.slane %v3884_v40, %v10465_v21 }
 0x57b   :  { %6696 = vmax.xlane.f32.xlu1 %v6695_v42  ;;  %15607 = vst [vmem:[#allocation66_spill] sm:$0xff] %v11664_v6  ;;  %6711 = vmax.xlane.f32.xlu0 %v6710_v23  ;;  %v11672_v58 = vrot.slane %v15609_v36, %v10465_v21  ;;  %v11687_v23 = vrot.slane %v4260_v56, %v10465_v21 }
 0x57c   :  { %v11680_v32 = vrot.slane %v15610_v47, %v15433_v60  ;;  %v6701_v42 = vsel %vm6508_vm0, %v15611_v33, -inf  ;;  %v11690_v36 = vrot.slane %v4060_v31, %v15433_v60  ;;  %v4156_v43 = vcombine.low %v11664_v6, %v11647_v51 }
 0x57d   :  { %v3644_v63 = vcombine.low %v11672_v58, %v11640_v27  ;;  %v11701_v59 = vsub.s32 %v11251_v26, %v15513_v61  ;;  %v11704_v47 = vrot.slane %v3277_v12, %v15433_v60  ;;  %v6716_v31 = vsel %vm6508_vm0, %v4052_v28, -inf }
 0x57e   :  { %v4324_v56 = vcombine.low %v11687_v23, %v11656_v15  ;;  %v11711_v33 = vsub.s32 %v11254_v35, %v15513_v61  ;;  %v15614_v40 = vcombine.high %v15533_v52, %v15532_v57  ;;  %v4124_v26 = vcombine.low %v11690_v36, %v11661_v39 }
 0x57f   :  { %15612 = vst [vmem:[#allocation110_spill] sm:$0xff] %v11701_v59  ;;  %6702 = vmax.xlane.f32.xlu1 %v6701_v42  ;;  %6717 = vmax.xlane.f32.xlu0 %v6716_v31  ;;  %v11722_v28 = vrot.slane %v3852_v20, %v10465_v21  ;;  %v11726_v42 = vsub.s32 %v11282_v37, %v15513_v61  ;;  %v6707_v31 = vsel %vm6508_vm0, %v3644_v63, -inf }
 0x580   :  { %15613 = vst [vmem:[#allocation106_spill] sm:$0xff] %v11711_v33  ;;  %v3275_v38 = vrot.slane %v15614_v40, %v15433_v60  ;;  %v11719_v12 = vpop.xlane.xlu0 %6510  ;;  %v3259_v35 = vrot.slane %v3245_v62, %v15433_v60  ;;  %v3341_v6 = vcombine.high %v11428_v11, %v11411_v30  ;;  %v3356_v57 = vcombine.low %v11704_v47, %v11680_v32 }
 0x581   :  { %v3397_v52 = vcombine.high %v15523_v49, %v15522_v10  ;;  %v3916_v20 = vcombine.low %v11722_v28, %v11697_v55  ;;  %v11739_v40 = vrot.slane %v4156_v43, %v10465_v21  ;;  %v3309_v37 = vcombine.high %v11419_v22, %v11399_v14  ;;  %v15616_v14 = vld [vmem:[#allocation32_spill] sm:$0xff] }
 0x582   :  { %v3429_v30 = vcombine.high %v15529_v53, %v15528_v34  ;;  %v6722_v11 = vsel %vm6508_vm0, %v4324_v56, -inf  ;;  %v3509_v10 = vcombine.high %v11471_v29, %v11456_v17  ;;  %v3324_v49 = vcombine.low %v3259_v35, %v3275_v38  ;;  %v15615_v53 = vld [vmem:[#allocation35_spill] sm:$0xff] }
 0x583   :  { %6708 = vmax.xlane.f32.xlu1 %v6707_v31  ;;  %v3381_v62 = vcombine.high %v15539_v48, %v15538_v45  ;;  %v3477_v43 = vcombine.high %v11390_v44, %v11371_v25  ;;  %6723 = vmax.xlane.f32.xlu0 %v6722_v11  ;;  %v11755_v22 = vrot.slane %v4124_v26, %v10465_v21  ;;  %v15617_v48 = vld [vmem:[#allocation92_spill] sm:$0xff]  ;;  %v15618_v25 = vld [vmem:[#allocation130_spill] sm:$0xff]  ;;  %v6713_v29 = vsel %vm6508_vm0, %v3916_v20, -inf }
 0x584   :  { %v11752_v63 = vpop.xlane.xlu0 %6516  ;;  %v3325_v34 = vcombine.high %v3259_v35, %v3275_v38  ;;  %v3413_v56 = vcombine.high %v15616_v14, %v15615_v53  ;;  %v3355_v31 = vrot.slane %v3341_v6, %v10465_v21  ;;  %v11761_v17 = vrot.slane %v3356_v57, %v10465_v21 }
 0x585   :  { %v11764_v45 = vrot.slane %v3397_v52, %v15433_v60  ;;  %v3445_v44 = vcombine.high %v15618_v25, %v15617_v48  ;;  %v4188_v26 = vcombine.low %v11755_v22, %v11739_v40  ;;  %v11772_v38 = vrot.slane %v3429_v30, %v15433_v60 }
 0x586   :  { %v6728_v6 = vsel %vm6508_vm0, %v3509_v10, -inf  ;;  %v3781_v35 = vcombine.high %v11589_v41, %v11572_v13  ;;  %v3323_v57 = vrot.slane %v3309_v37, %v10465_v21  ;;  %v3357_v52 = vcombine.high %v11704_v47, %v11680_v32 }
 0x587   :  { %6714 = vmax.xlane.f32.xlu1 %v6713_v29  ;;  %v11781_v11 = vrot.slane %v3381_v62, %v15433_v60  ;;  %6729 = vmax.xlane.f32.xlu0 %v6728_v6  ;;  %v11786_v30 = vrot.slane %v3477_v43, %v10465_v21  ;;  %v11789_v53 = vrot.slane %v3324_v49, %v10465_v21  ;;  %v6719_v37 = vsel %vm6508_vm0, %v4188_v26, -inf  ;;  %v15619_v43 = vld [vmem:[#allocation88_spill] sm:$0xff] }
 0x588   :  { %v11783_v20 = vpop.xlane.xlu0 %6519  ;;  %v11792_v10 = vrot.slane %v3413_v56, %v15433_v60  ;;  %v3373_v41 = vcombine.high %v11480_v54, %v11489_v7  ;;  %v3374_v13 = vcombine.low %v3323_v57, %v3355_v31  ;;  %v3375_v32 = vcombine.high %v3323_v57, %v3355_v31  ;;  %v15620_v31 = vld [vmem:[#allocation122_spill] sm:$0xff] }
 0x589   :  { %v3460_v47 = vcombine.low %v11781_v11, %v11764_v45  ;;  %v11800_v62 = vrot.slane %v3445_v44, %v10465_v21  ;;  %v3376_v49 = vcombine.low %v11789_v53, %v11761_v17  ;;  %v11806_v14 = vsub.s32 %v15619_v43, %v15513_v61 }
 0x58a   :  { %v3492_v54 = vcombine.low %v11792_v10, %v11772_v38  ;;  %v6734_v7 = vsel %vm6508_vm0, %v3781_v35, -inf  ;;  %v4053_v56 = vcombine.high %v11637_v46, %v11619_v3  ;;  %v11815_v48 = vsub.s32 %v15620_v31, %v15513_v61 }
 0x58b   :  { %6720 = vmax.xlane.f32.xlu1 %v6719_v37  ;;  %6735 = vmax.xlane.f32.xlu0 %v6734_v7  ;;  %v3510_v44 = vcombine.low %v11800_v62, %v11786_v30  ;;  %v11820_v29 = vrot.slane %v3325_v34, %v10465_v21  ;;  %v11823_v26 = vrot.slane %v3357_v52, %v10465_v21  ;;  %v6725_v6 = vsel %vm6508_vm0, %v3373_v41, -inf  ;;  %v15622_v34 = vld [vmem:[#allocation82_spill] sm:$0xff]  ;;  %v15623_v37 = vld [vmem:[#allocation124_spill] sm:$0xff] }
 0x58c   :  { %15621 = vst [vmem:[#allocation102_spill] sm:$0xff] %v11815_v48  ;;  %v6526_v25 = vpop.xlane.xlu0 %6525  ;;  %v3645_v46 = vcombine.high %v11672_v58, %v11640_v27  ;;  %v11829_v3 = vsel %vm6508_vm0, %v3374_v13, -inf  ;;  %v11832_v61 = vsel %vm6508_vm0, %v3375_v32, -inf  ;;  %v3749_v57 = vcombine.high %v15622_v34, %v11497_v18  ;;  %v15624_v18 = vld [vmem:[#allocation77_spill] sm:$0xff]  ;;  %v15627_v34 = vld [vmem:[#allocation126_spill] sm:$0xff] }
 0x58d   :  { %v11839_v52 = vrot.slane %v3460_v47, %v10465_v21  ;;  %v11842_v41 = vsel %vm6508_vm0, %v3376_v49, -inf  ;;  %v6740_v58 = vsel %vm6508_vm0, %v4053_v56, -inf  ;;  %v4325_v13 = vcombine.high %v11687_v23, %v11656_v15  ;;  %v15626_v15 = vld [vmem:[#allocation84_spill] sm:$0xff] }
 0x58e   :  { %v11850_v32 = vrot.slane %v3492_v54, %v10465_v21  ;;  %v3717_v43 = vcombine.high %v15624_v18, %v15623_v37  ;;  %v6752_v7 = vsel %vm6508_vm0, %v3510_v44, -inf  ;;  %v6731_v54 = vsel %vm6508_vm0, %v3645_v46, -inf  ;;  %v15628_v18 = vld [vmem:[#allocation73_spill] sm:$0xff] }
 0x58f   :  { %6726 = vmax.xlane.f32.xlu1 %v6725_v6  ;;  %6741 = vmax.xlane.f32.xlu0 %v6740_v58  ;;  %v15625_v6 = vld [vmem:[#allocation46_spill] sm:$0xff]  ;;  %v7548_v37 = vrot.slane %v11752_v63, %v15627_v34  ;;  %v3917_v58 = vcombine.high %v11722_v28, %v11697_v55  ;;  %v11866_v44 = vrot.slane %v3749_v57, %v10465_v21  ;;  %v6746_v46 = vsel %vm6508_vm0, %v4325_v13, -inf  ;;  %v15629_v63 = vld [vmem:[#allocation120_spill] sm:$0xff] }
 0x590   :  { %v6514_v47 = vpop.xlane.xlu1 %6513  ;;  %v6532_v49 = vpop.xlane.xlu0 %6531  ;;  %v7536_v56 = vrot.slane %v11719_v12, %v15625_v6  ;;  %v4021_v35 = vcombine.high %v15628_v18, %v11536_v16  ;;  %v7555_v12 = vrot.slane %v11783_v20, %v11701_v59  ;;  %v3613_v27 = vcombine.high %v15629_v63, %v11547_v19  ;;  %v15630_v16 = vld [vmem:[#allocation68_spill] sm:$0xff]  ;;  %v15632_v18 = vld [vmem:[#allocation75_spill] sm:$0xff] }
 0x591   :  { %v7541_v23 = vrot.slane %v6514_v47, %v15626_v15  ;;  %v11878_v57 = vrot.slane %v3717_v43, %v10465_v21  ;;  %v3989_v20 = vcombine.high %v15630_v16, %v11555_v50  ;;  %v3581_v19 = vcombine.high %v11483_v24, %v11492_v0  ;;  %v15631_v43 = vld [vmem:[#allocation80_spill] sm:$0xff]  ;;  %v15633_v0 = vld [vmem:[#allocation43_spill] sm:$0xff] }
 0x592   :  { %v7569_v13 = vrot.slane %v6526_v25, %v11726_v42  ;;  %v15634_v24 = vld [vmem:[#allocation39_spill] sm:$0xff]  ;;  %v3885_v16 = vcombine.high %v11625_v9, %v11602_v2  ;;  %v15636_v2 = vld [vmem:[#allocation41_spill] sm:$0xff] }
 0x593   :  { %v7543_v47 = vsel %vm7542_vm1, %v7541_v23, %v7536_v56  ;;  %6732 = vmax.xlane.f32.xlu1 %v6731_v54  ;;  %6747 = vmax.xlane.f32.xlu0 %v6746_v46  ;;  %v6737_v54 = vsel %vm6508_vm0, %v3917_v58, -inf  ;;  %v3517_v25 = vcombine.high %v15634_v24, %v15633_v0 }
 0x594   :  { %v7550_v31 = vsel %vm7549_vm2, %v7548_v37, %v7543_v47  ;;  %v6523_v55 = vpop.xlane.xlu1 %6522  ;;  %v6538_v28 = vpop.xlane.xlu0 %6537  ;;  %v4189_v37 = vcombine.high %v11755_v22, %v11739_v40  ;;  %v4293_v47 = vcombine.high %v15632_v18, %v15631_v43  ;;  %v11902_v40 = vrot.slane %v3613_v27, %v10465_v21  ;;  %v15637_v43 = vld [vmem:[#allocation69_spill] sm:$0xff] }
 0x595   :  { %v7557_v56 = vsel %vm7556_vm3, %v7555_v12, %v7550_v31  ;;  %v7562_v23 = vrot.slane %v6523_v55, %v11711_v33  ;;  %v3782_v31 = vcombine.low %v11878_v57, %v11866_v44  ;;  %v11896_v12 = vrot.slane %v4021_v35, %v10465_v21  ;;  %v15638_v18 = vld [vmem:[#allocation65_spill] sm:$0xff] }
 0x596   :  { %v4261_v22 = vcombine.high %v11612_v8, %v11596_v1  ;;  %v11908_v35 = vrot.slane %v3989_v20, %v10465_v21  ;;  %v11915_v27 = vrot.slane %v3581_v19, %v10465_v21  ;;  %v11922_v20 = vrot.slane %v4293_v47, %v10465_v21 }
 0x597   :  { %v7564_v50 = vsel %vm7563_vm4, %v7562_v23, %v7557_v56  ;;  %6738 = vmax.xlane.f32.xlu1 %v6737_v54  ;;  %6753 = vmax.xlane.f32.xlu0 %v6752_v7  ;;  %v7583_v56 = vrot.slane %v6532_v49, %v11815_v48  ;;  %v6743_v7 = vsel %vm6508_vm0, %v4189_v37, -inf  ;;  %v6758_v8 = vsel %vm6508_vm0, %v3782_v31, -inf }
 0x598   :  { %v6529_v58 = vpop.xlane.xlu1 %6528  ;;  %v7571_v46 = vsel %vm7570_vm5, %v7569_v13, %v7564_v50  ;;  %v6544_v55 = vpop.xlane.xlu0 %6543  ;;  %v4054_v1 = vcombine.low %v11908_v35, %v11896_v12  ;;  %v15635_v13 = vld [vmem:[#allocation45_spill] sm:$0xff]  ;;  %v3853_v49 = vcombine.high %v11632_v5, %v11622_v4  ;;  %v3646_v37 = vcombine.low %v11915_v27, %v11902_v40 }
 0x599   :  { %v7576_v63 = vrot.slane %v6529_v58, %v11806_v14  ;;  %v3533_v9 = vcombine.high %v15636_v2, %v15635_v13  ;;  %v3701_v50 = vcombine.high %v15638_v18, %v15637_v43  ;;  %v7593_v47 = vrot.slane %v6538_v28, %v15626_v15  ;;  %v15639_v5 = vld [vmem:[#allocation53_spill] sm:$0xff]  ;;  %v15643_v28 = vld [vmem:[#allocation63_spill] sm:$0xff] }
 0x59a   :  { %v11938_v24 = vrot.slane %v4261_v22, %v10465_v21  ;;  %v11941_v4 = vrot.slane %v3517_v25, %v15433_v60  ;;  %v15640_v58 = vld [vmem:[#allocation49_spill] sm:$0xff]  ;;  %v6764_v22 = vsel %vm6508_vm0, %v4054_v1, -inf }
 0x59b   :  { %v7578_v23 = vsel %vm7577_vm6, %v7576_v63, %v7571_v46  ;;  %6744 = vmax.xlane.f32.xlu1 %v6743_v7  ;;  %6759 = vmax.xlane.f32.xlu0 %v6758_v8  ;;  %v3565_v46 = vcombine.high %v15640_v58, %v15639_v5  ;;  %v15641_v63 = vld [vmem:[#allocation66_spill] sm:$0xff]  ;;  %v11948_v7 = vrot.slane %v3885_v16, %v10465_v21  ;;  %v6755_v58 = vsel %vm6508_vm0, %v3646_v37, -inf }
 0x59c   :  { %v11929_v19 = vsel %vm7584_vm7, %v7583_v56, %v7578_v23  ;;  %v6535_v54 = vpop.xlane.xlu1 %6534  ;;  %v6550_v0 = vpop.xlane.xlu0 %6549  ;;  %v4157_v56 = vcombine.high %v15641_v63, %v11647_v51  ;;  %v15642_v23 = vld [vmem:[#allocation67_spill] sm:$0xff]  ;;  %v4326_v25 = vcombine.low %v11938_v24, %v11922_v20  ;;  %v11958_v2 = vrot.slane %v3533_v9, %v15433_v60  ;;  %v15645_v51 = vld [vmem:[#allocation57_spill] sm:$0xff] }
 0x59d   :  { %v7589_v31 = vrot.slane %v6535_v54, %v15625_v6  ;;  %v3685_v8 = vcombine.high %v15643_v28, %v15642_v23  ;;  %v15644_v54 = vld [vmem:[#allocation61_spill] sm:$0xff]  ;;  %v4125_v16 = vcombine.high %v11690_v36, %v11661_v39  ;;  %v11970_v5 = vrot.slane %v3701_v50, %v15433_v60  ;;  %v15649_v23 = vld [vmem:[#allocation59_spill] sm:$0xff] }
 0x59e   :  { %v3669_v43 = vcombine.high %v15645_v51, %v15644_v54  ;;  %v15650_v28 = vld [vmem:[#allocation55_spill] sm:$0xff]  ;;  %v7603_v39 = vrot.slane %v6544_v55, %v11701_v59  ;;  %v6770_v51 = vsel %vm6508_vm0, %v4326_v25, -inf }
 0x59f   :  { %v7594_v13 = vsel %vm7542_vm1, %v7593_v47, %v7589_v31  ;;  %6750 = vmax.xlane.f32.xlu1 %v11829_v3  ;;  %6765 = vmax.xlane.f32.xlu0 %v6764_v22  ;;  %v11965_v47 = vrot.slane %v3853_v49, %v10465_v21  ;;  %v15646_v3 = vld [vmem:[#allocation51_spill] sm:$0xff]  ;;  %15648 = vst [vmem:[#allocation112_spill] sm:$0xff] %v11970_v5 }
 0x5a0   :  { %v6541_v18 = vpop.xlane.xlu1 %6540  ;;  %v15647_v31 = vld [vmem:[#allocation47_spill] sm:$0xff]  ;;  %v6556_v63 = vpop.xlane.xlu0 %6555  ;;  %v3653_v54 = vcombine.high %v15650_v28, %v15649_v23  ;;  %v11980_v49 = vrot.slane %v4157_v56, %v10465_v21  ;;  %v11983_v22 = vrot.slane %v3565_v46, %v15433_v60  ;;  %v11986_v50 = vrot.slane %v3685_v8, %v15433_v60 }
 0x5a1   :  { %v3549_v1 = vcombine.high %v15647_v31, %v15646_v3  ;;  %v7598_v9 = vrot.slane %v6541_v18, %v15627_v34  ;;  %v3918_v36 = vcombine.low %v11965_v47, %v11948_v7  ;;  %v11991_v18 = vrot.slane %v3669_v43, %v15433_v60 }
 0x5a2   :  { %15651 = vst [vmem:[#allocation108_spill] sm:$0xff] %v11986_v50  ;;  %v11995_v56 = vrot.slane %v4125_v16, %v10465_v21  ;;  %v3512_v46 = vcombine.low %v11839_v52, %v11850_v32  ;;  %v3596_v8 = vcombine.low %v11941_v4, %v11958_v2  ;;  %v3764_v25 = vcombine.low %v11986_v50, %v11970_v5  ;;  %v15671_v50 = vld [vmem:[#allocation87_spill] sm:$0xff] }
 0x5a3   :  { %v7599_v37 = vsel %vm7549_vm2, %v7598_v9, %v7594_v13  ;;  %6756 = vmax.xlane.f32.xlu1 %v6755_v58  ;;  %15652 = vst [vmem:[#allocation104_spill] sm:$0xff] %v11991_v18  ;;  %6771 = vmax.xlane.f32.xlu0 %v6770_v51  ;;  %v12002_v13 = vrot.slane %v3549_v1, %v15433_v60  ;;  %v6761_v58 = vsel %vm6508_vm0, %v3918_v36, -inf }
 0x5a4   :  { %v6547_v55 = vpop.xlane.xlu1 %6546  ;;  %v7604_v3 = vsel %vm7556_vm3, %v7603_v39, %v7599_v37  ;;  %v6562_v31 = vpop.xlane.xlu0 %6561  ;;  %v12008_v9 = vrot.slane %v3653_v54, %v15433_v60  ;;  %v7613_v16 = vrot.slane %v6550_v0, %v11726_v42  ;;  %v4190_v23 = vcombine.low %v11995_v56, %v11980_v49 }
 0x5a5   :  { %v7608_v43 = vrot.slane %v6547_v55, %v11711_v33  ;;  %v3628_v1 = vcombine.low %v12002_v13, %v11983_v22  ;;  %v15654_v39 = vcombine.high %v11800_v62, %v11786_v30  ;;  %v3783_v54 = vcombine.high %v11878_v57, %v11866_v44  ;;  %v15656_v30 = vld [vmem:[#allocation71_spill] sm:$0xff] }
 0x5a6   :  { %15653 = vst [vmem:[#allocation100_spill] sm:$0xff] %v12008_v9  ;;  %v3732_v0 = vcombine.low %v12008_v9, %v11991_v18  ;;  %v3647_v55 = vcombine.high %v11915_v27, %v11902_v40  ;;  %v12035_v44 = vrot.slane %v3764_v25, %v10465_v21  ;;  %v12038_v57 = vrot.slane %v3596_v8, %v10465_v21  ;;  %v15659_v8 = vld [vmem:[#allocation101_spill] sm:$0xff] }
 0x5a7   :  { %v7609_v28 = vsel %vm7563_vm4, %v7608_v43, %v7604_v3  ;;  %6762 = vmax.xlane.f32.xlu1 %v6761_v58  ;;  %v6776_v37 = vsel %vm6508_vm0, %v15654_v39, -inf  ;;  %v12029_v3 = vsel %vm6508_vm0, %v3512_v46, -inf  ;;  %v15655_v43 = vld [vmem:[#allocation76_spill] sm:$0xff]  ;;  %v7623_v40 = vrot.slane %v6556_v63, %v11815_v48 }
 0x5a8   :  { %v6553_v36 = vpop.xlane.xlu1 %6552  ;;  %v7614_v51 = vsel %vm7570_vm5, %v7613_v16, %v7609_v28  ;;  %6777 = vmax.xlane.f32.xlu0 %v6776_v37  ;;  %v3789_v62 = vcombine.high %v15656_v30, %v15655_v43  ;;  %v6568_v39 = vpop.xlane.xlu0 %6567  ;;  %v15657_v16 = vld [vmem:[#allocation103_spill] sm:$0xff]  ;;  %v6767_v27 = vsel %vm6508_vm0, %v4190_v23, -inf  ;;  %v4055_v25 = vcombine.high %v11908_v35, %v11896_v12  ;;  %v15660_v30 = vld [vmem:[#allocation97_spill] sm:$0xff] }
 0x5a9   :  { %v7618_v58 = vrot.slane %v6553_v36, %v11806_v14  ;;  %v15658_v28 = vld [vmem:[#allocation99_spill] sm:$0xff]  ;;  %v6782_v36 = vsel %vm6508_vm0, %v3783_v54, -inf  ;;  %v12049_v43 = vrot.slane %v3628_v1, %v10465_v21  ;;  %v3957_v9 = vcombine.high %v15660_v30, %v15659_v8 }
 0x5aa   :  { %v3973_v37 = vcombine.high %v15658_v28, %v15657_v16  ;;  %v6779_v23 = vsel %vm6508_vm0, %v3647_v55, -inf  ;;  %v15662_v54 = vld [vmem:[#allocation91_spill] sm:$0xff]  ;;  %v7632_v12 = vrot.slane %v6562_v31, %v15626_v15  ;;  %v15664_v55 = vld [vmem:[#allocation89_spill] sm:$0xff] }
 0x5ab   :  { %v7619_v46 = vsel %vm7577_vm6, %v7618_v58, %v7614_v51  ;;  %6768 = vmax.xlane.f32.xlu1 %v6767_v27  ;;  %v12056_v51 = vrot.slane %v3732_v0, %v10465_v21  ;;  %v15661_v58 = vld [vmem:[#allocation95_spill] sm:$0xff] }
 0x5ac   :  { %v7624_v16 = vsel %vm7584_vm7, %v7623_v40, %v7619_v46  ;;  %v6559_v63 = vpop.xlane.xlu1 %6558  ;;  %6783 = vmax.xlane.f32.xlu0 %v6782_v36  ;;  %v3941_v28 = vcombine.high %v15662_v54, %v15661_v58  ;;  %v6574_v27 = vpop.xlane.xlu0 %6573  ;;  %v12067_v40 = vrot.slane %v3789_v62, %v15433_v60  ;;  %v15663_v46 = vld [vmem:[#allocation93_spill] sm:$0xff]  ;;  %v12072_v0 = vrot.slane %v3973_v37, %v15433_v60  ;;  %v15665_v31 = vld [vmem:[#allocation135_spill] sm:$0xff]  ;;  %v15668_v54 = vld [vmem:[#allocation74_spill] sm:$0xff] }
 0x5ad   :  { %v12063_v35 = vsel %vm8795_vm8, %v7624_v16, %v11929_v19  ;;  %v7628_v1 = vrot.slane %v6559_v63, %v15625_v6  ;;  %v3925_v36 = vcombine.high %v15664_v55, %v15663_v46  ;;  %v15666_v30 = vld [vmem:[#allocation131_spill] sm:$0xff]  ;;  %v6788_v16 = vsel %vm6508_vm0, %v4055_v25, -inf  ;;  %v15669_v37 = vld [vmem:[#allocation85_spill] sm:$0xff] }
 0x5ae   :  { %v4245_v58 = vcombine.high %v15666_v30, %v15665_v31  ;;  %v4327_v62 = vcombine.high %v11938_v24, %v11922_v20  ;;  %v15667_v63 = vld [vmem:[#allocation79_spill] sm:$0xff]  ;;  %v15670_v55 = vld [vmem:[#allocation81_spill] sm:$0xff]  ;;  %v12090_v31 = vrot.slane %v3957_v9, %v15433_v60  ;;  %v7642_v9 = vrot.slane %v6568_v39, %v11701_v59 }
 0x5af   :  { %v7633_v19 = vsel %vm7542_vm1, %v7632_v12, %v7628_v1  ;;  %6774 = vmax.xlane.f32.xlu1 %v11832_v61  ;;  %v3805_v46 = vcombine.high %v15668_v54, %v15667_v63  ;;  %v3821_v18 = vcombine.high %v15670_v55, %v15669_v37  ;;  %v15672_v8 = vld [vmem:[#allocation83_spill] sm:$0xff]  ;;  %v12093_v61 = vrot.slane %v3941_v28, %v15433_v60  ;;  %v15676_v24 = vld [vmem:[#allocation133_spill] sm:$0xff] }
 0x5b0   :  { %v3837_v5 = vcombine.high %v15672_v8, %v15671_v50  ;;  %v6565_v12 = vpop.xlane.xlu1 %6564  ;;  %6789 = vmax.xlane.f32.xlu0 %v6788_v16  ;;  %v15674_v25 = vld [vmem:[#allocation127_spill] sm:$0xff]  ;;  %v15677_v30 = vld [vmem:[#allocation129_spill] sm:$0xff]  ;;  %v6580_v37 = vpop.xlane.xlu0 %6579  ;;  %v12101_v55 = vrot.slane %v3925_v36, %v15433_v60  ;;  %v4036_v50 = vcombine.low %v12090_v31, %v12072_v0  ;;  %v3919_v28 = vcombine.high %v11965_v47, %v11948_v7 }
 0x5b1   :  { %15673 = vst [vmem:[#allocation10_spill] sm:$0xff] %v12093_v61  ;;  %v15675_v1 = vld [vmem:[#allocation123_spill] sm:$0xff]  ;;  %v4229_v63 = vcombine.high %v15677_v30, %v15676_v24  ;;  %v7637_v54 = vrot.slane %v6565_v12, %v15627_v34  ;;  %v15679_v8 = vld [vmem:[#allocation125_spill] sm:$0xff]  ;;  %v6794_v36 = vsel %vm6508_vm0, %v4327_v62, -inf  ;;  %v12116_v24 = vrot.slane %v3805_v46, %v15433_v60 }
 0x5b2   :  { %v4213_v20 = vcombine.high %v15675_v1, %v15674_v25  ;;  %15678 = vst [vmem:[#allocation9_spill] sm:$0xff] %v12101_v55  ;;  %v15680_v16 = vld [vmem:[#allocation121_spill] sm:$0xff]  ;;  %v12111_v1 = vrot.slane %v4245_v58, %v15433_v60  ;;  %v12119_v30 = vrot.slane %v3821_v18, %v15433_v60  ;;  %v12122_v39 = vrot.slane %v3837_v5, %v15433_v60  ;;  %v15683_v46 = vld [vmem:[#allocation119_spill] sm:$0xff] }
 0x5b3   :  { %v4197_v25 = vcombine.high %v15680_v16, %v15679_v8  ;;  %v7638_v12 = vsel %vm7549_vm2, %v7637_v54, %v7633_v19  ;;  %6780 = vmax.xlane.f32.xlu1 %v6779_v23  ;;  %v4004_v58 = vcombine.low %v12101_v55, %v12093_v61  ;;  %v12131_v19 = vrot.slane %v4229_v63, %v15433_v60  ;;  %v15684_v54 = vld [vmem:[#allocation115_spill] sm:$0xff] }
 0x5b4   :  { %15681 = vst [vmem:[#allocation15_spill] sm:$0xff] %v12111_v1  ;;  %v6571_v7 = vpop.xlane.xlu1 %6570  ;;  %v7643_v47 = vsel %vm7556_vm3, %v7642_v9, %v7638_v12  ;;  %6795 = vmax.xlane.f32.xlu0 %v6794_v36  ;;  %v12128_v23 = vrot.slane %v4213_v20, %v15433_v60  ;;  %v6586_v18 = vpop.xlane.xlu0 %6585  ;;  %v4109_v5 = vcombine.high %v15684_v54, %v15683_v46  ;;  %v6785_v9 = vsel %vm6508_vm0, %v3919_v28, -inf  ;;  %v15686_v28 = vld [vmem:[#allocation107_spill] sm:$0xff]  ;;  %v15687_v54 = vld [vmem:[#allocation117_spill] sm:$0xff] }
 0x5b5   :  { %15682 = vst [vmem:[#allocation11_spill] sm:$0xff] %v12131_v19  ;;  %v7647_v62 = vrot.slane %v6571_v7, %v11711_v33  ;;  %v7652_v8 = vrot.slane %v6574_v27, %v11726_v42  ;;  %v4191_v16 = vcombine.high %v11995_v56, %v11980_v49  ;;  %v12141_v12 = vrot.slane %v4197_v25, %v15433_v60  ;;  %v15685_v7 = vld [vmem:[#allocation111_spill] sm:$0xff]  ;;  %v15688_v49 = vld [vmem:[#allocation113_spill] sm:$0xff] }
 0x5b6   :  { %v4308_v20 = vcombine.low %v12131_v19, %v12111_v1  ;;  %v12147_v36 = vrot.slane %v4036_v50, %v10465_v21  ;;  %v3900_v27 = vcombine.low %v12119_v30, %v12122_v39  ;;  %v4077_v46 = vcombine.high %v15686_v28, %v15685_v7  ;;  %v15689_v19 = vld [vmem:[#allocation109_spill] sm:$0xff] }
 0x5b7   :  { %v7648_v63 = vsel %vm7563_vm4, %v7647_v62, %v7643_v47  ;;  %6786 = vmax.xlane.f32.xlu1 %v6785_v9  ;;  %v4093_v56 = vcombine.high %v15688_v49, %v15687_v54  ;;  %v15690_v47 = vld [vmem:[#allocation105_spill] sm:$0xff]  ;;  %v4276_v50 = vcombine.low %v12141_v12, %v12128_v23  ;;  %v12163_v61 = vrot.slane %v4004_v58, %v10465_v21 }
 0x5b8   :  { %v6577_v25 = vpop.xlane.xlu1 %6576  ;;  %v7653_v55 = vsel %vm7570_vm5, %v7652_v8, %v7648_v63  ;;  %6801 = vmax.xlane.f32.xlu0 %v12029_v3  ;;  %v4061_v62 = vcombine.high %v15690_v47, %v15689_v19  ;;  %v6592_v1 = vpop.xlane.xlu0 %6591  ;;  %v12166_v7 = vrot.slane %v4109_v5, %v15433_v60  ;;  %v7662_v28 = vrot.slane %v6580_v37, %v11815_v48 }
 0x5b9   :  { %v7657_v9 = vrot.slane %v6577_v25, %v11806_v14  ;;  %v6791_v3 = vsel %vm6508_vm0, %v4191_v16, -inf  ;;  %v15691_v19 = vcombine.low %v12056_v51, %v12035_v44  ;;  %v4056_v58 = vcombine.low %v12163_v61, %v12147_v36 }
 0x5ba   :  { %v12178_v54 = vrot.slane %v4308_v20, %v10465_v21  ;;  %v3868_v37 = vcombine.low %v12067_v40, %v12116_v24  ;;  %v12183_v5 = vrot.slane %v4077_v46, %v15433_v60  ;;  %v7671_v25 = vrot.slane %v6586_v18, %v15626_v15 }
 0x5bb   :  { %v7658_v8 = vsel %vm7577_vm6, %v7657_v9, %v7653_v55  ;;  %6792 = vmax.xlane.f32.xlu1 %v6791_v3  ;;  %v6806_v63 = vsel %vm6508_vm0, %v15691_v19, -inf  ;;  %v12186_v55 = vrot.slane %v4093_v56, %v15433_v60  ;;  %v12198_v46 = vrot.slane %v4276_v50, %v10465_v21 }
 0x5bc   :  { %v7663_v16 = vsel %vm7584_vm7, %v7662_v28, %v7658_v8  ;;  %v6583_v49 = vpop.xlane.xlu1 %6582  ;;  %6807 = vmax.xlane.f32.xlu0 %v6806_v63  ;;  %v12195_v9 = vpop.xlane.xlu0 %6597  ;;  %v12201_v56 = vrot.slane %v4061_v62, %v15433_v60  ;;  %v3648_v18 = vcombine.low %v12038_v57, %v12049_v43  ;;  %v12208_v3 = vrot.slane %v3900_v27, %v10465_v21 }
 0x5bd   :  { %v12192_v47 = vsel %vm8797_vm9, %v7663_v16, %v12063_v35  ;;  %v7667_v20 = vrot.slane %v6583_v49, %v15625_v6  ;;  %v4172_v28 = vcombine.low %v12186_v55, %v12166_v7  ;;  %v6812_v8 = vsel %vm6508_vm0, %v4056_v58, -inf }
 0x5be   :  { %v4328_v50 = vcombine.low %v12198_v46, %v12178_v54  ;;  %v15692_v62 = vcombine.high %v11792_v10, %v11772_v38  ;;  %v4140_v63 = vcombine.low %v12201_v56, %v12183_v5  ;;  %v12224_v16 = vrot.slane %v3868_v37, %v10465_v21 }
 0x5bf   :  { %v7672_v35 = vsel %vm7542_vm1, %v7671_v25, %v7667_v20  ;;  %6798 = vmax.xlane.f32.xlu1 %v11842_v41  ;;  %v3377_v41 = vcombine.high %v11789_v53, %v11761_v17  ;;  %v15693_v38 = vcombine.high %v11781_v11, %v11764_v45  ;;  %v3378_v25 = vcombine.low %v11820_v29, %v11823_v26 }
 0x5c0   :  { %v12219_v19 = vrot.slane %v15692_v62, %v10465_v21  ;;  %v6589_v27 = vpop.xlane.xlu1 %6588  ;;  %6813 = vmax.xlane.f32.xlu0 %v6812_v8  ;;  %v6604_v49 = vpop.xlane.xlu0 %6603  ;;  %v3379_v20 = vcombine.high %v11820_v29, %v11823_v26  ;;  %v7681_v37 = vrot.slane %v6592_v1, %v11701_v59  ;;  %v6803_v8 = vsel %vm6508_vm0, %v3648_v18, -inf }
 0x5c1   :  { %v7676_v58 = vrot.slane %v6589_v27, %v15627_v34  ;;  %v12233_v10 = vrot.slane %v15693_v38, %v10465_v21  ;;  %v3920_v17 = vcombine.low %v12224_v16, %v12208_v3  ;;  %v12244_v53 = vrot.slane %v4172_v28, %v10465_v21  ;;  %v15695_v27 = vld [vmem:[#allocation108_spill] sm:$0xff] }
 0x5c2   :  { %v6818_v11 = vsel %vm6508_vm0, %v4328_v50, -inf  ;;  %v3513_v62 = vcombine.high %v11839_v52, %v11850_v32  ;;  %v3597_v26 = vcombine.high %v11941_v4, %v11958_v2  ;;  %v3629_v1 = vcombine.high %v12002_v13, %v11983_v22  ;;  %v15694_v50 = vld [vmem:[#allocation112_spill] sm:$0xff] }
 0x5c3   :  { %v7677_v45 = vsel %vm7549_vm2, %v7676_v58, %v7672_v35  ;;  %6804 = vmax.xlane.f32.xlu1 %v6803_v8  ;;  %v3514_v29 = vcombine.low %v12233_v10, %v12219_v19  ;;  %v12258_v35 = vrot.slane %v4140_v63, %v10465_v21  ;;  %v3765_v58 = vcombine.high %v15695_v27, %v15694_v50 }
 0x5c4   :  { %v6595_v18 = vpop.xlane.xlu1 %6594  ;;  %v7682_v28 = vsel %vm7556_vm3, %v7681_v37, %v7677_v45  ;;  %6819 = vmax.xlane.f32.xlu0 %v6818_v11  ;;  %v12263_v32 = vpop.xlane.xlu0 %6609  ;;  %v3785_v4 = vcombine.high %v12056_v51, %v12035_v44  ;;  %v6821_v2 = vsel %vm6508_vm0, %v3377_v41, -inf  ;;  %v6809_v22 = vsel %vm6508_vm0, %v3920_v17, -inf  ;;  %v15696_v41 = vld [vmem:[#allocation104_spill] sm:$0xff] }
 0x5c5   :  { %v7686_v52 = vrot.slane %v6595_v18, %v11711_v33  ;;  %v4192_v13 = vcombine.low %v12258_v35, %v12244_v53  ;;  %v12272_v63 = vsel %vm6508_vm0, %v3378_v25, -inf  ;;  %v12275_v38 = vsel %vm6508_vm0, %v3379_v20, -inf  ;;  %v15697_v17 = vld [vmem:[#allocation100_spill] sm:$0xff] }
 0x5c6   :  { %v6824_v8 = vsel %vm6508_vm0, %v3513_v62, -inf  ;;  %v12280_v44 = vsel %vm6508_vm0, %v3514_v29, -inf  ;;  %v3515_v51 = vcombine.high %v12233_v10, %v12219_v19  ;;  %v3733_v45 = vcombine.high %v15697_v17, %v15696_v41 }
 0x5c7   :  { %v7687_v37 = vsel %vm7563_vm4, %v7686_v52, %v7682_v28  ;;  %6810 = vmax.xlane.f32.xlu1 %v6809_v22  ;;  %v7691_v25 = vrot.slane %v12195_v9, %v11726_v42  ;;  %v3611_v20 = vrot.slane %v3597_v26, %v10465_v21  ;;  %v3643_v18 = vrot.slane %v3629_v1, %v10465_v21  ;;  %v15699_v22 = vld [vmem:[#allocation9_spill] sm:$0xff] }
 0x5c8   :  { %v6601_v11 = vpop.xlane.xlu1 %6600  ;;  %6825 = vmax.xlane.f32.xlu0 %v6824_v8  ;;  %v3901_v62 = vcombine.high %v12119_v30, %v12122_v39  ;;  %v12293_v28 = vpop.xlane.xlu0 %6615  ;;  %v6830_v19 = vsel %vm6508_vm0, %v3785_v4, -inf  ;;  %v3779_v10 = vrot.slane %v3765_v58, %v10465_v21  ;;  %v7701_v50 = vrot.slane %v6604_v49, %v11815_v48 }
 0x5c9   :  { %v7696_v29 = vrot.slane %v6601_v11, %v11806_v14  ;;  %v7692_v9 = vsel %vm7570_vm5, %v7691_v25, %v7687_v37  ;;  %v6815_v26 = vsel %vm6508_vm0, %v4192_v13, -inf  ;;  %v3869_v1 = vcombine.high %v12067_v40, %v12116_v24  ;;  %v15698_v24 = vld [vmem:[#allocation10_spill] sm:$0xff]  ;;  %v15701_v11 = vld [vmem:[#allocation144_spill] sm:$0xff] }
 0x5ca   :  { %v4037_v30 = vcombine.high %v12090_v31, %v12072_v0  ;;  %v4057_v27 = vcombine.high %v12163_v61, %v12147_v36  ;;  %v3649_v52 = vcombine.high %v12038_v57, %v12049_v43  ;;  %v3747_v4 = vrot.slane %v3733_v45, %v10465_v21 }
 0x5cb   :  { %v7697_v39 = vsel %vm7577_vm6, %v7696_v29, %v7692_v9  ;;  %6816 = vmax.xlane.f32.xlu1 %v6815_v26  ;;  %v3650_v40 = vcombine.low %v3611_v20, %v3643_v18  ;;  %v4005_v0 = vcombine.high %v15699_v22, %v15698_v24  ;;  %v3915_v61 = vrot.slane %v3901_v62, %v10465_v21  ;;  %v15705_v29 = vld [vmem:[#allocation132_spill] sm:$0xff] }
 0x5cc   :  { %v7702_v58 = vsel %vm7584_vm7, %v7701_v50, %v7697_v39  ;;  %v12308_v49 = vpop.xlane.xlu1 %6606  ;;  %6831 = vmax.xlane.f32.xlu0 %v6830_v19  ;;  %v12319_v13 = vpop.xlane.xlu0 %6621  ;;  %v3651_v36 = vcombine.high %v3611_v20, %v3643_v18  ;;  %v4173_v37 = vcombine.high %v12186_v55, %v12166_v7  ;;  %v3786_v8 = vcombine.low %v3747_v4, %v3779_v10  ;;  %v15702_v7 = vld [vmem:[#allocation140_spill] sm:$0xff]  ;;  %v15707_v50 = vld [vmem:[#allocation138_spill] sm:$0xff] }
 0x5cd   :  { %v12317_v31 = vsel %vm8799_vm10, %v7702_v58, %v12192_v47  ;;  %v12325_v57 = vsel %vm6508_vm0, %v3515_v51, -inf  ;;  %v3787_v43 = vcombine.high %v3747_v4, %v3779_v10  ;;  %v6836_v41 = vsel %vm6508_vm0, %v4057_v27, -inf  ;;  %v15706_v10 = vld [vmem:[#allocation142_spill] sm:$0xff]  ;;  %v15709_v58 = vld [vmem:[#allocation72_spill] sm:$0xff] }
 0x5ce   :  { %15700 = vst [vmem:[#allocation30_spill] sm:$0xff] %v12317_v31  ;;  %v4329_v47 = vcombine.high %v12198_v46, %v12178_v54  ;;  %v4051_v17 = vrot.slane %v4037_v30, %v10465_v21  ;;  %v3883_v45 = vrot.slane %v3869_v1, %v10465_v21  ;;  %v4141_v25 = vcombine.high %v12201_v56, %v12183_v5  ;;  %v15704_v56 = vld [vmem:[#allocation136_spill] sm:$0xff]  ;;  %v15708_v27 = vld [vmem:[#allocation134_spill] sm:$0xff] }
 0x5cf   :  { %6822 = vmax.xlane.f32.xlu1 %v6821_v2  ;;  %v4380_v55 = vcombine.low %v15702_v7, %v15701_v11  ;;  %v6827_v2 = vsel %vm6508_vm0, %v3649_v52, -inf  ;;  %v12340_v51 = vsel %vm6508_vm0, %v3650_v40, -inf  ;;  %v3921_v54 = vcombine.high %v12224_v16, %v12208_v3 }
 0x5d0   :  { %v12336_v20 = vpop.xlane.xlu1 %6612  ;;  %6837 = vmax.xlane.f32.xlu0 %v6836_v41  ;;  %v12342_v18 = vpop.xlane.xlu0 %6627  ;;  %v4019_v46 = vrot.slane %v4005_v0, %v10465_v21  ;;  %v3922_v62 = vcombine.low %v3883_v45, %v3915_v61  ;;  %v12348_v5 = vsel %vm6508_vm0, %v3651_v36, -inf  ;;  %v4348_v19 = vcombine.low %v15705_v29, %v15704_v56  ;;  %v15711_v41 = vld [vmem:[#allocation11_spill] sm:$0xff] }
 0x5d1   :  { %15703 = vst [vmem:[#allocation27_spill] sm:$0xff] %v12342_v18  ;;  %v4364_v9 = vcombine.low %v15707_v50, %v15706_v10  ;;  %v6854_v26 = vsel %vm6508_vm0, %v3786_v8, -inf  ;;  %v12356_v1 = vrot.slane %v4173_v37, %v10465_v21  ;;  %v6842_v3 = vsel %vm6508_vm0, %v4329_v47, -inf }
 0x5d2   :  { %v4058_v16 = vcombine.low %v4019_v46, %v4051_v17  ;;  %v12360_v30 = vsel %vm6508_vm0, %v3787_v43, -inf  ;;  %v3923_v39 = vcombine.high %v3883_v45, %v3915_v61  ;;  %v4332_v52 = vcombine.low %v15709_v58, %v15708_v27  ;;  %v15710_v43 = vld [vmem:[#allocation15_spill] sm:$0xff] }
 0x5d3   :  { %6828 = vmax.xlane.f32.xlu1 %v6827_v2  ;;  %v12365_v4 = vrot.slane %v4380_v55, %v15433_v60  ;;  %v4155_v24 = vrot.slane %v4141_v25, %v10465_v21  ;;  %v4059_v22 = vcombine.high %v4019_v46, %v4051_v17  ;;  %v4349_v0 = vcombine.high %v15705_v29, %v15704_v56  ;;  %v15713_v29 = vld [vmem:[#allocation160_spill] sm:$0xff] }
 0x5d4   :  { %v12367_v40 = vpop.xlane.xlu1 %6618  ;;  %6843 = vmax.xlane.f32.xlu0 %v6842_v3  ;;  %v6833_v36 = vsel %vm6508_vm0, %v3921_v54, -inf  ;;  %v12373_v37 = vpop.xlane.xlu0 %6633  ;;  %v4193_v61 = vcombine.high %v12258_v35, %v12244_v53  ;;  %v12378_v8 = vsel %vm6508_vm0, %v3922_v62, -inf  ;;  %v4309_v47 = vcombine.high %v15711_v41, %v15710_v43 }
 0x5d5   :  { %v4356_v45 = vrot.slane %v4348_v19, %v15433_v60  ;;  %v4372_v17 = vrot.slane %v4364_v9, %v15433_v60  ;;  %v4194_v25 = vcombine.low %v4155_v24, %v12356_v1  ;;  %v4277_v55 = vcombine.high %v12141_v12, %v12128_v23  ;;  %v15714_v19 = vld [vmem:[#allocation156_spill] sm:$0xff] }
 0x5d6   :  { %v4333_v2 = vcombine.high %v15709_v58, %v15708_v27  ;;  %v6860_v53 = vsel %vm6508_vm0, %v4058_v16, -inf  ;;  %v12391_v35 = vsel %vm6508_vm0, %v3923_v39, -inf  ;;  %v4340_v54 = vrot.slane %v4332_v52, %v15433_v60  ;;  %v15716_v52 = vld [vmem:[#allocation152_spill] sm:$0xff] }
 0x5d7   :  { %6834 = vmax.xlane.f32.xlu1 %v6833_v36  ;;  %v4381_v46 = vcombine.high %v15702_v7, %v15701_v11  ;;  %v4428_v62 = vcombine.low %v4372_v17, %v12365_v4  ;;  %v12401_v23 = vsel %vm6508_vm0, %v4059_v22, -inf  ;;  %v12404_v12 = vrot.slane %v4349_v0, %v15433_v60  ;;  %v15717_v22 = vld [vmem:[#allocation148_spill] sm:$0xff]  ;;  %v15718_v36 = vld [vmem:[#allocation158_spill] sm:$0xff] }
 0x5d8   :  { %v12397_v56 = vpop.xlane.xlu1 %6624  ;;  %6849 = vmax.xlane.f32.xlu0 %v12280_v44  ;;  %v4516_v9 = vcombine.low %v15714_v19, %v15713_v29  ;;  %v6839_v3 = vsel %vm6508_vm0, %v4193_v61, -inf  ;;  %v12409_v16 = vpop.xlane.xlu0 %6639  ;;  %v4195_v11 = vcombine.high %v4155_v24, %v12356_v1  ;;  %v4396_v7 = vcombine.low %v4340_v54, %v4356_v45  ;;  %v15719_v61 = vld [vmem:[#allocation154_spill] sm:$0xff]  ;;  %v15732_v19 = vld [vmem:[#allocation164_spill] sm:$0xff] }
 0x5d9   :  { %15712 = vst [vmem:[#allocation37_spill] sm:$0xff] %v12404_v12  ;;  %v4365_v39 = vcombine.high %v15707_v50, %v15706_v10  ;;  %v4323_v44 = vrot.slane %v4309_v47, %v10465_v21  ;;  %v12416_v27 = vsel %vm6508_vm0, %v4194_v25, -inf  ;;  %v12419_v58 = vrot.slane %v4333_v2, %v15433_v60  ;;  %v15722_v2 = vld [vmem:[#allocation150_spill] sm:$0xff] }
 0x5da   :  { %v4484_v0 = vcombine.low %v15717_v22, %v15716_v52  ;;  %v4500_v43 = vcombine.low %v15719_v61, %v15718_v36  ;;  %v4291_v1 = vrot.slane %v4277_v55, %v10465_v21  ;;  %v4397_v24 = vcombine.high %v4340_v54, %v4356_v45  ;;  %v15723_v61 = vld [vmem:[#allocation146_spill] sm:$0xff]  ;;  %v15725_v45 = vld [vmem:[#allocation176_spill] sm:$0xff] }
 0x5db   :  { %15715 = vst [vmem:[#allocation33_spill] sm:$0xff] %v12419_v58  ;;  %6840 = vmax.xlane.f32.xlu1 %v6839_v3  ;;  %v12427_v10 = vrot.slane %v4381_v46, %v15433_v60  ;;  %v4429_v50 = vcombine.high %v4372_v17, %v12365_v4  ;;  %v12433_v47 = vrot.slane %v4428_v62, %v10465_v21  ;;  %v15726_v54 = vld [vmem:[#allocation172_spill] sm:$0xff] }
 0x5dc   :  { %v12430_v41 = vpop.xlane.xlu1 %6630  ;;  %6855 = vmax.xlane.f32.xlu0 %v6854_v26  ;;  %v4412_v25 = vcombine.low %v12419_v58, %v12404_v12  ;;  %v4468_v3 = vcombine.low %v15723_v61, %v15722_v2  ;;  %v12440_v55 = vrot.slane %v4516_v9, %v15433_v60  ;;  %v4652_v46 = vcombine.low %v15726_v54, %v15725_v45  ;;  %v12444_v36 = vpop.xlane.xlu0 %6645  ;;  %v15731_v9 = vld [vmem:[#allocation168_spill] sm:$0xff]  ;;  %v15733_v54 = vld [vmem:[#allocation174_spill] sm:$0xff] }
 0x5dd   :  { %15720 = vst [vmem:[#allocation17_spill] sm:$0xff] %v12427_v10  ;;  %15721 = vst [vmem:[#allocation13_spill] sm:$0xff] %v12433_v47  ;;  %v12447_v4 = vrot.slane %v4365_v39, %v15433_v60  ;;  %v4330_v26 = vcombine.low %v4291_v1, %v4323_v44  ;;  %v4331_v17 = vcombine.high %v4291_v1, %v4323_v44  ;;  %v15734_v45 = vld [vmem:[#allocation170_spill] sm:$0xff] }
 0x5de   :  { %15724 = vst [vmem:[#allocation23_spill] sm:$0xff] %v12440_v55  ;;  %v12450_v62 = vrot.slane %v4396_v7, %v10465_v21  ;;  %v12453_v58 = vrot.slane %v4484_v0, %v15433_v60  ;;  %v12456_v12 = vrot.slane %v4500_v43, %v15433_v60  ;;  %v4620_v29 = vcombine.low %v15732_v19, %v15731_v9 }
 0x5df   :  { %15727 = vst [vmem:[#allocation19_spill] sm:$0xff] %v12447_v4  ;;  %v4636_v31 = vcombine.low %v15734_v45, %v15733_v54  ;;  %6846 = vmax.xlane.f32.xlu1 %v12272_v63  ;;  %v4444_v39 = vcombine.low %v12447_v4, %v12427_v10  ;;  %v12468_v7 = vsel %vm6508_vm0, %v4195_v11, -inf  ;;  %v12473_v43 = vrot.slane %v4429_v50, %v10465_v21  ;;  %v15737_v45 = vld [vmem:[#allocation166_spill] sm:$0xff] }
 0x5e0   :  { %15728 = vst [vmem:[#allocation24_spill] sm:$0xff] %v12450_v62  ;;  %15729 = vst [vmem:[#allocation21_spill] sm:$0xff] %v12453_v58  ;;  %v12465_v44 = vpop.xlane.xlu1 %6636  ;;  %6861 = vmax.xlane.f32.xlu0 %v6860_v53  ;;  %v4460_v0 = vcombine.low %v12450_v62, %v12433_v47  ;;  %v12476_v1 = vrot.slane %v4468_v3, %v15433_v60  ;;  %v4564_v63 = vcombine.low %v12456_v12, %v12440_v55  ;;  %v15738_v4 = vld [vmem:[#allocation162_spill] sm:$0xff]  ;;  %v12485_v11 = vpop.xlane.xlu0 %6651  ;;  %v15774_v47 = vld [vmem:[#allocation203_spill] sm:$0xff] }
 0x5e1   :  { %15730 = vst [vmem:[#allocation29_spill] sm:$0xff] %v12456_v12  ;;  %15735 = vst [vmem:[#allocation26_spill] sm:$0xff] %v12473_v43  ;;  %v4604_v10 = vcombine.low %v15738_v4, %v15737_v45  ;;  %v12483_v53 = vrot.slane %v4652_v46, %v15433_v60  ;;  %v6866_v54 = vsel %vm6508_vm0, %v4330_v26, -inf  ;;  %v12489_v19 = vsel %vm6508_vm0, %v4331_v17, -inf  ;;  %v15745_v17 = vld [vmem:[#allocation192_spill] sm:$0xff] }
 0x5e2   :  { %15736 = vst [vmem:[#allocation35_spill] sm:$0xff] %v12476_v1  ;;  %15740 = vst [vmem:[#allocation92_spill] sm:$0xff] %v12485_v11  ;;  %v12492_v50 = vrot.slane %v4397_v24, %v10465_v21  ;;  %v12495_v3 = vrot.slane %v4412_v25, %v10465_v21  ;;  %v4485_v9 = vcombine.high %v15717_v22, %v15716_v52  ;;  %v15746_v24 = vld [vmem:[#allocation188_spill] sm:$0xff] }
 0x5e3   :  { %15739 = vst [vmem:[#allocation32_spill] sm:$0xff] %v12483_v53  ;;  %v4532_v46 = vcombine.low %v12476_v1, %v12453_v58  ;;  %v12502_v4 = vrot.slane %v4620_v29, %v15433_v60  ;;  %v12505_v26 = vrot.slane %v4636_v31, %v15433_v60  ;;  %6852 = vmax.xlane.f32.xlu1 %v12340_v51  ;;  %v15749_v52 = vld [vmem:[#allocation184_spill] sm:$0xff] }
 0x5e4   :  { %15741 = vst [vmem:[#allocation130_spill] sm:$0xff] %v12492_v50  ;;  %15742 = vst [vmem:[#allocation88_spill] sm:$0xff] %v12495_v3  ;;  %v4788_v45 = vcombine.low %v15746_v24, %v15745_v17  ;;  %v12510_v11 = vpop.xlane.xlu1 %6642  ;;  %6867 = vmax.xlane.f32.xlu0 %v6866_v54  ;;  %v12517_v29 = vrot.slane %v4444_v39, %v10465_v21  ;;  %v12520_v31 = vrot.slane %v4604_v10, %v15433_v60  ;;  %v12524_v25 = vpop.xlane.xlu0 %6657  ;;  %v15750_v39 = vld [vmem:[#allocation180_spill] sm:$0xff]  ;;  %v15751_v3 = vld [vmem:[#allocation190_spill] sm:$0xff] }
 0x5e5   :  { %15743 = vst [vmem:[#allocation122_spill] sm:$0xff] %v12502_v4  ;;  %15744 = vst [vmem:[#allocation82_spill] sm:$0xff] %v12505_v26  ;;  %v4700_v51 = vcombine.low %v12505_v26, %v12483_v53  ;;  %v12527_v24 = vrot.slane %v4564_v63, %v10465_v21  ;;  %v12530_v54 = vsel %vm6508_vm0, %v4460_v0, -inf  ;;  %v4756_v17 = vcombine.low %v15750_v39, %v15749_v52  ;;  %v15752_v10 = vld [vmem:[#allocation186_spill] sm:$0xff]  ;;  %v15754_v43 = vld [vmem:[#allocation228_spill] sm:$0xff] }
 0x5e6   :  { %15747 = vst [vmem:[#allocation124_spill] sm:$0xff] %v12517_v29  ;;  %15748 = vst [vmem:[#allocation77_spill] sm:$0xff] %v12520_v31  ;;  %v4772_v29 = vcombine.low %v15752_v10, %v15751_v3  ;;  %v15753_v50 = vld [vmem:[#allocation18_spill] sm:$0xff]  ;;  %v12541_v53 = vrot.slane %v4485_v9, %v15433_v60  ;;  %v4668_v0 = vcombine.low %v12520_v31, %v12502_v4  ;;  %v15761_v3 = vld [vmem:[#allocation231_spill] sm:$0xff] }
 0x5e7   :  { %v5060_v26 = vcombine.low %v15754_v43, %v15753_v50  ;;  %6858 = vmax.xlane.f32.xlu1 %v12378_v8  ;;  %v4540_v22 = vrot.slane %v4532_v46, %v10465_v21  ;;  %v15756_v39 = vld [vmem:[#allocation182_spill] sm:$0xff]  ;;  %v12552_v10 = vrot.slane %v4788_v45, %v15433_v60  ;;  %v15759_v43 = vld [vmem:[#allocation223_spill] sm:$0xff]  ;;  %v15760_v50 = vld [vmem:[#allocation216_spill] sm:$0xff] }
 0x5e8   :  { %15755 = vst [vmem:[#allocation46_spill] sm:$0xff] %v12541_v53  ;;  %v15757_v52 = vld [vmem:[#allocation178_spill] sm:$0xff]  ;;  %v5028_v9 = vcombine.low %v15760_v50, %v15759_v43  ;;  %v12558_v63 = vpop.xlane.xlu1 %6648  ;;  %6873 = vmax.xlane.f32.xlu0 %v12325_v57  ;;  %v15764_v31 = vld [vmem:[#allocation205_spill] sm:$0xff]  ;;  %v12572_v50 = vrot.slane %v4756_v17, %v15433_v60  ;;  %v12575_v43 = vrot.slane %v4772_v29, %v15433_v60  ;;  %v15773_v1 = vld [vmem:[#allocation208_spill] sm:$0xff] }
 0x5e9   :  { %v4740_v2 = vcombine.low %v15757_v52, %v15756_v39  ;;  %15758 = vst [vmem:[#allocation73_spill] sm:$0xff] %v12552_v10  ;;  %v15762_v53 = vld [vmem:[#allocation226_spill] sm:$0xff]  ;;  %v12565_v52 = vpop.xlane.xlu0 %6663  ;;  %v4596_v45 = vcombine.low %v4540_v22, %v12527_v24  ;;  %v12569_v39 = vrot.slane %v4700_v51, %v10465_v21  ;;  %v15768_v57 = vld [vmem:[#allocation221_spill] sm:$0xff]  ;;  %v12580_v8 = vrot.slane %v5060_v26, %v15433_v60 }
 0x5ea   :  { %v5044_v61 = vcombine.low %v15762_v53, %v15761_v3  ;;  %v15763_v46 = vld [vmem:[#allocation210_spill] sm:$0xff]  ;;  %15766 = vst [vmem:[#allocation68_spill] sm:$0xff] %v12572_v50  ;;  %15767 = vst [vmem:[#allocation80_spill] sm:$0xff] %v12575_v43  ;;  %v15769_v53 = vld [vmem:[#allocation213_spill] sm:$0xff]  ;;  %v4908_v62 = vcombine.low %v15774_v47, %v15773_v1  ;;  %v12588_v17 = vrot.slane %v4668_v0, %v10465_v21 }
 0x5eb   :  { %v4924_v4 = vcombine.low %v15764_v31, %v15763_v46  ;;  %15765 = vst [vmem:[#allocation120_spill] sm:$0xff] %v12569_v39  ;;  %v5012_v3 = vcombine.low %v15769_v53, %v15768_v57  ;;  %15770 = vst [vmem:[#allocation75_spill] sm:$0xff] %v12580_v8  ;;  %v15771_v31 = vld [vmem:[#allocation200_spill] sm:$0xff]  ;;  %6864 = vmax.xlane.f32.xlu1 %v12416_v27  ;;  %v4597_v29 = vcombine.high %v4540_v22, %v12527_v24  ;;  %v15779_v27 = vld [vmem:[#allocation198_spill] sm:$0xff] }
 0x5ec   :  { %v15772_v46 = vld [vmem:[#allocation196_spill] sm:$0xff]  ;;  %15775 = vst [vmem:[#allocation43_spill] sm:$0xff] %v12588_v17  ;;  %v12592_v51 = vrot.slane %v4740_v2, %v15433_v60  ;;  %v4836_v26 = vcombine.low %v12575_v43, %v12552_v10  ;;  %v12597_v53 = vrot.slane %v5028_v9, %v15433_v60  ;;  %6879 = vmax.xlane.f32.xlu0 %v12360_v30  ;;  %v15780_v0 = vld [vmem:[#allocation194_spill] sm:$0xff]  ;;  %v6896_v22 = vsel %vm6508_vm0, %v4596_v45, -inf }
 0x5ed   :  { %v4892_v58 = vcombine.low %v15772_v46, %v15771_v31  ;;  %v12600_v46 = vrot.slane %v5044_v61, %v15433_v60  ;;  %v12602_v31 = vpop.xlane.xlu1 %6654  ;;  %v4876_v47 = vcombine.low %v15780_v0, %v15779_v27  ;;  %v12608_v24 = vrot.slane %v4924_v4, %v15433_v60  ;;  %v12610_v2 = vpop.xlane.xlu0 %6669  ;;  %v15782_v57 = vld [vmem:[#allocation22_spill] sm:$0xff]  ;;  %v15783_v0 = vld [vmem:[#allocation28_spill] sm:$0xff] }
 0x5ee   :  { %15776 = vst [vmem:[#allocation39_spill] sm:$0xff] %v12592_v51  ;;  %15777 = vst [vmem:[#allocation45_spill] sm:$0xff] %v12597_v53  ;;  %v4732_v9 = vcombine.low %v12588_v17, %v12569_v39  ;;  %v4804_v61 = vcombine.low %v12592_v51, %v12572_v50  ;;  %v12618_v1 = vrot.slane %v5012_v3, %v15433_v60  ;;  %v15785_v43 = vld [vmem:[#allocation54_spill] sm:$0xff]  ;;  %v15786_v10 = vld [vmem:[#allocation36_spill] sm:$0xff] }
 0x5ef   :  { %15778 = vst [vmem:[#allocation41_spill] sm:$0xff] %v12600_v46  ;;  %v5108_v30 = vcombine.low %v12600_v46, %v12580_v8  ;;  %v5164_v4 = vcombine.low %v15783_v0, %v15782_v57  ;;  %v12625_v27 = vrot.slane %v4892_v58, %v15433_v60  ;;  %v12628_v45 = vrot.slane %v4908_v62, %v15433_v60  ;;  %v15787_v39 = vld [vmem:[#allocation114_spill] sm:$0xff]  ;;  %v15788_v51 = vld [vmem:[#allocation116_spill] sm:$0xff]  ;;  %v15789_v46 = vld [vmem:[#allocation217_spill] sm:$0xff] }
 0x5f0   :  { %15781 = vst [vmem:[#allocation69_spill] sm:$0xff] %v12618_v1  ;;  %v5196_v17 = vcombine.low %v15786_v10, %v15785_v43  ;;  %v5332_v50 = vcombine.low %v15788_v51, %v15787_v39  ;;  %6870 = vmax.xlane.f32.xlu1 %v12275_v38  ;;  %v5076_v3 = vcombine.low %v12618_v1, %v12597_v53  ;;  %v15790_v8 = vld [vmem:[#allocation16_spill] sm:$0xff]  ;;  %v15791_v57 = vld [vmem:[#allocation118_spill] sm:$0xff] }
 0x5f1   :  { %15784 = vst [vmem:[#allocation65_spill] sm:$0xff] %v12625_v27  ;;  %v5148_v0 = vcombine.low %v15790_v8, %v15789_v46  ;;  %v15792_v58 = vld [vmem:[#allocation44_spill] sm:$0xff]  ;;  %v12641_v12 = vpop.xlane.xlu1 %6660  ;;  %6885 = vmax.xlane.f32.xlu0 %v12401_v23  ;;  %v12645_v62 = vrot.slane %v4836_v26, %v10465_v21  ;;  %v12648_v10 = vrot.slane %v4876_v47, %v15433_v60  ;;  %v15794_v43 = vld [vmem:[#allocation62_spill] sm:$0xff] }
 0x5f2   :  { %v5300_v55 = vcombine.low %v15792_v58, %v15791_v57  ;;  %v4972_v38 = vcombine.low %v12628_v45, %v12608_v24  ;;  %v15795_v51 = vld [vmem:[#allocation34_spill] sm:$0xff]  ;;  %v15797_v46 = vld [vmem:[#allocation128_spill] sm:$0xff]  ;;  %v12656_v58 = vpop.xlane.xlu0 %6675  ;;  %v12659_v57 = vrot.slane %v5164_v4, %v15433_v60  ;;  %v12664_v47 = vrot.slane %v4804_v61, %v10465_v21 }
 0x5f3   :  { %15793 = vst [vmem:[#allocation53_spill] sm:$0xff] %v12648_v10  ;;  %v5180_v39 = vcombine.low %v15795_v51, %v15794_v43  ;;  %v15796_v8 = vld [vmem:[#allocation70_spill] sm:$0xff]  ;;  %v15799_v23 = vld [vmem:[#allocation96_spill] sm:$0xff]  ;;  %v12667_v18 = vrot.slane %v5108_v30, %v10465_v21  ;;  %v4940_v51 = vcombine.low %v12648_v10, %v12625_v27  ;;  %v12672_v43 = vrot.slane %v5196_v17, %v15433_v60 }
 0x5f4   :  { %v5316_v1 = vcombine.low %v15797_v46, %v15796_v8  ;;  %15798 = vst [vmem:[#allocation49_spill] sm:$0xff] %v12659_v57  ;;  %v15800_v26 = vld [vmem:[#allocation98_spill] sm:$0xff]  ;;  %v12675_v46 = vrot.slane %v5332_v50, %v15433_v60  ;;  %6876 = vmax.xlane.f32.xlu1 %v12348_v5  ;;  %v12679_v4 = vsel %vm6508_vm0, %v4597_v29, -inf  ;;  %v12682_v61 = vrot.slane %v5148_v0, %v15433_v60 }
 0x5f5   :  { %v5284_v53 = vcombine.low %v15800_v26, %v15799_v23  ;;  %15801 = vst [vmem:[#allocation66_spill] sm:$0xff] %v12672_v43  ;;  %v12685_v30 = vrot.slane %v5300_v55, %v15433_v60  ;;  %v12687_v26 = vpop.xlane.xlu1 %6666  ;;  %6891 = vmax.xlane.f32.xlu0 %v12489_v19  ;;  %v4868_v17 = vcombine.low %v12664_v47, %v12645_v62  ;;  %v12704_v55 = vsel %vm6508_vm0, %v4732_v9, -inf }
 0x5f6   :  { %15802 = vst [vmem:[#allocation67_spill] sm:$0xff] %v12682_v61  ;;  %v12693_v50 = vrot.slane %v5076_v3, %v10465_v21  ;;  %v12696_v5 = vrot.slane %v5180_v39, %v15433_v60  ;;  %v12699_v29 = vrot.slane %v5316_v1, %v15433_v60  ;;  %v12701_v0 = vpop.xlane.xlu0 %6681  ;;  %v12707_v23 = vrot.slane %v4972_v38, %v10465_v21 }
 0x5f7   :  { %v5212_v19 = vcombine.low %v12682_v61, %v12659_v57  ;;  %v12712_v3 = vrot.slane %v5284_v53, %v15433_v60  ;;  %v7706_v38 = vrot.slane %v12308_v49, %v15625_v6  ;;  %v12726_v53 = vrot.slane %v4940_v51, %v10465_v21 }
 0x5f8   :  { %15803 = vst [vmem:[#allocation63_spill] sm:$0xff] %v12696_v5  ;;  %v5140_v39 = vcombine.low %v12693_v50, %v12667_v18  ;;  %v5244_v8 = vcombine.low %v12696_v5, %v12672_v43  ;;  %v5380_v9 = vcombine.low %v12699_v29, %v12675_v46  ;;  %6882 = vmax.xlane.f32.xlu1 %v12391_v35  ;;  %v6902_v43 = vsel %vm6508_vm0, %v4868_v17, -inf }
 0x5f9   :  { %v5348_v61 = vcombine.low %v12712_v3, %v12685_v30  ;;  %v7715_v1 = vrot.slane %v12336_v20, %v15627_v34  ;;  %v7745_v57 = vrot.slane %v12430_v41, %v15625_v6  ;;  %v12734_v5 = vpop.xlane.xlu1 %6672  ;;  %6897 = vmax.xlane.f32.xlu0 %v6896_v22  ;;  %v7710_v49 = vrot.slane %v12263_v32, %v15626_v15 }
 0x5fa   :  { %v7754_v35 = vrot.slane %v12465_v44, %v15627_v34  ;;  %v7784_v51 = vrot.slane %v12602_v31, %v15625_v6  ;;  %v12743_v10 = vpop.xlane.xlu0 %6687  ;;  %v7749_v41 = vrot.slane %v12373_v37, %v15626_v15  ;;  %v7793_v22 = vrot.slane %v12641_v12, %v15627_v34 }
 0x5fb   :  { %v6908_v17 = vsel %vm6508_vm0, %v5140_v39, -inf  ;;  %v12753_v32 = vrot.slane %v5212_v19, %v10465_v21  ;;  %v7711_v44 = vsel %vm7542_vm1, %v7710_v49, %v7706_v38  ;;  %v7788_v31 = vrot.slane %v12524_v25, %v15626_v15 }
 0x5fc   :  { %6888 = vmax.xlane.f32.xlu1 %v12468_v7  ;;  %v12760_v20 = vrot.slane %v5380_v9, %v10465_v21  ;;  %v12763_v37 = vrot.slane %v5244_v8, %v10465_v21  ;;  %v7716_v12 = vsel %vm7549_vm2, %v7715_v1, %v7711_v44  ;;  %v7725_v39 = vrot.slane %v12367_v40, %v11711_v33 }
 0x5fd   :  { %v7750_v19 = vsel %vm7542_vm1, %v7749_v41, %v7745_v57  ;;  %v6679_v27 = vpop.xlane.xlu1 %6678  ;;  %6903 = vmax.xlane.f32.xlu0 %v6902_v43  ;;  %v12770_v38 = vrot.slane %v5348_v61, %v10465_v21  ;;  %v7720_v7 = vrot.slane %v12293_v28, %v11701_v59  ;;  %v7764_v8 = vrot.slane %v12510_v11, %v11711_v33 }
 0x5fe   :  { %v7755_v25 = vsel %vm7549_vm2, %v7754_v35, %v7750_v19  ;;  %v7789_v1 = vsel %vm7542_vm1, %v7788_v31, %v7784_v51  ;;  %v12778_v9 = vpop.xlane.xlu0 %6693  ;;  %v7759_v40 = vrot.slane %v12409_v16, %v11701_v59  ;;  %v7803_v57 = vrot.slane %v12687_v26, %v11711_v33 }
 0x5ff   :  { %v7794_v43 = vsel %vm7549_vm2, %v7793_v22, %v7789_v1  ;;  %v7823_v61 = vrot.slane %v6679_v27, %v15625_v6  ;;  %v7730_v28 = vrot.slane %v12319_v13, %v11726_v42  ;;  %v7721_v49 = vsel %vm7556_vm3, %v7720_v7, %v7716_v12 }
 0x600   :  { %v7798_v11 = vrot.slane %v12565_v52, %v11701_v59  ;;  %6894 = vmax.xlane.f32.xlu1 %v12530_v54  ;;  %v5412_v16 = vcombine.low %v12770_v38, %v12760_v20  ;;  %v7726_v35 = vsel %vm7563_vm4, %v7725_v39, %v7721_v49  ;;  %v7735_v26 = vrot.slane %v12397_v56, %v11806_v14 }
 0x601   :  { %v7760_v27 = vsel %vm7556_vm3, %v7759_v40, %v7755_v25  ;;  %v7827_v13 = vrot.slane %v12701_v0, %v15626_v15  ;;  %v6685_v51 = vpop.xlane.xlu1 %6684  ;;  %6909 = vmax.xlane.f32.xlu0 %v6908_v17  ;;  %v7774_v52 = vrot.slane %v12558_v63, %v11806_v14  ;;  %v7769_v56 = vrot.slane %v12444_v36, %v11726_v42 }
 0x602   :  { %v7765_v41 = vsel %vm7563_vm4, %v7764_v8, %v7760_v27  ;;  %v7799_v54 = vsel %vm7556_vm3, %v7798_v11, %v7794_v43  ;;  %v7832_v22 = vrot.slane %v6685_v51, %v15627_v34  ;;  %v6700_v44 = vpop.xlane.xlu0 %6699  ;;  %v7813_v0 = vrot.slane %v12734_v5, %v11806_v14 }
 0x603   :  { %v7804_v31 = vsel %vm7563_vm4, %v7803_v57, %v7799_v54  ;;  %v7828_v17 = vsel %vm7542_vm1, %v7827_v13, %v7823_v61  ;;  %v7731_v12 = vsel %vm7570_vm5, %v7730_v28, %v7726_v35  ;;  %v7808_v63 = vrot.slane %v12610_v2, %v11726_v42  ;;  %v15804_v2 = vld [vmem:[#allocation27_spill] sm:$0xff]  ;;  %v15805_v61 = vld [vmem:[#allocation92_spill] sm:$0xff] }
 0x604   :  { %v7833_v39 = vsel %vm7549_vm2, %v7832_v22, %v7828_v17  ;;  %6900 = vmax.xlane.f32.xlu1 %v12704_v55  ;;  %v6914_v19 = vsel %vm6508_vm0, %v5412_v16, -inf  ;;  %v7736_v36 = vsel %vm7577_vm6, %v7735_v26, %v7731_v12  ;;  %v7770_v7 = vsel %vm7570_vm5, %v7769_v56, %v7765_v41 }
 0x605   :  { %v7837_v5 = vrot.slane %v12743_v10, %v11701_v59  ;;  %v6691_v25 = vpop.xlane.xlu1 %6690  ;;  %6915 = vmax.xlane.f32.xlu0 %v6914_v19  ;;  %v5276_v8 = vcombine.low %v12753_v32, %v12763_v37  ;;  %v7740_v1 = vrot.slane %v15804_v2, %v11815_v48  ;;  %v7775_v40 = vsel %vm7577_vm6, %v7774_v52, %v7770_v7 }
 0x606   :  { %v7809_v55 = vsel %vm7570_vm5, %v7808_v63, %v7804_v31  ;;  %v7842_v43 = vrot.slane %v6691_v25, %v11711_v33  ;;  %v6706_v57 = vpop.xlane.xlu0 %6705  ;;  %v7779_v28 = vrot.slane %v15805_v61, %v11815_v48  ;;  %v15806_v11 = vcombine.low %v12726_v53, %v12707_v23  ;;  %v15809_v63 = vld [vmem:[#allocation160_spill] sm:$0xff]  ;;  %v15812_v25 = vld [vmem:[#allocation23_spill] sm:$0xff] }
 0x607   :  { %v7814_v10 = vsel %vm7577_vm6, %v7813_v0, %v7809_v55  ;;  %v7838_v49 = vsel %vm7556_vm3, %v7837_v5, %v7833_v39  ;;  %v7741_v35 = vsel %vm7584_vm7, %v7740_v1, %v7736_v36  ;;  %v7818_v26 = vrot.slane %v12656_v58, %v11815_v48  ;;  %v15808_v0 = vld [vmem:[#allocation30_spill] sm:$0xff]  ;;  %v15810_v39 = vld [vmem:[#allocation156_spill] sm:$0xff]  ;;  %v15811_v5 = vld [vmem:[#allocation29_spill] sm:$0xff] }
 0x608   :  { %v6905_v16 = vsel %vm6508_vm0, %v15806_v11, -inf  ;;  %v7843_v27 = vsel %vm7563_vm4, %v7842_v43, %v7838_v49  ;;  %v7780_v13 = vsel %vm7584_vm7, %v7779_v28, %v7775_v40  ;;  %v7847_v51 = vrot.slane %v12778_v9, %v11726_v42  ;;  %v15815_v40 = vld [vmem:[#allocation13_spill] sm:$0xff]  ;;  %v15818_v49 = vld [vmem:[#allocation150_spill] sm:$0xff] }
 0x609   :  { %6906 = vmax.xlane.f32.xlu1 %v6905_v16  ;;  %v6697_v41 = vpop.xlane.xlu1 %6696  ;;  %6921 = vmax.xlane.f32.xlu0 %v12679_v4  ;;  %v15807_v52 = vcombine.high %v12664_v47, %v12645_v62  ;;  %v7819_v58 = vsel %vm7584_vm7, %v7818_v26, %v7814_v10  ;;  %v6911_v56 = vsel %vm6508_vm0, %v5276_v8, -inf  ;;  %v8802_v17 = vsel %vm8801_vm11, %v7741_v35, %v15808_v0  ;;  %v15817_v10 = vld [vmem:[#allocation146_spill] sm:$0xff] }
 0x60a   :  { %v7852_v22 = vrot.slane %v6697_v41, %v11806_v14  ;;  %v6712_v31 = vpop.xlane.xlu0 %6711  ;;  %v7857_v9 = vrot.slane %v6700_v44, %v11815_v48  ;;  %v7848_v4 = vsel %vm7570_vm5, %v7847_v51, %v7843_v27  ;;  %v8804_v62 = vsel %vm8803_vm12, %v7780_v13, %v8802_v17  ;;  %v15820_v35 = vld [vmem:[#allocation158_spill] sm:$0xff]  ;;  %v15823_v13 = vld [vmem:[#allocation43_spill] sm:$0xff] }
 0x60b   :  { %v6926_v54 = vsel %vm6508_vm0, %v15807_v52, -inf  ;;  %v5141_v12 = vcombine.high %v12693_v50, %v12667_v18  ;;  %v4517_v19 = vcombine.high %v15810_v39, %v15809_v63  ;;  %v8806_v36 = vsel %vm8805_vm13, %v7819_v58, %v8804_v62  ;;  %v15814_v50 = vld [vmem:[#allocation24_spill] sm:$0xff]  ;;  %v15821_v26 = vld [vmem:[#allocation154_spill] sm:$0xff]  ;;  %v15824_v41 = vld [vmem:[#allocation35_spill] sm:$0xff] }
 0x60c   :  { %v7853_v47 = vsel %vm7577_vm6, %v7852_v22, %v7848_v4  ;;  %v15813_v8 = vcombine.high %v15811_v5, %v15812_v25  ;;  %v7866_v1 = vrot.slane %v6706_v57, %v15626_v15  ;;  %v15816_v55 = vcombine.high %v15814_v50, %v15815_v40  ;;  %v15822_v57 = vld [vmem:[#allocation120_spill] sm:$0xff]  ;;  %v15825_v52 = vld [vmem:[#allocation21_spill] sm:$0xff]  ;;  %v15829_v62 = vld [vmem:[#allocation46_spill] sm:$0xff] }
 0x60d   :  { %6912 = vmax.xlane.f32.xlu1 %v6911_v56  ;;  %v7858_v7 = vsel %vm7584_vm7, %v7857_v9, %v7853_v47  ;;  %v6703_v44 = vpop.xlane.xlu1 %6702  ;;  %6927 = vmax.xlane.f32.xlu0 %v6926_v54  ;;  %v15819_v11 = vcombine.high %v15817_v10, %v15818_v49  ;;  %v4501_v27 = vcombine.high %v15821_v26, %v15820_v35  ;;  %v15827_v22 = vld [vmem:[#allocation73_spill] sm:$0xff]  ;;  %v15828_v56 = vld [vmem:[#allocation80_spill] sm:$0xff]  ;;  %v6932_v9 = vsel %vm6508_vm0, %v5141_v12, -inf  ;;  %v15837_v49 = vld [vmem:[#allocation75_spill] sm:$0xff] }
 0x60e   :  { %v12867_v2 = vrot.slane %v15813_v8, %v10465_v21  ;;  %v7862_v18 = vrot.slane %v6703_v44, %v15625_v6  ;;  %v6917_v43 = vsel %vm6508_vm0, %v15816_v55, -inf  ;;  %v6718_v61 = vpop.xlane.xlu0 %6717  ;;  %v8808_v28 = vsel %vm8807_vm14, %v7858_v7, %v8806_v36  ;;  %v15830_v7 = vld [vmem:[#allocation26_spill] sm:$0xff]  ;;  %v15832_v25 = vld [vmem:[#allocation68_spill] sm:$0xff]  ;;  %v15833_v8 = vld [vmem:[#allocation39_spill] sm:$0xff] }
 0x60f   :  { %v12880_v16 = vrot.slane %v15819_v11, %v15433_v60  ;;  %v4733_v51 = vcombine.high %v15823_v13, %v15822_v57  ;;  %v15826_v54 = vcombine.high %v15824_v41, %v15825_v52  ;;  %8835 = vst.msk [vmem:[#allocation6] sm:$0xff] %vm8834_vm15, %v8808_v28  ;;  %v4837_v0 = vcombine.high %v15828_v56, %v15827_v22  ;;  %v15831_v44 = vld [vmem:[#allocation130_spill] sm:$0xff]  ;;  %v15836_v50 = vld [vmem:[#allocation88_spill] sm:$0xff]  ;;  %v15838_v11 = vld [vmem:[#allocation41_spill] sm:$0xff] }
 0x610   :  { %v7867_v17 = vsel %vm7542_vm1, %v7866_v1, %v7862_v18  ;;  %v5413_v4 = vcombine.high %v12770_v38, %v12760_v20  ;;  %v12902_v63 = vrot.slane %v4517_v19, %v15433_v60  ;;  %v4463_v5 = vcombine.high %v15831_v44, %v15830_v7  ;;  %v15835_v18 = vld [vmem:[#allocation124_spill] sm:$0xff]  ;;  %v15840_v52 = vld [vmem:[#allocation82_spill] sm:$0xff]  ;;  %v15841_v22 = vld [vmem:[#allocation45_spill] sm:$0xff] }
 0x611   :  { %v12890_v58 = vrot.slane %v15826_v54, %v10465_v21  ;;  %6918 = vmax.xlane.f32.xlu1 %v6917_v43  ;;  %v4548_v47 = vcombine.low %v12880_v16, %v15829_v62  ;;  %v6709_v39 = vpop.xlane.xlu1 %6708  ;;  %6933 = vmax.xlane.f32.xlu0 %v6932_v9  ;;  %v4805_v12 = vcombine.high %v15833_v8, %v15832_v25  ;;  %v6923_v28 = vsel %vm6508_vm0, %v4733_v51, -inf  ;;  %v15839_v41 = vld [vmem:[#allocation32_spill] sm:$0xff]  ;;  %v15842_v56 = vld [vmem:[#allocation69_spill] sm:$0xff] }
 0x612   :  { %v7871_v1 = vrot.slane %v6709_v39, %v15627_v34  ;;  %v6724_v20 = vpop.xlane.xlu0 %6723  ;;  %v15834_v38 = vcombine.low %v15831_v44, %v15830_v7  ;;  %v12920_v55 = vrot.slane %v4501_v27, %v15433_v60  ;;  %v7876_v43 = vrot.slane %v6712_v31, %v11701_v59  ;;  %v15843_v39 = vld [vmem:[#allocation122_spill] sm:$0xff]  ;;  %v15844_v25 = vld [vmem:[#allocation77_spill] sm:$0xff] }
 0x613   :  { %v4598_v36 = vcombine.low %v12890_v58, %v12867_v2  ;;  %v5005_v10 = vcombine.high %v12726_v53, %v12707_v23  ;;  %v5109_v35 = vcombine.high %v15838_v11, %v15837_v49  ;;  %v6938_v57 = vsel %vm6508_vm0, %v5413_v4, -inf  ;;  %v15845_v49 = vld [vmem:[#allocation168_spill] sm:$0xff]  ;;  %v15872_v44 = vld [vmem:[#allocation18_spill] sm:$0xff] }
 0x614   :  { %v12915_v19 = vsel %vm6508_vm0, %v15834_v38, -inf  ;;  %v7872_v26 = vsel %vm7549_vm2, %v7871_v1, %v7867_v17  ;;  %v12931_v13 = vrot.slane %v4837_v0, %v10465_v21  ;;  %v4580_v27 = vcombine.low %v12920_v55, %v12902_v63  ;;  %v15846_v11 = vld [vmem:[#allocation164_spill] sm:$0xff] }
 0x615   :  { %6924 = vmax.xlane.f32.xlu1 %v6923_v28  ;;  %v6715_v31 = vpop.xlane.xlu1 %6714  ;;  %v7877_v51 = vsel %vm7556_vm3, %v7876_v43, %v7872_v26  ;;  %6939 = vmax.xlane.f32.xlu0 %v6938_v57  ;;  %v6944_v23 = vsel %vm6508_vm0, %v4598_v36, -inf  ;;  %v12938_v53 = vrot.slane %v4548_v47, %v10465_v21  ;;  %v4701_v54 = vcombine.high %v15840_v52, %v15839_v41 }
 0x616   :  { %v5077_v17 = vcombine.high %v15842_v56, %v15841_v22  ;;  %v7881_v0 = vrot.slane %v6715_v31, %v11711_v33  ;;  %v6730_v9 = vpop.xlane.xlu0 %6729  ;;  %v12946_v4 = vrot.slane %v4805_v12, %v10465_v21  ;;  %v4669_v8 = vcombine.high %v15844_v25, %v15843_v39  ;;  %v15847_v22 = vld [vmem:[#allocation166_spill] sm:$0xff]  ;;  %v15850_v56 = vld [vmem:[#allocation53_spill] sm:$0xff] }
 0x617   :  { %v7886_v36 = vrot.slane %v6718_v61, %v11726_v42  ;;  %v6929_v47 = vsel %vm6508_vm0, %v5005_v10, -inf  ;;  %v5277_v1 = vcombine.high %v12753_v32, %v12763_v37  ;;  %v5381_v38 = vcombine.high %v12699_v29, %v12675_v46 }
 0x618   :  { %v7882_v43 = vsel %vm7563_vm4, %v7881_v0, %v7877_v51  ;;  %v4870_v12 = vcombine.low %v12946_v4, %v12931_v13  ;;  %v12960_v28 = vrot.slane %v5109_v35, %v10465_v21  ;;  %v4621_v61 = vcombine.high %v15846_v11, %v15845_v49  ;;  %v15853_v49 = vld [vmem:[#allocation188_spill] sm:$0xff] }
 0x619   :  { %6930 = vmax.xlane.f32.xlu1 %v6929_v47  ;;  %v6721_v26 = vpop.xlane.xlu1 %6720  ;;  %v7887_v10 = vsel %vm7570_vm5, %v7886_v36, %v7882_v43  ;;  %6945 = vmax.xlane.f32.xlu0 %v6944_v23  ;;  %v4599_v32 = vcombine.high %v12890_v58, %v12867_v2  ;;  %v12968_v46 = vrot.slane %v4580_v27, %v10465_v21  ;;  %v6935_v27 = vsel %vm6508_vm0, %v5277_v1, -inf }
 0x61a   :  { %v5349_v29 = vcombine.high %v12712_v3, %v12685_v30  ;;  %v7891_v37 = vrot.slane %v6721_v26, %v11806_v14  ;;  %v6736_v35 = vpop.xlane.xlu0 %6735  ;;  %v12974_v57 = vrot.slane %v5077_v17, %v10465_v21  ;;  %v12977_v31 = vrot.slane %v4701_v54, %v10465_v21  ;;  %v15854_v26 = vld [vmem:[#allocation66_spill] sm:$0xff] }
 0x61b   :  { %v4973_v51 = vcombine.high %v12628_v45, %v12608_v24  ;;  %v7896_v23 = vrot.slane %v6724_v20, %v11815_v48  ;;  %v12984_v41 = vrot.slane %v4669_v8, %v10465_v21  ;;  %v6950_v3 = vsel %vm6508_vm0, %v4870_v12, -inf  ;;  %v15848_v24 = vld [vmem:[#allocation162_spill] sm:$0xff]  ;;  %v15849_v20 = vld [vmem:[#allocation65_spill] sm:$0xff]  ;;  %v15852_v12 = vld [vmem:[#allocation192_spill] sm:$0xff] }
 0x61c   :  { %v7892_v30 = vsel %vm7577_vm6, %v7891_v37, %v7887_v10  ;;  %v5142_v52 = vcombine.low %v12974_v57, %v12960_v28  ;;  %v12991_v54 = vrot.slane %v5381_v38, %v10465_v21  ;;  %v4605_v45 = vcombine.high %v15848_v24, %v15847_v22  ;;  %v15855_v10 = vld [vmem:[#allocation63_spill] sm:$0xff]  ;;  %v15858_v22 = vld [vmem:[#allocation184_spill] sm:$0xff] }
 0x61d   :  { %6936 = vmax.xlane.f32.xlu1 %v6935_v27  ;;  %v4941_v17 = vcombine.high %v15850_v56, %v15849_v20  ;;  %v12998_v0 = vsel %vm7584_vm7, %v7896_v23, %v7892_v30  ;;  %v6727_v39 = vpop.xlane.xlu1 %6726  ;;  %6951 = vmax.xlane.f32.xlu0 %v6950_v3  ;;  %v7905_v8 = vrot.slane %v6730_v9, %v15626_v15  ;;  %v15856_v23 = vld [vmem:[#allocation176_spill] sm:$0xff]  ;;  %v15860_v56 = vld [vmem:[#allocation190_spill] sm:$0xff] }
 0x61e   :  { %v7901_v36 = vrot.slane %v6727_v39, %v15625_v6  ;;  %v6742_v47 = vpop.xlane.xlu0 %6741  ;;  %v4734_v1 = vcombine.low %v12984_v41, %v12977_v31  ;;  %v13007_v38 = vrot.slane %v5349_v29, %v10465_v21  ;;  %v13010_v43 = vrot.slane %v4621_v61, %v15433_v60  ;;  %v15857_v27 = vld [vmem:[#allocation172_spill] sm:$0xff]  ;;  %v15861_v39 = vld [vmem:[#allocation186_spill] sm:$0xff] }
 0x61f   :  { %v4789_v11 = vcombine.high %v15853_v49, %v15852_v12  ;;  %v5245_v37 = vcombine.high %v15855_v10, %v15854_v26  ;;  %v13017_v9 = vrot.slane %v4973_v51, %v10465_v21  ;;  %v4653_v30 = vcombine.high %v15857_v27, %v15856_v23  ;;  %v15859_v24 = vld [vmem:[#allocation180_spill] sm:$0xff]  ;;  %v15862_v51 = vld [vmem:[#allocation49_spill] sm:$0xff]  ;;  %v15863_v49 = vld [vmem:[#allocation67_spill] sm:$0xff] }
 0x620   :  { %15851 = vst [vmem:[#allocation61_spill] sm:$0xff] %v13010_v43  ;;  %v7906_v3 = vsel %vm7542_vm1, %v7905_v8, %v7901_v36  ;;  %v6956_v29 = vsel %vm6508_vm0, %v5142_v52, -inf  ;;  %v5414_v61 = vcombine.low %v13007_v38, %v12991_v54  ;;  %v4757_v20 = vcombine.high %v15859_v24, %v15858_v22  ;;  %v15865_v36 = vld [vmem:[#allocation170_spill] sm:$0xff] }
 0x621   :  { %6942 = vmax.xlane.f32.xlu1 %v12915_v19  ;;  %v4773_v12 = vcombine.high %v15861_v39, %v15860_v56  ;;  %v5213_v26 = vcombine.high %v15863_v49, %v15862_v51  ;;  %v6733_v10 = vpop.xlane.xlu1 %6732  ;;  %6957 = vmax.xlane.f32.xlu0 %v6956_v29  ;;  %v13033_v8 = vrot.slane %v4941_v17, %v10465_v21  ;;  %v15864_v19 = vld [vmem:[#allocation174_spill] sm:$0xff]  ;;  %v6947_v22 = vsel %vm6508_vm0, %v4734_v1, -inf }
 0x622   :  { %v4637_v52 = vcombine.high %v15865_v36, %v15864_v19  ;;  %v15866_v23 = vld [vmem:[#allocation182_spill] sm:$0xff]  ;;  %v7910_v40 = vrot.slane %v6733_v10, %v15627_v34  ;;  %v6748_v24 = vpop.xlane.xlu0 %6747  ;;  %v13042_v56 = vrot.slane %v4789_v11, %v15433_v60  ;;  %v7915_v39 = vrot.slane %v6736_v35, %v11701_v59 }
 0x623   :  { %v15867_v27 = vld [vmem:[#allocation178_spill] sm:$0xff]  ;;  %v5006_v17 = vcombine.low %v13033_v8, %v13017_v9  ;;  %v13048_v29 = vrot.slane %v5245_v37, %v10465_v21  ;;  %v13051_v51 = vrot.slane %v4605_v45, %v15433_v60  ;;  %v13054_v49 = vrot.slane %v4653_v30, %v15433_v60 }
 0x624   :  { %v4741_v25 = vcombine.high %v15867_v27, %v15866_v23  ;;  %v7911_v1 = vsel %vm7549_vm2, %v7910_v40, %v7906_v3  ;;  %v6962_v11 = vsel %vm6508_vm0, %v5414_v61, -inf  ;;  %v13059_v10 = vrot.slane %v4757_v20, %v15433_v60 }
 0x625   :  { %15868 = vst [vmem:[#allocation57_spill] sm:$0xff] %v13051_v51  ;;  %6948 = vmax.xlane.f32.xlu1 %v6947_v22  ;;  %v13062_v35 = vrot.slane %v4773_v12, %v15433_v60  ;;  %v6739_v19 = vpop.xlane.xlu1 %6738  ;;  %v7916_v37 = vsel %vm7556_vm3, %v7915_v39, %v7911_v1  ;;  %6963 = vmax.xlane.f32.xlu0 %v6962_v11  ;;  %v6965_v1 = vsel %vm6508_vm0, %v4463_v5, -inf  ;;  %v15873_v5 = vld [vmem:[#allocation228_spill] sm:$0xff] }
 0x626   :  { %v13066_v45 = vrot.slane %v5213_v26, %v10465_v21  ;;  %v4684_v30 = vcombine.low %v13051_v51, %v13010_v43  ;;  %v13071_v40 = vrot.slane %v4637_v52, %v15433_v60  ;;  %v13074_v3 = vrot.slane %v4741_v25, %v15433_v60  ;;  %v6754_v20 = vpop.xlane.xlu0 %6753 }
 0x627   :  { %v7920_v61 = vrot.slane %v6739_v19, %v11711_v33  ;;  %v4852_v12 = vcombine.low %v13062_v35, %v13042_v56  ;;  %v7925_v36 = vrot.slane %v6742_v47, %v11726_v42  ;;  %v6953_v26 = vsel %vm6508_vm0, %v5006_v17, -inf }
 0x628   :  { %15869 = vst [vmem:[#allocation51_spill] sm:$0xff] %v13071_v40  ;;  %v5278_v23 = vcombine.low %v13066_v45, %v13048_v29  ;;  %v4716_v52 = vcombine.low %v13071_v40, %v13054_v49  ;;  %v6968_v25 = vsel %vm6508_vm0, %v4599_v32, -inf  ;;  %v4871_v22 = vcombine.high %v12946_v4, %v12931_v13 }
 0x629   :  { %v7921_v27 = vsel %vm7563_vm4, %v7920_v61, %v7916_v37  ;;  %6954 = vmax.xlane.f32.xlu1 %v6953_v26  ;;  %v4820_v47 = vcombine.low %v13074_v3, %v13059_v10  ;;  %v6745_v39 = vpop.xlane.xlu1 %6744  ;;  %6969 = vmax.xlane.f32.xlu0 %v6968_v25  ;;  %v15870_v2 = vcombine.low %v15836_v50, %v15835_v18  ;;  %v15874_v25 = vld [vmem:[#allocation198_spill] sm:$0xff] }
 0x62a   :  { %v7926_v17 = vsel %vm7570_vm5, %v7925_v36, %v7921_v27  ;;  %v7930_v13 = vrot.slane %v6745_v39, %v11806_v14  ;;  %v6760_v4 = vpop.xlane.xlu0 %6759  ;;  %v4735_v32 = vcombine.high %v12984_v41, %v12977_v31  ;;  %v15871_v11 = vcombine.low %v12938_v53, %v12968_v46  ;;  %v15875_v39 = vld [vmem:[#allocation194_spill] sm:$0xff] }
 0x62b   :  { %v13103_v58 = vsel %vm6508_vm0, %v15870_v2, -inf  ;;  %v13115_v7 = vrot.slane %v4684_v30, %v10465_v21  ;;  %v5061_v37 = vcombine.high %v15873_v5, %v15872_v44  ;;  %v7935_v61 = vrot.slane %v6748_v24, %v11815_v48  ;;  %v15876_v24 = vld [vmem:[#allocation231_spill] sm:$0xff] }
 0x62c   :  { %v13112_v19 = vsel %vm6508_vm0, %v15871_v11, -inf  ;;  %v6959_v36 = vsel %vm6508_vm0, %v5278_v23, -inf  ;;  %v13122_v26 = vrot.slane %v4852_v12, %v10465_v21  ;;  %v7931_v31 = vsel %vm7577_vm6, %v7930_v13, %v7926_v17  ;;  %v15877_v11 = vld [vmem:[#allocation226_spill] sm:$0xff]  ;;  %v15879_v13 = vld [vmem:[#allocation216_spill] sm:$0xff] }
 0x62d   :  { %6960 = vmax.xlane.f32.xlu1 %v6959_v36  ;;  %v6974_v41 = vsel %vm6508_vm0, %v4871_v22, -inf  ;;  %v5143_v27 = vcombine.high %v12974_v57, %v12960_v28  ;;  %v13129_v30 = vrot.slane %v4716_v52, %v10465_v21  ;;  %v4877_v2 = vcombine.high %v15875_v39, %v15874_v25  ;;  %v6751_v44 = vpop.xlane.xlu1 %6750  ;;  %v15878_v22 = vld [vmem:[#allocation223_spill] sm:$0xff]  ;;  %v15880_v25 = vld [vmem:[#allocation221_spill] sm:$0xff] }
 0x62e   :  { %v5045_v23 = vcombine.high %v15877_v11, %v15876_v24  ;;  %v7936_v12 = vsel %vm7584_vm7, %v7935_v61, %v7931_v31  ;;  %6975 = vmax.xlane.f32.xlu0 %v6974_v41  ;;  %v13137_v17 = vrot.slane %v4820_v47, %v10465_v21  ;;  %v5029_v5 = vcombine.high %v15879_v13, %v15878_v22  ;;  %v6766_v36 = vpop.xlane.xlu0 %6765  ;;  %v15881_v39 = vld [vmem:[#allocation213_spill] sm:$0xff]  ;;  %v15882_v24 = vld [vmem:[#allocation114_spill] sm:$0xff]  ;;  %v15886_v13 = vld [vmem:[#allocation203_spill] sm:$0xff] }
 0x62f   :  { %v7944_v28 = vrot.slane %v6754_v20, %v15626_v15  ;;  %v13144_v57 = vsel %vm8795_vm8, %v7936_v12, %v12998_v0  ;;  %v7940_v52 = vrot.slane %v6751_v44, %v15625_v6  ;;  %v5013_v61 = vcombine.high %v15881_v39, %v15880_v25  ;;  %v15883_v20 = vld [vmem:[#allocation116_spill] sm:$0xff]  ;;  %v15887_v25 = vld [vmem:[#allocation210_spill] sm:$0xff]  ;;  %v15888_v39 = vld [vmem:[#allocation205_spill] sm:$0xff] }
 0x630   :  { %v13150_v31 = vrot.slane %v5061_v37, %v15433_v60  ;;  %v6971_v47 = vsel %vm6508_vm0, %v4735_v32, -inf  ;;  %v5333_v11 = vcombine.high %v15883_v20, %v15882_v24  ;;  %v6980_v12 = vsel %vm6508_vm0, %v5143_v27, -inf  ;;  %v15885_v37 = vld [vmem:[#allocation208_spill] sm:$0xff]  ;;  %v15889_v27 = vld [vmem:[#allocation118_spill] sm:$0xff] }
 0x631   :  { %v7945_v0 = vsel %vm7542_vm1, %v7944_v28, %v7940_v52  ;;  %6966 = vmax.xlane.f32.xlu1 %v6965_v1  ;;  %v5415_v44 = vcombine.high %v13007_v38, %v12991_v54  ;;  %v13162_v22 = vrot.slane %v4877_v2, %v15433_v60  ;;  %v4909_v32 = vcombine.high %v15886_v13, %v15885_v37  ;;  %v6757_v24 = vpop.xlane.xlu1 %6756  ;;  %v15890_v28 = vld [vmem:[#allocation44_spill] sm:$0xff]  ;;  %v15891_v38 = vld [vmem:[#allocation70_spill] sm:$0xff] }
 0x632   :  { %v4925_v41 = vcombine.high %v15888_v39, %v15887_v25  ;;  %v13169_v51 = vrot.slane %v5045_v23, %v15433_v60  ;;  %6981 = vmax.xlane.f32.xlu0 %v6980_v12  ;;  %v13172_v1 = vrot.slane %v5029_v5, %v15433_v60  ;;  %v5301_v54 = vcombine.high %v15890_v28, %v15889_v27  ;;  %v15892_v2 = vld [vmem:[#allocation128_spill] sm:$0xff]  ;;  %v6772_v37 = vpop.xlane.xlu0 %6771  ;;  %v15894_v39 = vld [vmem:[#allocation98_spill] sm:$0xff] }
 0x633   :  { %15884 = vst [vmem:[#allocation47_spill] sm:$0xff] %v13162_v22  ;;  %v5317_v52 = vcombine.high %v15892_v2, %v15891_v38  ;;  %v7949_v20 = vrot.slane %v6757_v24, %v15627_v34  ;;  %v13180_v13 = vrot.slane %v5013_v61, %v15433_v60  ;;  %v7954_v12 = vrot.slane %v6760_v4, %v11701_v59  ;;  %v15893_v25 = vld [vmem:[#allocation96_spill] sm:$0xff] }
 0x634   :  { %v5124_v23 = vcombine.low %v13169_v51, %v13150_v31  ;;  %v5007_v5 = vcombine.high %v13033_v8, %v13017_v9  ;;  %v5285_v27 = vcombine.high %v15894_v39, %v15893_v25  ;;  %v13190_v28 = vrot.slane %v5333_v11, %v15433_v60  ;;  %v15895_v38 = vld [vmem:[#allocation200_spill] sm:$0xff] }
 0x635   :  { %v7950_v24 = vsel %vm7549_vm2, %v7949_v20, %v7945_v0  ;;  %6972 = vmax.xlane.f32.xlu1 %v6971_v47  ;;  %v6986_v61 = vsel %vm6508_vm0, %v5415_v44, -inf  ;;  %v15896_v2 = vld [vmem:[#allocation196_spill] sm:$0xff]  ;;  %v13197_v40 = vrot.slane %v4909_v32, %v15433_v60  ;;  %v13200_v4 = vrot.slane %v4925_v41, %v15433_v60  ;;  %v6763_v9 = vpop.xlane.xlu1 %6762  ;;  %v15898_v20 = vld [vmem:[#allocation54_spill] sm:$0xff] }
 0x636   :  { %v4893_v43 = vcombine.high %v15896_v2, %v15895_v38  ;;  %v7955_v8 = vsel %vm7556_vm3, %v7954_v12, %v7950_v24  ;;  %6987 = vmax.xlane.f32.xlu0 %v6986_v61  ;;  %v5092_v11 = vcombine.low %v13180_v13, %v13172_v1  ;;  %v13206_v47 = vrot.slane %v5301_v54, %v15433_v60  ;;  %v6778_v32 = vpop.xlane.xlu0 %6777  ;;  %v15899_v25 = vld [vmem:[#allocation36_spill] sm:$0xff] }
 0x637   :  { %15897 = vst [vmem:[#allocation59_spill] sm:$0xff] %v13197_v40  ;;  %v13209_v0 = vrot.slane %v5317_v52, %v15433_v60  ;;  %v7959_v44 = vrot.slane %v6763_v9, %v11711_v33  ;;  %v5197_v41 = vcombine.high %v15899_v25, %v15898_v20  ;;  %v7964_v39 = vrot.slane %v6766_v36, %v11726_v42  ;;  %v15900_v36 = vld [vmem:[#allocation22_spill] sm:$0xff] }
 0x638   :  { %v6977_v12 = vsel %vm6508_vm0, %v5007_v5, -inf  ;;  %v5279_v24 = vcombine.high %v13066_v45, %v13048_v29  ;;  %v13219_v61 = vrot.slane %v5285_v27, %v15433_v60  ;;  %v13225_v38 = vrot.slane %v5124_v23, %v10465_v21  ;;  %v15901_v5 = vld [vmem:[#allocation28_spill] sm:$0xff]  ;;  %v15902_v20 = vld [vmem:[#allocation62_spill] sm:$0xff] }
 0x639   :  { %v5396_v54 = vcombine.low %v13209_v0, %v13190_v28  ;;  %v7960_v52 = vsel %vm7563_vm4, %v7959_v44, %v7955_v8  ;;  %6978 = vmax.xlane.f32.xlu1 %v6977_v12  ;;  %v13228_v2 = vrot.slane %v4893_v43, %v15433_v60  ;;  %v5165_v9 = vcombine.high %v15901_v5, %v15900_v36  ;;  %v15903_v29 = vld [vmem:[#allocation34_spill] sm:$0xff]  ;;  %v6769_v27 = vpop.xlane.xlu1 %6768  ;;  %v15904_v36 = vld [vmem:[#allocation217_spill] sm:$0xff]  ;;  %v15905_v5 = vld [vmem:[#allocation16_spill] sm:$0xff] }
 0x63a   :  { %v5181_v45 = vcombine.high %v15903_v29, %v15902_v20  ;;  %v7965_v25 = vsel %vm7570_vm5, %v7964_v39, %v7960_v52  ;;  %6993 = vmax.xlane.f32.xlu0 %v13112_v19  ;;  %v4988_v8 = vcombine.low %v13197_v40, %v13200_v4  ;;  %v5364_v23 = vcombine.low %v13219_v61, %v13206_v47  ;;  %v6784_v44 = vpop.xlane.xlu0 %6783 }
 0x63b   :  { %v7969_v43 = vrot.slane %v6769_v27, %v11806_v14  ;;  %v13242_v12 = vrot.slane %v5092_v11, %v10465_v21  ;;  %v5149_v20 = vcombine.high %v15905_v5, %v15904_v36  ;;  %v13247_v29 = vrot.slane %v5197_v41, %v15433_v60 }
 0x63c   :  { %v7974_v19 = vrot.slane %v6772_v37, %v11815_v48  ;;  %v6983_v39 = vsel %vm6508_vm0, %v5279_v24, -inf  ;;  %v15906_v27 = vcombine.low %v13137_v17, %v13122_v26  ;;  %v13259_v36 = vrot.slane %v5396_v54, %v10465_v21 }
 0x63d   :  { %v7970_v52 = vsel %vm7577_vm6, %v7969_v43, %v7965_v25  ;;  %6984 = vmax.xlane.f32.xlu1 %v6983_v39  ;;  %v5144_v11 = vcombine.low %v13242_v12, %v13225_v38  ;;  %v4956_v41 = vcombine.low %v13162_v22, %v13228_v2  ;;  %v13264_v37 = vrot.slane %v5165_v9, %v15433_v60  ;;  %v6775_v43 = vpop.xlane.xlu1 %6774 }
 0x63e   :  { %v6998_v40 = vsel %vm6508_vm0, %v15906_v27, -inf  ;;  %v13267_v24 = vrot.slane %v5181_v45, %v15433_v60  ;;  %v7975_v25 = vsel %vm7584_vm7, %v7974_v19, %v7970_v52  ;;  %v7983_v5 = vrot.slane %v6778_v32, %v15626_v15  ;;  %v6790_v27 = vpop.xlane.xlu0 %6789 }
 0x63f   :  { %6999 = vmax.xlane.f32.xlu0 %v6998_v40  ;;  %v8810_v39 = vsel %vm8797_vm9, %v7975_v25, %v13144_v57  ;;  %v7979_v54 = vrot.slane %v6775_v43, %v15625_v6  ;;  %v13275_v22 = vrot.slane %v5364_v23, %v10465_v21  ;;  %v13278_v9 = vrot.slane %v5149_v20, %v15433_v60 }
 0x640   :  { %v5260_v45 = vcombine.low %v13267_v24, %v13247_v29  ;;  %v4736_v40 = vcombine.low %v13115_v7, %v13129_v30  ;;  %v13285_v32 = vrot.slane %v4988_v8, %v10465_v21  ;;  %v7004_v19 = vsel %vm6508_vm0, %v5144_v11, -inf }
 0x641   :  { %v7984_v57 = vsel %vm7542_vm1, %v7983_v5, %v7979_v54  ;;  %6990 = vmax.xlane.f32.xlu1 %v13103_v58  ;;  %v5416_v23 = vcombine.low %v13275_v22, %v13259_v36  ;;  %v5228_v20 = vcombine.low %v13278_v9, %v13264_v37  ;;  %v6781_v52 = vpop.xlane.xlu1 %6780  ;;  %v13295_v25 = vrot.slane %v4956_v41, %v10465_v21 }
 0x642   :  { %v7988_v8 = vrot.slane %v6781_v52, %v15627_v34  ;;  %v6796_v43 = vpop.xlane.xlu0 %6795  ;;  %v7993_v5 = vrot.slane %v6784_v44, %v11701_v59  ;;  %v6995_v58 = vsel %vm6508_vm0, %v4736_v40, -inf  ;;  %v13303_v54 = vrot.slane %v5260_v45, %v10465_v21 }
 0x643   :  { %7005 = vmax.xlane.f32.xlu0 %v7004_v19  ;;  %v5008_v11 = vcombine.low %v13295_v25, %v13285_v32  ;;  %v7010_v19 = vsel %vm6508_vm0, %v5416_v23, -inf  ;;  %v4601_v41 = vcombine.high %v12938_v53, %v12968_v46  ;;  %v13311_v44 = vrot.slane %v5228_v20, %v10465_v21  ;;  %v15908_v46 = vld [vmem:[#allocation141_spill] sm:$0xff] }
 0x644   :  { %v7989_v15 = vsel %vm7549_vm2, %v7988_v8, %v7984_v57  ;;  %v15909_v20 = vld [vmem:[#allocation137_spill] sm:$0xff] }
 0x645   :  { %6996 = vmax.xlane.f32.xlu1 %v6995_v58  ;;  %v6787_v52 = vpop.xlane.xlu1 %6786  ;;  %v7994_v34 = vsel %vm7556_vm3, %v7993_v5, %v7989_v15  ;;  %v7001_v45 = vsel %vm6508_vm0, %v5008_v11, -inf  ;;  %v5280_v57 = vcombine.low %v13311_v44, %v13303_v54  ;;  %v7016_v53 = vsel %vm6508_vm0, %v4601_v41, -inf  ;;  %v15911_v11 = vld [vmem:[#allocation78_spill] sm:$0xff] }
 0x646   :  { %v7998_v40 = vrot.slane %v6787_v52, %v11711_v33  ;;  %v13314_v59 = vpop.xlane.xlu0 %6801  ;;  %v4873_v15 = vcombine.high %v13137_v17, %v13122_v26  ;;  %v5436_v8 = vcombine.low %v15909_v20, %v15908_v46  ;;  %v8003_v5 = vrot.slane %v6790_v27, %v11726_v42 }
 0x647   :  { %7011 = vmax.xlane.f32.xlu0 %v7010_v19  ;;  %15907 = vst [vmem:[#allocation55_spill] sm:$0xff] %v13314_v59  ;;  %v15910_v19 = vld [vmem:[#allocation139_spill] sm:$0xff]  ;;  %v4581_v26 = vcombine.high %v12920_v55, %v12902_v63  ;;  %v8013_v17 = vrot.slane %v6796_v43, %v11815_v48  ;;  %v7007_v27 = vsel %vm6508_vm0, %v5280_v57, -inf  ;;  %v4549_v55 = vcombine.high %v12880_v16, %v15829_v62 }
 0x648   :  { %v7999_v23 = vsel %vm7563_vm4, %v7998_v40, %v7994_v34  ;;  %v5420_v52 = vcombine.low %v15911_v11, %v15910_v19  ;;  %v4465_v34 = vcombine.high %v15836_v50, %v15835_v18  ;;  %v15913_v18 = vld [vmem:[#allocation17_spill] sm:$0xff]  ;;  %v15914_v50 = vld [vmem:[#allocation19_spill] sm:$0xff]  ;;  %v4737_v16 = vcombine.high %v13115_v7, %v13129_v30 }
 0x649   :  { %7002 = vmax.xlane.f32.xlu1 %v7001_v45  ;;  %v6793_v58 = vpop.xlane.xlu1 %6792  ;;  %v8004_v41 = vsel %vm7570_vm5, %v8003_v5, %v7999_v23  ;;  %v7022_v45 = vsel %vm6508_vm0, %v4873_v15, -inf  ;;  %v4445_v63 = vcombine.high %v15914_v50, %v15913_v18  ;;  %v15916_v23 = vld [vmem:[#allocation33_spill] sm:$0xff]  ;;  %v13366_v62 = vrot.slane %v4581_v26, %v10465_v21  ;;  %v15933_v19 = vld [vmem:[#allocation163_spill] sm:$0xff] }
 0x64a   :  { %v8008_v33 = vrot.slane %v6793_v58, %v11806_v14  ;;  %v13329_v59 = vpop.xlane.xlu0 %6807  ;;  %v13343_v58 = vrot.slane %v5436_v8, %v15433_v60  ;;  %v7013_v8 = vsel %vm6508_vm0, %v4465_v34, -inf  ;;  %v13378_v7 = vrot.slane %v4549_v55, %v10465_v21  ;;  %v15920_v34 = vld [vmem:[#allocation143_spill] sm:$0xff]  ;;  %v15923_v55 = vld [vmem:[#allocation145_spill] sm:$0xff] }
 0x64b   :  { %7017 = vmax.xlane.f32.xlu0 %v7016_v53  ;;  %v5145_v53 = vcombine.high %v13242_v12, %v13225_v38  ;;  %v13360_v12 = vrot.slane %v5420_v52, %v15433_v60  ;;  %v4459_v30 = vrot.slane %v4445_v63, %v10465_v21  ;;  %v5125_v63 = vcombine.high %v13169_v51, %v13150_v31  ;;  %v15924_v31 = vld [vmem:[#allocation51_spill] sm:$0xff] }
 0x64c   :  { %v8009_v40 = vsel %vm7577_vm6, %v8008_v33, %v8004_v41  ;;  %15912 = vst [vmem:[#allocation76_spill] sm:$0xff] %v13343_v58  ;;  %v15915_v33 = vld [vmem:[#allocation37_spill] sm:$0xff]  ;;  %v5417_v41 = vcombine.high %v13275_v22, %v13259_v36  ;;  %v4821_v22 = vcombine.high %v13074_v3, %v13059_v10  ;;  %v15934_v11 = vld [vmem:[#allocation159_spill] sm:$0xff] }
 0x64d   :  { %7008 = vmax.xlane.f32.xlu1 %v7007_v27  ;;  %v8014_v43 = vsel %vm7584_vm7, %v8013_v17, %v8009_v40  ;;  %v13350_v57 = vpop.xlane.xlu1 %6798  ;;  %v4413_v15 = vcombine.high %v15916_v23, %v15915_v33  ;;  %15918 = vst [vmem:[#allocation103_spill] sm:$0xff] %v13360_v12  ;;  %v4853_v17 = vcombine.high %v13062_v35, %v13042_v56  ;;  %v15919_v35 = vld [vmem:[#allocation147_spill] sm:$0xff]  ;;  %v7019_v40 = vsel %vm6508_vm0, %v4737_v16, -inf  ;;  %v15926_v56 = vld [vmem:[#allocation57_spill] sm:$0xff] }
 0x64e   :  { %v13355_v5 = vsel %vm8799_vm10, %v8014_v43, %v8810_v39  ;;  %v13357_v38 = vpop.xlane.xlu0 %6813  ;;  %v7028_v39 = vsel %vm6508_vm0, %v5145_v53, -inf  ;;  %v5484_v52 = vcombine.low %v13360_v12, %v13343_v58  ;;  %v5452_v26 = vcombine.low %v15920_v34, %v15919_v35  ;;  %v15949_v58 = vld [vmem:[#allocation177_spill] sm:$0xff] }
 0x64f   :  { %7023 = vmax.xlane.f32.xlu0 %v7022_v45  ;;  %15917 = vst [vmem:[#allocation71_spill] sm:$0xff] %v13355_v5  ;;  %v5009_v45 = vcombine.high %v13295_v25, %v13285_v32  ;;  %v4602_v53 = vcombine.low %v13378_v7, %v13366_v62  ;;  %v4427_v18 = vrot.slane %v4413_v15, %v10465_v21  ;;  %v7034_v10 = vsel %vm6508_vm0, %v5417_v41, -inf  ;;  %v15922_v25 = vld [vmem:[#allocation149_spill] sm:$0xff] }
 0x650   :  { %v13401_v3 = vrot.slane %v4853_v17, %v10465_v21  ;;  %v5468_v43 = vcombine.low %v15923_v55, %v15922_v25  ;;  %v13410_v15 = vrot.slane %v5484_v52, %v10465_v21  ;;  %v13413_v51 = vrot.slane %v5452_v26, %v15433_v60  ;;  %v15966_v55 = vld [vmem:[#allocation183_spill] sm:$0xff]  ;;  %v15967_v25 = vld [vmem:[#allocation206_spill] sm:$0xff] }
 0x651   :  { %7014 = vmax.xlane.f32.xlu1 %v7013_v8  ;;  %v13375_v27 = vpop.xlane.xlu1 %6804  ;;  %v4466_v23 = vcombine.low %v4427_v18, %v4459_v30  ;;  %v4717_v8 = vcombine.high %v15924_v31, %v13054_v49  ;;  %v5093_v16 = vcombine.high %v13180_v13, %v13172_v1  ;;  %v7025_v41 = vsel %vm6508_vm0, %v5009_v45, -inf  ;;  %v15927_v45 = vld [vmem:[#allocation155_spill] sm:$0xff]  ;;  %v15932_v31 = vld [vmem:[#allocation161_spill] sm:$0xff] }
 0x652   :  { %v13387_v36 = vpop.xlane.xlu0 %6819  ;;  %v5281_v52 = vcombine.high %v13311_v44, %v13303_v54  ;;  %v4467_v26 = vcombine.high %v4427_v18, %v4459_v30  ;;  %v5397_v49 = vcombine.high %v13209_v0, %v13190_v28  ;;  %v13435_v13 = vrot.slane %v5125_v63, %v10465_v21  ;;  %v15929_v44 = vld [vmem:[#allocation157_spill] sm:$0xff] }
 0x653   :  { %7029 = vmax.xlane.f32.xlu0 %v7028_v39  ;;  %15921 = vst [vmem:[#allocation99_spill] sm:$0xff] %v13387_v36  ;;  %v13422_v39 = vrot.slane %v4821_v22, %v10465_v21  ;;  %v13438_v22 = vrot.slane %v5468_v43, %v15433_v60  ;;  %v15930_v30 = vld [vmem:[#allocation153_spill] sm:$0xff]  ;;  %v7037_v28 = vsel %vm6508_vm0, %v4466_v23, -inf  ;;  %v5365_v63 = vcombine.high %v13219_v61, %v13206_v47 }
 0x654   :  { %v5572_v18 = vcombine.low %v15930_v30, %v15929_v44  ;;  %v15931_v0 = vld [vmem:[#allocation165_spill] sm:$0xff]  ;;  %v13454_v43 = vrot.slane %v5093_v16, %v10465_v21  ;;  %v13457_v50 = vrot.slane %v4717_v8, %v10465_v21  ;;  %v5588_v30 = vcombine.low %v15934_v11, %v15933_v19 }
 0x655   :  { %7020 = vmax.xlane.f32.xlu1 %v7019_v40  ;;  %v13407_v33 = vpop.xlane.xlu1 %6810  ;;  %v7040_v40 = vsel %vm6508_vm0, %v4602_v53, -inf  ;;  %v4874_v1 = vcombine.low %v13422_v39, %v13401_v3  ;;  %v15928_v53 = vld [vmem:[#allocation151_spill] sm:$0xff]  ;;  %v7031_v44 = vsel %vm6508_vm0, %v5281_v52, -inf  ;;  %v13474_v16 = vrot.slane %v5397_v49, %v10465_v21  ;;  %v15948_v19 = vld [vmem:[#allocation181_spill] sm:$0xff] }
 0x656   :  { %v13419_v17 = vpop.xlane.xlu0 %6825  ;;  %v5556_v54 = vcombine.low %v15928_v53, %v15927_v45  ;;  %v13465_v53 = vsel %vm6508_vm0, %v4467_v26, -inf  ;;  %v5146_v61 = vcombine.low %v13454_v43, %v13435_v13  ;;  %v15938_v52 = vld [vmem:[#allocation47_spill] sm:$0xff]  ;;  %v5740_v12 = vcombine.low %v15949_v58, %v15948_v19  ;;  %v15952_v58 = vld [vmem:[#allocation197_spill] sm:$0xff]  ;;  %v15954_v19 = vld [vmem:[#allocation212_spill] sm:$0xff] }
 0x657   :  { %7035 = vmax.xlane.f32.xlu0 %v7034_v10  ;;  %v15925_v10 = vld [vmem:[#allocation61_spill] sm:$0xff]  ;;  %v7046_v47 = vsel %vm6508_vm0, %v4874_v1, -inf  ;;  %v4957_v26 = vcombine.high %v15938_v52, %v13228_v2  ;;  %v4603_v1 = vcombine.high %v13378_v7, %v13366_v62  ;;  %v15940_v49 = vld [vmem:[#allocation171_spill] sm:$0xff]  ;;  %v13501_v2 = vrot.slane %v5588_v30, %v15433_v60 }
 0x658   :  { %v4685_v32 = vcombine.high %v15926_v56, %v15925_v10  ;;  %v13477_v45 = vrot.slane %v5556_v54, %v15433_v60  ;;  %v15945_v52 = vld [vmem:[#allocation169_spill] sm:$0xff]  ;;  %v5261_v7 = vcombine.high %v13267_v24, %v13247_v29  ;;  %v5229_v24 = vcombine.high %v13278_v9, %v13264_v37 }
 0x659   :  { %7026 = vmax.xlane.f32.xlu1 %v7025_v41  ;;  %v13444_v56 = vpop.xlane.xlu1 %6816  ;;  %v5604_v41 = vcombine.low %v15932_v31, %v15931_v0  ;;  %v13498_v0 = vrot.slane %v5365_v63, %v10465_v21  ;;  %15943 = vst [vmem:[#allocation93_spill] sm:$0xff] %v13501_v2  ;;  %v7052_v63 = vsel %vm6508_vm0, %v5146_v61, -inf  ;;  %v15953_v37 = vld [vmem:[#allocation193_spill] sm:$0xff] }
 0x65a   :  { %v13451_v10 = vpop.xlane.xlu0 %6831  ;;  %v13471_v8 = vrot.slane %v4685_v32, %v10465_v21  ;;  %15936 = vst [vmem:[#allocation101_spill] sm:$0xff] %v13477_v45  ;;  %v5876_v9 = vcombine.low %v15953_v37, %v15952_v58  ;;  %v13544_v20 = vrot.slane %v5261_v7, %v10465_v21  ;;  %v15959_v58 = vld [vmem:[#allocation189_spill] sm:$0xff]  ;;  %v15963_v7 = vld [vmem:[#allocation211_spill] sm:$0xff] }
 0x65b   :  { %7041 = vmax.xlane.f32.xlu0 %v7040_v40  ;;  %v15935_v40 = vld [vmem:[#allocation59_spill] sm:$0xff]  ;;  %v13489_v32 = vrot.slane %v5604_v41, %v15433_v60  ;;  %v5418_v30 = vcombine.low %v13498_v0, %v13474_v16  ;;  %v15969_v36 = vld [vmem:[#allocation229_spill] sm:$0xff] }
 0x65c   :  { %v4989_v23 = vcombine.high %v15935_v40, %v13200_v4  ;;  %v13480_v4 = vrot.slane %v5572_v18, %v15433_v60  ;;  %v15941_v40 = vld [vmem:[#allocation167_spill] sm:$0xff]  ;;  %v4738_v18 = vcombine.low %v13471_v8, %v13457_v50 }
 0x65d   :  { %7032 = vmax.xlane.f32.xlu1 %v7031_v44  ;;  %v13484_v44 = vpop.xlane.xlu1 %6822  ;;  %15939 = vst [vmem:[#allocation95_spill] sm:$0xff] %v13489_v32  ;;  %v5692_v31 = vcombine.low %v15941_v40, %v15940_v49  ;;  %v15946_v40 = vld [vmem:[#allocation179_spill] sm:$0xff]  ;;  %v7058_v37 = vsel %vm6508_vm0, %v5418_v30, -inf  ;;  %v15968_v30 = vld [vmem:[#allocation201_spill] sm:$0xff] }
 0x65e   :  { %15937 = vst [vmem:[#allocation97_spill] sm:$0xff] %v13480_v4  ;;  %v13493_v54 = vpop.xlane.xlu0 %6837  ;;  %v13508_v41 = vrot.slane %v4989_v23, %v10465_v21  ;;  %v15947_v49 = vld [vmem:[#allocation175_spill] sm:$0xff]  ;;  %v5620_v29 = vcombine.low %v13477_v45, %v13480_v4 }
 0x65f   :  { %7047 = vmax.xlane.f32.xlu0 %v7046_v47  ;;  %15942 = vst [vmem:[#allocation91_spill] sm:$0xff] %v13493_v54  ;;  %v15944_v47 = vld [vmem:[#allocation173_spill] sm:$0xff]  ;;  %v5724_v11 = vcombine.low %v15947_v49, %v15946_v40  ;;  %v13526_v49 = vrot.slane %v4957_v26, %v10465_v21  ;;  %v13531_v61 = vrot.slane %v5692_v31, %v15433_v60  ;;  %v15961_v45 = vld [vmem:[#allocation195_spill] sm:$0xff] }
 0x660   :  { %v5708_v62 = vcombine.low %v15945_v52, %v15944_v47  ;;  %v7043_v52 = vsel %vm6508_vm0, %v4738_v18, -inf  ;;  %v7064_v47 = vsel %vm6508_vm0, %v4603_v1, -inf  ;;  %v13553_v1 = vrot.slane %v5740_v12, %v15433_v60  ;;  %v15962_v4 = vld [vmem:[#allocation191_spill] sm:$0xff] }
 0x661   :  { %7038 = vmax.xlane.f32.xlu1 %v7037_v28  ;;  %v13523_v23 = vpop.xlane.xlu1 %6828  ;;  %v5652_v28 = vcombine.low %v13501_v2, %v13489_v32  ;;  %15950 = vst [vmem:[#allocation89_spill] sm:$0xff] %v13531_v61  ;;  %v5010_v26 = vcombine.low %v13526_v49, %v13508_v41  ;;  %v13550_v18 = vrot.slane %v5724_v11, %v15433_v60  ;;  %v15964_v2 = vld [vmem:[#allocation207_spill] sm:$0xff] }
 0x662   :  { %v13534_v40 = vpop.xlane.xlu0 %6843  ;;  %v13547_v31 = vrot.slane %v5708_v62, %v15433_v60  ;;  %15958 = vst [vmem:[#allocation74_spill] sm:$0xff] %v13553_v1  ;;  %v5860_v5 = vcombine.low %v15962_v4, %v15961_v45  ;;  %v5996_v32 = vcombine.low %v15964_v2, %v15963_v7  ;;  %v13565_v11 = vrot.slane %v5229_v24, %v10465_v21  ;;  %v15965_v12 = vld [vmem:[#allocation187_spill] sm:$0xff]  ;;  %v15975_v4 = vld [vmem:[#allocation218_spill] sm:$0xff] }
 0x663   :  { %7053 = vmax.xlane.f32.xlu0 %v7052_v63  ;;  %15951 = vst [vmem:[#allocation135_spill] sm:$0xff] %v13534_v40  ;;  %v15955_v63 = vld [vmem:[#allocation209_spill] sm:$0xff]  ;;  %15957 = vst [vmem:[#allocation79_spill] sm:$0xff] %v13550_v18  ;;  %v5980_v40 = vcombine.low %v15968_v30, %v15967_v25  ;;  %v4875_v2 = vcombine.high %v13422_v39, %v13401_v3  ;;  %v13578_v7 = vrot.slane %v5876_v9, %v15433_v60  ;;  %v15976_v39 = vld [vmem:[#allocation227_spill] sm:$0xff] }
 0x664   :  { %v6012_v46 = vcombine.low %v15955_v63, %v15954_v19  ;;  %15956 = vst [vmem:[#allocation131_spill] sm:$0xff] %v13547_v31  ;;  %v15960_v63 = vld [vmem:[#allocation185_spill] sm:$0xff]  ;;  %v5756_v30 = vcombine.low %v13531_v61, %v13547_v31  ;;  %v15977_v9 = vld [vmem:[#allocation224_spill] sm:$0xff]  ;;  %v13600_v54 = vrot.slane %v5860_v5, %v15433_v60  ;;  %v13603_v61 = vrot.slane %v5996_v32, %v15433_v60 }
 0x665   :  { %7044 = vmax.xlane.f32.xlu1 %v7043_v52  ;;  %v5844_v19 = vcombine.low %v15960_v63, %v15959_v58  ;;  %v13562_v62 = vpop.xlane.xlu1 %6834  ;;  %v5828_v52 = vcombine.low %v15966_v55, %v15965_v12  ;;  %v15970_v63 = vld [vmem:[#allocation225_spill] sm:$0xff]  ;;  %v5282_v55 = vcombine.low %v13565_v11, %v13544_v20  ;;  %v15974_v12 = vld [vmem:[#allocation222_spill] sm:$0xff]  ;;  %v6132_v45 = vcombine.low %v15977_v9, %v15976_v39  ;;  %v15982_v9 = vld [vmem:[#allocation220_spill] sm:$0xff] }
 0x666   :  { %v6148_v58 = vcombine.low %v15970_v63, %v15969_v36  ;;  %v13573_v48 = vpop.xlane.xlu0 %6849  ;;  %v13581_v24 = vrot.slane %v6012_v46, %v15433_v60  ;;  %v15972_v63 = vld [vmem:[#allocation204_spill] sm:$0xff]  ;;  %v15973_v36 = vld [vmem:[#allocation199_spill] sm:$0xff]  ;;  %v6116_v3 = vcombine.low %v15975_v4, %v15974_v12  ;;  %v5788_v46 = vcombine.low %v13550_v18, %v13553_v1  ;;  %15979 = vst [vmem:[#allocation87_spill] sm:$0xff] %v13603_v61  ;;  %v15983_v39 = vld [vmem:[#allocation214_spill] sm:$0xff] }
 0x667   :  { %7059 = vmax.xlane.f32.xlu0 %v7058_v37  ;;  %v7049_v37 = vsel %vm6508_vm0, %v5010_v26, -inf  ;;  %v5964_v25 = vcombine.low %v15973_v36, %v15972_v63  ;;  %v13597_v26 = vrot.slane %v5844_v19, %v15433_v60  ;;  %v13608_v4 = vrot.slane %v5828_v52, %v15433_v60 }
 0x668   :  { %15971 = vst [vmem:[#allocation85_spill] sm:$0xff] %v13581_v24  ;;  %v6100_v12 = vcombine.low %v15983_v39, %v15982_v9  ;;  %v13616_v19 = vrot.slane %v6148_v58, %v15433_v60  ;;  %v5924_v32 = vcombine.low %v13600_v54, %v13578_v7  ;;  %v7055_v52 = vsel %vm6508_vm0, %v5282_v55, -inf }
 0x669   :  { %7050 = vmax.xlane.f32.xlu1 %v7049_v37  ;;  %15978 = vst [vmem:[#allocation81_spill] sm:$0xff] %v13597_v26  ;;  %v13605_v36 = vpop.xlane.xlu1 %6840  ;;  %15980 = vst [vmem:[#allocation83_spill] sm:$0xff] %v13608_v4  ;;  %v13611_v37 = vrot.slane %v5980_v40, %v15433_v60  ;;  %v7070_v63 = vsel %vm6508_vm0, %v4875_v2, -inf  ;;  %v13627_v40 = vrot.slane %v5964_v25, %v15433_v60 }
 0x66a   :  { %15984 = vst [vmem:[#allocation123_spill] sm:$0xff] %v13616_v19  ;;  %v13618_v5 = vpop.xlane.xlu0 %6855  ;;  %v13630_v39 = vrot.slane %v6116_v3, %v15433_v60  ;;  %v13633_v58 = vrot.slane %v6132_v45, %v15433_v60  ;;  %v5147_v9 = vcombine.high %v13454_v43, %v13435_v13  ;;  %v5628_v55 = vrot.slane %v5620_v29, %v10465_v21 }
 0x66b   :  { %7065 = vmax.xlane.f32.xlu0 %v7064_v47  ;;  %15981 = vst [vmem:[#allocation127_spill] sm:$0xff] %v13611_v37  ;;  %v6060_v47 = vcombine.low %v13603_v61, %v13581_v24  ;;  %15985 = vst [vmem:[#allocation133_spill] sm:$0xff] %v13627_v40  ;;  %v5892_v61 = vcombine.low %v13608_v4, %v13597_v26  ;;  %v5660_v25 = vrot.slane %v5652_v28, %v10465_v21  ;;  %v16006_v4 = vld [vmem:[#allocation56_spill] sm:$0xff] }
 0x66c   :  { %15986 = vst [vmem:[#allocation129_spill] sm:$0xff] %v13630_v39  ;;  %15987 = vst [vmem:[#allocation125_spill] sm:$0xff] %v13633_v58  ;;  %v15988_v2 = vcombine.low %v13413_v51, %v13438_v22  ;;  %v6028_v3 = vcombine.low %v13627_v40, %v13611_v37  ;;  %v13652_v13 = vrot.slane %v6100_v12, %v15433_v60  ;;  %v15992_v40 = vld [vmem:[#allocation202_spill] sm:$0xff] }
 0x66d   :  { %7056 = vmax.xlane.f32.xlu1 %v7055_v52  ;;  %v13639_v24 = vpop.xlane.xlu1 %6846  ;;  %v6196_v43 = vcombine.low %v13633_v58, %v13616_v19  ;;  %v13659_v29 = vrot.slane %v5788_v46, %v10465_v21  ;;  %v4739_v28 = vcombine.high %v13471_v8, %v13457_v50  ;;  %v13664_v52 = vrot.slane %v5924_v32, %v10465_v21  ;;  %v15991_v19 = vld [vmem:[#allocation25_spill] sm:$0xff] }
 0x66e   :  { %v13647_v45 = vrot.slane %v15988_v2, %v10465_v21  ;;  %15989 = vst [vmem:[#allocation121_spill] sm:$0xff] %v13652_v13  ;;  %v13667_v2 = vrot.slane %v5756_v30, %v10465_v21  ;;  %v13670_v12 = vrot.slane %v6060_v47, %v10465_v21  ;;  %v6164_v58 = vcombine.low %v13652_v13, %v13630_v39  ;;  %v15993_v39 = vld [vmem:[#allocation215_spill] sm:$0xff] }
 0x66f   :  { %7071 = vmax.xlane.f32.xlu0 %v7070_v63  ;;  %v13656_v63 = vpop.xlane.xlu0 %6861  ;;  %v6284_v37 = vcombine.low %v15992_v40, %v15991_v19  ;;  %v7076_v46 = vsel %vm6508_vm0, %v5147_v9, -inf  ;;  %v5419_v50 = vcombine.high %v13498_v0, %v13474_v16  ;;  %v5684_v30 = vcombine.low %v5628_v55, %v5660_v25  ;;  %v15994_v40 = vld [vmem:[#allocation31_spill] sm:$0xff] }
 0x670   :  { %15990 = vst [vmem:[#allocation119_spill] sm:$0xff] %v13670_v12  ;;  %v13683_v32 = vrot.slane %v5892_v61, %v10465_v21  ;;  %v5548_v47 = vcombine.low %v13410_v15, %v13647_v45  ;;  %v5685_v13 = vcombine.high %v5628_v55, %v5660_v25  ;;  %v6268_v19 = vcombine.low %v15994_v40, %v15993_v39  ;;  %v15996_v61 = vld [vmem:[#allocation20_spill] sm:$0xff] }
 0x671   :  { %7062 = vmax.xlane.f32.xlu1 %v13465_v53  ;;  %v13680_v8 = vpop.xlane.xlu1 %6852  ;;  %v13692_v9 = vrot.slane %v6196_v43, %v10465_v21  ;;  %v5820_v0 = vcombine.low %v13667_v2, %v13659_v29  ;;  %v13697_v16 = vrot.slane %v6028_v3, %v10465_v21  ;;  %v7067_v18 = vsel %vm6508_vm0, %v4739_v28, -inf }
 0x672   :  { %v5011_v55 = vcombine.high %v13526_v49, %v13508_v41  ;;  %v5956_v25 = vcombine.low %v13683_v32, %v13664_v52  ;;  %v13707_v43 = vrot.slane %v6284_v37, %v15433_v60  ;;  %v7082_v40 = vsel %vm6508_vm0, %v5419_v50, -inf  ;;  %v16000_v49 = vld [vmem:[#allocation230_spill] sm:$0xff] }
 0x673   :  { %7077 = vmax.xlane.f32.xlu0 %v7076_v46  ;;  %v13689_v53 = vpop.xlane.xlu0 %6867  ;;  %15995 = vst [vmem:[#allocation115_spill] sm:$0xff] %v13697_v16  ;;  %v15997_v46 = vld [vmem:[#allocation12_spill] sm:$0xff]  ;;  %v13711_v3 = vrot.slane %v6164_v58, %v10465_v21  ;;  %v6092_v39 = vcombine.low %v13697_v16, %v13670_v12  ;;  %v7088_v37 = vsel %vm6508_vm0, %v5684_v30, -inf  ;;  %v13724_v50 = vrot.slane %v6268_v19, %v15433_v60  ;;  %v16004_v12 = vld [vmem:[#allocation94_spill] sm:$0xff] }
 0x674   :  { %v6252_v31 = vcombine.low %v15997_v46, %v15996_v61  ;;  %15998 = vst [vmem:[#allocation111_spill] sm:$0xff] %v13707_v43  ;;  %v15999_v46 = vld [vmem:[#allocation14_spill] sm:$0xff]  ;;  %v13731_v28 = vsel %vm6508_vm0, %v5820_v0, -inf  ;;  %v7073_v30 = vsel %vm6508_vm0, %v5011_v55, -inf  ;;  %v5283_v19 = vcombine.high %v13565_v11, %v13544_v20  ;;  %v16003_v16 = vld [vmem:[#allocation48_spill] sm:$0xff] }
 0x675   :  { %7068 = vmax.xlane.f32.xlu1 %v7067_v18  ;;  %v6236_v41 = vcombine.low %v16000_v49, %v15999_v46  ;;  %v13719_v61 = vpop.xlane.xlu1 %6858  ;;  %v7085_v18 = vsel %vm6508_vm0, %v5548_v47, -inf  ;;  %16001 = vst [vmem:[#allocation107_spill] sm:$0xff] %v13724_v50  ;;  %v6228_v1 = vcombine.low %v13711_v3, %v13692_v9  ;;  %v13734_v49 = vsel %vm6508_vm0, %v5685_v13, -inf  ;;  %v16007_v20 = vld [vmem:[#allocation60_spill] sm:$0xff] }
 0x676   :  { %v7094_v47 = vsel %vm6508_vm0, %v5956_v25, -inf  ;;  %v6332_v46 = vcombine.low %v13724_v50, %v13707_v43  ;;  %v6468_v0 = vcombine.low %v16004_v12, %v16003_v16  ;;  %v8018_v13 = vrot.slane %v13350_v57, %v15625_v6  ;;  %v16008_v25 = vld [vmem:[#allocation126_spill] sm:$0xff]  ;;  %v16009_v57 = vld [vmem:[#allocation84_spill] sm:$0xff]  ;;  %v16010_v16 = vld [vmem:[#allocation55_spill] sm:$0xff] }
 0x677   :  { %7083 = vmax.xlane.f32.xlu0 %v7082_v40  ;;  %v13726_v58 = vpop.xlane.xlu0 %6873  ;;  %v13737_v40 = vrot.slane %v6252_v31, %v15433_v60  ;;  %v13750_v31 = vsel %vm6508_vm0, %v6092_v39, -inf  ;;  %v13753_v55 = vrot.slane %v6236_v41, %v15433_v60  ;;  %v6436_v11 = vcombine.low %v16007_v20, %v16006_v4 }
 0x678   :  { %v8027_v26 = vrot.slane %v13375_v27, %v16008_v25  ;;  %v8057_v50 = vrot.slane %v13484_v44, %v15625_v6  ;;  %v8066_v39 = vrot.slane %v13523_v23, %v16008_v25  ;;  %v8096_v41 = vrot.slane %v13639_v24, %v15625_v6 }
 0x679   :  { %16002 = vst [vmem:[#allocation117_spill] sm:$0xff] %v13737_v40  ;;  %7074 = vmax.xlane.f32.xlu1 %v7073_v30  ;;  %16005 = vst [vmem:[#allocation113_spill] sm:$0xff] %v13753_v55  ;;  %v13761_v12 = vpop.xlane.xlu1 %6864  ;;  %v8022_v30 = vrot.slane %v16010_v16, %v16009_v57  ;;  %v7100_v4 = vsel %vm6508_vm0, %v6228_v1, -inf  ;;  %v6300_v27 = vcombine.low %v13753_v55, %v13737_v40  ;;  %v7079_v20 = vsel %vm6508_vm0, %v5283_v19, -inf }
 0x67a   :  { %v8061_v44 = vrot.slane %v13419_v17, %v16009_v57  ;;  %v8100_v24 = vrot.slane %v13573_v48, %v16009_v57  ;;  %v13783_v16 = vrot.slane %v6468_v0, %v10465_v21  ;;  %v13786_v1 = vrot.slane %v6332_v46, %v10465_v21  ;;  %v16011_v17 = vld [vmem:[#allocation106_spill] sm:$0xff] }
 0x67b   :  { %7089 = vmax.xlane.f32.xlu0 %v7088_v37  ;;  %v13769_v43 = vpop.xlane.xlu0 %6879  ;;  %v8105_v37 = vrot.slane %v13680_v8, %v16008_v25  ;;  %v8023_v23 = vsel %vm7542_vm1, %v8022_v30, %v8018_v13  ;;  %v8037_v40 = vrot.slane %v13407_v33, %v16011_v17  ;;  %v13793_v13 = vrot.slane %v6436_v11, %v10465_v21  ;;  %v16012_v48 = vld [vmem:[#allocation110_spill] sm:$0xff] }
 0x67c   :  { %v8028_v55 = vsel %vm7549_vm2, %v8027_v26, %v8023_v23  ;;  %v8062_v8 = vsel %vm7542_vm1, %v8061_v44, %v8057_v50  ;;  %v8032_v30 = vrot.slane %v13329_v59, %v16012_v48  ;;  %v8076_v46 = vrot.slane %v13562_v62, %v16011_v17 }
 0x67d   :  { %7080 = vmax.xlane.f32.xlu1 %v7079_v20  ;;  %v6871_v19 = vpop.xlane.xlu1 %6870  ;;  %v8067_v0 = vsel %vm7549_vm2, %v8066_v39, %v8062_v8  ;;  %v8101_v26 = vsel %vm7542_vm1, %v8100_v24, %v8096_v41  ;;  %v8071_v33 = vrot.slane %v13451_v10, %v16012_v48  ;;  %v8042_v59 = vrot.slane %v13357_v38, %v11726_v42  ;;  %v16013_v24 = vld [vmem:[#allocation91_spill] sm:$0xff] }
 0x67e   :  { %v8106_v50 = vsel %vm7549_vm2, %v8105_v37, %v8101_v26  ;;  %v8135_v11 = vrot.slane %v6871_v19, %v15625_v6  ;;  %v8033_v39 = vsel %vm7556_vm3, %v8032_v30, %v8028_v55  ;;  %v8110_v62 = vrot.slane %v13618_v5, %v16012_v48 }
 0x67f   :  { %7095 = vmax.xlane.f32.xlu0 %v7094_v47  ;;  %v13801_v20 = vpop.xlane.xlu0 %6885  ;;  %v8115_v47 = vrot.slane %v13719_v61, %v16011_v17  ;;  %v6500_v41 = vcombine.low %v13793_v13, %v13783_v16  ;;  %v8038_v10 = vsel %vm7563_vm4, %v8037_v40, %v8033_v39  ;;  %v8047_v44 = vrot.slane %v13444_v56, %v11806_v14 }
 0x680   :  { %v8072_v61 = vsel %vm7556_vm3, %v8071_v33, %v8067_v0  ;;  %v8139_v37 = vrot.slane %v13726_v58, %v16009_v57  ;;  %v8086_v5 = vrot.slane %v13605_v36, %v11806_v14  ;;  %v8081_v56 = vrot.slane %v16013_v24, %v11726_v42 }
 0x681   :  { %7086 = vmax.xlane.f32.xlu1 %v7085_v18  ;;  %v6877_v38 = vpop.xlane.xlu1 %6876  ;;  %v8077_v55 = vsel %vm7563_vm4, %v8076_v46, %v8072_v61  ;;  %v8111_v18 = vsel %vm7556_vm3, %v8110_v62, %v8106_v50  ;;  %v8125_v58 = vrot.slane %v13761_v12, %v11806_v14  ;;  %v8043_v19 = vsel %vm7570_vm5, %v8042_v59, %v8038_v10 }
 0x682   :  { %v8144_v23 = vrot.slane %v6877_v38, %v16008_v25  ;;  %v8116_v8 = vsel %vm7563_vm4, %v8115_v47, %v8111_v18  ;;  %v8120_v36 = vrot.slane %v13656_v63, %v11726_v42  ;;  %v7106_v0 = vsel %vm6508_vm0, %v6500_v41, -inf  ;;  %v16014_v47 = vld [vmem:[#allocation102_spill] sm:$0xff]  ;;  %v16015_v63 = vld [vmem:[#allocation99_spill] sm:$0xff]  ;;  %v16018_v18 = vld [vmem:[#allocation145_spill] sm:$0xff] }
 0x683   :  { %7101 = vmax.xlane.f32.xlu0 %v7100_v4  ;;  %v6892_v40 = vpop.xlane.xlu0 %6891  ;;  %v8140_v4 = vsel %vm7542_vm1, %v8139_v37, %v8135_v11  ;;  %v8048_v46 = vsel %vm7577_vm6, %v8047_v44, %v8043_v19  ;;  %v8082_v26 = vsel %vm7570_vm5, %v8081_v56, %v8077_v55  ;;  %v8149_v12 = vrot.slane %v13769_v43, %v16012_v48  ;;  %v16016_v41 = vld [vmem:[#allocation135_spill] sm:$0xff] }
 0x684   :  { %v8145_v30 = vsel %vm7549_vm2, %v8144_v23, %v8140_v4  ;;  %v13844_v50 = vrot.slane %v6300_v27, %v10465_v21  ;;  %v8052_v11 = vrot.slane %v16015_v63, %v16014_v47  ;;  %v8087_v59 = vsel %vm7577_vm6, %v8086_v5, %v8082_v26  ;;  %v16017_v5 = vld [vmem:[#allocation149_spill] sm:$0xff] }
 0x685   :  { %7092 = vmax.xlane.f32.xlu1 %v13731_v28  ;;  %v6883_v33 = vpop.xlane.xlu1 %6882  ;;  %v8121_v28 = vsel %vm7570_vm5, %v8120_v36, %v8116_v8  ;;  %v8091_v10 = vrot.slane %v16016_v41, %v16014_v47  ;;  %v8150_v44 = vsel %vm7556_vm3, %v8149_v12, %v8145_v30  ;;  %v8130_v37 = vrot.slane %v13689_v53, %v16014_v47  ;;  %v16019_v53 = vld [vmem:[#allocation95_spill] sm:$0xff]  ;;  %v16020_v4 = vld [vmem:[#allocation93_spill] sm:$0xff] }
 0x686   :  { %v8154_v39 = vrot.slane %v6883_v33, %v16011_v17  ;;  %v8126_v43 = vsel %vm7577_vm6, %v8125_v58, %v8121_v28  ;;  %v6364_v27 = vcombine.low %v13844_v50, %v13786_v1  ;;  %v8053_v61 = vsel %vm7584_vm7, %v8052_v11, %v8048_v46  ;;  %v16024_v28 = vld [vmem:[#allocation137_spill] sm:$0xff] }
 0x687   :  { %7107 = vmax.xlane.f32.xlu0 %v7106_v0  ;;  %v6898_v62 = vpop.xlane.xlu0 %6897  ;;  %v5957_v55 = vcombine.high %v13683_v32, %v13664_v52  ;;  %v5469_v23 = vcombine.high %v16018_v18, %v16017_v5  ;;  %v5517_v24 = vcombine.high %v13413_v51, %v13438_v22  ;;  %v8092_v56 = vsel %vm7584_vm7, %v8091_v10, %v8087_v59  ;;  %v16021_v51 = vld [vmem:[#allocation71_spill] sm:$0xff] }
 0x688   :  { %v8155_v38 = vsel %vm7563_vm4, %v8154_v39, %v8150_v44  ;;  %v8159_v8 = vrot.slane %v13801_v20, %v11726_v42  ;;  %v8131_v19 = vsel %vm7584_vm7, %v8130_v37, %v8126_v43  ;;  %v5549_v36 = vcombine.high %v13410_v15, %v13647_v45  ;;  %v16022_v15 = vld [vmem:[#allocation97_spill] sm:$0xff] }
 0x689   :  { %7098 = vmax.xlane.f32.xlu1 %v13750_v31  ;;  %v6889_v58 = vpop.xlane.xlu1 %6888  ;;  %v5653_v31 = vcombine.high %v16020_v4, %v16019_v53  ;;  %v8812_v22 = vsel %vm8801_vm11, %v8053_v61, %v16021_v51  ;;  %v8169_v30 = vrot.slane %v6892_v40, %v16014_v47  ;;  %v7118_v26 = vsel %vm6508_vm0, %v5957_v55, -inf  ;;  %v16023_v45 = vld [vmem:[#allocation101_spill] sm:$0xff]  ;;  %v16028_v55 = vld [vmem:[#allocation76_spill] sm:$0xff]  ;;  %v16031_v4 = vld [vmem:[#allocation163_spill] sm:$0xff] }
 0x68a   :  { %v8164_v52 = vrot.slane %v6889_v58, %v11806_v14  ;;  %v8160_v20 = vsel %vm7570_vm5, %v8159_v8, %v8155_v38  ;;  %v8813_v0 = vsel %vm8803_vm12, %v8092_v56, %v8812_v22  ;;  %v6229_v12 = vcombine.high %v13711_v3, %v13692_v9  ;;  %v16025_v39 = vld [vmem:[#allocation141_spill] sm:$0xff]  ;;  %v16027_v38 = vld [vmem:[#allocation103_spill] sm:$0xff] }
 0x68b   :  { %7113 = vmax.xlane.f32.xlu0 %v13734_v49  ;;  %v6904_v32 = vpop.xlane.xlu0 %6903  ;;  %v7103_v49 = vsel %vm6508_vm0, %v6364_v27, -inf  ;;  %v5621_v33 = vcombine.high %v16023_v45, %v16022_v15  ;;  %v8814_v63 = vsel %vm8805_vm13, %v8131_v19, %v8813_v0  ;;  %v13893_v59 = vrot.slane %v5517_v24, %v10465_v21  ;;  %v16034_v19 = vld [vmem:[#allocation161_spill] sm:$0xff] }
 0x68c   :  { %v8165_v46 = vsel %vm7577_vm6, %v8164_v52, %v8160_v20  ;;  %v16026_v41 = vcombine.high %v16024_v28, %v16025_v39  ;;  %v8178_v9 = vrot.slane %v6898_v62, %v16009_v57  ;;  %v7109_v27 = vsel %vm6508_vm0, %v5549_v36, -inf  ;;  %v16037_v20 = vld [vmem:[#allocation119_spill] sm:$0xff] }
 0x68d   :  { %7104 = vmax.xlane.f32.xlu1 %v7103_v49  ;;  %v8170_v40 = vsel %vm7584_vm7, %v8169_v30, %v8165_v46  ;;  %v6895_v11 = vpop.xlane.xlu1 %6894  ;;  %v5821_v61 = vcombine.high %v13667_v2, %v13659_v29  ;;  %v13908_v37 = vrot.slane %v5653_v31, %v10465_v21  ;;  %v16029_v5 = vcombine.high %v16027_v38, %v16028_v55  ;;  %v16032_v31 = vld [vmem:[#allocation159_spill] sm:$0xff]  ;;  %v16043_v38 = vld [vmem:[#allocation74_spill] sm:$0xff] }
 0x68e   :  { %v13899_v10 = vrot.slane %v16026_v41, %v15433_v60  ;;  %v8174_v3 = vrot.slane %v6895_v11, %v15625_v6  ;;  %v8815_v44 = vsel %vm8807_vm14, %v8170_v40, %v8814_v63  ;;  %v5925_v62 = vcombine.high %v13600_v54, %v13578_v7  ;;  %v16038_v49 = vld [vmem:[#allocation115_spill] sm:$0xff]  ;;  %v16041_v40 = vld [vmem:[#allocation157_spill] sm:$0xff] }
 0x68f   :  { %7119 = vmax.xlane.f32.xlu0 %v7118_v26  ;;  %v6910_v43 = vpop.xlane.xlu0 %6909  ;;  %v13914_v18 = vrot.slane %v16029_v5, %v10465_v21  ;;  %8836 = vst.msk [vmem:[#allocation6 + $0x8] sm:$0xff] %vm8834_vm15, %v8815_v44  ;;  %v7124_v56 = vsel %vm6508_vm0, %v6229_v12, -inf  ;;  %v6501_v29 = vcombine.high %v13793_v13, %v13783_v16  ;;  %v16030_v2 = vcombine.high %v15920_v34, %v15919_v35  ;;  %v16033_v13 = vld [vmem:[#allocation165_spill] sm:$0xff]  ;;  %v16036_v34 = vld [vmem:[#allocation83_spill] sm:$0xff] }
 0x690   :  { %v8179_v24 = vsel %vm7542_vm1, %v8178_v9, %v8174_v3  ;;  %v13930_v58 = vrot.slane %v5469_v23, %v15433_v60  ;;  %v13933_v54 = vrot.slane %v5621_v33, %v10465_v21  ;;  %v5589_v16 = vcombine.high %v16032_v31, %v16031_v4  ;;  %v16035_v35 = vld [vmem:[#allocation81_spill] sm:$0xff]  ;;  %v16040_v33 = vld [vmem:[#allocation151_spill] sm:$0xff] }
 0x691   :  { %7110 = vmax.xlane.f32.xlu1 %v7109_v27  ;;  %v13927_v8 = vrot.slane %v16030_v2, %v15433_v60  ;;  %v6901_v53 = vpop.xlane.xlu1 %6900  ;;  %v5550_v7 = vcombine.low %v13914_v18, %v13893_v59  ;;  %v5605_v52 = vcombine.high %v16034_v19, %v16033_v13  ;;  %v5893_v36 = vcombine.high %v16036_v34, %v16035_v35  ;;  %v16042_v11 = vld [vmem:[#allocation153_spill] sm:$0xff]  ;;  %v16044_v55 = vld [vmem:[#allocation79_spill] sm:$0xff] }
 0x692   :  { %v8183_v23 = vrot.slane %v6901_v53, %v16008_v25  ;;  %v8188_v22 = vrot.slane %v6904_v32, %v16012_v48  ;;  %v7115_v30 = vsel %vm6508_vm0, %v5821_v61, -inf  ;;  %v6093_v0 = vcombine.high %v16038_v49, %v16037_v20  ;;  %v16039_v32 = vld [vmem:[#allocation155_spill] sm:$0xff]  ;;  %v16048_v13 = vld [vmem:[#allocation89_spill] sm:$0xff] }
 0x693   :  { %7125 = vmax.xlane.f32.xlu0 %v7124_v56  ;;  %v6916_v51 = vpop.xlane.xlu0 %6915  ;;  %v5551_v46 = vcombine.high %v13914_v18, %v13893_v59  ;;  %v7130_v12 = vsel %vm6508_vm0, %v6501_v29, -inf  ;;  %v5686_v15 = vcombine.low %v13933_v54, %v13908_v37  ;;  %v13955_v45 = vrot.slane %v5925_v62, %v10465_v21  ;;  %v16045_v56 = vld [vmem:[#allocation181_spill] sm:$0xff] }
 0x694   :  { %v8184_v26 = vsel %vm7549_vm2, %v8183_v23, %v8179_v24  ;;  %v5557_v63 = vcombine.high %v16040_v33, %v16039_v32  ;;  %v5573_v28 = vcombine.high %v16042_v11, %v16041_v40  ;;  %v7133_v41 = vsel %vm6508_vm0, %v5550_v7, -inf  ;;  %v16046_v29 = vld [vmem:[#allocation177_spill] sm:$0xff]  ;;  %v16051_v23 = vld [vmem:[#allocation179_spill] sm:$0xff] }
 0x695   :  { %7116 = vmax.xlane.f32.xlu1 %v7115_v30  ;;  %v8189_v59 = vsel %vm7556_vm3, %v8188_v22, %v8184_v26  ;;  %v13964_v9 = vrot.slane %v5589_v16, %v15433_v60  ;;  %v13967_v3 = vrot.slane %v5605_v52, %v15433_v60  ;;  %v13971_v61 = vrot.slane %v5893_v36, %v10465_v21  ;;  %v16047_v16 = vld [vmem:[#allocation131_spill] sm:$0xff]  ;;  %v16049_v35 = vld [vmem:[#allocation173_spill] sm:$0xff] }
 0x696   :  { %v6907_v39 = vpop.xlane.xlu1 %6906  ;;  %v5789_v5 = vcombine.high %v16044_v55, %v16043_v38  ;;  %v8198_v18 = vrot.slane %v6910_v43, %v11726_v42  ;;  %v7121_v62 = vsel %vm6508_vm0, %v6093_v0, -inf  ;;  %v6365_v24 = vcombine.high %v13844_v50, %v13786_v1  ;;  %v16050_v34 = vld [vmem:[#allocation169_spill] sm:$0xff]  ;;  %v16052_v22 = vld [vmem:[#allocation175_spill] sm:$0xff] }
 0x697   :  { %7131 = vmax.xlane.f32.xlu0 %v7130_v12  ;;  %v8193_v44 = vrot.slane %v6907_v39, %v16011_v17  ;;  %v6922_v27 = vpop.xlane.xlu0 %6921  ;;  %v5741_v2 = vcombine.high %v16046_v29, %v16045_v56  ;;  %v7136_v7 = vsel %vm6508_vm0, %v5686_v15, -inf  ;;  %v5958_v4 = vcombine.low %v13971_v61, %v13955_v45  ;;  %v16053_v0 = vld [vmem:[#allocation85_spill] sm:$0xff]  ;;  %v16054_v26 = vld [vmem:[#allocation87_spill] sm:$0xff] }
 0x698   :  { %v13986_v31 = vrot.slane %v5557_v63, %v15433_v60  ;;  %v13989_v43 = vrot.slane %v5573_v28, %v15433_v60  ;;  %v5757_v1 = vcombine.high %v16048_v13, %v16047_v16  ;;  %v5668_v52 = vcombine.low %v13964_v9, %v13967_v3  ;;  %v16055_v63 = vld [vmem:[#allocation171_spill] sm:$0xff] }
 0x699   :  { %v8194_v53 = vsel %vm7563_vm4, %v8193_v44, %v8189_v59  ;;  %7122 = vmax.xlane.f32.xlu1 %v7121_v62  ;;  %v5709_v36 = vcombine.high %v16050_v34, %v16049_v35  ;;  %v5725_v30 = vcombine.high %v16052_v22, %v16051_v23  ;;  %v6061_v12 = vcombine.high %v16054_v26, %v16053_v0  ;;  %v16056_v40 = vld [vmem:[#allocation167_spill] sm:$0xff]  ;;  %v16059_v35 = vld [vmem:[#allocation78_spill] sm:$0xff] }
 0x69a   :  { %v6913_v50 = vpop.xlane.xlu1 %6912  ;;  %v8199_v19 = vsel %vm7570_vm5, %v8198_v18, %v8194_v53  ;;  %v8208_v15 = vrot.slane %v6916_v51, %v16014_v47  ;;  %v7127_v32 = vsel %vm6508_vm0, %v6365_v24, -inf  ;;  %v5803_v33 = vrot.slane %v5789_v5, %v10465_v21  ;;  %v16057_v38 = vld [vmem:[#allocation127_spill] sm:$0xff]  ;;  %v16058_v51 = vld [vmem:[#allocation133_spill] sm:$0xff] }
 0x69b   :  { %7137 = vmax.xlane.f32.xlu0 %v7136_v7  ;;  %v8203_v20 = vrot.slane %v6913_v50, %v11806_v14  ;;  %v6928_v49 = vpop.xlane.xlu0 %6927  ;;  %v5693_v11 = vcombine.high %v16056_v40, %v16055_v63  ;;  %v14009_v28 = vrot.slane %v5741_v2, %v15433_v60  ;;  %v7142_v59 = vsel %vm6508_vm0, %v5958_v4, -inf }
 0x69c   :  { %v5636_v44 = vcombine.low %v13986_v31, %v13989_v43  ;;  %v6029_v55 = vcombine.high %v16058_v51, %v16057_v38  ;;  %v5771_v62 = vrot.slane %v5757_v1, %v10465_v21  ;;  %v14022_v24 = vrot.slane %v5709_v36, %v15433_v60 }
 0x69d   :  { %v8204_v39 = vsel %vm7577_vm6, %v8203_v20, %v8199_v19  ;;  %7128 = vmax.xlane.f32.xlu1 %v7127_v32  ;;  %v14025_v56 = vrot.slane %v5725_v30, %v15433_v60  ;;  %v8217_v29 = vrot.slane %v6922_v27, %v16009_v57  ;;  %v7157_v7 = vsel %vm6508_vm0, %v5551_v46, -inf  ;;  %v16060_v46 = vld [vmem:[#allocation139_spill] sm:$0xff] }
 0x69e   :  { %v14018_v18 = vsel %vm7584_vm7, %v8208_v15, %v8204_v39  ;;  %v6919_v5 = vpop.xlane.xlu1 %6918  ;;  %v5822_v4 = vcombine.low %v5771_v62, %v5803_v33  ;;  %v14031_v16 = vrot.slane %v6061_v12, %v10465_v21  ;;  %v14034_v13 = vrot.slane %v5668_v52, %v10465_v21 }
 0x69f   :  { %7143 = vmax.xlane.f32.xlu0 %v7142_v59  ;;  %v8213_v2 = vrot.slane %v6919_v5, %v15625_v6  ;;  %v6934_v53 = vpop.xlane.xlu0 %6933  ;;  %v14037_v1 = vrot.slane %v5693_v11, %v15433_v60  ;;  %v5804_v50 = vcombine.low %v14025_v56, %v14009_v28  ;;  %v5823_v19 = vcombine.high %v5771_v62, %v5803_v33 }
 0x6a0   :  { %v16061_v34 = vcombine.high %v16059_v35, %v16060_v46  ;;  %v5532_v52 = vcombine.low %v13927_v8, %v13930_v58  ;;  %v14051_v22 = vrot.slane %v6029_v55, %v10465_v21  ;;  %v5644_v0 = vrot.slane %v5636_v44, %v10465_v21 }
 0x6a1   :  { %v8218_v27 = vsel %vm7542_vm1, %v8217_v29, %v8213_v2  ;;  %7134 = vmax.xlane.f32.xlu1 %v7133_v41  ;;  %v5772_v30 = vcombine.low %v14037_v1, %v14022_v24  ;;  %v8227_v12 = vrot.slane %v6928_v49, %v16012_v48  ;;  %v7139_v15 = vsel %vm6508_vm0, %v5822_v4, -inf }
 0x6a2   :  { %v14046_v36 = vrot.slane %v16061_v34, %v15433_v60  ;;  %v6925_v23 = vpop.xlane.xlu1 %6924  ;;  %v6094_v32 = vcombine.low %v14051_v22, %v14031_v16  ;;  %v7163_v63 = vsel %vm6508_vm0, %v5823_v19, -inf  ;;  %v5688_v40 = vcombine.low %v5644_v0, %v14034_v13  ;;  %v16062_v19 = vld [vmem:[#allocation197_spill] sm:$0xff] }
 0x6a3   :  { %7158 = vmax.xlane.f32.xlu0 %v7157_v7  ;;  %v8222_v41 = vrot.slane %v6925_v23, %v16008_v25  ;;  %v6940_v20 = vpop.xlane.xlu0 %6939  ;;  %v14067_v11 = vrot.slane %v5804_v50, %v10465_v21  ;;  %v14071_v49 = vrot.slane %v5532_v52, %v10465_v21  ;;  %v14075_v51 = vrot.slane %v5772_v30, %v10465_v21  ;;  %v16064_v30 = vld [vmem:[#allocation189_spill] sm:$0xff] }
 0x6a4   :  { %v5500_v26 = vcombine.low %v14046_v36, %v13899_v10  ;;  %v8237_v55 = vrot.slane %v6934_v53, %v11726_v42  ;;  %v7145_v5 = vsel %vm6508_vm0, %v6094_v32, -inf  ;;  %v5687_v62 = vcombine.high %v13933_v54, %v13908_v37  ;;  %v16063_v37 = vld [vmem:[#allocation193_spill] sm:$0xff] }
 0x6a5   :  { %v8223_v33 = vsel %vm7549_vm2, %v8222_v41, %v8218_v27  ;;  %7140 = vmax.xlane.f32.xlu1 %v7139_v15  ;;  %v7184_v7 = vsel %vm6508_vm0, %v5688_v40, -inf  ;;  %v5824_v4 = vcombine.low %v14075_v51, %v14067_v11  ;;  %v5877_v54 = vcombine.high %v16063_v37, %v16062_v19  ;;  %v16065_v41 = vld [vmem:[#allocation185_spill] sm:$0xff]  ;;  %v16067_v15 = vld [vmem:[#allocation191_spill] sm:$0xff] }
 0x6a6   :  { %v6931_v39 = vpop.xlane.xlu1 %6930  ;;  %v8228_v59 = vsel %vm7556_vm3, %v8227_v12, %v8223_v33  ;;  %v14082_v29 = vrot.slane %v5500_v26, %v10465_v21  ;;  %v8247_v34 = vrot.slane %v6940_v20, %v16014_v47  ;;  %v7160_v52 = vsel %vm6508_vm0, %v5687_v62, -inf  ;;  %v16066_v12 = vld [vmem:[#allocation195_spill] sm:$0xff] }
 0x6a7   :  { %7164 = vmax.xlane.f32.xlu0 %v7163_v63  ;;  %v8232_v44 = vrot.slane %v6931_v39, %v16011_v17  ;;  %v6946_v38 = vpop.xlane.xlu0 %6945  ;;  %v5689_v23 = vcombine.high %v5644_v0, %v14034_v13  ;;  %v5845_v26 = vcombine.high %v16065_v41, %v16064_v30  ;;  %v5861_v32 = vcombine.high %v16067_v15, %v16066_v12  ;;  %v16068_v39 = vld [vmem:[#allocation187_spill] sm:$0xff] }
 0x6a8   :  { %v5552_v53 = vcombine.low %v14082_v29, %v14071_v49  ;;  %v7187_v63 = vsel %vm6508_vm0, %v5824_v4, -inf  ;;  %v5669_v40 = vcombine.high %v13964_v9, %v13967_v3  ;;  %v16069_v20 = vld [vmem:[#allocation183_spill] sm:$0xff]  ;;  %v16071_v4 = vld [vmem:[#allocation125_spill] sm:$0xff]  ;;  %v5533_v37 = vcombine.high %v13927_v8, %v13930_v58 }
 0x6a9   :  { %v8233_v2 = vsel %vm7563_vm4, %v8232_v44, %v8228_v59  ;;  %7146 = vmax.xlane.f32.xlu1 %v7145_v5  ;;  %v5829_v59 = vcombine.high %v16069_v20, %v16068_v39  ;;  %v8256_v5 = vrot.slane %v6946_v38, %v16009_v57  ;;  %v14126_v38 = vrot.slane %v5845_v26, %v15433_v60  ;;  %v16075_v20 = vld [vmem:[#allocation209_spill] sm:$0xff] }
 0x6aa   :  { %v6937_v50 = vpop.xlane.xlu1 %6936  ;;  %v8238_v27 = vsel %vm7570_vm5, %v8237_v55, %v8233_v2  ;;  %v7181_v0 = vsel %vm6508_vm0, %v5552_v53, -inf  ;;  %v14110_v55 = vrot.slane %v5877_v54, %v15433_v60  ;;  %v5637_v2 = vcombine.high %v13986_v31, %v13989_v43  ;;  %v16072_v54 = vld [vmem:[#allocation129_spill] sm:$0xff] }
 0x6ab   :  { %7185 = vmax.xlane.f32.xlu0 %v7184_v7  ;;  %v8242_v35 = vrot.slane %v6937_v50, %v11806_v14  ;;  %v6952_v46 = vpop.xlane.xlu0 %6951  ;;  %v16070_v7 = vld [vmem:[#allocation123_spill] sm:$0xff]  ;;  %v5959_v53 = vcombine.high %v13971_v61, %v13955_v45  ;;  %v6095_v31 = vcombine.high %v14051_v22, %v14031_v16  ;;  %v5501_v43 = vcombine.high %v14046_v36, %v13899_v10  ;;  %v16073_v45 = vld [vmem:[#allocation121_spill] sm:$0xff] }
 0x6ac   :  { %v6197_v50 = vcombine.high %v16071_v4, %v16070_v7  ;;  %v6165_v61 = vcombine.high %v16073_v45, %v16072_v54  ;;  %v5553_v8 = vcombine.high %v14082_v29, %v14071_v49  ;;  %v8266_v58 = vrot.slane %v6952_v46, %v16012_v48  ;;  %v16080_v54 = vld [vmem:[#allocation204_spill] sm:$0xff]  ;;  %v16081_v45 = vld [vmem:[#allocation199_spill] sm:$0xff] }
 0x6ad   :  { %v8243_v33 = vsel %vm7577_vm6, %v8242_v35, %v8238_v27  ;;  %7161 = vmax.xlane.f32.xlu1 %v7160_v52  ;;  %v7208_v27 = vsel %vm6508_vm0, %v5689_v23, -inf  ;;  %v14144_v52 = vrot.slane %v5829_v59, %v15433_v60  ;;  %v7166_v36 = vsel %vm6508_vm0, %v5959_v53, -inf  ;;  %v16079_v53 = vld [vmem:[#allocation207_spill] sm:$0xff] }
 0x6ae   :  { %v8248_v44 = vsel %vm7584_vm7, %v8247_v34, %v8243_v33  ;;  %v6943_v13 = vpop.xlane.xlu1 %6942  ;;  %v14141_v34 = vrot.slane %v5669_v40, %v10465_v21  ;;  %v14154_v23 = vrot.slane %v6197_v50, %v10465_v21  ;;  %v14157_v30 = vrot.slane %v5637_v2, %v10465_v21 }
 0x6af   :  { %7188 = vmax.xlane.f32.xlu0 %v7187_v63  ;;  %v14115_v62 = vsel %vm8795_vm8, %v8248_v44, %v14018_v18  ;;  %v8252_v9 = vrot.slane %v6943_v13, %v15625_v6  ;;  %v6958_v3 = vpop.xlane.xlu0 %6957  ;;  %v14129_v18 = vrot.slane %v5861_v32, %v15433_v60  ;;  %v5908_v41 = vcombine.low %v14144_v52, %v14126_v38 }
 0x6b0   :  { %v7169_v12 = vsel %vm6508_vm0, %v6095_v31, -inf  ;;  %v5825_v49 = vcombine.high %v14075_v51, %v14067_v11  ;;  %v6179_v15 = vrot.slane %v6165_v61, %v10465_v21  ;;  %v5690_v32 = vcombine.low %v14157_v30, %v14141_v34  ;;  %v16074_v51 = vld [vmem:[#allocation212_spill] sm:$0xff] }
 0x6b1   :  { %v8257_v19 = vsel %vm7542_vm1, %v8256_v5, %v8252_v9  ;;  %7182 = vmax.xlane.f32.xlu1 %v7181_v0  ;;  %v5940_v16 = vcombine.low %v14129_v18, %v14110_v55  ;;  %v14170_v33 = vrot.slane %v5533_v37, %v10465_v21  ;;  %v14177_v11 = vrot.slane %v5501_v43, %v10465_v21  ;;  %v16076_v5 = vld [vmem:[#allocation206_spill] sm:$0xff]  ;;  %v16077_v9 = vld [vmem:[#allocation201_spill] sm:$0xff] }
 0x6b2   :  { %v6949_v35 = vpop.xlane.xlu1 %6948  ;;  %v6013_v59 = vcombine.high %v16075_v20, %v16074_v51  ;;  %v8276_v44 = vrot.slane %v6958_v3, %v11726_v42  ;;  %v7205_v13 = vsel %vm6508_vm0, %v5553_v8, -inf  ;;  %v6230_v0 = vcombine.low %v6179_v15, %v14154_v23 }
 0x6b3   :  { %7209 = vmax.xlane.f32.xlu0 %v7208_v27  ;;  %v8261_v22 = vrot.slane %v6949_v35, %v16008_v25  ;;  %v6964_v10 = vpop.xlane.xlu0 %6963  ;;  %v14174_v39 = vrot.slane %v5940_v16, %v10465_v21  ;;  %v5981_v2 = vcombine.high %v16077_v9, %v16076_v5  ;;  %v7211_v4 = vsel %vm6508_vm0, %v5825_v49, -inf  ;;  %v16078_v27 = vld [vmem:[#allocation211_spill] sm:$0xff]  ;;  %v16089_v5 = vld [vmem:[#allocation113_spill] sm:$0xff] }
 0x6b4   :  { %v5916_v50 = vrot.slane %v5908_v41, %v10465_v21  ;;  %v7232_v43 = vsel %vm6508_vm0, %v5690_v32, -inf  ;;  %v5554_v37 = vcombine.low %v14177_v11, %v14170_v33  ;;  %v5965_v61 = vcombine.high %v16081_v45, %v16080_v54  ;;  %v16083_v41 = vld [vmem:[#allocation107_spill] sm:$0xff]  ;;  %v16085_v32 = vld [vmem:[#allocation225_spill] sm:$0xff]  ;;  %v16092_v54 = vld [vmem:[#allocation220_spill] sm:$0xff] }
 0x6b5   :  { %v8262_v26 = vsel %vm7549_vm2, %v8261_v22, %v8257_v19  ;;  %7167 = vmax.xlane.f32.xlu1 %v7166_v36  ;;  %v5997_v19 = vcombine.high %v16079_v53, %v16078_v27  ;;  %v16082_v36 = vld [vmem:[#allocation111_spill] sm:$0xff]  ;;  %v7148_v49 = vsel %vm6508_vm0, %v6230_v0, -inf }
 0x6b6   :  { %v6955_v29 = vpop.xlane.xlu1 %6954  ;;  %v8267_v46 = vsel %vm7556_vm3, %v8266_v58, %v8262_v26  ;;  %v5960_v22 = vcombine.low %v5916_v50, %v14174_v39  ;;  %v5961_v8 = vcombine.high %v5916_v50, %v14174_v39  ;;  %v14201_v58 = vrot.slane %v6013_v59, %v15433_v60  ;;  %v16086_v59 = vld [vmem:[#allocation222_spill] sm:$0xff] }
 0x6b7   :  { %7170 = vmax.xlane.f32.xlu0 %v7169_v12  ;;  %v8271_v63 = vrot.slane %v6955_v29, %v16011_v17  ;;  %v6970_v40 = vpop.xlane.xlu0 %6969  ;;  %v6333_v26 = vcombine.high %v16083_v41, %v16082_v36  ;;  %v8286_v12 = vrot.slane %v6964_v10, %v16014_v47  ;;  %v14208_v29 = vrot.slane %v5981_v2, %v15433_v60  ;;  %v16088_v10 = vld [vmem:[#allocation117_spill] sm:$0xff] }
 0x6b8   :  { %v6231_v39 = vcombine.high %v6179_v15, %v14154_v23  ;;  %v14215_v20 = vrot.slane %v5997_v19, %v15433_v60  ;;  %v6301_v0 = vcombine.high %v16089_v5, %v16088_v10  ;;  %v8295_v27 = vrot.slane %v6970_v40, %v16009_v57  ;;  %v16093_v40 = vld [vmem:[#allocation214_spill] sm:$0xff] }
 0x6b9   :  { %v8272_v7 = vsel %vm7563_vm4, %v8271_v63, %v8267_v46  ;;  %7206 = vmax.xlane.f32.xlu1 %v7205_v13  ;;  %v16084_v46 = vld [vmem:[#allocation229_spill] sm:$0xff]  ;;  %v14231_v19 = vrot.slane %v5965_v61, %v15433_v60  ;;  %v6101_v45 = vcombine.high %v16093_v40, %v16092_v54 }
 0x6ba   :  { %v6961_v31 = vpop.xlane.xlu1 %6960  ;;  %v8277_v3 = vsel %vm7570_vm5, %v8276_v44, %v8272_v7  ;;  %v6149_v63 = vcombine.high %v16085_v32, %v16084_v46  ;;  %v16087_v44 = vld [vmem:[#allocation218_spill] sm:$0xff]  ;;  %v16090_v7 = vld [vmem:[#allocation227_spill] sm:$0xff]  ;;  %v7172_v61 = vsel %vm6508_vm0, %v6231_v39, -inf  ;;  %v7229_v32 = vsel %vm6508_vm0, %v5554_v37, -inf }
 0x6bb   :  { %7212 = vmax.xlane.f32.xlu0 %v7211_v4  ;;  %v8281_v35 = vrot.slane %v6961_v31, %v11806_v14  ;;  %v6976_v16 = vpop.xlane.xlu0 %6975  ;;  %v6117_v13 = vcombine.high %v16087_v44, %v16086_v59  ;;  %v16091_v4 = vld [vmem:[#allocation224_spill] sm:$0xff]  ;;  %v6076_v31 = vcombine.low %v14215_v20, %v14201_v58  ;;  %v6044_v36 = vcombine.low %v14231_v19, %v14208_v29 }
 0x6bc   :  { %v6133_v50 = vcombine.high %v16091_v4, %v16090_v7  ;;  %v8305_v39 = vrot.slane %v6976_v16, %v16012_v48 }
 0x6bd   :  { %v8282_v51 = vsel %vm7577_vm6, %v8281_v35, %v8277_v3  ;;  %7149 = vmax.xlane.f32.xlu1 %v7148_v49  ;;  %v7190_v3 = vsel %vm6508_vm0, %v5960_v22, -inf  ;;  %v14249_v22 = vrot.slane %v6301_v0, %v10465_v21  ;;  %v14280_v10 = vrot.slane %v6044_v36, %v10465_v21  ;;  %v16094_v36 = vld [vmem:[#allocation90_spill] sm:$0xff] }
 0x6be   :  { %v8287_v9 = vsel %vm7584_vm7, %v8286_v12, %v8282_v51  ;;  %v6967_v2 = vpop.xlane.xlu1 %6966  ;;  %v14254_v12 = vrot.slane %v6117_v13, %v15433_v60  ;;  %v14257_v49 = vrot.slane %v6133_v50, %v15433_v60  ;;  %v5805_v51 = vcombine.high %v14025_v56, %v14009_v28 }
 0x6bf   :  { %7233 = vmax.xlane.f32.xlu0 %v7232_v43  ;;  %v14227_v23 = vsel %vm8797_vm9, %v8287_v9, %v14115_v62  ;;  %v8291_v15 = vrot.slane %v6967_v2, %v15625_v6  ;;  %v6982_v53 = vpop.xlane.xlu0 %6981  ;;  %v14237_v43 = vrot.slane %v6333_v26, %v10465_v21  ;;  %v14242_v62 = vrot.slane %v6149_v63, %v15433_v60 }
 0x6c0   :  { %v5555_v26 = vcombine.high %v14177_v11, %v14170_v33  ;;  %v14267_v33 = vrot.slane %v6076_v31, %v10465_v21  ;;  %v14270_v11 = vrot.slane %v6101_v45, %v15433_v60  ;;  %v7214_v13 = vsel %vm6508_vm0, %v5961_v8, -inf }
 0x6c1   :  { %v8296_v35 = vsel %vm7542_vm1, %v8295_v27, %v8291_v15  ;;  %7191 = vmax.xlane.f32.xlu1 %v7190_v3  ;;  %v6366_v59 = vcombine.low %v14249_v22, %v14237_v43  ;;  %v6212_v44 = vcombine.low %v14257_v49, %v14242_v62  ;;  %v5773_v28 = vcombine.high %v14037_v1, %v14022_v24 }
 0x6c2   :  { %v6973_v41 = vpop.xlane.xlu1 %6972  ;;  %v6180_v5 = vcombine.low %v14270_v11, %v14254_v12  ;;  %v6096_v8 = vcombine.low %v14280_v10, %v14267_v33  ;;  %v14291_v24 = vrot.slane %v5805_v51, %v10465_v21  ;;  %v5941_v1 = vcombine.high %v14129_v18, %v14110_v55 }
 0x6c3   :  { %7173 = vmax.xlane.f32.xlu0 %v7172_v61  ;;  %v8300_v46 = vrot.slane %v6973_v41, %v16008_v25  ;;  %v6988_v63 = vpop.xlane.xlu0 %6987  ;;  %v7151_v2 = vsel %vm6508_vm0, %v6366_v59, -inf  ;;  %v7253_v4 = vsel %vm6508_vm0, %v5555_v26, -inf  ;;  %v14298_v50 = vrot.slane %v6212_v44, %v10465_v21  ;;  %v16097_v44 = vld [vmem:[#allocation25_spill] sm:$0xff] }
 0x6c4   :  { %v8315_v27 = vrot.slane %v6982_v53, %v11726_v42  ;;  %v14302_v31 = vrot.slane %v5773_v28, %v10465_v21  ;;  %v5909_v3 = vcombine.high %v14144_v52, %v14126_v38  ;;  %v6188_v54 = vrot.slane %v6180_v5, %v10465_v21  ;;  %v16095_v38 = vld [vmem:[#allocation86_spill] sm:$0xff] }
 0x6c5   :  { %v8301_v37 = vsel %vm7549_vm2, %v8300_v46, %v8296_v35  ;;  %7230 = vmax.xlane.f32.xlu1 %v7229_v32  ;;  %v8325_v40 = vrot.slane %v6988_v63, %v16014_v47  ;;  %v7193_v53 = vsel %vm6508_vm0, %v6096_v8, -inf  ;;  %v16096_v52 = vcombine.low %v16094_v36, %v16095_v38  ;;  %v16101_v8 = vld [vmem:[#allocation215_spill] sm:$0xff] }
 0x6c6   :  { %v6979_v56 = vpop.xlane.xlu1 %6978  ;;  %v8306_v16 = vsel %vm7556_vm3, %v8305_v39, %v8301_v37  ;;  %v5826_v35 = vcombine.low %v14302_v31, %v14291_v24  ;;  %v6232_v26 = vcombine.low %v6188_v54, %v14298_v50  ;;  %v14322_v46 = vrot.slane %v5941_v1, %v10465_v21  ;;  %v16098_v37 = vld [vmem:[#allocation202_spill] sm:$0xff]  ;;  %v16102_v1 = vld [vmem:[#allocation31_spill] sm:$0xff] }
 0x6c7   :  { %7215 = vmax.xlane.f32.xlu0 %v7214_v13  ;;  %v8310_v0 = vrot.slane %v6979_v56, %v16011_v17  ;;  %v14285_v9 = vpop.xlane.xlu0 %6993  ;;  %v7154_v41 = vsel %vm6508_vm0, %v16096_v52, -inf  ;;  %v5923_v59 = vrot.slane %v5909_v3, %v10465_v21  ;;  %v6285_v13 = vcombine.high %v16098_v37, %v16097_v44  ;;  %v16104_v3 = vld [vmem:[#allocation230_spill] sm:$0xff] }
 0x6c8   :  { %v7235_v28 = vsel %vm6508_vm0, %v5826_v35, -inf  ;;  %v5691_v56 = vcombine.high %v14157_v30, %v14141_v34 }
 0x6c9   :  { %v8311_v7 = vsel %vm7563_vm4, %v8310_v0, %v8306_v16  ;;  %7152 = vmax.xlane.f32.xlu1 %v7151_v2  ;;  %v7196_v16 = vsel %vm6508_vm0, %v6232_v26, -inf  ;;  %v5962_v5 = vcombine.low %v5923_v59, %v14322_v46  ;;  %v16099_v0 = vld [vmem:[#allocation20_spill] sm:$0xff]  ;;  %v14352_v34 = vrot.slane %v6285_v13, %v15433_v60 }
 0x6ca   :  { %v6985_v15 = vpop.xlane.xlu1 %6984  ;;  %v8316_v45 = vsel %vm7570_vm5, %v8315_v27, %v8311_v7  ;;  %v6269_v7 = vcombine.high %v16102_v1, %v16101_v8  ;;  %v7256_v30 = vsel %vm6508_vm0, %v5691_v56, -inf  ;;  %v16107_v13 = vcombine.high %v16094_v36, %v16095_v38 }
 0x6cb   :  { %7254 = vmax.xlane.f32.xlu0 %v7253_v4  ;;  %v8320_v55 = vrot.slane %v6985_v15, %v11806_v14  ;;  %v16103_v15 = vld [vmem:[#allocation14_spill] sm:$0xff]  ;;  %v6233_v56 = vcombine.high %v6188_v54, %v14298_v50  ;;  %v6077_v1 = vcombine.high %v14215_v20, %v14201_v58  ;;  %v5827_v36 = vcombine.high %v14302_v31, %v14291_v24  ;;  %v16112_v50 = vld [vmem:[#allocation40_spill] sm:$0xff]  ;;  %v16113_v54 = vld [vmem:[#allocation219_spill] sm:$0xff] }
 0x6cc   :  { %v14307_v18 = vpop.xlane.xlu0 %6999  ;;  %v6283_v35 = vrot.slane %v6269_v7, %v15433_v60  ;;  %v6373_v38 = vcombine.high %v16113_v54, %v16112_v50  ;;  %v6045_v58 = vcombine.high %v14231_v19, %v14208_v29 }
 0x6cd   :  { %v8321_v61 = vsel %vm7577_vm6, %v8320_v55, %v8316_v45  ;;  %7194 = vmax.xlane.f32.xlu1 %v7193_v53  ;;  %v6237_v55 = vcombine.high %v16104_v3, %v16103_v15  ;;  %v7238_v45 = vsel %vm6508_vm0, %v5962_v5, -inf }
 0x6ce   :  { %v8326_v32 = vsel %vm7584_vm7, %v8325_v40, %v8321_v61  ;;  %v14325_v63 = vpop.xlane.xlu1 %6990  ;;  %v6367_v40 = vcombine.high %v14249_v22, %v14237_v43  ;;  %v6348_v43 = vcombine.low %v6283_v35, %v14352_v34  ;;  %v16105_v22 = vld [vmem:[#allocation42_spill] sm:$0xff]  ;;  %v6349_v29 = vcombine.high %v6283_v35, %v14352_v34 }
 0x6cf   :  { %7155 = vmax.xlane.f32.xlu0 %v7154_v41  ;;  %v14329_v51 = vsel %vm8799_vm10, %v8326_v32, %v14227_v23  ;;  %v16100_v23 = vld [vmem:[#allocation12_spill] sm:$0xff]  ;;  %v6097_v41 = vcombine.high %v14280_v10, %v14267_v33  ;;  %v6251_v26 = vrot.slane %v6237_v55, %v15433_v60  ;;  %v16106_v32 = vld [vmem:[#allocation58_spill] sm:$0xff] }
 0x6d0   :  { %v14331_v39 = vpop.xlane.xlu0 %7005  ;;  %v6253_v2 = vcombine.high %v16100_v23, %v16099_v0  ;;  %v6421_v44 = vcombine.high %v16106_v32, %v16105_v22  ;;  %v7175_v37 = vsel %vm6508_vm0, %v6367_v40, -inf  ;;  %v16108_v33 = vld [vmem:[#allocation64_spill] sm:$0xff]  ;;  %v16109_v10 = vld [vmem:[#allocation38_spill] sm:$0xff]  ;;  %v6356_v55 = vrot.slane %v6348_v43, %v10465_v21 }
 0x6d1   :  { %7236 = vmax.xlane.f32.xlu1 %v7235_v28  ;;  %v7178_v28 = vsel %vm6508_vm0, %v16107_v13, -inf  ;;  %v6389_v5 = vcombine.high %v16109_v10, %v16108_v33  ;;  %v16110_v0 = vld [vmem:[#allocation50_spill] sm:$0xff]  ;;  %v16111_v23 = vld [vmem:[#allocation52_spill] sm:$0xff]  ;;  %v7217_v3 = vsel %vm6508_vm0, %v6097_v41, -inf  ;;  %v5963_v40 = vcombine.high %v5923_v59, %v14322_v46 }
 0x6d2   :  { %v14345_v4 = vpop.xlane.xlu1 %6996  ;;  %v14359_v53 = vrot.slane %v6253_v2, %v15433_v60  ;;  %v6405_v2 = vcombine.high %v16111_v23, %v16110_v0  ;;  %v6435_v15 = vrot.slane %v6421_v44, %v15433_v60  ;;  %v7259_v41 = vsel %vm6508_vm0, %v5827_v36, -inf }
 0x6d3   :  { %7197 = vmax.xlane.f32.xlu0 %v7196_v16  ;;  %v6403_v20 = vrot.slane %v6389_v5, %v15433_v60  ;;  %v6387_v22 = vrot.slane %v6373_v38, %v15433_v60  ;;  %v6091_v59 = vrot.slane %v6077_v1, %v10465_v21  ;;  %v7262_v19 = vsel %vm6508_vm0, %v5963_v40, -inf }
 0x6d4   :  { %v14347_v27 = vpop.xlane.xlu0 %7011  ;;  %v6316_v16 = vcombine.low %v6251_v26, %v14359_v53  ;;  %v6419_v24 = vrot.slane %v6405_v2, %v15433_v60  ;;  %v6213_v60 = vcombine.high %v14257_v49, %v14242_v62  ;;  %v6363_v23 = vrot.slane %v6349_v29, %v10465_v21 }
 0x6d5   :  { %7257 = vmax.xlane.f32.xlu1 %v7256_v30  ;;  %v7220_v30 = vsel %vm6508_vm0, %v6233_v56, -inf  ;;  %v6317_v56 = vcombine.high %v6251_v26, %v14359_v53  ;;  %v6181_v53 = vcombine.high %v14270_v11, %v14254_v12  ;;  %v6453_v49 = vcombine.high %v6387_v22, %v6403_v20 }
 0x6d6   :  { %v14362_v61 = vpop.xlane.xlu1 %7002  ;;  %v6484_v32 = vcombine.low %v6419_v24, %v6435_v15  ;;  %v6485_v10 = vcombine.high %v6419_v24, %v6435_v15  ;;  %v6227_v54 = vrot.slane %v6213_v60, %v10465_v21 }
 0x6d7   :  { %7239 = vmax.xlane.f32.xlu0 %v7238_v45  ;;  %v6324_v45 = vrot.slane %v6316_v16, %v10465_v21  ;;  %v6331_v1 = vrot.slane %v6317_v56, %v10465_v21 }
 0x6d8   :  { %v14364_v52 = vpop.xlane.xlu0 %7017  ;;  %v6492_v35 = vrot.slane %v6484_v32, %v10465_v21  ;;  %v6499_v12 = vrot.slane %v6485_v10, %v10465_v21 }
 0x6d9   :  { %7176 = vmax.xlane.f32.xlu1 %v7175_v37  ;;  %v6368_v46 = vcombine.low %v6324_v45, %v6356_v55  ;;  %v6369_v44 = vcombine.high %v6324_v45, %v6356_v55  ;;  %v6452_v37 = vcombine.low %v6387_v22, %v6403_v20  ;;  %v6370_v15 = vcombine.low %v6331_v1, %v6363_v23 }
 0x6da   :  { %v14383_v8 = vpop.xlane.xlu1 %7008 }
 0x6db   :  { %7179 = vmax.xlane.f32.xlu0 %v7178_v28  ;;  %v6059_v28 = vrot.slane %v6045_v58, %v10465_v21  ;;  %v7199_v33 = vsel %vm6508_vm0, %v6368_v46, -inf  ;;  %v7223_v5 = vsel %vm6508_vm0, %v6369_v44, -inf  ;;  %v6460_v62 = vrot.slane %v6452_v37, %v10465_v21 }
 0x6dc   :  { %v14387_v7 = vpop.xlane.xlu0 %7023  ;;  %v7247_v20 = vsel %vm6508_vm0, %v6370_v15, -inf }
 0x6dd   :  { %7218 = vmax.xlane.f32.xlu1 %v7217_v3  ;;  %v6098_v34 = vcombine.low %v6059_v28, %v6091_v59  ;;  %v6099_v0 = vcombine.high %v6059_v28, %v6091_v59  ;;  %v6504_v50 = vcombine.low %v6460_v62, %v6492_v35  ;;  %v6195_v3 = vrot.slane %v6181_v53, %v10465_v21 }
 0x6de   :  { %v14402_v31 = vpop.xlane.xlu1 %7014  ;;  %v6505_v32 = vcombine.high %v6460_v62, %v6492_v35  ;;  %v8339_v35 = vrot.slane %v14345_v4, %v16008_v25 }
 0x6df   :  { %7221 = vmax.xlane.f32.xlu0 %v7220_v30  ;;  %v7241_v36 = vsel %vm6508_vm0, %v6098_v34, -inf  ;;  %v7265_v38 = vsel %vm6508_vm0, %v6099_v0, -inf  ;;  %v6467_v30 = vrot.slane %v6453_v49, %v10465_v21  ;;  %v7202_v40 = vsel %vm6508_vm0, %v6504_v50, -inf }
 0x6e0   :  { %v14406_v43 = vpop.xlane.xlu0 %7029  ;;  %v6234_v58 = vcombine.low %v6195_v3, %v6227_v54  ;;  %v6235_v44 = vcombine.high %v6195_v3, %v6227_v54  ;;  %v8330_v34 = vrot.slane %v14325_v63, %v15625_v6  ;;  %v8369_v10 = vrot.slane %v14402_v31, %v15625_v6 }
 0x6e1   :  { %7260 = vmax.xlane.f32.xlu1 %v7259_v41  ;;  %v6506_v24 = vcombine.low %v6467_v30, %v6499_v12  ;;  %v6507_v59 = vcombine.high %v6467_v30, %v6499_v12  ;;  %v8334_v0 = vrot.slane %v14285_v9, %v16009_v57  ;;  %v8373_v63 = vrot.slane %v14364_v52, %v16009_v57 }
 0x6e2   :  { %v14412_v13 = vpop.xlane.xlu1 %7020  ;;  %v7244_v22 = vsel %vm6508_vm0, %v6234_v58, -inf  ;;  %v7268_v60 = vsel %vm6508_vm0, %v6235_v44, -inf  ;;  %v8344_v52 = vrot.slane %v14307_v18, %v16012_v48  ;;  %v8383_v12 = vrot.slane %v14387_v7, %v16012_v48 }
 0x6e3   :  { %7263 = vmax.xlane.f32.xlu0 %v7262_v19  ;;  %v7250_v46 = vsel %vm6508_vm0, %v6506_v24, -inf  ;;  %v7226_v19 = vsel %vm6508_vm0, %v6505_v32, -inf  ;;  %v7274_v37 = vsel %vm6508_vm0, %v6507_v59, -inf  ;;  %v8378_v53 = vrot.slane %v14412_v13, %v16008_v25 }
 0x6e4   :  { %v14416_v16 = vpop.xlane.xlu0 %7035  ;;  %v8349_v13 = vrot.slane %v14362_v61, %v16011_v17  ;;  %v8354_v18 = vrot.slane %v14331_v39, %v11726_v42  ;;  %v8393_v59 = vrot.slane %v14406_v43, %v11726_v42 }
 0x6e5   :  { %7200 = vmax.xlane.f32.xlu1 %v7199_v33  ;;  %v6371_v33 = vcombine.high %v6331_v1, %v6363_v23  ;;  %v8335_v1 = vsel %vm7542_vm1, %v8334_v0, %v8330_v34 }
 0x6e6   :  { %v14426_v26 = vpop.xlane.xlu1 %7026  ;;  %v8340_v9 = vsel %vm7549_vm2, %v8339_v35, %v8335_v1 }
 0x6e7   :  { %7224 = vmax.xlane.f32.xlu0 %v7223_v5  ;;  %v7271_v4 = vsel %vm6508_vm0, %v6371_v33, -inf  ;;  %v8364_v33 = vrot.slane %v14347_v27, %v16014_v47 }
 0x6e8   :  { %v14429_v2 = vpop.xlane.xlu0 %7041 }
 0x6e9   :  { %7242 = vmax.xlane.f32.xlu1 %v7241_v36  ;;  %v8412_v31 = vrot.slane %v14429_v2, %v16009_v57  ;;  %v8374_v36 = vsel %vm7542_vm1, %v8373_v63, %v8369_v10 }
 0x6ea   :  { %v14436_v11 = vpop.xlane.xlu1 %7032  ;;  %v8379_v54 = vsel %vm7549_vm2, %v8378_v53, %v8374_v36 }
 0x6eb   :  { %7266 = vmax.xlane.f32.xlu0 %v7265_v38  ;;  %v8388_v38 = vrot.slane %v14426_v26, %v16011_v17  ;;  %v8384_v7 = vsel %vm7556_vm3, %v8383_v12, %v8379_v54  ;;  %v8398_v39 = vrot.slane %v14436_v11, %v11806_v14 }
 0x6ec   :  { %v14439_v55 = vpop.xlane.xlu0 %7047 }
 0x6ed   :  { %7203 = vmax.xlane.f32.xlu1 %v7202_v40  ;;  %v8345_v40 = vsel %vm7556_vm3, %v8344_v52, %v8340_v9  ;;  %v8422_v26 = vrot.slane %v14439_v55, %v16012_v48 }
 0x6ee   :  { %v7039_v45 = vpop.xlane.xlu1 %7038  ;;  %v8350_v58 = vsel %vm7563_vm4, %v8349_v13, %v8345_v40 }
 0x6ef   :  { %7248 = vmax.xlane.f32.xlu0 %v7247_v20  ;;  %v8408_v62 = vrot.slane %v7039_v45, %v15625_v6  ;;  %v8359_v20 = vrot.slane %v14383_v8, %v11806_v14  ;;  %v8355_v44 = vsel %vm7570_vm5, %v8354_v18, %v8350_v58 }
 0x6f0   :  { %v14444_v41 = vpop.xlane.xlu0 %7053 }
 0x6f1   :  { %7245 = vmax.xlane.f32.xlu1 %v7244_v22  ;;  %v8413_v15 = vsel %vm7542_vm1, %v8412_v31, %v8408_v62  ;;  %v8389_v22 = vsel %vm7563_vm4, %v8388_v38, %v8384_v7 }
 0x6f2   :  { %v7045_v29 = vpop.xlane.xlu1 %7044 }
 0x6f3   :  { %7251 = vmax.xlane.f32.xlu0 %v7250_v46  ;;  %v8417_v49 = vrot.slane %v7045_v29, %v16008_v25 }
 0x6f4   :  { %v14448_v21 = vpop.xlane.xlu0 %7059 }
 0x6f5   :  { %7227 = vmax.xlane.f32.xlu1 %v7226_v19  ;;  %v8418_v3 = vsel %vm7549_vm2, %v8417_v49, %v8413_v15 }
 0x6f6   :  { %v7051_v28 = vpop.xlane.xlu1 %7050  ;;  %v8423_v32 = vsel %vm7556_vm3, %v8422_v26, %v8418_v3 }
 0x6f7   :  { %7275 = vmax.xlane.f32.xlu0 %v7274_v37  ;;  %v8427_v61 = vrot.slane %v7051_v28, %v16011_v17  ;;  %v8432_v37 = vrot.slane %v14444_v41, %v11726_v42  ;;  %v8360_v28 = vsel %vm7577_vm6, %v8359_v20, %v8355_v44  ;;  %v8403_v41 = vrot.slane %v14416_v16, %v16014_v47 }
 0x6f8   :  { %v7066_v56 = vpop.xlane.xlu0 %7065  ;;  %v8365_v62 = vsel %vm7584_vm7, %v8364_v33, %v8360_v28 }
 0x6f9   :  { %7269 = vmax.xlane.f32.xlu1 %v7268_v60  ;;  %v8451_v24 = vrot.slane %v7066_v56, %v16009_v57  ;;  %v8428_v8 = vsel %vm7563_vm4, %v8427_v61, %v8423_v32  ;;  %v8394_v56 = vsel %vm7570_vm5, %v8393_v59, %v8389_v22  ;;  %v8819_v9 = vsel %vm8801_vm11, %v8365_v62, %v14329_v51 }
 0x6fa   :  { %v7057_v5 = vpop.xlane.xlu1 %7056  ;;  %v8399_v34 = vsel %vm7577_vm6, %v8398_v39, %v8394_v56  ;;  %v8433_v35 = vsel %vm7570_vm5, %v8432_v37, %v8428_v8 }
 0x6fb   :  { %v8437_v29 = vrot.slane %v7057_v5, %v11806_v14  ;;  %v8404_v63 = vsel %vm7584_vm7, %v8403_v41, %v8399_v34 }
 0x6fc   :  { %v7072_v23 = vpop.xlane.xlu0 %7071 }
 0x6fd   :  { %7272 = vmax.xlane.f32.xlu1 %v7271_v4  ;;  %v8461_v60 = vrot.slane %v7072_v23, %v16012_v48  ;;  %v8438_v0 = vsel %vm7577_vm6, %v8437_v29, %v8433_v35  ;;  %v8442_v23 = vrot.slane %v14448_v21, %v16014_v47  ;;  %v8820_v21 = vsel %vm8803_vm12, %v8404_v63, %v8819_v9 }
 0x6fe   :  { %v7063_v50 = vpop.xlane.xlu1 %7062 }
 0x6ff   :  { %v8447_v30 = vrot.slane %v7063_v50, %v15625_v6  ;;  %v8443_v1 = vsel %vm7584_vm7, %v8442_v23, %v8438_v0 }
 0x700   :  { %v7078_v2 = vpop.xlane.xlu0 %7077  ;;  %v8821_v52 = vsel %vm8805_vm13, %v8443_v1, %v8820_v21 }
 0x701   :  { %v8452_v19 = vsel %vm7542_vm1, %v8451_v24, %v8447_v30  ;;  %v8471_v49 = vrot.slane %v7078_v2, %v11726_v42 }
 0x702   :  { %v7069_v45 = vpop.xlane.xlu1 %7068 }
 0x703   :  { %v8456_v46 = vrot.slane %v7069_v45, %v16008_v25 }
 0x704   :  { %v7084_v55 = vpop.xlane.xlu0 %7083 }
 0x705   :  { %v8457_v11 = vsel %vm7549_vm2, %v8456_v46, %v8452_v19  ;;  %v8481_v13 = vrot.slane %v7084_v55, %v16014_v47 }
 0x706   :  { %v7075_v43 = vpop.xlane.xlu1 %7074  ;;  %v8462_v53 = vsel %vm7556_vm3, %v8461_v60, %v8457_v11 }
 0x707   :  { %v8466_v10 = vrot.slane %v7075_v43, %v16011_v17 }
 0x708   :  { %v7090_v5 = vpop.xlane.xlu0 %7089 }
 0x709   :  { %v8467_v27 = vsel %vm7563_vm4, %v8466_v10, %v8462_v53  ;;  %v8490_v15 = vrot.slane %v7090_v5, %v16009_v57 }
 0x70a   :  { %v7081_v4 = vpop.xlane.xlu1 %7080  ;;  %v8472_v36 = vsel %vm7570_vm5, %v8471_v49, %v8467_v27 }
 0x70b   :  { %v8476_v16 = vrot.slane %v7081_v4, %v11806_v14 }
 0x70c   :  { %v7096_v31 = vpop.xlane.xlu0 %7095 }
 0x70d   :  { %v8477_v50 = vsel %vm7577_vm6, %v8476_v16, %v8472_v36  ;;  %v8500_v40 = vrot.slane %v7096_v31, %v16012_v48 }
 0x70e   :  { %v8482_v54 = vsel %vm7584_vm7, %v8481_v13, %v8477_v50  ;;  %v7087_v38 = vpop.xlane.xlu1 %7086 }
 0x70f   :  { %v8822_v2 = vsel %vm8807_vm14, %v8482_v54, %v8821_v52  ;;  %v8486_v12 = vrot.slane %v7087_v38, %v15625_v6 }
 0x710   :  { %v7102_v51 = vpop.xlane.xlu0 %7101  ;;  %8837 = vst.msk [vmem:[#allocation6 + $0x10] sm:$0xff] %vm8834_vm15, %v8822_v2 }
 0x711   :  { %v8491_v3 = vsel %vm7542_vm1, %v8490_v15, %v8486_v12  ;;  %v8510_v45 = vrot.slane %v7102_v51, %v11726_v42 }
 0x712   :  { %v7093_v61 = vpop.xlane.xlu1 %7092 }
 0x713   :  { %v8495_v30 = vrot.slane %v7093_v61, %v16008_v25 }
 0x714   :  { %v7108_v18 = vpop.xlane.xlu0 %7107 }
 0x715   :  { %v8496_v26 = vsel %vm7549_vm2, %v8495_v30, %v8491_v3  ;;  %v8520_v59 = vrot.slane %v7108_v18, %v16014_v47 }
 0x716   :  { %v7099_v58 = vpop.xlane.xlu1 %7098  ;;  %v8501_v20 = vsel %vm7556_vm3, %v8500_v40, %v8496_v26 }
 0x717   :  { %v8505_v7 = vrot.slane %v7099_v58, %v16011_v17 }
 0x718   :  { %v7114_v24 = vpop.xlane.xlu0 %7113 }
 0x719   :  { %v8506_v22 = vsel %vm7563_vm4, %v8505_v7, %v8501_v20  ;;  %v8529_v44 = vrot.slane %v7114_v24, %v16009_v57 }
 0x71a   :  { %v7105_v39 = vpop.xlane.xlu1 %7104  ;;  %v8511_v32 = vsel %vm7570_vm5, %v8510_v45, %v8506_v22 }
 0x71b   :  { %v8515_v46 = vrot.slane %v7105_v39, %v11806_v14 }
 0x71c   :  { %v7120_v55 = vpop.xlane.xlu0 %7119 }
 0x71d   :  { %v8516_v8 = vsel %vm7577_vm6, %v8515_v46, %v8511_v32  ;;  %v8539_v33 = vrot.slane %v7120_v55, %v16012_v48 }
 0x71e   :  { %v8521_v29 = vsel %vm7584_vm7, %v8520_v59, %v8516_v8  ;;  %v7111_v19 = vpop.xlane.xlu1 %7110 }
 0x71f   :  { %v8525_v37 = vrot.slane %v7111_v19, %v15625_v6 }
 0x720   :  { %v7126_v11 = vpop.xlane.xlu0 %7125 }
 0x721   :  { %v8530_v28 = vsel %vm7542_vm1, %v8529_v44, %v8525_v37  ;;  %v8549_v0 = vrot.slane %v7126_v11, %v11726_v42 }
 0x722   :  { %v7117_v56 = vpop.xlane.xlu1 %7116 }
 0x723   :  { %v8534_v60 = vrot.slane %v7117_v56, %v16008_v25 }
 0x724   :  { %v7132_v43 = vpop.xlane.xlu0 %7131 }
 0x725   :  { %v8535_v34 = vsel %vm7549_vm2, %v8534_v60, %v8530_v28  ;;  %v8559_v49 = vrot.slane %v7132_v43, %v16014_v47 }
 0x726   :  { %v7123_v35 = vpop.xlane.xlu1 %7122  ;;  %v8540_v10 = vsel %vm7556_vm3, %v8539_v33, %v8535_v34 }
 0x727   :  { %v8544_v5 = vrot.slane %v7123_v35, %v16011_v17 }
 0x728   :  { %v7138_v41 = vpop.xlane.xlu0 %7137 }
 0x729   :  { %v8545_v53 = vsel %vm7563_vm4, %v8544_v5, %v8540_v10  ;;  %v8568_v31 = vrot.slane %v7138_v41, %v16009_v57 }
 0x72a   :  { %v7129_v62 = vpop.xlane.xlu1 %7128  ;;  %v8550_v23 = vsel %vm7570_vm5, %v8549_v0, %v8545_v53 }
 0x72b   :  { %v8554_v27 = vrot.slane %v7129_v62, %v11806_v14 }
 0x72c   :  { %v7144_v63 = vpop.xlane.xlu0 %7143 }
 0x72d   :  { %v8555_v4 = vsel %vm7577_vm6, %v8554_v27, %v8550_v23  ;;  %v8578_v38 = vrot.slane %v7144_v63, %v16012_v48 }
 0x72e   :  { %v8560_v1 = vsel %vm7584_vm7, %v8559_v49, %v8555_v4  ;;  %v7135_v16 = vpop.xlane.xlu1 %7134 }
 0x72f   :  { %v8564_v9 = vrot.slane %v7135_v16, %v15625_v6  ;;  %v8823_v36 = vsel %vm8795_vm8, %v8560_v1, %v8521_v29 }
 0x730   :  { %v7159_v13 = vpop.xlane.xlu0 %7158 }
 0x731   :  { %v8569_v21 = vsel %vm7542_vm1, %v8568_v31, %v8564_v9  ;;  %v8603_v18 = vrot.slane %v7159_v13, %v15625_v6 }
 0x732   :  { %v7141_v50 = vpop.xlane.xlu1 %7140 }
 0x733   :  { %v8573_v52 = vrot.slane %v7141_v50, %v16008_v25 }
 0x734   :  { %v7165_v54 = vpop.xlane.xlu0 %7164 }
 0x735   :  { %v8574_v15 = vsel %vm7549_vm2, %v8573_v52, %v8569_v21  ;;  %v8612_v58 = vrot.slane %v7165_v54, %v16008_v25 }
 0x736   :  { %v7147_v2 = vpop.xlane.xlu1 %7146  ;;  %v8579_v12 = vsel %vm7556_vm3, %v8578_v38, %v8574_v15 }
 0x737   :  { %v8583_v51 = vrot.slane %v7147_v2, %v16011_v17 }
 0x738   :  { %v7186_v3 = vpop.xlane.xlu0 %7185 }
 0x739   :  { %v8584_v61 = vsel %vm7563_vm4, %v8583_v51, %v8579_v12  ;;  %v8646_v45 = vrot.slane %v7186_v3, %v16009_v57 }
 0x73a   :  { %v7162_v30 = vpop.xlane.xlu1 %7161 }
 0x73b   :  { %v8607_v40 = vrot.slane %v7162_v30, %v16009_v57 }
 0x73c   :  { %v7189_v26 = vpop.xlane.xlu0 %7188 }
 0x73d   :  { %v8608_v20 = vsel %vm7542_vm1, %v8607_v40, %v8603_v18  ;;  %v8651_v32 = vrot.slane %v7189_v26, %v16008_v25 }
 0x73e   :  { %v7183_v7 = vpop.xlane.xlu1 %7182  ;;  %v8613_v24 = vsel %vm7549_vm2, %v8612_v58, %v8608_v20 }
 0x73f   :  { %v8642_v22 = vrot.slane %v7183_v7, %v15625_v6 }
 0x740   :  { %v14587_v39 = vpop.xlane.xlu0 %7209 }
 0x741   :  { %v8647_v46 = vsel %vm7542_vm1, %v8646_v45, %v8642_v22 }
 0x742   :  { %v7168_v55 = vpop.xlane.xlu1 %7167  ;;  %v8652_v59 = vsel %vm7549_vm2, %v8651_v32, %v8647_v46 }
 0x743   :  { %v8617_v8 = vrot.slane %v7168_v55, %v16012_v48 }
 0x744   :  { %v7171_v29 = vpop.xlane.xlu0 %7170 }
 0x745   :  { %v8618_v19 = vsel %vm7556_vm3, %v8617_v8, %v8613_v24  ;;  %v8622_v16 = vrot.slane %v7171_v29, %v16011_v17 }
 0x746   :  { %v14594_v44 = vpop.xlane.xlu1 %7206 }
 0x747   :  { %v8623_v21 = vsel %vm7563_vm4, %v8622_v16, %v8618_v19 }
 0x748   :  { %v14596_v37 = vpop.xlane.xlu0 %7212 }
 0x74a   :  { %v7150_v11 = vpop.xlane.xlu1 %7149 }
 0x74b   :  { %v8588_v10 = vrot.slane %v7150_v11, %v11726_v42  ;;  %v8681_v11 = vrot.slane %v14594_v44, %v15625_v6 }
 0x74c   :  { %v14598_v28 = vpop.xlane.xlu0 %7233 }
 0x74d   :  { %v8589_v53 = vsel %vm7570_vm5, %v8588_v10, %v8584_v61  ;;  %v8685_v10 = vrot.slane %v14587_v39, %v16009_v57  ;;  %v8724_v44 = vrot.slane %v14598_v28, %v16009_v57 }
 0x74e   :  { %v7192_v56 = vpop.xlane.xlu1 %7191 }
 0x74f   :  { %v8656_v40 = vrot.slane %v7192_v56, %v16012_v48 }
 0x750   :  { %v7174_v60 = vpop.xlane.xlu0 %7173 }
 0x751   :  { %v8627_v9 = vrot.slane %v7174_v60, %v11726_v42  ;;  %v8657_v45 = vsel %vm7556_vm3, %v8656_v40, %v8652_v59  ;;  %v8690_v59 = vrot.slane %v14596_v37, %v16008_v25  ;;  %v8686_v37 = vsel %vm7542_vm1, %v8685_v10, %v8681_v11 }
 0x752   :  { %v14600_v43 = vpop.xlane.xlu1 %7230 }
 0x753   :  { %v8628_v54 = vsel %vm7570_vm5, %v8627_v9, %v8623_v21  ;;  %v8691_v39 = vsel %vm7549_vm2, %v8690_v59, %v8686_v37 }
 0x754   :  { %v14602_v33 = vpop.xlane.xlu0 %7215 }
 0x756   :  { %v7153_v34 = vpop.xlane.xlu1 %7152 }
 0x757   :  { %v8593_v5 = vrot.slane %v7153_v34, %v11806_v14  ;;  %v8720_v34 = vrot.slane %v14600_v43, %v15625_v6 }
 0x758   :  { %v14604_v35 = vpop.xlane.xlu0 %7254 }
 0x759   :  { %v8594_v23 = vsel %vm7577_vm6, %v8593_v5, %v8589_v53  ;;  %v8695_v5 = vrot.slane %v14602_v33, %v16012_v48  ;;  %v8725_v33 = vsel %vm7542_vm1, %v8724_v44, %v8720_v34 }
 0x75a   :  { %v7195_v41 = vpop.xlane.xlu1 %7194 }
 0x75b   :  { %v8661_v26 = vrot.slane %v7195_v41, %v16011_v17 }
 0x75c   :  { %v7156_v0 = vpop.xlane.xlu0 %7155 }
 0x75d   :  { %v8598_v62 = vrot.slane %v7156_v0, %v16014_v47  ;;  %v8662_v22 = vsel %vm7563_vm4, %v8661_v26, %v8657_v45 }
 0x75e   :  { %v7237_v63 = vpop.xlane.xlu1 %7236 }
 0x75f   :  { %v8599_v27 = vsel %vm7584_vm7, %v8598_v62, %v8594_v23  ;;  %v8729_v41 = vrot.slane %v7237_v63, %v16008_v25 }
 0x760   :  { %v8824_v49 = vsel %vm8797_vm9, %v8599_v27, %v8823_v36  ;;  %v7198_v4 = vpop.xlane.xlu0 %7197 }
 0x761   :  { %v8666_v20 = vrot.slane %v7198_v4, %v11726_v42  ;;  %v8730_v4 = vsel %vm7549_vm2, %v8729_v41, %v8725_v33 }
 0x762   :  { %v14613_v1 = vpop.xlane.xlu1 %7257 }
 0x763   :  { %v8667_v46 = vsel %vm7570_vm5, %v8666_v20, %v8662_v22  ;;  %v8763_v16 = vrot.slane %v14613_v1, %v16009_v57 }
 0x764   :  { %v7240_v31 = vpop.xlane.xlu0 %7239 }
 0x765   :  { %v8734_v0 = vrot.slane %v7240_v31, %v16012_v48 }
 0x766   :  { %v7177_v13 = vpop.xlane.xlu1 %7176 }
 0x767   :  { %v8632_v50 = vrot.slane %v7177_v13, %v11806_v14  ;;  %v8735_v9 = vsel %vm7556_vm3, %v8734_v0, %v8730_v4 }
 0x768   :  { %v7180_v52 = vpop.xlane.xlu0 %7179 }
 0x769   :  { %v8637_v38 = vrot.slane %v7180_v52, %v16014_v47  ;;  %v8633_v36 = vsel %vm7577_vm6, %v8632_v50, %v8628_v54  ;;  %v8759_v50 = vrot.slane %v14604_v35, %v15625_v6 }
 0x76a   :  { %v7219_v2 = vpop.xlane.xlu1 %7218 }
 0x76b   :  { %v8638_v15 = vsel %vm7584_vm7, %v8637_v38, %v8633_v36  ;;  %v8700_v53 = vrot.slane %v7219_v2, %v16011_v17  ;;  %v8764_v2 = vsel %vm7542_vm1, %v8763_v16, %v8759_v50 }
 0x76c   :  { %v8825_v12 = vsel %vm8799_vm10, %v8638_v15, %v8824_v49  ;;  %v7222_v51 = vpop.xlane.xlu0 %7221  ;;  %v8696_v49 = vsel %vm7556_vm3, %v8695_v5, %v8691_v39 }
 0x76d   :  { %v8705_v62 = vrot.slane %v7222_v51, %v11726_v42  ;;  %v8701_v13 = vsel %vm7563_vm4, %v8700_v53, %v8696_v49 }
 0x76e   :  { %v7261_v3 = vpop.xlane.xlu1 %7260 }
 0x76f   :  { %v8768_v21 = vrot.slane %v7261_v3, %v16008_v25  ;;  %v8706_v52 = vsel %vm7570_vm5, %v8705_v62, %v8701_v13 }
 0x770   :  { %v7264_v61 = vpop.xlane.xlu0 %7263 }
 0x771   :  { %v8773_v54 = vrot.slane %v7264_v61, %v16012_v48  ;;  %v8769_v35 = vsel %vm7549_vm2, %v8768_v21, %v8764_v2 }
 0x772   :  { %v7201_v30 = vpop.xlane.xlu1 %7200 }
 0x773   :  { %v8671_v24 = vrot.slane %v7201_v30, %v11806_v14  ;;  %v8774_v3 = vsel %vm7556_vm3, %v8773_v54, %v8769_v35 }
 0x774   :  { %v7225_v18 = vpop.xlane.xlu0 %7224 }
 0x775   :  { %v8672_v8 = vsel %vm7577_vm6, %v8671_v24, %v8667_v46  ;;  %v8710_v27 = vrot.slane %v7225_v18, %v11806_v14 }
 0x776   :  { %v7243_v58 = vpop.xlane.xlu1 %7242 }
 0x777   :  { %v8739_v43 = vrot.slane %v7243_v58, %v16011_v17  ;;  %v8711_v57 = vsel %vm7577_vm6, %v8710_v27, %v8706_v52 }
 0x778   :  { %v7267_v7 = vpop.xlane.xlu0 %7266 }
 0x779   :  { %v8740_v38 = vsel %vm7563_vm4, %v8739_v43, %v8735_v9  ;;  %v8778_v1 = vrot.slane %v7267_v7, %v16011_v17 }
 0x77a   :  { %v7204_v32 = vpop.xlane.xlu1 %7203 }
 0x77b   :  { %v8676_v55 = vrot.slane %v7204_v32, %v16014_v47  ;;  %v8779_v30 = vsel %vm7563_vm4, %v8778_v1, %v8774_v3 }
 0x77c   :  { %v7249_v19 = vpop.xlane.xlu0 %7248 }
 0x77d   :  { %v8677_v29 = vsel %vm7584_vm7, %v8676_v55, %v8672_v8  ;;  %v8749_v25 = vrot.slane %v7249_v19, %v11806_v14 }
 0x77e   :  { %v8826_v56 = vsel %vm8801_vm11, %v8677_v29, %v8825_v12  ;;  %v7246_v60 = vpop.xlane.xlu1 %7245 }
 0x77f   :  { %v8744_v63 = vrot.slane %v7246_v60, %v11726_v42 }
 0x780   :  { %v7252_v28 = vpop.xlane.xlu0 %7251 }
 0x781   :  { %v8745_v15 = vsel %vm7570_vm5, %v8744_v63, %v8740_v38  ;;  %v8754_v48 = vrot.slane %v7252_v28, %v16014_v47 }
 0x782   :  { %v7228_v23 = vpop.xlane.xlu1 %7227  ;;  %v8750_v61 = vsel %vm7577_vm6, %v8749_v25, %v8745_v15 }
 0x783   :  { %v8715_v31 = vrot.slane %v7228_v23, %v16014_v47  ;;  %v8755_v58 = vsel %vm7584_vm7, %v8754_v48, %v8750_v61 }
 0x784   :  { %v7276_v51 = vpop.xlane.xlu0 %7275 }
 0x785   :  { %v8716_v12 = vsel %vm7584_vm7, %v8715_v31, %v8711_v57 }
 0x786   :  { %v7270_v36 = vpop.xlane.xlu1 %7269  ;;  %v8827_v18 = vsel %vm8803_vm12, %v8716_v12, %v8826_v56 }
 0x787   :  { %v8783_v6 = vrot.slane %v7270_v36, %v11726_v42  ;;  %v8793_v42 = vrot.slane %v7276_v51, %v16014_v47  ;;  %v8828_v7 = vsel %vm8805_vm13, %v8755_v58, %v8827_v18 }
 0x789   :  { %v8784_v26 = vsel %vm7570_vm5, %v8783_v6, %v8779_v30 }
 0x78a   :  { %v7273_v17 = vpop.xlane.xlu1 %7272 }
 0x78b   :  { %v8788_v40 = vrot.slane %v7273_v17, %v11806_v14 }
 0x78d   :  { %v8789_v20 = vsel %vm7577_vm6, %v8788_v40, %v8784_v26 }
 0x78e   :  { %v8794_v24 = vsel %vm7584_vm7, %v8793_v42, %v8789_v20 }
 0x78f   :  { %v8829_v45 = vsel %vm8807_vm14, %v8794_v24, %v8828_v7 }
 0x790   :  { %8838 = vst.msk [vmem:[#allocation6 + $0x18] sm:$0xff] %vm8834_vm15, %v8829_v45 }
 0x791   :  { %9096 = shalt.err (!%p9093_p12)
}
 0x792   :  { %s9097_s30 = scalar_lea.hbm %s14713_s6, 512 }
 0x793   :  { %p9098_p13 = scmp.ne.s32.totalorder %s14713_s6, %s9097_s30  ;;  %p9101_p0 = scmp.lt.u32.totalorder %s9097_s30, %s14713_s6 }
 0x795   :  { %p9103_p1 = pnand %p9101_p0, %p9098_p13 }
 0x797   :  { %9106 = shalt.err (!%p9103_p1)
}
 0x798   :  { %s16114_s12 = smov 128  }
 0x799   :  { %8850 = dma.vmem_to_hbm [thread:$0]  %s8845_s20, 512, %s14713_s6, [#allocation5], %s16114_s12, %s16114_s12, %s9113_s8  }
 0x79a   :  { %9109 = dma.done.wait [#allocation5], 512  }
 0x79b   :  { %9110 = vsyncadd [#allocation5], 4294966784 }
 0x79c   :  { %8854 = vsyncpa [#allocation4], 1 }
 0x79d   :  { %8855 = vsyncpa [#allocation5], 1 }

</bundles_post_ra>
